<compile_context>
chip_gen: v7x
topology: tpu7x:2x2x1
jax: 0.10.0
libtpu: 0.0.40
codegen_flags: <defaults>
</compile_context>

<pallas_src>
import math
import functools

import jax
import jax.numpy as jnp
from jax.experimental import pallas as pl
from jax.experimental.pallas import tpu as pltpu

NUM_GROUPS = 8  # matches the PyTorch module's `num_groups`


# ----------------------------- Pallas kernel --------------------------------

def _down_block_kernel(xf_ref, mask_ref, gmat_ref,
                       w1_ref, b1_ref, g1_ref, be1_ref,
                       w3x_ref, w3h_ref, b3_ref, g3_ref, be3_ref,
                       w2x_ref, w2h1_ref, w2h2_ref, b2_ref,
                       o_ref, h1f_ref, *, H, W):
    """Fully fused DownBlock for one sample.

    Activations live in 'padded-flat' layout: the (H+2, W+2, C) zero-padded image
    flattened to (P2, C).  A 3x3 tap (kh, kw) is a contiguous row-slice of length
    M = H*(W+2), so each conv is 9 accumulating MXU dots (no im2col, no in-kernel
    reshapes).  Rows that fall on width-pad columns are garbage; `mask` zeroes them
    for GroupNorm statistics and before they are re-used as conv padding.
    """
    Wp = W + 2
    M = H * Wp                      # rows actually computed per conv
    q0 = Wp + 1                     # flat index of pixel (0, 0) == padded (1, 1)
    C1 = xf_ref.shape[2]
    Ch = w1_ref.shape[1]

    f32 = jnp.float32
    bf16 = jnp.bfloat16

    mask = mask_ref[...]            # (M, 1)  f32: 1.0 at valid pixels, 0.0 at pad cols
    gmat = gmat_ref[...]            # (Ch, Ch) f32: block-diag ones / (H*W*group_size)

    def x_tap(t):                   # tap t = 3*kh + kw of the input image
        start = (t // 3) * Wp + (t % 3)
        return xf_ref[0, pl.ds(start, M), :].astype(bf16)        # (M, C1) bf16

    def h_tap(t):                   # tap of the staged (padded-flat) h1
        start = (t // 3) * Wp + (t % 3)
        return h1f_ref[pl.ds(start, M), :].astype(bf16)          # (M, Ch) bf16

    def conv9(tap_fn, w_ref, cin):
        acc = jnp.zeros((M, Ch), f32)
        for t in range(9):          # 9 accumulating MXU dots, f32 accumulation
            wt = w_ref[t * cin:(t + 1) * cin, :]                 # (cin, Ch) bf16
            acc = acc + jnp.dot(tap_fn(t), wt, preferred_element_type=f32)
        return acc

    def elu(y):
        return jnp.where(y > 0, y, jnp.exp(jnp.minimum(y, 0.0)) - 1.0)

    def group_norm(y, gamma, beta):
        # Vectorized GroupNorm: group stats via one (1,Ch)x(Ch,Ch) averaging matmul,
        # then a single per-channel fused scale/shift over the whole tile.
        ym = y * mask
        s1 = jnp.sum(ym, axis=0, keepdims=True)                  # (1, Ch)
        s2 = jnp.sum(ym * ym, axis=0, keepdims=True)             # (1, Ch)
        mean_c = jnp.dot(s1, gmat, preferred_element_type=f32)   # per-channel group mean
        esq_c = jnp.dot(s2, gmat, preferred_element_type=f32)    # per-channel group E[y^2]
        var_c = jnp.maximum(esq_c - mean_c * mean_c, 0.0)        # biased var (torch GN)
        rstd_c = jax.lax.rsqrt(var_c + 1e-5)
        scale = gamma * rstd_c
        shift = beta - mean_c * scale
        return y * scale + shift

    # ---- conv_1: Conv3x3(x) -> ELU -> GroupNorm ----------------------------
    y1 = conv9(x_tap, w1_ref, C1) + b1_ref[...]
    h1 = group_norm(elu(y1), g1_ref[...], be1_ref[...]) * mask   # zero at pad columns

    # Stage h1 in padded-flat layout so conv_3 can read its halo taps from VMEM.
    h1f_ref[...] = jnp.zeros_like(h1f_ref)
    h1f_ref[pl.ds(q0, M), :] = h1

    # ---- conv_3: Conv3x3([x, h1]) -> ELU -> GroupNorm (split-weight, no concat) ----
    y2 = conv9(x_tap, w3x_ref, C1) + conv9(h_tap, w3h_ref, Ch) + b3_ref[...]
    h2 = group_norm(elu(y2), g3_ref[...], be3_ref[...])

    # ---- conv_2: Conv1x1([x, h1, h2]) (split-weight, no concat) -------------------
    xc = xf_ref[0, pl.ds(q0, M), :].astype(bf16)                 # center tap of x
    out = (jnp.dot(xc, w2x_ref[...], preferred_element_type=f32)
           + jnp.dot(h1.astype(bf16), w2h1_ref[...], preferred_element_type=f32)
           + jnp.dot(h2.astype(bf16), w2h2_ref[...], preferred_element_type=f32)
           + b2_ref[...])
    o_ref[0] = out.astype(o_ref.dtype)                           # single store


# ------------------------------ JAX glue ------------------------------------

def _down_block_pallas(x_nhwc, p):
    """Run the fused DownBlock kernel. x_nhwc: (N, H, W, Cin) f32 -> (N, H, W, Cout)."""
    N, H, W, C1 = x_nhwc.shape
    Ch = p["w1"].shape[1]
    Cout = p["w2x"].shape[1]

    Wp = W + 2
    M = H * Wp
    P_pad = (H + 2) * Wp
    P2 = ((P_pad + 2 + 7) // 8) * 8          # room for furthest tap slice, 8-aligned

    # Padded-flat input: only ~1.4x the raw bytes (vs 9x for HBM im2col).
    xp = jnp.pad(x_nhwc, ((0, 0), (1, 1), (1, 1), (0, 0)))
    xf = xp.reshape(N, P_pad, C1)
    xf = jnp.pad(xf, ((0, 0), (0, P2 - P_pad), (0, 0)))

    # Valid-row mask (rows on width-pad columns are garbage in the flat layout).
    idx = jnp.arange(M, dtype=jnp.int32)
    maskf = ((idx % Wp) < W).astype(jnp.float32).reshape(M, 1)

    # Block-diagonal group-averaging matrix (folds the 1/count of GroupNorm stats).
    gs = Ch // NUM_GROUPS
    gid = jnp.arange(Ch, dtype=jnp.int32) // gs
    gmat = (gid[:, None] == gid[None, :]).astype(jnp.float32) / float(H * W * gs)

    bfw = lambda w: w.astype(jnp.bfloat16)               # matmul operands -> bf16
    row = lambda v: v.reshape(1, -1).astype(jnp.float32)  # bias/gamma/beta stay f32

    kernel = functools.partial(_down_block_kernel, H=H, W=W)
    full = lambda shape: pl.BlockSpec(shape, lambda n, _s=len(shape): (0,) * _s)

    # TODO(synk): for large H*W the whole sample no longer fits VMEM (esp. v7x's 64 MiB)
    # and N=2 gives only 2 grid steps; add an HW-tiled grid axis with two-pass
    # (accumulate-then-normalize) GroupNorm statistics.
    out_flat = pl.pallas_call(
        kernel,
        out_shape=jax.ShapeDtypeStruct((N, M, Cout), jnp.float32),
        grid_spec=pltpu.PrefetchScalarGridSpec(
            num_scalar_prefetch=0,
            grid=(N,),
            in_specs=[
                pl.BlockSpec((1, P2, C1), lambda n: (n, 0, 0)),   # padded-flat input
                full((M, 1)),                                     # valid-row mask
                full((Ch, Ch)),                                   # group-averaging mat
                full((9 * C1, Ch)), full((1, Ch)), full((1, Ch)), full((1, Ch)),  # conv_1
                full((9 * C1, Ch)), full((9 * Ch, Ch)),                            # conv_3 w
                full((1, Ch)), full((1, Ch)), full((1, Ch)),                       # conv_3 b/gn
                full((C1, Cout)), full((Ch, Cout)), full((Ch, Cout)), full((1, Cout)),  # conv_2
            ],
            out_specs=pl.BlockSpec((1, M, Cout), lambda n: (n, 0, 0)),
            scratch_shapes=[pltpu.VMEM((P2, Ch), jnp.float32)],   # padded-flat h1
        ),
        compiler_params=pltpu.CompilerParams(dimension_semantics=("parallel",)),
    )(
        xf, maskf, gmat,
        bfw(p["w1"]), row(p["b1"]), row(p["g1"]), row(p["be1"]),
        bfw(p["w3x"]), bfw(p["w3h"]), row(p["b3"]), row(p["g3"]), row(p["be3"]),
        bfw(p["w2x"]), bfw(p["w2h1"]), bfw(p["w2h2"]), row(p["b2"]),
    )
    # Crop the width-pad columns (garbage rows) and return NHWC.
    return out_flat.reshape(N, H, Wp, Cout)[:, :, :W, :]


def bilinear_downsample(x_nchw, scale=0.7):
    """F.interpolate(scale_factor=0.7, mode='bilinear', align_corners=False,
    recompute_scale_factor=None): out = floor(in*scale); source index uses 1/scale."""
    N, C, H, W = x_nchw.shape
    out_h = int(math.floor(H * scale))
    out_w = int(math.floor(W * scale))
    r = 1.0 / scale

    def src_index(out_size, in_size):
        d = jnp.arange(out_size, dtype=jnp.float32)
        src = r * (d + 0.5) - 0.5
        src = jnp.maximum(src, 0.0)
        i0 = jnp.clip(jnp.floor(src).astype(jnp.int32), 0, in_size - 1)
        i1 = jnp.minimum(i0 + 1, in_size - 1)
        l1 = src - i0.astype(jnp.float32)
        l0 = 1.0 - l1
        return i0, i1, l0, l1

    h0, h1, lh0, lh1 = src_index(out_h, H)
    w0, w1, lw0, lw1 = src_index(out_w, W)
    top = (x_nchw[:, :, h0, :] * lh0[None, None, :, None]
           + x_nchw[:, :, h1, :] * lh1[None, None, :, None])
    out = (top[:, :, :, w0] * lw0[None, None, None, :]
           + top[:, :, :, w1] * lw1[None, None, None, :])
    return out


# ------------------------------ DownBlock -----------------------------------

def init_params(key, in_size, h_size, out_size):
    """Weights stored directly in matmul layout; conv weights split per input branch
    (equivalent parameterization of the conv-over-concat in the PyTorch module)."""
    ks = jax.random.split(key, 9)
    c1, ch = in_size, h_size
    p = {
        # conv_1: Conv3x3Block(in_size -> h_size); weight laid out (kh,kw,cin) x cout
        "w1":  0.1 * jax.random.normal(ks[0], (9 * c1, ch), jnp.float32),
        "b1":  0.01 * jax.random.normal(ks[1], (ch,), jnp.float32),
        "g1":  jnp.ones((ch,), jnp.float32),
        "be1": jnp.zeros((ch,), jnp.float32),
        # conv_3: Conv3x3Block(in_size + h_size -> h_size), split into x / h1 branches
        "w3x": 0.1 * jax.random.normal(ks[2], (9 * c1, ch), jnp.float32),
        "w3h": 0.1 * jax.random.normal(ks[3], (9 * ch, ch), jnp.float32),
        "b3":  0.01 * jax.random.normal(ks[4], (ch,), jnp.float32),
        "g3":  jnp.ones((ch,), jnp.float32),
        "be3": jnp.zeros((ch,), jnp.float32),
        # conv_2: Conv1x1Block(in_size + 2*h_size -> out_size), split into x / h1 / h2
        "w2x":  0.1 * jax.random.normal(ks[5], (c1, out_size), jnp.float32),
        "w2h1": 0.1 * jax.random.normal(ks[6], (ch, out_size), jnp.float32),
        "w2h2": 0.1 * jax.random.normal(ks[7], (ch, out_size), jnp.float32),
        "b2":   0.01 * jax.random.normal(ks[8], (out_size,), jnp.float32),
    }
    return p


def down_block_forward(x_nchw, p, do_pool=True):
    if do_pool:
        x_nchw = bilinear_downsample(x_nchw, 0.7)
    x = jnp.transpose(x_nchw, (0, 2, 3, 1))        # NCHW -> NHWC
    out = _down_block_pallas(x, p)                 # fused Conv/ELU/GN x2 + Conv1x1
    return jnp.transpose(out, (0, 3, 1, 2))        # NHWC -> NCHW


if __name__ == "__main__":
    in_size, h_size, out_size = 4, 16, 8           # h_size divisible by num_groups=8
    N, H, W = 2, 16, 16

    key = jax.random.PRNGKey(0)
    x = jax.random.normal(key, (N, in_size, H, W), jnp.float32)
    params = init_params(jax.random.PRNGKey(1), in_size, h_size, out_size)

    fwd = jax.jit(functools.partial(down_block_forward, do_pool=True))
    out = jax.block_until_ready(fwd(x, params))

    # do_pool -> floor(16*0.7) = 11 -> 11x11 spatial
    assert out.shape == (N, out_size, 11, 11), out.shape
    assert bool(jnp.all(jnp.isfinite(out)))
    print("KERNEL_OK")
</pallas_src>

<mosaic_0001>
module attributes {stable_mosaic.version = 11 : i64} {
  func.func @_down_block_kernel(%arg0: i32, %arg1: memref<1x176x4xf32, #tpu.memory_space<vmem>>, %arg2: memref<143x1xf32, #tpu.memory_space<vmem>>, %arg3: memref<16x16xf32, #tpu.memory_space<vmem>>, %arg4: memref<36x16xbf16, #tpu.memory_space<vmem>>, %arg5: memref<1x16xf32, #tpu.memory_space<vmem>>, %arg6: memref<1x16xf32, #tpu.memory_space<vmem>>, %arg7: memref<1x16xf32, #tpu.memory_space<vmem>>, %arg8: memref<36x16xbf16, #tpu.memory_space<vmem>>, %arg9: memref<144x16xbf16, #tpu.memory_space<vmem>>, %arg10: memref<1x16xf32, #tpu.memory_space<vmem>>, %arg11: memref<1x16xf32, #tpu.memory_space<vmem>>, %arg12: memref<1x16xf32, #tpu.memory_space<vmem>>, %arg13: memref<4x8xbf16, #tpu.memory_space<vmem>>, %arg14: memref<16x8xbf16, #tpu.memory_space<vmem>>, %arg15: memref<16x8xbf16, #tpu.memory_space<vmem>>, %arg16: memref<1x8xf32, #tpu.memory_space<vmem>>, %arg17: memref<1x143x8xf32, #tpu.memory_space<vmem>>, %arg18: memref<176x16xf32, #tpu.memory_space<vmem>>) attributes {dimension_semantics = [#tpu.dimension_semantics<parallel>], iteration_bounds = array<i64: 2>, scalar_prefetch = 0 : i64, scratch_operands = 1 : i64, tpu.core_type = #tpu.core_type<tc>, window_params = [{transform_indices = @transform_0, window_bounds = array<i64: 1, 176, 4>}, {pipeline_mode = #tpu.pipeline_mode<synchronous>, transform_indices = @transform_1, window_bounds = array<i64: 143, 1>}, {pipeline_mode = #tpu.pipeline_mode<synchronous>, transform_indices = @transform_2, window_bounds = array<i64: 16, 16>}, {pipeline_mode = #tpu.pipeline_mode<synchronous>, transform_indices = @transform_3, window_bounds = array<i64: 36, 16>}, {pipeline_mode = #tpu.pipeline_mode<synchronous>, transform_indices = @transform_4, window_bounds = array<i64: 1, 16>}, {pipeline_mode = #tpu.pipeline_mode<synchronous>, transform_indices = @transform_5, window_bounds = array<i64: 1, 16>}, {pipeline_mode = #tpu.pipeline_mode<synchronous>, transform_indices = @transform_6, window_bounds = array<i64: 1, 16>}, {pipeline_mode = #tpu.pipeline_mode<synchronous>, transform_indices = @transform_7, window_bounds = array<i64: 36, 16>}, {pipeline_mode = #tpu.pipeline_mode<synchronous>, transform_indices = @transform_8, window_bounds = array<i64: 144, 16>}, {pipeline_mode = #tpu.pipeline_mode<synchronous>, transform_indices = @transform_9, window_bounds = array<i64: 1, 16>}, {pipeline_mode = #tpu.pipeline_mode<synchronous>, transform_indices = @transform_10, window_bounds = array<i64: 1, 16>}, {pipeline_mode = #tpu.pipeline_mode<synchronous>, transform_indices = @transform_11, window_bounds = array<i64: 1, 16>}, {pipeline_mode = #tpu.pipeline_mode<synchronous>, transform_indices = @transform_12, window_bounds = array<i64: 4, 8>}, {pipeline_mode = #tpu.pipeline_mode<synchronous>, transform_indices = @transform_13, window_bounds = array<i64: 16, 8>}, {pipeline_mode = #tpu.pipeline_mode<synchronous>, transform_indices = @transform_14, window_bounds = array<i64: 16, 8>}, {pipeline_mode = #tpu.pipeline_mode<synchronous>, transform_indices = @transform_15, window_bounds = array<i64: 1, 8>}, {transform_indices = @transform_16, window_bounds = array<i64: 1, 143, 8>}]} {
    %c0 = arith.constant 0 : index
    %c0_0 = arith.constant 0 : index
    %0 = vector.load %arg2[%c0, %c0_0] : memref<143x1xf32, #tpu.memory_space<vmem>>, vector<143x1xf32>
    %c0_1 = arith.constant 0 : index
    %c0_2 = arith.constant 0 : index
    %1 = vector.load %arg3[%c0_1, %c0_2] : memref<16x16xf32, #tpu.memory_space<vmem>>, vector<16x16xf32>
    %cst = arith.constant 0.000000e+00 : f32
    %2 = vector.broadcast %cst : f32 to vector<143x16xf32>
    %c0_3 = arith.constant 0 : index
    %c0_4 = arith.constant 0 : index
    %3 = vector.load %arg4[%c0_3, %c0_4] : memref<36x16xbf16, #tpu.memory_space<vmem>>, vector<4x16xbf16>
    %c0_5 = arith.constant 0 : index
    %c0_6 = arith.constant 0 : index
    %c0_7 = arith.constant 0 : index
    %4 = vector.load %arg1[%c0_5, %c0_6, %c0_7] : memref<1x176x4xf32, #tpu.memory_space<vmem>>, vector<1x143x4xf32>
    %5 = vector.shape_cast %4 : vector<1x143x4xf32> to vector<143x4xf32>
    %6 = arith.truncf %5 : vector<143x4xf32> to vector<143x4xbf16>
    %cst_8 = arith.constant dense<0.000000e+00> : vector<143x16xf32>
    %7 = tpu.matmul %6, %3, %cst_8 {dimension_numbers = #tpu.dot_dimension_numbers<[1], [0], [0], [1], [0, 0, 1, 1], [], []>} : vector<143x4xbf16>, vector<4x16xbf16>, vector<143x16xf32> -> vector<143x16xf32>
    %8 = arith.addf %2, %7 : vector<143x16xf32>
    %c4 = arith.constant 4 : index
    %c0_9 = arith.constant 0 : index
    %9 = vector.load %arg4[%c4, %c0_9] : memref<36x16xbf16, #tpu.memory_space<vmem>>, vector<4x16xbf16>
    %c0_10 = arith.constant 0 : index
    %c1 = arith.constant 1 : index
    %c0_11 = arith.constant 0 : index
    %10 = vector.load %arg1[%c0_10, %c1, %c0_11] : memref<1x176x4xf32, #tpu.memory_space<vmem>>, vector<1x143x4xf32>
    %11 = vector.shape_cast %10 : vector<1x143x4xf32> to vector<143x4xf32>
    %12 = arith.truncf %11 : vector<143x4xf32> to vector<143x4xbf16>
    %cst_12 = arith.constant dense<0.000000e+00> : vector<143x16xf32>
    %13 = tpu.matmul %12, %9, %cst_12 {dimension_numbers = #tpu.dot_dimension_numbers<[1], [0], [0], [1], [0, 0, 1, 1], [], []>} : vector<143x4xbf16>, vector<4x16xbf16>, vector<143x16xf32> -> vector<143x16xf32>
    %14 = arith.addf %8, %13 : vector<143x16xf32>
    %c8 = arith.constant 8 : index
    %c0_13 = arith.constant 0 : index
    %15 = vector.load %arg4[%c8, %c0_13] : memref<36x16xbf16, #tpu.memory_space<vmem>>, vector<4x16xbf16>
    %c0_14 = arith.constant 0 : index
    %c2 = arith.constant 2 : index
    %c0_15 = arith.constant 0 : index
    %16 = vector.load %arg1[%c0_14, %c2, %c0_15] : memref<1x176x4xf32, #tpu.memory_space<vmem>>, vector<1x143x4xf32>
    %17 = vector.shape_cast %16 : vector<1x143x4xf32> to vector<143x4xf32>
    %18 = arith.truncf %17 : vector<143x4xf32> to vector<143x4xbf16>
    %cst_16 = arith.constant dense<0.000000e+00> : vector<143x16xf32>
    %19 = tpu.matmul %18, %15, %cst_16 {dimension_numbers = #tpu.dot_dimension_numbers<[1], [0], [0], [1], [0, 0, 1, 1], [], []>} : vector<143x4xbf16>, vector<4x16xbf16>, vector<143x16xf32> -> vector<143x16xf32>
    %20 = arith.addf %14, %19 : vector<143x16xf32>
    %c12 = arith.constant 12 : index
    %c0_17 = arith.constant 0 : index
    %21 = vector.load %arg4[%c12, %c0_17] : memref<36x16xbf16, #tpu.memory_space<vmem>>, vector<4x16xbf16>
    %c0_18 = arith.constant 0 : index
    %c13 = arith.constant 13 : index
    %c0_19 = arith.constant 0 : index
    %22 = vector.load %arg1[%c0_18, %c13, %c0_19] : memref<1x176x4xf32, #tpu.memory_space<vmem>>, vector<1x143x4xf32>
    %23 = vector.shape_cast %22 : vector<1x143x4xf32> to vector<143x4xf32>
    %24 = arith.truncf %23 : vector<143x4xf32> to vector<143x4xbf16>
    %cst_20 = arith.constant dense<0.000000e+00> : vector<143x16xf32>
    %25 = tpu.matmul %24, %21, %cst_20 {dimension_numbers = #tpu.dot_dimension_numbers<[1], [0], [0], [1], [0, 0, 1, 1], [], []>} : vector<143x4xbf16>, vector<4x16xbf16>, vector<143x16xf32> -> vector<143x16xf32>
    %26 = arith.addf %20, %25 : vector<143x16xf32>
    %c16 = arith.constant 16 : index
    %c0_21 = arith.constant 0 : index
    %27 = vector.load %arg4[%c16, %c0_21] : memref<36x16xbf16, #tpu.memory_space<vmem>>, vector<4x16xbf16>
    %c0_22 = arith.constant 0 : index
    %c14 = arith.constant 14 : index
    %c0_23 = arith.constant 0 : index
    %28 = vector.load %arg1[%c0_22, %c14, %c0_23] : memref<1x176x4xf32, #tpu.memory_space<vmem>>, vector<1x143x4xf32>
    %29 = vector.shape_cast %28 : vector<1x143x4xf32> to vector<143x4xf32>
    %30 = arith.truncf %29 : vector<143x4xf32> to vector<143x4xbf16>
    %cst_24 = arith.constant dense<0.000000e+00> : vector<143x16xf32>
    %31 = tpu.matmul %30, %27, %cst_24 {dimension_numbers = #tpu.dot_dimension_numbers<[1], [0], [0], [1], [0, 0, 1, 1], [], []>} : vector<143x4xbf16>, vector<4x16xbf16>, vector<143x16xf32> -> vector<143x16xf32>
    %32 = arith.addf %26, %31 : vector<143x16xf32>
    %c20 = arith.constant 20 : index
    %c0_25 = arith.constant 0 : index
    %33 = vector.load %arg4[%c20, %c0_25] : memref<36x16xbf16, #tpu.memory_space<vmem>>, vector<4x16xbf16>
    %c0_26 = arith.constant 0 : index
    %c15 = arith.constant 15 : index
    %c0_27 = arith.constant 0 : index
    %34 = vector.load %arg1[%c0_26, %c15, %c0_27] : memref<1x176x4xf32, #tpu.memory_space<vmem>>, vector<1x143x4xf32>
    %35 = vector.shape_cast %34 : vector<1x143x4xf32> to vector<143x4xf32>
    %36 = arith.truncf %35 : vector<143x4xf32> to vector<143x4xbf16>
    %cst_28 = arith.constant dense<0.000000e+00> : vector<143x16xf32>
    %37 = tpu.matmul %36, %33, %cst_28 {dimension_numbers = #tpu.dot_dimension_numbers<[1], [0], [0], [1], [0, 0, 1, 1], [], []>} : vector<143x4xbf16>, vector<4x16xbf16>, vector<143x16xf32> -> vector<143x16xf32>
    %38 = arith.addf %32, %37 : vector<143x16xf32>
    %c24 = arith.constant 24 : index
    %c0_29 = arith.constant 0 : index
    %39 = vector.load %arg4[%c24, %c0_29] : memref<36x16xbf16, #tpu.memory_space<vmem>>, vector<4x16xbf16>
    %c0_30 = arith.constant 0 : index
    %c26 = arith.constant 26 : index
    %c0_31 = arith.constant 0 : index
    %40 = vector.load %arg1[%c0_30, %c26, %c0_31] : memref<1x176x4xf32, #tpu.memory_space<vmem>>, vector<1x143x4xf32>
    %41 = vector.shape_cast %40 : vector<1x143x4xf32> to vector<143x4xf32>
    %42 = arith.truncf %41 : vector<143x4xf32> to vector<143x4xbf16>
    %cst_32 = arith.constant dense<0.000000e+00> : vector<143x16xf32>
    %43 = tpu.matmul %42, %39, %cst_32 {dimension_numbers = #tpu.dot_dimension_numbers<[1], [0], [0], [1], [0, 0, 1, 1], [], []>} : vector<143x4xbf16>, vector<4x16xbf16>, vector<143x16xf32> -> vector<143x16xf32>
    %44 = arith.addf %38, %43 : vector<143x16xf32>
    %c28 = arith.constant 28 : index
    %c0_33 = arith.constant 0 : index
    %45 = vector.load %arg4[%c28, %c0_33] : memref<36x16xbf16, #tpu.memory_space<vmem>>, vector<4x16xbf16>
    %c0_34 = arith.constant 0 : index
    %c27 = arith.constant 27 : index
    %c0_35 = arith.constant 0 : index
    %46 = vector.load %arg1[%c0_34, %c27, %c0_35] : memref<1x176x4xf32, #tpu.memory_space<vmem>>, vector<1x143x4xf32>
    %47 = vector.shape_cast %46 : vector<1x143x4xf32> to vector<143x4xf32>
    %48 = arith.truncf %47 : vector<143x4xf32> to vector<143x4xbf16>
    %cst_36 = arith.constant dense<0.000000e+00> : vector<143x16xf32>
    %49 = tpu.matmul %48, %45, %cst_36 {dimension_numbers = #tpu.dot_dimension_numbers<[1], [0], [0], [1], [0, 0, 1, 1], [], []>} : vector<143x4xbf16>, vector<4x16xbf16>, vector<143x16xf32> -> vector<143x16xf32>
    %50 = arith.addf %44, %49 : vector<143x16xf32>
    %c32 = arith.constant 32 : index
    %c0_37 = arith.constant 0 : index
    %51 = vector.load %arg4[%c32, %c0_37] : memref<36x16xbf16, #tpu.memory_space<vmem>>, vector<4x16xbf16>
    %c0_38 = arith.constant 0 : index
    %c28_39 = arith.constant 28 : index
    %c0_40 = arith.constant 0 : index
    %52 = vector.load %arg1[%c0_38, %c28_39, %c0_40] : memref<1x176x4xf32, #tpu.memory_space<vmem>>, vector<1x143x4xf32>
    %53 = vector.shape_cast %52 : vector<1x143x4xf32> to vector<143x4xf32>
    %54 = arith.truncf %53 : vector<143x4xf32> to vector<143x4xbf16>
    %cst_41 = arith.constant dense<0.000000e+00> : vector<143x16xf32>
    %55 = tpu.matmul %54, %51, %cst_41 {dimension_numbers = #tpu.dot_dimension_numbers<[1], [0], [0], [1], [0, 0, 1, 1], [], []>} : vector<143x4xbf16>, vector<4x16xbf16>, vector<143x16xf32> -> vector<143x16xf32>
    %56 = arith.addf %50, %55 : vector<143x16xf32>
    %c0_42 = arith.constant 0 : index
    %c0_43 = arith.constant 0 : index
    %57 = vector.load %arg5[%c0_42, %c0_43] : memref<1x16xf32, #tpu.memory_space<vmem>>, vector<1x16xf32>
    %58 = vector.broadcast %57 : vector<1x16xf32> to vector<143x16xf32>
    %59 = arith.addf %56, %58 : vector<143x16xf32>
    %cst_44 = arith.constant 0.000000e+00 : f32
    %60 = vector.broadcast %cst_44 : f32 to vector<143x16xf32>
    %61 = arith.cmpf ogt, %59, %60 : vector<143x16xf32>
    %cst_45 = arith.constant 0.000000e+00 : f32
    %62 = vector.broadcast %cst_45 : f32 to vector<143x16xf32>
    %63 = arith.minimumf %59, %62 : vector<143x16xf32>
    %64 = math.exp %63 : vector<143x16xf32>
    %cst_46 = arith.constant 1.000000e+00 : f32
    %65 = vector.broadcast %cst_46 : f32 to vector<143x16xf32>
    %66 = arith.subf %64, %65 : vector<143x16xf32>
    %67 = arith.select %61, %59, %66 : vector<143x16xi1>, vector<143x16xf32>
    %c0_47 = arith.constant 0 : index
    %c0_48 = arith.constant 0 : index
    %68 = vector.load %arg6[%c0_47, %c0_48] : memref<1x16xf32, #tpu.memory_space<vmem>>, vector<1x16xf32>
    %c0_49 = arith.constant 0 : index
    %c0_50 = arith.constant 0 : index
    %69 = vector.load %arg7[%c0_49, %c0_50] : memref<1x16xf32, #tpu.memory_space<vmem>>, vector<1x16xf32>
    %70 = vector.broadcast %0 : vector<143x1xf32> to vector<143x16xf32>
    %71 = arith.mulf %67, %70 : vector<143x16xf32>
    %cst_51 = arith.constant dense<0.000000e+00> : vector<16xf32>
    %72 = vector.multi_reduction <add>, %71, %cst_51 [0] : vector<143x16xf32> to vector<16xf32>
    %73 = vector.shape_cast %72 : vector<16xf32> to vector<1x16xf32>
    %74 = arith.mulf %71, %71 : vector<143x16xf32>
    %cst_52 = arith.constant dense<0.000000e+00> : vector<16xf32>
    %75 = vector.multi_reduction <add>, %74, %cst_52 [0] : vector<143x16xf32> to vector<16xf32>
    %76 = vector.shape_cast %75 : vector<16xf32> to vector<1x16xf32>
    %cst_53 = arith.constant dense<0.000000e+00> : vector<1x16xf32>
    %77 = tpu.matmul %73, %1, %cst_53 {dimension_numbers = #tpu.dot_dimension_numbers<[1], [0], [0], [1], [0, 0, 1, 1], [], []>} : vector<1x16xf32>, vector<16x16xf32>, vector<1x16xf32> -> vector<1x16xf32>
    %cst_54 = arith.constant dense<0.000000e+00> : vector<1x16xf32>
    %78 = tpu.matmul %76, %1, %cst_54 {dimension_numbers = #tpu.dot_dimension_numbers<[1], [0], [0], [1], [0, 0, 1, 1], [], []>} : vector<1x16xf32>, vector<16x16xf32>, vector<1x16xf32> -> vector<1x16xf32>
    %79 = arith.mulf %77, %77 : vector<1x16xf32>
    %80 = arith.subf %78, %79 : vector<1x16xf32>
    %cst_55 = arith.constant 0.000000e+00 : f32
    %81 = vector.broadcast %cst_55 : f32 to vector<1x16xf32>
    %82 = arith.maximumf %80, %81 : vector<1x16xf32>
    %cst_56 = arith.constant 9.99999974E-6 : f32
    %83 = vector.broadcast %cst_56 : f32 to vector<1x16xf32>
    %84 = arith.addf %82, %83 : vector<1x16xf32>
    %85 = math.rsqrt %84 : vector<1x16xf32>
    %86 = arith.mulf %68, %85 : vector<1x16xf32>
    %87 = arith.mulf %77, %86 : vector<1x16xf32>
    %88 = arith.subf %69, %87 : vector<1x16xf32>
    %89 = vector.broadcast %86 : vector<1x16xf32> to vector<143x16xf32>
    %90 = arith.mulf %67, %89 : vector<143x16xf32>
    %91 = vector.broadcast %88 : vector<1x16xf32> to vector<143x16xf32>
    %92 = arith.addf %90, %91 : vector<143x16xf32>
    %93 = vector.broadcast %0 : vector<143x1xf32> to vector<143x16xf32>
    %94 = arith.mulf %92, %93 : vector<143x16xf32>
    %cst_57 = arith.constant 0.000000e+00 : f32
    %95 = vector.broadcast %cst_57 : f32 to vector<176x16xf32>
    %c0_58 = arith.constant 0 : index
    %c0_59 = arith.constant 0 : index
    %96 = vector.load %arg18[%c0_58, %c0_59] : memref<176x16xf32, #tpu.memory_space<vmem>>, vector<176x16xf32>
    tpu.vector_store %arg18[%c0_58, %c0_59], %95 {strides = array<i32>} : memref<176x16xf32, #tpu.memory_space<vmem>>, vector<176x16xf32>,
    %c14_60 = arith.constant 14 : index
    %c0_61 = arith.constant 0 : index
    %97 = vector.load %arg18[%c14_60, %c0_61] : memref<176x16xf32, #tpu.memory_space<vmem>>, vector<143x16xf32>
    tpu.vector_store %arg18[%c14_60, %c0_61], %94 {strides = array<i32>} : memref<176x16xf32, #tpu.memory_space<vmem>>, vector<143x16xf32>,
    %cst_62 = arith.constant 0.000000e+00 : f32
    %98 = vector.broadcast %cst_62 : f32 to vector<143x16xf32>
    %c0_63 = arith.constant 0 : index
    %c0_64 = arith.constant 0 : index
    %99 = vector.load %arg8[%c0_63, %c0_64] : memref<36x16xbf16, #tpu.memory_space<vmem>>, vector<4x16xbf16>
    %c0_65 = arith.constant 0 : index
    %c0_66 = arith.constant 0 : index
    %c0_67 = arith.constant 0 : index
    %100 = vector.load %arg1[%c0_65, %c0_66, %c0_67] : memref<1x176x4xf32, #tpu.memory_space<vmem>>, vector<1x143x4xf32>
    %101 = vector.shape_cast %100 : vector<1x143x4xf32> to vector<143x4xf32>
    %102 = arith.truncf %101 : vector<143x4xf32> to vector<143x4xbf16>
    %cst_68 = arith.constant dense<0.000000e+00> : vector<143x16xf32>
    %103 = tpu.matmul %102, %99, %cst_68 {dimension_numbers = #tpu.dot_dimension_numbers<[1], [0], [0], [1], [0, 0, 1, 1], [], []>} : vector<143x4xbf16>, vector<4x16xbf16>, vector<143x16xf32> -> vector<143x16xf32>
    %104 = arith.addf %98, %103 : vector<143x16xf32>
    %c4_69 = arith.constant 4 : index
    %c0_70 = arith.constant 0 : index
    %105 = vector.load %arg8[%c4_69, %c0_70] : memref<36x16xbf16, #tpu.memory_space<vmem>>, vector<4x16xbf16>
    %c0_71 = arith.constant 0 : index
    %c1_72 = arith.constant 1 : index
    %c0_73 = arith.constant 0 : index
    %106 = vector.load %arg1[%c0_71, %c1_72, %c0_73] : memref<1x176x4xf32, #tpu.memory_space<vmem>>, vector<1x143x4xf32>
    %107 = vector.shape_cast %106 : vector<1x143x4xf32> to vector<143x4xf32>
    %108 = arith.truncf %107 : vector<143x4xf32> to vector<143x4xbf16>
    %cst_74 = arith.constant dense<0.000000e+00> : vector<143x16xf32>
    %109 = tpu.matmul %108, %105, %cst_74 {dimension_numbers = #tpu.dot_dimension_numbers<[1], [0], [0], [1], [0, 0, 1, 1], [], []>} : vector<143x4xbf16>, vector<4x16xbf16>, vector<143x16xf32> -> vector<143x16xf32>
    %110 = arith.addf %104, %109 : vector<143x16xf32>
    %c8_75 = arith.constant 8 : index
    %c0_76 = arith.constant 0 : index
    %111 = vector.load %arg8[%c8_75, %c0_76] : memref<36x16xbf16, #tpu.memory_space<vmem>>, vector<4x16xbf16>
    %c0_77 = arith.constant 0 : index
    %c2_78 = arith.constant 2 : index
    %c0_79 = arith.constant 0 : index
    %112 = vector.load %arg1[%c0_77, %c2_78, %c0_79] : memref<1x176x4xf32, #tpu.memory_space<vmem>>, vector<1x143x4xf32>
    %113 = vector.shape_cast %112 : vector<1x143x4xf32> to vector<143x4xf32>
    %114 = arith.truncf %113 : vector<143x4xf32> to vector<143x4xbf16>
    %cst_80 = arith.constant dense<0.000000e+00> : vector<143x16xf32>
    %115 = tpu.matmul %114, %111, %cst_80 {dimension_numbers = #tpu.dot_dimension_numbers<[1], [0], [0], [1], [0, 0, 1, 1], [], []>} : vector<143x4xbf16>, vector<4x16xbf16>, vector<143x16xf32> -> vector<143x16xf32>
    %116 = arith.addf %110, %115 : vector<143x16xf32>
    %c12_81 = arith.constant 12 : index
    %c0_82 = arith.constant 0 : index
    %117 = vector.load %arg8[%c12_81, %c0_82] : memref<36x16xbf16, #tpu.memory_space<vmem>>, vector<4x16xbf16>
    %c0_83 = arith.constant 0 : index
    %c13_84 = arith.constant 13 : index
    %c0_85 = arith.constant 0 : index
    %118 = vector.load %arg1[%c0_83, %c13_84, %c0_85] : memref<1x176x4xf32, #tpu.memory_space<vmem>>, vector<1x143x4xf32>
    %119 = vector.shape_cast %118 : vector<1x143x4xf32> to vector<143x4xf32>
    %120 = arith.truncf %119 : vector<143x4xf32> to vector<143x4xbf16>
    %cst_86 = arith.constant dense<0.000000e+00> : vector<143x16xf32>
    %121 = tpu.matmul %120, %117, %cst_86 {dimension_numbers = #tpu.dot_dimension_numbers<[1], [0], [0], [1], [0, 0, 1, 1], [], []>} : vector<143x4xbf16>, vector<4x16xbf16>, vector<143x16xf32> -> vector<143x16xf32>
    %122 = arith.addf %116, %121 : vector<143x16xf32>
    %c16_87 = arith.constant 16 : index
    %c0_88 = arith.constant 0 : index
    %123 = vector.load %arg8[%c16_87, %c0_88] : memref<36x16xbf16, #tpu.memory_space<vmem>>, vector<4x16xbf16>
    %c0_89 = arith.constant 0 : index
    %c14_90 = arith.constant 14 : index
    %c0_91 = arith.constant 0 : index
    %124 = vector.load %arg1[%c0_89, %c14_90, %c0_91] : memref<1x176x4xf32, #tpu.memory_space<vmem>>, vector<1x143x4xf32>
    %125 = vector.shape_cast %124 : vector<1x143x4xf32> to vector<143x4xf32>
    %126 = arith.truncf %125 : vector<143x4xf32> to vector<143x4xbf16>
    %cst_92 = arith.constant dense<0.000000e+00> : vector<143x16xf32>
    %127 = tpu.matmul %126, %123, %cst_92 {dimension_numbers = #tpu.dot_dimension_numbers<[1], [0], [0], [1], [0, 0, 1, 1], [], []>} : vector<143x4xbf16>, vector<4x16xbf16>, vector<143x16xf32> -> vector<143x16xf32>
    %128 = arith.addf %122, %127 : vector<143x16xf32>
    %c20_93 = arith.constant 20 : index
    %c0_94 = arith.constant 0 : index
    %129 = vector.load %arg8[%c20_93, %c0_94] : memref<36x16xbf16, #tpu.memory_space<vmem>>, vector<4x16xbf16>
    %c0_95 = arith.constant 0 : index
    %c15_96 = arith.constant 15 : index
    %c0_97 = arith.constant 0 : index
    %130 = vector.load %arg1[%c0_95, %c15_96, %c0_97] : memref<1x176x4xf32, #tpu.memory_space<vmem>>, vector<1x143x4xf32>
    %131 = vector.shape_cast %130 : vector<1x143x4xf32> to vector<143x4xf32>
    %132 = arith.truncf %131 : vector<143x4xf32> to vector<143x4xbf16>
    %cst_98 = arith.constant dense<0.000000e+00> : vector<143x16xf32>
    %133 = tpu.matmul %132, %129, %cst_98 {dimension_numbers = #tpu.dot_dimension_numbers<[1], [0], [0], [1], [0, 0, 1, 1], [], []>} : vector<143x4xbf16>, vector<4x16xbf16>, vector<143x16xf32> -> vector<143x16xf32>
    %134 = arith.addf %128, %133 : vector<143x16xf32>
    %c24_99 = arith.constant 24 : index
    %c0_100 = arith.constant 0 : index
    %135 = vector.load %arg8[%c24_99, %c0_100] : memref<36x16xbf16, #tpu.memory_space<vmem>>, vector<4x16xbf16>
    %c0_101 = arith.constant 0 : index
    %c26_102 = arith.constant 26 : index
    %c0_103 = arith.constant 0 : index
    %136 = vector.load %arg1[%c0_101, %c26_102, %c0_103] : memref<1x176x4xf32, #tpu.memory_space<vmem>>, vector<1x143x4xf32>
    %137 = vector.shape_cast %136 : vector<1x143x4xf32> to vector<143x4xf32>
    %138 = arith.truncf %137 : vector<143x4xf32> to vector<143x4xbf16>
    %cst_104 = arith.constant dense<0.000000e+00> : vector<143x16xf32>
    %139 = tpu.matmul %138, %135, %cst_104 {dimension_numbers = #tpu.dot_dimension_numbers<[1], [0], [0], [1], [0, 0, 1, 1], [], []>} : vector<143x4xbf16>, vector<4x16xbf16>, vector<143x16xf32> -> vector<143x16xf32>
    %140 = arith.addf %134, %139 : vector<143x16xf32>
    %c28_105 = arith.constant 28 : index
    %c0_106 = arith.constant 0 : index
    %141 = vector.load %arg8[%c28_105, %c0_106] : memref<36x16xbf16, #tpu.memory_space<vmem>>, vector<4x16xbf16>
    %c0_107 = arith.constant 0 : index
    %c27_108 = arith.constant 27 : index
    %c0_109 = arith.constant 0 : index
    %142 = vector.load %arg1[%c0_107, %c27_108, %c0_109] : memref<1x176x4xf32, #tpu.memory_space<vmem>>, vector<1x143x4xf32>
    %143 = vector.shape_cast %142 : vector<1x143x4xf32> to vector<143x4xf32>
    %144 = arith.truncf %143 : vector<143x4xf32> to vector<143x4xbf16>
    %cst_110 = arith.constant dense<0.000000e+00> : vector<143x16xf32>
    %145 = tpu.matmul %144, %141, %cst_110 {dimension_numbers = #tpu.dot_dimension_numbers<[1], [0], [0], [1], [0, 0, 1, 1], [], []>} : vector<143x4xbf16>, vector<4x16xbf16>, vector<143x16xf32> -> vector<143x16xf32>
    %146 = arith.addf %140, %145 : vector<143x16xf32>
    %c32_111 = arith.constant 32 : index
    %c0_112 = arith.constant 0 : index
    %147 = vector.load %arg8[%c32_111, %c0_112] : memref<36x16xbf16, #tpu.memory_space<vmem>>, vector<4x16xbf16>
    %c0_113 = arith.constant 0 : index
    %c28_114 = arith.constant 28 : index
    %c0_115 = arith.constant 0 : index
    %148 = vector.load %arg1[%c0_113, %c28_114, %c0_115] : memref<1x176x4xf32, #tpu.memory_space<vmem>>, vector<1x143x4xf32>
    %149 = vector.shape_cast %148 : vector<1x143x4xf32> to vector<143x4xf32>
    %150 = arith.truncf %149 : vector<143x4xf32> to vector<143x4xbf16>
    %cst_116 = arith.constant dense<0.000000e+00> : vector<143x16xf32>
    %151 = tpu.matmul %150, %147, %cst_116 {dimension_numbers = #tpu.dot_dimension_numbers<[1], [0], [0], [1], [0, 0, 1, 1], [], []>} : vector<143x4xbf16>, vector<4x16xbf16>, vector<143x16xf32> -> vector<143x16xf32>
    %152 = arith.addf %146, %151 : vector<143x16xf32>
    %cst_117 = arith.constant 0.000000e+00 : f32
    %153 = vector.broadcast %cst_117 : f32 to vector<143x16xf32>
    %c0_118 = arith.constant 0 : index
    %c0_119 = arith.constant 0 : index
    %154 = vector.load %arg9[%c0_118, %c0_119] : memref<144x16xbf16, #tpu.memory_space<vmem>>, vector<16x16xbf16>
    %c0_120 = arith.constant 0 : index
    %c0_121 = arith.constant 0 : index
    %155 = vector.load %arg18[%c0_120, %c0_121] : memref<176x16xf32, #tpu.memory_space<vmem>>, vector<143x16xf32>
    %156 = arith.truncf %155 : vector<143x16xf32> to vector<143x16xbf16>
    %cst_122 = arith.constant dense<0.000000e+00> : vector<143x16xf32>
    %157 = tpu.matmul %156, %154, %cst_122 {dimension_numbers = #tpu.dot_dimension_numbers<[1], [0], [0], [1], [0, 0, 1, 1], [], []>} : vector<143x16xbf16>, vector<16x16xbf16>, vector<143x16xf32> -> vector<143x16xf32>
    %158 = arith.addf %153, %157 : vector<143x16xf32>
    %c16_123 = arith.constant 16 : index
    %c0_124 = arith.constant 0 : index
    %159 = vector.load %arg9[%c16_123, %c0_124] : memref<144x16xbf16, #tpu.memory_space<vmem>>, vector<16x16xbf16>
    %c1_125 = arith.constant 1 : index
    %c0_126 = arith.constant 0 : index
    %160 = vector.load %arg18[%c1_125, %c0_126] : memref<176x16xf32, #tpu.memory_space<vmem>>, vector<143x16xf32>
    %161 = arith.truncf %160 : vector<143x16xf32> to vector<143x16xbf16>
    %cst_127 = arith.constant dense<0.000000e+00> : vector<143x16xf32>
    %162 = tpu.matmul %161, %159, %cst_127 {dimension_numbers = #tpu.dot_dimension_numbers<[1], [0], [0], [1], [0, 0, 1, 1], [], []>} : vector<143x16xbf16>, vector<16x16xbf16>, vector<143x16xf32> -> vector<143x16xf32>
    %163 = arith.addf %158, %162 : vector<143x16xf32>
    %c32_128 = arith.constant 32 : index
    %c0_129 = arith.constant 0 : index
    %164 = vector.load %arg9[%c32_128, %c0_129] : memref<144x16xbf16, #tpu.memory_space<vmem>>, vector<16x16xbf16>
    %c2_130 = arith.constant 2 : index
    %c0_131 = arith.constant 0 : index
    %165 = vector.load %arg18[%c2_130, %c0_131] : memref<176x16xf32, #tpu.memory_space<vmem>>, vector<143x16xf32>
    %166 = arith.truncf %165 : vector<143x16xf32> to vector<143x16xbf16>
    %cst_132 = arith.constant dense<0.000000e+00> : vector<143x16xf32>
    %167 = tpu.matmul %166, %164, %cst_132 {dimension_numbers = #tpu.dot_dimension_numbers<[1], [0], [0], [1], [0, 0, 1, 1], [], []>} : vector<143x16xbf16>, vector<16x16xbf16>, vector<143x16xf32> -> vector<143x16xf32>
    %168 = arith.addf %163, %167 : vector<143x16xf32>
    %c48 = arith.constant 48 : index
    %c0_133 = arith.constant 0 : index
    %169 = vector.load %arg9[%c48, %c0_133] : memref<144x16xbf16, #tpu.memory_space<vmem>>, vector<16x16xbf16>
    %c13_134 = arith.constant 13 : index
    %c0_135 = arith.constant 0 : index
    %170 = vector.load %arg18[%c13_134, %c0_135] : memref<176x16xf32, #tpu.memory_space<vmem>>, vector<143x16xf32>
    %171 = arith.truncf %170 : vector<143x16xf32> to vector<143x16xbf16>
    %cst_136 = arith.constant dense<0.000000e+00> : vector<143x16xf32>
    %172 = tpu.matmul %171, %169, %cst_136 {dimension_numbers = #tpu.dot_dimension_numbers<[1], [0], [0], [1], [0, 0, 1, 1], [], []>} : vector<143x16xbf16>, vector<16x16xbf16>, vector<143x16xf32> -> vector<143x16xf32>
    %173 = arith.addf %168, %172 : vector<143x16xf32>
    %c64 = arith.constant 64 : index
    %c0_137 = arith.constant 0 : index
    %174 = vector.load %arg9[%c64, %c0_137] : memref<144x16xbf16, #tpu.memory_space<vmem>>, vector<16x16xbf16>
    %c14_138 = arith.constant 14 : index
    %c0_139 = arith.constant 0 : index
    %175 = vector.load %arg18[%c14_138, %c0_139] : memref<176x16xf32, #tpu.memory_space<vmem>>, vector<143x16xf32>
    %176 = arith.truncf %175 : vector<143x16xf32> to vector<143x16xbf16>
    %cst_140 = arith.constant dense<0.000000e+00> : vector<143x16xf32>
    %177 = tpu.matmul %176, %174, %cst_140 {dimension_numbers = #tpu.dot_dimension_numbers<[1], [0], [0], [1], [0, 0, 1, 1], [], []>} : vector<143x16xbf16>, vector<16x16xbf16>, vector<143x16xf32> -> vector<143x16xf32>
    %178 = arith.addf %173, %177 : vector<143x16xf32>
    %c80 = arith.constant 80 : index
    %c0_141 = arith.constant 0 : index
    %179 = vector.load %arg9[%c80, %c0_141] : memref<144x16xbf16, #tpu.memory_space<vmem>>, vector<16x16xbf16>
    %c15_142 = arith.constant 15 : index
    %c0_143 = arith.constant 0 : index
    %180 = vector.load %arg18[%c15_142, %c0_143] : memref<176x16xf32, #tpu.memory_space<vmem>>, vector<143x16xf32>
    %181 = arith.truncf %180 : vector<143x16xf32> to vector<143x16xbf16>
    %cst_144 = arith.constant dense<0.000000e+00> : vector<143x16xf32>
    %182 = tpu.matmul %181, %179, %cst_144 {dimension_numbers = #tpu.dot_dimension_numbers<[1], [0], [0], [1], [0, 0, 1, 1], [], []>} : vector<143x16xbf16>, vector<16x16xbf16>, vector<143x16xf32> -> vector<143x16xf32>
    %183 = arith.addf %178, %182 : vector<143x16xf32>
    %c96 = arith.constant 96 : index
    %c0_145 = arith.constant 0 : index
    %184 = vector.load %arg9[%c96, %c0_145] : memref<144x16xbf16, #tpu.memory_space<vmem>>, vector<16x16xbf16>
    %c26_146 = arith.constant 26 : index
    %c0_147 = arith.constant 0 : index
    %185 = vector.load %arg18[%c26_146, %c0_147] : memref<176x16xf32, #tpu.memory_space<vmem>>, vector<143x16xf32>
    %186 = arith.truncf %185 : vector<143x16xf32> to vector<143x16xbf16>
    %cst_148 = arith.constant dense<0.000000e+00> : vector<143x16xf32>
    %187 = tpu.matmul %186, %184, %cst_148 {dimension_numbers = #tpu.dot_dimension_numbers<[1], [0], [0], [1], [0, 0, 1, 1], [], []>} : vector<143x16xbf16>, vector<16x16xbf16>, vector<143x16xf32> -> vector<143x16xf32>
    %188 = arith.addf %183, %187 : vector<143x16xf32>
    %c112 = arith.constant 112 : index
    %c0_149 = arith.constant 0 : index
    %189 = vector.load %arg9[%c112, %c0_149] : memref<144x16xbf16, #tpu.memory_space<vmem>>, vector<16x16xbf16>
    %c27_150 = arith.constant 27 : index
    %c0_151 = arith.constant 0 : index
    %190 = vector.load %arg18[%c27_150, %c0_151] : memref<176x16xf32, #tpu.memory_space<vmem>>, vector<143x16xf32>
    %191 = arith.truncf %190 : vector<143x16xf32> to vector<143x16xbf16>
    %cst_152 = arith.constant dense<0.000000e+00> : vector<143x16xf32>
    %192 = tpu.matmul %191, %189, %cst_152 {dimension_numbers = #tpu.dot_dimension_numbers<[1], [0], [0], [1], [0, 0, 1, 1], [], []>} : vector<143x16xbf16>, vector<16x16xbf16>, vector<143x16xf32> -> vector<143x16xf32>
    %193 = arith.addf %188, %192 : vector<143x16xf32>
    %c128 = arith.constant 128 : index
    %c0_153 = arith.constant 0 : index
    %194 = vector.load %arg9[%c128, %c0_153] : memref<144x16xbf16, #tpu.memory_space<vmem>>, vector<16x16xbf16>
    %c28_154 = arith.constant 28 : index
    %c0_155 = arith.constant 0 : index
    %195 = vector.load %arg18[%c28_154, %c0_155] : memref<176x16xf32, #tpu.memory_space<vmem>>, vector<143x16xf32>
    %196 = arith.truncf %195 : vector<143x16xf32> to vector<143x16xbf16>
    %cst_156 = arith.constant dense<0.000000e+00> : vector<143x16xf32>
    %197 = tpu.matmul %196, %194, %cst_156 {dimension_numbers = #tpu.dot_dimension_numbers<[1], [0], [0], [1], [0, 0, 1, 1], [], []>} : vector<143x16xbf16>, vector<16x16xbf16>, vector<143x16xf32> -> vector<143x16xf32>
    %198 = arith.addf %193, %197 : vector<143x16xf32>
    %199 = arith.addf %152, %198 : vector<143x16xf32>
    %c0_157 = arith.constant 0 : index
    %c0_158 = arith.constant 0 : index
    %200 = vector.load %arg10[%c0_157, %c0_158] : memref<1x16xf32, #tpu.memory_space<vmem>>, vector<1x16xf32>
    %201 = vector.broadcast %200 : vector<1x16xf32> to vector<143x16xf32>
    %202 = arith.addf %199, %201 : vector<143x16xf32>
    %cst_159 = arith.constant 0.000000e+00 : f32
    %203 = vector.broadcast %cst_159 : f32 to vector<143x16xf32>
    %204 = arith.cmpf ogt, %202, %203 : vector<143x16xf32>
    %cst_160 = arith.constant 0.000000e+00 : f32
    %205 = vector.broadcast %cst_160 : f32 to vector<143x16xf32>
    %206 = arith.minimumf %202, %205 : vector<143x16xf32>
    %207 = math.exp %206 : vector<143x16xf32>
    %cst_161 = arith.constant 1.000000e+00 : f32
    %208 = vector.broadcast %cst_161 : f32 to vector<143x16xf32>
    %209 = arith.subf %207, %208 : vector<143x16xf32>
    %210 = arith.select %204, %202, %209 : vector<143x16xi1>, vector<143x16xf32>
    %c0_162 = arith.constant 0 : index
    %c0_163 = arith.constant 0 : index
    %211 = vector.load %arg11[%c0_162, %c0_163] : memref<1x16xf32, #tpu.memory_space<vmem>>, vector<1x16xf32>
    %c0_164 = arith.constant 0 : index
    %c0_165 = arith.constant 0 : index
    %212 = vector.load %arg12[%c0_164, %c0_165] : memref<1x16xf32, #tpu.memory_space<vmem>>, vector<1x16xf32>
    %213 = vector.broadcast %0 : vector<143x1xf32> to vector<143x16xf32>
    %214 = arith.mulf %210, %213 : vector<143x16xf32>
    %cst_166 = arith.constant dense<0.000000e+00> : vector<16xf32>
    %215 = vector.multi_reduction <add>, %214, %cst_166 [0] : vector<143x16xf32> to vector<16xf32>
    %216 = vector.shape_cast %215 : vector<16xf32> to vector<1x16xf32>
    %217 = arith.mulf %214, %214 : vector<143x16xf32>
    %cst_167 = arith.constant dense<0.000000e+00> : vector<16xf32>
    %218 = vector.multi_reduction <add>, %217, %cst_167 [0] : vector<143x16xf32> to vector<16xf32>
    %219 = vector.shape_cast %218 : vector<16xf32> to vector<1x16xf32>
    %cst_168 = arith.constant dense<0.000000e+00> : vector<1x16xf32>
    %220 = tpu.matmul %216, %1, %cst_168 {dimension_numbers = #tpu.dot_dimension_numbers<[1], [0], [0], [1], [0, 0, 1, 1], [], []>} : vector<1x16xf32>, vector<16x16xf32>, vector<1x16xf32> -> vector<1x16xf32>
    %cst_169 = arith.constant dense<0.000000e+00> : vector<1x16xf32>
    %221 = tpu.matmul %219, %1, %cst_169 {dimension_numbers = #tpu.dot_dimension_numbers<[1], [0], [0], [1], [0, 0, 1, 1], [], []>} : vector<1x16xf32>, vector<16x16xf32>, vector<1x16xf32> -> vector<1x16xf32>
    %222 = arith.mulf %220, %220 : vector<1x16xf32>
    %223 = arith.subf %221, %222 : vector<1x16xf32>
    %cst_170 = arith.constant 0.000000e+00 : f32
    %224 = vector.broadcast %cst_170 : f32 to vector<1x16xf32>
    %225 = arith.maximumf %223, %224 : vector<1x16xf32>
    %cst_171 = arith.constant 9.99999974E-6 : f32
    %226 = vector.broadcast %cst_171 : f32 to vector<1x16xf32>
    %227 = arith.addf %225, %226 : vector<1x16xf32>
    %228 = math.rsqrt %227 : vector<1x16xf32>
    %229 = arith.mulf %211, %228 : vector<1x16xf32>
    %230 = arith.mulf %220, %229 : vector<1x16xf32>
    %231 = arith.subf %212, %230 : vector<1x16xf32>
    %232 = vector.broadcast %229 : vector<1x16xf32> to vector<143x16xf32>
    %233 = arith.mulf %210, %232 : vector<143x16xf32>
    %234 = vector.broadcast %231 : vector<1x16xf32> to vector<143x16xf32>
    %235 = arith.addf %233, %234 : vector<143x16xf32>
    %c0_172 = arith.constant 0 : index
    %c14_173 = arith.constant 14 : index
    %c0_174 = arith.constant 0 : index
    %236 = vector.load %arg1[%c0_172, %c14_173, %c0_174] : memref<1x176x4xf32, #tpu.memory_space<vmem>>, vector<1x143x4xf32>
    %237 = vector.shape_cast %236 : vector<1x143x4xf32> to vector<143x4xf32>
    %238 = arith.truncf %237 : vector<143x4xf32> to vector<143x4xbf16>
    %c0_175 = arith.constant 0 : index
    %c0_176 = arith.constant 0 : index
    %239 = vector.load %arg13[%c0_175, %c0_176] : memref<4x8xbf16, #tpu.memory_space<vmem>>, vector<4x8xbf16>
    %cst_177 = arith.constant dense<0.000000e+00> : vector<143x8xf32>
    %240 = tpu.matmul %238, %239, %cst_177 {dimension_numbers = #tpu.dot_dimension_numbers<[1], [0], [0], [1], [0, 0, 1, 1], [], []>} : vector<143x4xbf16>, vector<4x8xbf16>, vector<143x8xf32> -> vector<143x8xf32>
    %241 = arith.truncf %94 : vector<143x16xf32> to vector<143x16xbf16>
    %c0_178 = arith.constant 0 : index
    %c0_179 = arith.constant 0 : index
    %242 = vector.load %arg14[%c0_178, %c0_179] : memref<16x8xbf16, #tpu.memory_space<vmem>>, vector<16x8xbf16>
    %cst_180 = arith.constant dense<0.000000e+00> : vector<143x8xf32>
    %243 = tpu.matmul %241, %242, %cst_180 {dimension_numbers = #tpu.dot_dimension_numbers<[1], [0], [0], [1], [0, 0, 1, 1], [], []>} : vector<143x16xbf16>, vector<16x8xbf16>, vector<143x8xf32> -> vector<143x8xf32>
    %244 = arith.addf %240, %243 : vector<143x8xf32>
    %245 = arith.truncf %235 : vector<143x16xf32> to vector<143x16xbf16>
    %c0_181 = arith.constant 0 : index
    %c0_182 = arith.constant 0 : index
    %246 = vector.load %arg15[%c0_181, %c0_182] : memref<16x8xbf16, #tpu.memory_space<vmem>>, vector<16x8xbf16>
    %cst_183 = arith.constant dense<0.000000e+00> : vector<143x8xf32>
    %247 = tpu.matmul %245, %246, %cst_183 {dimension_numbers = #tpu.dot_dimension_numbers<[1], [0], [0], [1], [0, 0, 1, 1], [], []>} : vector<143x16xbf16>, vector<16x8xbf16>, vector<143x8xf32> -> vector<143x8xf32>
    %248 = arith.addf %244, %247 : vector<143x8xf32>
    %c0_184 = arith.constant 0 : index
    %c0_185 = arith.constant 0 : index
    %249 = vector.load %arg16[%c0_184, %c0_185] : memref<1x8xf32, #tpu.memory_space<vmem>>, vector<1x8xf32>
    %250 = vector.broadcast %249 : vector<1x8xf32> to vector<143x8xf32>
    %251 = arith.addf %248, %250 : vector<143x8xf32>
    %c0_186 = arith.constant 0 : index
    %c0_187 = arith.constant 0 : index
    %c0_188 = arith.constant 0 : index
    %252 = vector.load %arg17[%c0_186, %c0_187, %c0_188] : memref<1x143x8xf32, #tpu.memory_space<vmem>>, vector<1x143x8xf32>
    %253 = vector.shape_cast %252 : vector<1x143x8xf32> to vector<143x8xf32>
    %254 = vector.shape_cast %251 : vector<143x8xf32> to vector<1x143x8xf32>
    tpu.vector_store %arg17[%c0_186, %c0_187, %c0_188], %254 {strides = array<i32>} : memref<1x143x8xf32, #tpu.memory_space<vmem>>, vector<1x143x8xf32>,
    return
  }
  func.func @transform_0(%arg0: i32) -> (i32, i32, i32) {
    %c0_i32 = arith.constant 0 : i32
    %c0_i32_0 = arith.constant 0 : i32
    %c0_i32_1 = arith.constant 0 : i32
    return %arg0, %c0_i32, %c0_i32_0 : i32, i32, i32
  }
  func.func @transform_1(%arg0: i32) -> (i32, i32) {
    %c0_i32 = arith.constant 0 : i32
    %c0_i32_0 = arith.constant 0 : i32
    %c0_i32_1 = arith.constant 0 : i32
    return %c0_i32, %c0_i32_0 : i32, i32
  }
  func.func @transform_2(%arg0: i32) -> (i32, i32) {
    %c0_i32 = arith.constant 0 : i32
    %c0_i32_0 = arith.constant 0 : i32
    %c0_i32_1 = arith.constant 0 : i32
    return %c0_i32, %c0_i32_0 : i32, i32
  }
  func.func @transform_3(%arg0: i32) -> (i32, i32) {
    %c0_i32 = arith.constant 0 : i32
    %c0_i32_0 = arith.constant 0 : i32
    %c0_i32_1 = arith.constant 0 : i32
    return %c0_i32, %c0_i32_0 : i32, i32
  }
  func.func @transform_4(%arg0: i32) -> (i32, i32) {
    %c0_i32 = arith.constant 0 : i32
    %c0_i32_0 = arith.constant 0 : i32
    %c0_i32_1 = arith.constant 0 : i32
    return %c0_i32, %c0_i32_0 : i32, i32
  }
  func.func @transform_5(%arg0: i32) -> (i32, i32) {
    %c0_i32 = arith.constant 0 : i32
    %c0_i32_0 = arith.constant 0 : i32
    %c0_i32_1 = arith.constant 0 : i32
    return %c0_i32, %c0_i32_0 : i32, i32
  }
  func.func @transform_6(%arg0: i32) -> (i32, i32) {
    %c0_i32 = arith.constant 0 : i32
    %c0_i32_0 = arith.constant 0 : i32
    %c0_i32_1 = arith.constant 0 : i32
    return %c0_i32, %c0_i32_0 : i32, i32
  }
  func.func @transform_7(%arg0: i32) -> (i32, i32) {
    %c0_i32 = arith.constant 0 : i32
    %c0_i32_0 = arith.constant 0 : i32
    %c0_i32_1 = arith.constant 0 : i32
    return %c0_i32, %c0_i32_0 : i32, i32
  }
  func.func @transform_8(%arg0: i32) -> (i32, i32) {
    %c0_i32 = arith.constant 0 : i32
    %c0_i32_0 = arith.constant 0 : i32
    %c0_i32_1 = arith.constant 0 : i32
    return %c0_i32, %c0_i32_0 : i32, i32
  }
  func.func @transform_9(%arg0: i32) -> (i32, i32) {
    %c0_i32 = arith.constant 0 : i32
    %c0_i32_0 = arith.constant 0 : i32
    %c0_i32_1 = arith.constant 0 : i32
    return %c0_i32, %c0_i32_0 : i32, i32
  }
  func.func @transform_10(%arg0: i32) -> (i32, i32) {
    %c0_i32 = arith.constant 0 : i32
    %c0_i32_0 = arith.constant 0 : i32
    %c0_i32_1 = arith.constant 0 : i32
    return %c0_i32, %c0_i32_0 : i32, i32
  }
  func.func @transform_11(%arg0: i32) -> (i32, i32) {
    %c0_i32 = arith.constant 0 : i32
    %c0_i32_0 = arith.constant 0 : i32
    %c0_i32_1 = arith.constant 0 : i32
    return %c0_i32, %c0_i32_0 : i32, i32
  }
  func.func @transform_12(%arg0: i32) -> (i32, i32) {
    %c0_i32 = arith.constant 0 : i32
    %c0_i32_0 = arith.constant 0 : i32
    %c0_i32_1 = arith.constant 0 : i32
    return %c0_i32, %c0_i32_0 : i32, i32
  }
  func.func @transform_13(%arg0: i32) -> (i32, i32) {
    %c0_i32 = arith.constant 0 : i32
    %c0_i32_0 = arith.constant 0 : i32
    %c0_i32_1 = arith.constant 0 : i32
    return %c0_i32, %c0_i32_0 : i32, i32
  }
  func.func @transform_14(%arg0: i32) -> (i32, i32) {
    %c0_i32 = arith.constant 0 : i32
    %c0_i32_0 = arith.constant 0 : i32
    %c0_i32_1 = arith.constant 0 : i32
    return %c0_i32, %c0_i32_0 : i32, i32
  }
  func.func @transform_15(%arg0: i32) -> (i32, i32) {
    %c0_i32 = arith.constant 0 : i32
    %c0_i32_0 = arith.constant 0 : i32
    %c0_i32_1 = arith.constant 0 : i32
    return %c0_i32, %c0_i32_0 : i32, i32
  }
  func.func @transform_16(%arg0: i32) -> (i32, i32, i32) {
    %c0_i32 = arith.constant 0 : i32
    %c0_i32_0 = arith.constant 0 : i32
    %c0_i32_1 = arith.constant 0 : i32
    return %arg0, %c0_i32, %c0_i32_0 : i32, i32, i32
  }
}

</mosaic_0001>

<bundles_post_ra>
// kernel: down_block_forward.1
= control target key start
LH: loop header
LB: loop body
LE: loop exit
PB: predicated region body
PF: predicated region fallthrough
CT: control target
= control target key end

     0   :  { %s9038_s21 = smov 0   ;;  %s12672_s0 = inlined_call_operand.vmem [shape: f32[2,176,4], index: 0, kind: input, shape index: {}]   ;;  %s12673_s1 = inlined_call_operand.vmem [shape: f32[143,1], index: 1, kind: input, shape index: {}]   ;;  %s12674_s2 = inlined_call_operand.vmem [shape: f32[16,16], index: 2, kind: input, shape index: {}]   ;;  %s12675_s3 = inlined_call_operand.vmem [shape: bf16[36,16], index: 3, kind: input, shape index: {}]   ;;  %s12676_s4 = inlined_call_operand.vmem [shape: f32[1,16], index: 4, kind: input, shape index: {}]   ;;  %s12677_s5 = inlined_call_operand.vmem [shape: f32[1,16], index: 5, kind: input, shape index: {}]   ;;  %s12678_s6 = inlined_call_operand.vmem [shape: f32[1,16], index: 6, kind: input, shape index: {}]   ;;  %s12679_s7 = inlined_call_operand.vmem [shape: bf16[36,16], index: 7, kind: input, shape index: {}]   ;;  %s12680_s8 = inlined_call_operand.vmem [shape: bf16[144,16], index: 8, kind: input, shape index: {}]   ;;  %s12681_s9 = inlined_call_operand.vmem [shape: f32[1,16], index: 9, kind: input, shape index: {}]   ;;  %s12682_s10 = inlined_call_operand.vmem [shape: f32[1,16], index: 10, kind: input, shape index: {}]   ;;  %s12683_s11 = inlined_call_operand.vmem [shape: f32[1,16], index: 11, kind: input, shape index: {}]   ;;  %s12684_s12 = inlined_call_operand.vmem [shape: bf16[4,8], index: 12, kind: input, shape index: {}]   ;;  %s12685_s13 = inlined_call_operand.vmem [shape: bf16[16,8], index: 13, kind: input, shape index: {}]   ;;  %s12686_s14 = inlined_call_operand.vmem [shape: bf16[16,8], index: 14, kind: input, shape index: {}]   ;;  %s12687_s15 = inlined_call_operand.vmem [shape: f32[1,8], index: 15, kind: input, shape index: {}]   ;;  %s12688_s16 = inlined_call_operand.vmem [shape: f32[2,143,8], index: 16, kind: output, shape index: {}]  }
   0x1   :  { %12752 = sst [smem:[#allocation78_spill]] %s12672_s0 }
   0x2 LB: > { %s6995_s22 = sadd.s32 4294967295, %s8947_s21   ;;  %p6999_p0 = scmp.ge.s32.totalorder %s8947_s21, 1  ;;  %s8947_s21 = sphi %s9038_s21, %s26_s21  }
   0x3   : > { %p462_p1 = scmp.lt.s32.totalorder %s8947_s21, 3 }
   0x5   : > { %p463_p2 = pnand %p6999_p0, %p462_p1 }
   0x7   : > { %466 = sbr.rel (%p463_p2) target bundleno = 2073 (0x819), region = 84 }
   0xe   : > { %v8846_v0 = vld [vmem:[%s12675_s3] ss:$0 sps:$4 sm:$0xcc]   ;;  %v12701_v1 = vmov 0.0   ;;  %vm631_vm0 = vcmask 1041408   ;;  %p512_p3 = scmp.lt.s32.totalorder %s6995_s22, 1 }
   0xf   : > { %7648 = vmatprep.subr.bf16.mxu0 %v12701_v1  ;;  %v543_v2 = vld [vmem:[%s12675_s3] sm:$0x3]  ;;  %8828 = vmatprep.subr.bf16.mxu1 %v12701_v1  ;;  %v602_v3 = vrot.slane %v8846_v0, 2  ;;  %vm8950_vm1 = vmmov 0   ;;  %s12753_s17 = sld [smem:[#allocation78_spill]]  ;;  %vm603_vm2 = vcmask 31744  }
  0x10   : > { %7650 = vmatprep.mubr.msk.bf16.mxu0 %vm8950_vm1, %v12701_v1  ;;  %v768_v4 = vsel %vm631_vm0, %v543_v2, 0  ;;  %7692 = vmatprep.mubr.msk.bf16.mxu1 %vm8950_vm1, %v12701_v1  ;;  %s12980_s22 = smov (!%p512_p3, %s6995_s22), 1  ;;  %v8847_v5 = vld [vmem:[%s12675_s3 + $0x4] ss:$0 sps:$4 sm:$0xcc]   ;;  %vm2397_vm3 = vcmask 130048  }
  0x11   : > { %8829 = vmatpush3.bf16.msra.mxu1 %v768_v4  ;;  %v633_v6 = vsel %vm631_vm0, %v602_v3, 0  ;;  %s8830_s29 = smul.u32 176, %s12980_s22  ;;  %v1087_v7 = vrot.slane %v8847_v5, 2  ;;  %v8848_v57 = vld [vmem:[%s12675_s3 + $0x8] ss:$0 sps:$4 sm:$0xcc]  }
  0x12   : > { %7762 = vmatprep.subr.bf16.mxu1 %v12701_v1  ;;  %7649 = vmatpush3.bf16.msra.mxu0 %v633_v6  ;;  %v1453_v63 = vrot.slane %v8848_v57, 2  ;;  %v875_v5 = vld [vmem:[%s12675_s3 + $0x4] sm:$0x3]  ;;  %2719 = vst.msk [vmem:[#allocation2] sm:$0xff] %vm2397_vm3, %v12701_v1  ;;  %2720 = vst.msk [vmem:[#allocation2 + $0x8] sm:$0xff] %vm2397_vm3, %v12701_v1 }
  0x13   : > { %7686 = vmatprep.subr.bf16.mxu0 %v12701_v1  ;;  %v1116_v14 = vsel %vm631_vm0, %v1087_v7, 0  ;;  %2721 = vst.msk [vmem:[#allocation2 + $0x10] sm:$0xff] %vm2397_vm3, %v12701_v1  ;;  %2722 = vst.msk [vmem:[#allocation2 + $0x18] sm:$0xff] %vm2397_vm3, %v12701_v1 }
  0x14   : > { %v1482_v2 = vsel %vm631_vm0, %v1453_v63, 0  ;;  %2723 = vst.msk [vmem:[#allocation2 + $0x20] sm:$0xff] %vm2397_vm3, %v12701_v1  ;;  %2724 = vst.msk [vmem:[#allocation2 + $0x28] sm:$0xff] %vm2397_vm3, %v12701_v1 }
  0x15   : > { %s9071_s18 = scalar_lea.vmem %s12753_s17, %s8830_s29  ;;  %2725 = vst.msk [vmem:[#allocation2 + $0x30] sm:$0xff] %vm2397_vm3, %v12701_v1  ;;  %2726 = vst.msk [vmem:[#allocation2 + $0x38] sm:$0xff] %vm2397_vm3, %v12701_v1  ;;  %s8831_s29 = smul.u32 144, %s12980_s22 }
  0x16   : > { %v572_v8 = vld [vmem:[%s9071_s18 + $0x1] sm:$0xff]  ;;  %v573_v9 = vld [vmem:[%s9071_s18 + $0x9] sm:$0xff]  ;;  %v547_v12 = vld [vmem:[%s9071_s18 + $0x18] sm:$0xff]  ;;  %2727 = vst.msk [vmem:[#allocation2 + $0x40] sm:$0xff] %vm2397_vm3, %v12701_v1 }
  0x17   : > { %v590_v10 = vpack.c.bf16 %v573_v9, %v572_v8  ;;  %v546_v11 = vld [vmem:[%s9071_s18 + $0x10] sm:$0xff]  ;;  %v575_v16 = vld [vmem:[%s9071_s18 + $0x19] sm:$0xff]  ;;  %v549_v18 = vld [vmem:[%s9071_s18 + $0x28] sm:$0xff]  ;;  %v931_v9 = vsel %vm631_vm0, %v875_v5, 0  ;;  %2728 = vst.msk [vmem:[#allocation2 + $0x48] sm:$0xff] %vm2397_vm3, %v12701_v1  ;;  %s12597_s19 = scalar_lea.vmem %s12688_s16, %s8831_s29 }
  0x18   : > { %v563_v13 = vpack.c.bf16 %v547_v12, %v546_v11  ;;  %v574_v15 = vld [vmem:[%s9071_s18 + $0x11] sm:$0xff]  ;;  %v548_v17 = vld [vmem:[%s9071_s18 + $0x20] sm:$0xff]  ;;  %v577_v22 = vld [vmem:[%s9071_s18 + $0x29] sm:$0xff]  ;;  %2729 = vst.msk [vmem:[#allocation2 + $0x50] sm:$0xff] %vm2397_vm3, %v12701_v1 }
  0x19   : > { %7651 = vmatmul.mubr.msk.bf16.vlgmr.msra.gmra.mrb[0].mxu0 %vm603_vm2, %v590_v10  ;;  %v591_v19 = vpack.c.bf16 %v575_v16, %v574_v15  ;;  %v564_v20 = vpack.c.bf16 %v549_v18, %v548_v17  ;;  %v576_v21 = vld [vmem:[%s9071_s18 + $0x21] sm:$0xff]  ;;  %v550_v23 = vld [vmem:[%s9071_s18 + $0x30] sm:$0xff]  ;;  %v551_v24 = vld [vmem:[%s9071_s18 + $0x38] sm:$0xff]  ;;  %2730 = vst.msk [vmem:[#allocation2 + $0x58] sm:$0xff] %vm2397_vm3, %v12701_v1 }
  0x1a   : > { %7687 = vmatpush3.bf16.msra.mxu0 %v768_v4  ;;  %7654 = vmatprep.mubr.msk.bf16.mxu0 %vm8950_vm1, %v12701_v1  ;;  %v592_v25 = vpack.c.bf16 %v577_v22, %v576_v21  ;;  %v565_v26 = vpack.c.bf16 %v551_v24, %v550_v23  ;;  %v578_v27 = vld [vmem:[%s9071_s18 + $0x31] sm:$0xff]  ;;  %v579_v28 = vld [vmem:[%s9071_s18 + $0x39] sm:$0xff]  ;;  %v553_v30 = vld [vmem:[%s9071_s18 + $0x48] sm:$0xff]  ;;  %2731 = vst.msk [vmem:[#allocation2 + $0x60] sm:$0xff] %vm2397_vm3, %v12701_v1 }
  0x1b   : > { %7693 = vmatmul.mubr.msk.bf16.vlgmr.msra.gmra.mrb[0].mxu1 %vm603_vm2, %v563_v13  ;;  %7724 = vmatprep.subr.bf16.mxu0 %v12701_v1  ;;  %v552_v29 = vld [vmem:[%s9071_s18 + $0x40] sm:$0xff]  ;;  %v593_v31 = vpack.c.bf16 %v579_v28, %v578_v27  ;;  %v581_v34 = vld [vmem:[%s9071_s18 + $0x49] sm:$0xff]  ;;  %v555_v36 = vld [vmem:[%s9071_s18 + $0x58] sm:$0xff]  ;;  %2732 = vst.msk [vmem:[#allocation2 + $0x68] sm:$0xff] %vm2397_vm3, %v12701_v1 }
  0x1c   : > { %7696 = vmatprep.mubr.msk.bf16.mxu1 %vm8950_vm1, %v12701_v1  ;;  %7763 = vmatpush3.bf16.msra.mxu1 %v1116_v14  ;;  %v566_v32 = vpack.c.bf16 %v553_v30, %v552_v29  ;;  %v580_v33 = vld [vmem:[%s9071_s18 + $0x41] sm:$0xff]  ;;  %v554_v35 = vld [vmem:[%s9071_s18 + $0x50] sm:$0xff]  ;;  %v583_v40 = vld [vmem:[%s9071_s18 + $0x59] sm:$0xff]  ;;  %2733 = vst.msk [vmem:[#allocation2 + $0x70] sm:$0xff] %vm2397_vm3, %v12701_v1 }
  0x1d   : > { %7838 = vmatprep.subr.bf16.mxu1 %v12701_v1  ;;  %v594_v37 = vpack.c.bf16 %v581_v34, %v580_v33  ;;  %v567_v38 = vpack.c.bf16 %v555_v36, %v554_v35  ;;  %v582_v39 = vld [vmem:[%s9071_s18 + $0x51] sm:$0xff]  ;;  %v556_v41 = vld [vmem:[%s9071_s18 + $0x60] sm:$0xff]  ;;  %v557_v42 = vld [vmem:[%s9071_s18 + $0x68] sm:$0xff]  ;;  %2734 = vst.msk [vmem:[#allocation2 + $0x78] sm:$0xff] %vm2397_vm3, %v12701_v1 }
  0x1e   : > { %v595_v43 = vpack.c.bf16 %v583_v40, %v582_v39  ;;  %v568_v44 = vpack.c.bf16 %v557_v42, %v556_v41  ;;  %v584_v45 = vld [vmem:[%s9071_s18 + $0x61] sm:$0xff]  ;;  %v585_v46 = vld [vmem:[%s9071_s18 + $0x69] sm:$0xff]  ;;  %v559_v48 = vld [vmem:[%s9071_s18 + $0x78] sm:$0xff]  ;;  %2735 = vst.msk [vmem:[#allocation2 + $0x80] sm:$0xff] %vm2397_vm3, %v12701_v1 }
  0x1f   : > { %v558_v47 = vld [vmem:[%s9071_s18 + $0x70] sm:$0xff]  ;;  %v596_v49 = vpack.c.bf16 %v585_v46, %v584_v45  ;;  %v587_v52 = vld [vmem:[%s9071_s18 + $0x79] sm:$0xff]  ;;  %v561_v54 = vld [vmem:[%s9071_s18 + $0x88] sm:$0x7f]  ;;  %2736 = vst.msk [vmem:[#allocation2 + $0x88] sm:$0xff] %vm2397_vm3, %v12701_v1 }
  0x20   : > { %v569_v50 = vpack.c.bf16 %v559_v48, %v558_v47  ;;  %v586_v51 = vld [vmem:[%s9071_s18 + $0x71] sm:$0xff]  ;;  %v560_v53 = vld [vmem:[%s9071_s18 + $0x80] sm:$0xff]  ;;  %v589_v59 = vld [vmem:[%s9071_s18 + $0x89] sm:$0x7f]  ;;  %2737 = vst.msk [vmem:[#allocation2 + $0x90] sm:$0xff] %vm2397_vm3, %v12701_v1 }
  0x21   : > { %7655 = vmatmul.mubr.msk.bf16.gmra.mrb[4].mxu0 %vm603_vm2, %v591_v19  ;;  %v597_v55 = vpack.c.bf16 %v587_v52, %v586_v51  ;;  %v570_v56 = vpack.c.bf16 %v561_v54, %v560_v53  ;;  %v588_v58 = vld [vmem:[%s9071_s18 + $0x81] sm:$0xff]  ;;  %v1057_v60 = vld [vmem:[%s9071_s18 + $0xd] sm:$0xff]  ;;  %v1058_v61 = vld [vmem:[%s9071_s18 + $0x15] sm:$0xff]  ;;  %2738 = vst.msk [vmem:[#allocation2 + $0x98] sm:$0xff] %vm2397_vm3, %v12701_v1 }
  0x22   : > { %7658 = vmatprep.mubr.msk.bf16.mxu0 %vm8950_vm1, %v12701_v1  ;;  %v598_v62 = vpack.c.bf16 %v589_v59, %v588_v58  ;;  %v1075_v0 = vpack.c.bf16 %v1058_v61, %v1057_v60  ;;  %v544_v3 = vld [vmem:[%s9071_s18] sm:$0xff]  ;;  %v545_v4 = vld [vmem:[%s9071_s18 + $0x8] sm:$0xff]  ;;  %v1062_v15 = vld [vmem:[%s9071_s18 + $0x35] sm:$0xff]  ;;  %2739 = vst.msk [vmem:[#allocation2 + $0xa0] sm:$0xff] %vm2397_vm3, %v12701_v1 }
  0x23   : > { %7697 = vmatmul.mubr.msk.bf16.gmra.mrb[4].mxu1 %vm603_vm2, %v564_v20  ;;  %v1059_v6 = vld [vmem:[%s9071_s18 + $0x1d] sm:$0xff]  ;;  %v1060_v7 = vld [vmem:[%s9071_s18 + $0x25] sm:$0xff]  ;;  %v562_v8 = vpack.c.bf16 %v545_v4, %v544_v3  ;;  %v1061_v14 = vld [vmem:[%s9071_s18 + $0x2d] sm:$0xff]  ;;  %2740 = vst.msk [vmem:[#allocation2 + $0xa8] sm:$0xff] %vm2397_vm3, %v12701_v1 }
  0x24   : > { %7700 = vmatprep.mubr.msk.bf16.mxu1 %vm8950_vm1, %v12701_v1  ;;  %v1076_v10 = vpack.c.bf16 %v1060_v7, %v1059_v6  ;;  %v876_v11 = vld [vmem:[%s9071_s18 + $0x2] sm:$0xff]  ;;  %v877_v12 = vld [vmem:[%s9071_s18 + $0xa] sm:$0xff]  ;;  %v1077_v18 = vpack.c.bf16 %v1062_v15, %v1061_v14  ;;  %v878_v19 = vld [vmem:[%s9071_s18 + $0x12] sm:$0xff] }
  0x25   : > { %v1241_v13 = vld [vmem:[%s12675_s3 + $0x8] sm:$0x3]  ;;  %v894_v16 = vpack.c.bf16 %v877_v12, %v876_v11  ;;  %v9199_v20 = vld [vmem:[%s9071_s18 + $0x1a] sm:$0xff]  ;;  %v1065_v27 = vld [vmem:[%s9071_s18 + $0x4d] sm:$0xff] }
  0x26   : > { %v1297_v17 = vsel %vm631_vm0, %v1241_v13, 0  ;;  %v1063_v21 = vld [vmem:[%s9071_s18 + $0x3d] sm:$0xff]  ;;  %v1064_v22 = vld [vmem:[%s9071_s18 + $0x45] sm:$0xff]  ;;  %v895_v23 = vpack.c.bf16 %v9199_v20, %v878_v19  ;;  %v1066_v28 = vld [vmem:[%s9071_s18 + $0x55] sm:$0xff] }
  0x27   : > { %v1078_v24 = vpack.c.bf16 %v1064_v22, %v1063_v21  ;;  %v1079_v30 = vpack.c.bf16 %v1066_v28, %v1065_v27  ;;  %v1067_v33 = vld [vmem:[%s9071_s18 + $0x5d] sm:$0xff]  ;;  %v1068_v34 = vld [vmem:[%s9071_s18 + $0x65] sm:$0xff]  ;;  %v1069_v39 = vld [vmem:[%s9071_s18 + $0x6d] sm:$0xff] }
  0x28   : > { %v1080_v36 = vpack.c.bf16 %v1068_v34, %v1067_v33  ;;  %v1070_v40 = vld [vmem:[%s9071_s18 + $0x75] sm:$0xff]  ;;  %v1071_v45 = vld [vmem:[%s9071_s18 + $0x7d] sm:$0xff]  ;;  %v1072_v46 = vld [vmem:[%s9071_s18 + $0x85] sm:$0xff] }
  0x29   : > { %7659 = vmatmul.mubr.msk.bf16.gmra.mrb[8].mxu0 %vm603_vm2, %v592_v25  ;;  %v9212_v25 = vld [vmem:[%s9071_s18 + $0x22] sm:$0xff]  ;;  %v1081_v42 = vpack.c.bf16 %v1070_v40, %v1069_v39  ;;  %v1082_v48 = vpack.c.bf16 %v1072_v46, %v1071_v45  ;;  %v1073_v51 = vld [vmem:[%s9071_s18 + $0x8d] sm:$0xff]  ;;  %v1074_v52 = vld [vmem:[%s9071_s18 + $0x95] sm:$0x7f] }
  0x2a   : > { %7662 = vmatprep.mubr.msk.bf16.mxu0 %vm8950_vm1, %v12701_v1  ;;  %v1083_v54 = vpack.c.bf16 %v1074_v52, %v1073_v51  ;;  %v9298_v57 = vld [vmem:[%s9071_s18 + $0x7a] sm:$0xff]  ;;  %v1423_v58 = vld [vmem:[%s9071_s18 + $0xf] sm:$0xff]  ;;  %v1426_v4 = vld [vmem:[%s9071_s18 + $0x27] sm:$0xff] }
  0x2b   : > { %7701 = vmatmul.mubr.msk.bf16.gmra.mrb[8].mxu1 %vm603_vm2, %v565_v26  ;;  %v9215_v26 = vld [vmem:[%s9071_s18 + $0x2a] sm:$0xff]  ;;  %v1424_v59 = vld [vmem:[%s9071_s18 + $0x17] sm:$0xff]  ;;  %v1425_v3 = vld [vmem:[%s9071_s18 + $0x1f] sm:$0xff] }
  0x2c   : > { %7704 = vmatprep.mubr.msk.bf16.mxu1 %vm8950_vm1, %v12701_v1  ;;  %v896_v29 = vpack.c.bf16 %v9215_v26, %v9212_v25  ;;  %v1442_v6 = vpack.c.bf16 %v1426_v4, %v1425_v3  ;;  %v1242_v7 = vld [vmem:[%s9071_s18 + $0xe] sm:$0xff]  ;;  %v1428_v11 = vld [vmem:[%s9071_s18 + $0x37] sm:$0xff]  ;;  %v1249_v33 = vld [vmem:[%s9071_s18 + $0x46] sm:$0xff] }
  0x2d   : > { %v1244_v15 = vld [vmem:[%s9071_s18 + $0x1e] sm:$0xff]  ;;  %v1246_v22 = vld [vmem:[%s9071_s18 + $0x2e] sm:$0xff]  ;;  %v1253_v51 = vld [vmem:[%s9071_s18 + $0x66] sm:$0xff] }
  0x2e   : > { %v1432_v27 = vld [vmem:[%s9071_s18 + $0x57] sm:$0xff]  ;;  %v1433_v34 = vld [vmem:[%s9071_s18 + $0x5f] sm:$0xff]  ;;  %v1250_v40 = vld [vmem:[%s9071_s18 + $0x4e] sm:$0xff] }
  0x2f   : > { %v1436_v45 = vld [vmem:[%s9071_s18 + $0x77] sm:$0xff]  ;;  %v1437_v52 = vld [vmem:[%s9071_s18 + $0x7f] sm:$0xff] }
  0x30   : > { %v1257_v3 = vld [vmem:[%s9071_s18 + $0x86] sm:$0xff]  ;;  %v1789_v4 = vld [vmem:[%s9071_s18 + $0x1b] sm:$0xff] }
  0x31   : > { %7663 = vmatmul.mubr.msk.bf16.gmra.mrb[12].mxu0 %vm603_vm2, %v593_v31  ;;  %v9228_v31 = vld [vmem:[%s9071_s18 + $0x32] sm:$0xff] }
  0x32   : > { %7666 = vmatprep.mubr.msk.bf16.mxu0 %vm8950_vm1, %v12701_v1 }
  0x33   : > { %7705 = vmatmul.mubr.msk.bf16.gmra.mrb[12].mxu1 %vm603_vm2, %v566_v32  ;;  %v9231_v32 = vld [vmem:[%s9071_s18 + $0x3a] sm:$0xff] }
  0x34   : > { %7708 = vmatprep.mubr.msk.bf16.mxu1 %vm8950_vm1, %v12701_v1  ;;  %v897_v35 = vpack.c.bf16 %v9231_v32, %v9228_v31 }
  0x39   : > { %7667 = vmatmul.mubr.msk.bf16.gmra.mrb[16].mxu0 %vm603_vm2, %v594_v37  ;;  %v9244_v37 = vld [vmem:[%s9071_s18 + $0x42] sm:$0xff] }
  0x3a   : > { %7670 = vmatprep.mubr.msk.bf16.mxu0 %vm8950_vm1, %v12701_v1 }
  0x3b   : > { %7709 = vmatmul.mubr.msk.bf16.gmra.mrb[16].mxu1 %vm603_vm2, %v567_v38  ;;  %v9247_v38 = vld [vmem:[%s9071_s18 + $0x4a] sm:$0xff] }
  0x3c   : > { %7712 = vmatprep.mubr.msk.bf16.mxu1 %vm8950_vm1, %v12701_v1  ;;  %v898_v41 = vpack.c.bf16 %v9247_v38, %v9244_v37 }
  0x41   : > { %7671 = vmatmul.mubr.msk.bf16.gmra.mrb[20].mxu0 %vm603_vm2, %v595_v43  ;;  %v9260_v43 = vld [vmem:[%s9071_s18 + $0x52] sm:$0xff] }
  0x42   : > { %7674 = vmatprep.mubr.msk.bf16.mxu0 %vm8950_vm1, %v12701_v1 }
  0x43   : > { %7713 = vmatmul.mubr.msk.bf16.gmra.mrb[20].mxu1 %vm603_vm2, %v568_v44  ;;  %v9263_v44 = vld [vmem:[%s9071_s18 + $0x5a] sm:$0xff] }
  0x44   : > { %7716 = vmatprep.mubr.msk.bf16.mxu1 %vm8950_vm1, %v12701_v1  ;;  %v899_v47 = vpack.c.bf16 %v9263_v44, %v9260_v43 }
  0x49   : > { %7675 = vmatmul.mubr.msk.bf16.gmra.mrb[24].mxu0 %vm603_vm2, %v596_v49  ;;  %v9276_v49 = vld [vmem:[%s9071_s18 + $0x62] sm:$0xff] }
  0x4a   : > { %7678 = vmatprep.mubr.msk.bf16.mxu0 %vm8950_vm1, %v12701_v1 }
  0x4b   : > { %7717 = vmatmul.mubr.msk.bf16.gmra.mrb[24].mxu1 %vm603_vm2, %v569_v50  ;;  %v9279_v50 = vld [vmem:[%s9071_s18 + $0x6a] sm:$0xff] }
  0x4c   : > { %7720 = vmatprep.mubr.msk.bf16.mxu1 %vm8950_vm1, %v12701_v1  ;;  %v900_v53 = vpack.c.bf16 %v9279_v50, %v9276_v49 }
  0x51   : > { %7679 = vmatmul.mubr.msk.bf16.gmra.mrb[28].mxu0 %vm603_vm2, %v597_v55  ;;  %v8849_v55 = vld [vmem:[%s12675_s3 + $0xc] ss:$0 sps:$4 sm:$0xcc]  }
  0x52   : > { %7682 = vmatprep.mubr.msk.bf16.mxu0 %vm8950_vm1, %v12701_v1  ;;  %v1819_v61 = vrot.slane %v8849_v55, 2 }
  0x53   : > { %7721 = vmatmul.mubr.msk.bf16.gmra.mrb[28].mxu1 %vm603_vm2, %v570_v56  ;;  %v9295_v56 = vld [vmem:[%s9071_s18 + $0x72] sm:$0xff] }
  0x54   : > { %7764 = vmatprep.mubr.msk.bf16.mxu1 %vm8950_vm1, %v12701_v1  ;;  %v901_v60 = vpack.c.bf16 %v9298_v57, %v9295_v56  ;;  %v1848_v63 = vsel %vm631_vm0, %v1819_v61, 0  ;;  %v1440_v61 = vld [vmem:[%s9071_s18 + $0x97] sm:$0x7f] }
  0x59   : > { %7683 = vmatmul.mubr.msk.bf16.gmra.mrb[32].mxu0 %vm603_vm2, %v598_v62  ;;  %v1441_v62 = vpack.c.bf16 %v1424_v59, %v1423_v58  ;;  %v1254_v58 = vld [vmem:[%s9071_s18 + $0x6e] sm:$0xff]  ;;  %v1255_v59 = vld [vmem:[%s9071_s18 + $0x76] sm:$0xff] }
  0x5a   : > { %7688 = vmatprep.mubr.msk.bf16.mxu0 %vm8950_vm1, %v12701_v1 }
  0x5b   : > { %7765 = vmatmul.mubr.msk.bf16.vlgmr.msra.gmra.mrb[32].mxu1 %vm603_vm2, %v1075_v0  ;;  %v9312_v0 = vld [vmem:[%s9071_s18 + $0x82] sm:$0xff] }
  0x5c   : > { %7768 = vmatprep.mubr.msk.bf16.mxu1 %vm8950_vm1, %v12701_v1  ;;  %7839 = vmatpush3.bf16.msra.mxu1 %v1482_v2  ;;  %v893_v2 = vld [vmem:[%s9071_s18 + $0x8a] sm:$0x7f] }
  0x5d   : > { %7914 = vmatprep.subr.bf16.mxu1 %v12701_v1  ;;  %v902_v5 = vpack.c.bf16 %v893_v2, %v9312_v0  ;;  %v1256_v2 = vld [vmem:[%s9071_s18 + $0x7e] sm:$0xff] }
  0x61   : > { %7689 = vmatmul.mubr.msk.bf16.vlgmr.msra.gmra.mrb[36].mxu0 %vm603_vm2, %v562_v8  ;;  %v1243_v8 = vld [vmem:[%s9071_s18 + $0x16] sm:$0xff] }
  0x62   : > { %7725 = vmatpush3.bf16.msra.mxu0 %v931_v9  ;;  %7726 = vmatprep.mubr.msk.bf16.mxu0 %vm8950_vm1, %v12701_v1  ;;  %v1607_v9 = vld [vmem:[%s12675_s3 + $0xc] sm:$0x3]  ;;  %v1260_v12 = vpack.c.bf16 %v1243_v8, %v1242_v7  ;;  %v1258_v8 = vld [vmem:[%s9071_s18 + $0x8e] sm:$0xff] }
  0x63   : > { %7800 = vmatprep.subr.bf16.mxu0 %v12701_v1  ;;  %7769 = vmatmul.mubr.msk.bf16.gmra.mrb[36].mxu1 %vm603_vm2, %v1076_v10  ;;  %v1427_v10 = vld [vmem:[%s9071_s18 + $0x2f] sm:$0xff]  ;;  %v1663_v13 = vsel %vm631_vm0, %v1607_v9, 0 }
  0x64   : > { %7772 = vmatprep.mubr.msk.bf16.mxu1 %vm8950_vm1, %v12701_v1  ;;  %v1443_v14 = vpack.c.bf16 %v1428_v11, %v1427_v10  ;;  %v1259_v9 = vld [vmem:[%s9071_s18 + $0x96] sm:$0x7f]  ;;  %v1791_v11 = vld [vmem:[%s9071_s18 + $0x2b] sm:$0xff] }
  0x69   : > { %7727 = vmatmul.mubr.msk.bf16.vlgmr.msra.gmra.mrb[40].mxu0 %vm603_vm2, %v894_v16  ;;  %v1245_v16 = vld [vmem:[%s9071_s18 + $0x26] sm:$0xff] }
  0x6a   : > { %7801 = vmatpush3.bf16.msra.mxu0 %v1297_v17  ;;  %7730 = vmatprep.mubr.msk.bf16.mxu0 %vm8950_vm1, %v12701_v1  ;;  %v1429_v17 = vld [vmem:[%s9071_s18 + $0x3f] sm:$0xff]  ;;  %v1261_v19 = vpack.c.bf16 %v1245_v16, %v1244_v15 }
  0x6b   : > { %7773 = vmatmul.mubr.msk.bf16.gmra.mrb[40].mxu1 %vm603_vm2, %v1077_v18  ;;  %7876 = vmatprep.subr.bf16.mxu0 %v12701_v1  ;;  %v1430_v18 = vld [vmem:[%s9071_s18 + $0x47] sm:$0xff] }
  0x6c   : > { %7776 = vmatprep.mubr.msk.bf16.mxu1 %vm8950_vm1, %v12701_v1  ;;  %v1444_v21 = vpack.c.bf16 %v1430_v18, %v1429_v17 }
  0x71   : > { %7731 = vmatmul.mubr.msk.bf16.gmra.mrb[44].mxu0 %vm603_vm2, %v895_v23  ;;  %v1247_v23 = vld [vmem:[%s9071_s18 + $0x36] sm:$0xff] }
  0x72   : > { %7734 = vmatprep.mubr.msk.bf16.mxu0 %vm8950_vm1, %v12701_v1  ;;  %v1262_v28 = vpack.c.bf16 %v1247_v23, %v1246_v22 }
  0x73   : > { %7777 = vmatmul.mubr.msk.bf16.gmra.mrb[44].mxu1 %vm603_vm2, %v1078_v24  ;;  %v1431_v24 = vld [vmem:[%s9071_s18 + $0x4f] sm:$0xff] }
  0x74   : > { %7780 = vmatprep.mubr.msk.bf16.mxu1 %vm8950_vm1, %v12701_v1 }
  0x79   : > { %7735 = vmatmul.mubr.msk.bf16.gmra.mrb[48].mxu0 %vm603_vm2, %v896_v29  ;;  %v1445_v29 = vpack.c.bf16 %v1432_v27, %v1431_v24  ;;  %v1973_v24 = vld [vmem:[%s12675_s3 + $0x10] sm:$0x3]  ;;  %v1793_v27 = vld [vmem:[%s9071_s18 + $0x3b] sm:$0xff] }
  0x7a   : > { %7738 = vmatprep.mubr.msk.bf16.mxu0 %vm8950_vm1, %v12701_v1 }
  0x7b   : > { %7781 = vmatmul.mubr.msk.bf16.gmra.mrb[48].mxu1 %vm603_vm2, %v1079_v30  ;;  %v1248_v30 = vld [vmem:[%s9071_s18 + $0x3e] sm:$0xff] }
  0x7c   : > { %7784 = vmatprep.mubr.msk.bf16.mxu1 %vm8950_vm1, %v12701_v1 }
  0x81   : > { %7739 = vmatmul.mubr.msk.bf16.gmra.mrb[52].mxu0 %vm603_vm2, %v897_v35  ;;  %v1434_v35 = vld [vmem:[%s9071_s18 + $0x67] sm:$0xff] }
  0x82   : > { %7742 = vmatprep.mubr.msk.bf16.mxu0 %vm8950_vm1, %v12701_v1  ;;  %v1446_v39 = vpack.c.bf16 %v1434_v35, %v1433_v34 }
  0x83   : > { %7785 = vmatmul.mubr.msk.bf16.gmra.mrb[52].mxu1 %vm603_vm2, %v1080_v36  ;;  %v1263_v36 = vpack.c.bf16 %v1249_v33, %v1248_v30  ;;  %v1626_v33 = vpack.c.bf16 %v9212_v25, %v9199_v20  ;;  %v1795_v25 = vld [vmem:[%s9071_s18 + $0x4b] sm:$0xff] }
  0x84   : > { %7788 = vmatprep.mubr.msk.bf16.mxu1 %vm8950_vm1, %v12701_v1 }
  0x89   : > { %7743 = vmatmul.mubr.msk.bf16.gmra.mrb[56].mxu0 %vm603_vm2, %v898_v41  ;;  %v1251_v41 = vld [vmem:[%s9071_s18 + $0x56] sm:$0xff] }
  0x8a   : > { %7746 = vmatprep.mubr.msk.bf16.mxu0 %vm8950_vm1, %v12701_v1  ;;  %v1264_v46 = vpack.c.bf16 %v1251_v41, %v1250_v40  ;;  %v2029_v40 = vsel %vm631_vm0, %v1973_v24, 0 }
  0x8b   : > { %7789 = vmatmul.mubr.msk.bf16.gmra.mrb[56].mxu1 %vm603_vm2, %v1081_v42  ;;  %v1435_v42 = vld [vmem:[%s9071_s18 + $0x6f] sm:$0xff] }
  0x8c   : > { %7792 = vmatprep.mubr.msk.bf16.mxu1 %vm8950_vm1, %v12701_v1 }
  0x91   : > { %7747 = vmatmul.mubr.msk.bf16.gmra.mrb[60].mxu0 %vm603_vm2, %v899_v47  ;;  %v1447_v47 = vpack.c.bf16 %v1436_v45, %v1435_v42 }
  0x92   : > { %7750 = vmatprep.mubr.msk.bf16.mxu0 %vm8950_vm1, %v12701_v1 }
  0x93   : > { %7793 = vmatmul.mubr.msk.bf16.gmra.mrb[60].mxu1 %vm603_vm2, %v1082_v48  ;;  %v1252_v48 = vld [vmem:[%s9071_s18 + $0x5e] sm:$0xff] }
  0x94   : > { %7796 = vmatprep.mubr.msk.bf16.mxu1 %vm8950_vm1, %v12701_v1 }
  0x99   : > { %7751 = vmatmul.mubr.msk.bf16.gmra.mrb[64].mxu0 %vm603_vm2, %v900_v53  ;;  %v1438_v53 = vld [vmem:[%s9071_s18 + $0x87] sm:$0xff] }
  0x9a   : > { %7754 = vmatprep.mubr.msk.bf16.mxu0 %vm8950_vm1, %v12701_v1  ;;  %v1448_v55 = vpack.c.bf16 %v1438_v53, %v1437_v52  ;;  %v1627_v52 = vpack.c.bf16 %v9228_v31, %v9215_v26  ;;  %v1797_v26 = vld [vmem:[%s9071_s18 + $0x5b] sm:$0xff]  ;;  %v1798_v31 = vld [vmem:[%s9071_s18 + $0x63] sm:$0xff] }
  0x9b   : > { %7797 = vmatmul.mubr.msk.bf16.gmra.mrb[64].mxu1 %vm603_vm2, %v1083_v54  ;;  %v1265_v54 = vpack.c.bf16 %v1253_v51, %v1252_v48 }
  0x9c   : > { %7840 = vmatprep.mubr.msk.bf16.mxu1 %vm8950_vm1, %v12701_v1 }
  0xa1   : > { %7755 = vmatmul.mubr.msk.bf16.gmra.mrb[68].mxu0 %vm603_vm2, %v901_v60  ;;  %v1439_v60 = vld [vmem:[%s9071_s18 + $0x8f] sm:$0xff] }
  0xa2   : > { %7758 = vmatprep.mubr.msk.bf16.mxu0 %vm8950_vm1, %v12701_v1 }
  0xa3   : > { %7841 = vmatmul.mubr.msk.bf16.vlgmr.msra.gmra.mrb[68].mxu1 %vm603_vm2, %v1441_v62  ;;  %v1266_v62 = vpack.c.bf16 %v1255_v59, %v1254_v58 }
  0xa4   : > { %7844 = vmatprep.mubr.msk.bf16.mxu1 %vm8950_vm1, %v12701_v1  ;;  %7915 = vmatpush3.bf16.msra.mxu1 %v1848_v63  ;;  %v1449_v63 = vpack.c.bf16 %v1440_v61, %v1439_v60 }
  0xa9   : > { %7759 = vmatmul.mubr.msk.bf16.gmra.mrb[72].mxu0 %vm603_vm2, %v902_v5  ;;  %v1790_v5 = vld [vmem:[%s9071_s18 + $0x23] sm:$0xff] }
  0xaa   : > { %7802 = vmatprep.mubr.msk.bf16.mxu0 %vm8950_vm1, %v12701_v1  ;;  %v1807_v7 = vpack.c.bf16 %v1790_v5, %v1789_v4  ;;  %v1628_v4 = vpack.c.bf16 %v9244_v37, %v9231_v32  ;;  %v1799_v32 = vld [vmem:[%s9071_s18 + $0x6b] sm:$0xff]  ;;  %v1800_v37 = vld [vmem:[%s9071_s18 + $0x73] sm:$0xff] }
  0xab   : > { %7845 = vmatmul.mubr.msk.bf16.gmra.mrb[72].mxu1 %vm603_vm2, %v1442_v6  ;;  %v1267_v6 = vpack.c.bf16 %v1257_v3, %v1256_v2 }
  0xac   : > { %7848 = vmatprep.mubr.msk.bf16.mxu1 %vm8950_vm1, %v12701_v1 }
  0xb1   : > { %7803 = vmatmul.mubr.msk.bf16.vlgmr.msra.gmra.mrb[76].mxu0 %vm603_vm2, %v1260_v12  ;;  %v1792_v12 = vld [vmem:[%s9071_s18 + $0x33] sm:$0xff] }
  0xb2   : > { %7877 = vmatpush3.bf16.msra.mxu0 %v1663_v13  ;;  %7806 = vmatprep.mubr.msk.bf16.mxu0 %vm8950_vm1, %v12701_v1 }
  0xb3   : > { %7849 = vmatmul.mubr.msk.bf16.gmra.mrb[76].mxu1 %vm603_vm2, %v1443_v14  ;;  %7952 = vmatprep.subr.bf16.mxu0 %v12701_v1  ;;  %v1268_v14 = vpack.c.bf16 %v1259_v9, %v1258_v8 }
  0xb4   : > { %7852 = vmatprep.mubr.msk.bf16.mxu1 %vm8950_vm1, %v12701_v1 }
  0xb9   : > { %7807 = vmatmul.mubr.msk.bf16.gmra.mrb[80].mxu0 %vm603_vm2, %v1261_v19  ;;  %v1808_v19 = vpack.c.bf16 %v1792_v12, %v1791_v11  ;;  %v1811_v11 = vpack.c.bf16 %v1798_v31, %v1797_v26 }
  0xba   : > { %7810 = vmatprep.mubr.msk.bf16.mxu0 %vm8950_vm1, %v12701_v1 }
  0xbb   : > { %7853 = vmatmul.mubr.msk.bf16.gmra.mrb[80].mxu1 %vm603_vm2, %v1444_v21 }
  0xbc   : > { %7856 = vmatprep.mubr.msk.bf16.mxu1 %vm8950_vm1, %v12701_v1 }
  0xc1   : > { %7811 = vmatmul.mubr.msk.bf16.gmra.mrb[84].mxu0 %vm603_vm2, %v1262_v28  ;;  %v1794_v28 = vld [vmem:[%s9071_s18 + $0x43] sm:$0xff] }
  0xc2   : > { %7814 = vmatprep.mubr.msk.bf16.mxu0 %vm8950_vm1, %v12701_v1  ;;  %v1809_v42 = vpack.c.bf16 %v1794_v28, %v1793_v27  ;;  %v1812_v27 = vpack.c.bf16 %v1800_v37, %v1799_v32  ;;  %v8951_v37 = vmov 0  }
  0xc3   : > { %7857 = vmatmul.mubr.msk.bf16.gmra.mrb[84].mxu1 %vm603_vm2, %v1445_v29  ;;  %8844 = vset.pattern.permute.xlu0 %v8951_v37 }
  0xc4   : > { %7860 = vmatprep.mubr.msk.bf16.mxu1 %vm8950_vm1, %v12701_v1  ;;  %8845 = vset.pattern.permute.xlu1 %v8951_v37 }
  0xc9   : > { %7815 = vmatmul.mubr.msk.bf16.gmra.mrb[88].mxu0 %vm603_vm2, %v1263_v36 }
  0xca   : > { %7818 = vmatprep.mubr.msk.bf16.mxu0 %vm8950_vm1, %v12701_v1 }
  0xcb   : > { %7861 = vmatmul.mubr.msk.bf16.gmra.mrb[88].mxu1 %vm603_vm2, %v1446_v39 }
  0xcc   : > { %7864 = vmatprep.mubr.msk.bf16.mxu1 %vm8950_vm1, %v12701_v1 }
  0xd1   : > { %7819 = vmatmul.mubr.msk.bf16.gmra.mrb[92].mxu0 %vm603_vm2, %v1264_v46 }
  0xd2   : > { %7822 = vmatprep.mubr.msk.bf16.mxu0 %vm8950_vm1, %v12701_v1 }
  0xd3   : > { %7865 = vmatmul.mubr.msk.bf16.gmra.mrb[92].mxu1 %vm603_vm2, %v1447_v47  ;;  %v1796_v47 = vld [vmem:[%s9071_s18 + $0x53] sm:$0xff] }
  0xd4   : > { %7868 = vmatprep.mubr.msk.bf16.mxu1 %vm8950_vm1, %v12701_v1  ;;  %v1810_v60 = vpack.c.bf16 %v1796_v47, %v1795_v25 }
  0xd9   : > { %7823 = vmatmul.mubr.msk.bf16.gmra.mrb[96].mxu0 %vm603_vm2, %v1265_v54 }
  0xda   : > { %7826 = vmatprep.mubr.msk.bf16.mxu0 %vm8950_vm1, %v12701_v1 }
  0xdb   : > { %7869 = vmatmul.mubr.msk.bf16.gmra.mrb[96].mxu1 %vm603_vm2, %v1448_v55 }
  0xdc   : > { %7872 = vmatprep.mubr.msk.bf16.mxu1 %vm8950_vm1, %v12701_v1 }
  0xe1   : > { %7827 = vmatmul.mubr.msk.bf16.gmra.mrb[100].mxu0 %vm603_vm2, %v1266_v62 }
  0xe2   : > { %7830 = vmatprep.mubr.msk.bf16.mxu0 %vm8950_vm1, %v12701_v1 }
  0xe3   : > { %7873 = vmatmul.mubr.msk.bf16.gmra.mrb[100].mxu1 %vm603_vm2, %v1449_v63 }
  0xe4   : > { %7916 = vmatprep.mubr.msk.bf16.mxu1 %vm8950_vm1, %v12701_v1 }
  0xe9   : > { %7831 = vmatmul.mubr.msk.bf16.gmra.mrb[104].mxu0 %vm603_vm2, %v1267_v6 }
  0xea   : > { %7834 = vmatprep.mubr.msk.bf16.mxu0 %vm8950_vm1, %v12701_v1 }
  0xeb   : > { %7917 = vmatmul.mubr.msk.bf16.vlgmr.msra.gmra.mrb[104].mxu1 %vm603_vm2, %v1807_v7 }
  0xec   : > { %v9412_v10 = vpop.f32.mrb[0].mxu0  ;;  %7920 = vmatprep.mubr.msk.bf16.mxu1 %vm8950_vm1, %v12701_v1 }
  0xed   : > { %v7652_v13 = vpop.f32.mrb[1].mxu0 }
  0xee   : > { %v9418_v15 = vpop.f32.mrb[2].mxu0  ;;  %v812_v16 = vpop.f32.mrb[0].mxu1 }
  0xef   : > { %v7653_v17 = vpop.f32.mrb[3].mxu0  ;;  %v7694_v18 = vpop.f32.mrb[1].mxu1 }
  0xf0   : > { %v815_v21 = vpop.f32.mrb[2].mxu1  ;;  %v1629_v18 = vpack.c.bf16 %v9260_v43, %v9247_v38  ;;  %v1801_v38 = vld [vmem:[%s9071_s18 + $0x7b] sm:$0xff]  ;;  %v1802_v43 = vld [vmem:[%s9071_s18 + $0x83] sm:$0xff] }
  0xf1   : > { %7835 = vmatmul.mubr.msk.bf16.gmra.mrb[108].mxu0 %vm603_vm2, %v1268_v14  ;;  %v7695_v22 = vpop.f32.mrb[3].mxu1 }
  0xf2   : > { %7878 = vmatprep.mubr.msk.bf16.mxu0 %vm8950_vm1, %v12701_v1 }
  0xf3   : > { %7921 = vmatmul.mubr.msk.bf16.gmra.mrb[108].mxu1 %vm603_vm2, %v1808_v19 }
  0xf4   : > { %v677_v23 = vpop.f32.mrb[4].mxu0  ;;  %7924 = vmatprep.mubr.msk.bf16.mxu1 %vm8950_vm1, %v12701_v1 }
  0xf5   : > { %v9431_v29 = vadd.f32 %v812_v16, %v677_v23  ;;  %v7656_v30 = vpop.f32.mrb[5].mxu0 }
  0xf6   : > { %v680_v34 = vpop.f32.mrb[6].mxu0  ;;  %v820_v35 = vpop.f32.mrb[4].mxu1 }
  0xf7   : > { %v9435_v36 = vadd.f32 %v815_v21, %v680_v34  ;;  %v7657_v39 = vpop.f32.mrb[7].mxu0  ;;  %v7698_v41 = vpop.f32.mrb[5].mxu1 }
  0xf8   : > { %v823_v45 = vpop.f32.mrb[6].mxu1  ;;  %v1630_v39 = vpack.c.bf16 %v9276_v49, %v9263_v44  ;;  %v1803_v44 = vld [vmem:[%s9071_s18 + $0x8b] sm:$0xff]  ;;  %v1804_v49 = vld [vmem:[%s9071_s18 + $0x93] sm:$0xff] }
  0xf9   : > { %7879 = vmatmul.mubr.msk.bf16.vlgmr.msra.gmra.mrb[112].mxu0 %vm603_vm2, %v1626_v33  ;;  %v7699_v46 = vpop.f32.mrb[7].mxu1 }
  0xfa   : > { %7953 = vmatpush3.bf16.msra.mxu0 %v2029_v40  ;;  %7882 = vmatprep.mubr.msk.bf16.mxu0 %vm8950_vm1, %v12701_v1 }
  0xfb   : > { %7925 = vmatmul.mubr.msk.bf16.gmra.mrb[112].mxu1 %vm603_vm2, %v1809_v42  ;;  %8042 = vmatprep.subr.bf16.mxu0 %v12701_v1 }
  0xfc   : > { %v685_v20 = vpop.f32.mrb[8].mxu0  ;;  %7928 = vmatprep.mubr.msk.bf16.mxu1 %vm8950_vm1, %v12701_v1 }
  0xfd   : > { %v9447_v48 = vadd.f32 %v820_v35, %v685_v20  ;;  %v7660_v51 = vpop.f32.mrb[9].mxu0  ;;  %v1813_v20 = vpack.c.bf16 %v1802_v43, %v1801_v38 }
  0xfe   : > { %v688_v53 = vpop.f32.mrb[10].mxu0  ;;  %v828_v54 = vpop.f32.mrb[8].mxu1 }
  0xff   : > { %v9451_v55 = vadd.f32 %v823_v45, %v688_v53  ;;  %v7661_v58 = vpop.f32.mrb[11].mxu0  ;;  %v7702_v59 = vpop.f32.mrb[9].mxu1 }
 0x100   : > { %v831_v61 = vpop.f32.mrb[10].mxu1 }
 0x101   : > { %7883 = vmatmul.mubr.msk.bf16.gmra.mrb[116].mxu0 %vm603_vm2, %v1627_v52  ;;  %v7703_v62 = vpop.f32.mrb[11].mxu1 }
 0x102   : > { %7886 = vmatprep.mubr.msk.bf16.mxu0 %vm8950_vm1, %v12701_v1 }
 0x103   : > { %7929 = vmatmul.mubr.msk.bf16.gmra.mrb[116].mxu1 %vm603_vm2, %v1810_v60 }
 0x104   : > { %v693_v63 = vpop.f32.mrb[12].mxu0  ;;  %7932 = vmatprep.mubr.msk.bf16.mxu1 %vm8950_vm1, %v12701_v1 }
 0x105   : > { %v9461_v2 = vadd.f32 %v828_v54, %v693_v63  ;;  %v7664_v3 = vpop.f32.mrb[13].mxu0  ;;  %v1631_v54 = vpack.c.bf16 %v9295_v56, %v9279_v50  ;;  %v1814_v63 = vpack.c.bf16 %v1804_v49, %v1803_v44  ;;  %v1805_v50 = vld [vmem:[%s9071_s18 + $0x9b] sm:$0xff]  ;;  %v1806_v56 = vld [vmem:[%s9071_s18 + $0xa3] sm:$0x7f] }
 0x106   : > { %v696_v5 = vpop.f32.mrb[14].mxu0  ;;  %v836_v6 = vpop.f32.mrb[12].mxu1 }
 0x107   : > { %v9465_v7 = vadd.f32 %v831_v61, %v696_v5  ;;  %v7665_v8 = vpop.f32.mrb[15].mxu0  ;;  %v7706_v9 = vpop.f32.mrb[13].mxu1 }
 0x108   : > { %v839_v12 = vpop.f32.mrb[14].mxu1 }
 0x109   : > { %7887 = vmatmul.mubr.msk.bf16.gmra.mrb[120].mxu0 %vm603_vm2, %v1628_v4  ;;  %v7707_v13 = vpop.f32.mrb[15].mxu1 }
 0x10a   : > { %7890 = vmatprep.mubr.msk.bf16.mxu0 %vm8950_vm1, %v12701_v1 }
 0x10b   : > { %7933 = vmatmul.mubr.msk.bf16.gmra.mrb[120].mxu1 %vm603_vm2, %v1811_v11 }
 0x10c   : > { %v701_v14 = vpop.f32.mrb[16].mxu0  ;;  %7936 = vmatprep.mubr.msk.bf16.mxu1 %vm8950_vm1, %v12701_v1 }
 0x10d   : > { %v9475_v16 = vadd.f32 %v836_v6, %v701_v14  ;;  %v7668_v17 = vpop.f32.mrb[17].mxu0  ;;  %v1632_v6 = vpack.c.bf16 %v9312_v0, %v9298_v57  ;;  %v1815_v14 = vpack.c.bf16 %v1806_v56, %v1805_v50  ;;  %v1622_v0 = vld [vmem:[%s9071_s18 + $0x8a] sm:$0xff] }
 0x10e   : > { %v704_v19 = vpop.f32.mrb[18].mxu0  ;;  %v844_v21 = vpop.f32.mrb[16].mxu1  ;;  %v523_v17 = vld [vmem:[%s12673_s1] sm:$0xff]  ;;  %v532_v56 = vld [vmem:[%s12673_s1 + $0x48] sm:$0xff] }
 0x10f   : > { %v9479_v22 = vadd.f32 %v839_v12, %v704_v19  ;;  %v7669_v23 = vpop.f32.mrb[19].mxu0  ;;  %v7710_v24 = vpop.f32.mrb[17].mxu1  ;;  %2291 = vperm.xlu0 %8844, %v523_v17  }
 0x110   : > { %v847_v28 = vpop.f32.mrb[18].mxu1  ;;  %v524_v23 = vld [vmem:[%s12673_s1 + $0x8] sm:$0xff] }
 0x111   : > { %7891 = vmatmul.mubr.msk.bf16.gmra.mrb[124].mxu0 %vm603_vm2, %v1629_v18  ;;  %v7711_v30 = vpop.f32.mrb[19].mxu1  ;;  %v1623_v18 = vld [vmem:[%s9071_s18 + $0x92] sm:$0xff] }
 0x112   : > { %7894 = vmatprep.mubr.msk.bf16.mxu0 %vm8950_vm1, %v12701_v1 }
 0x113   : > { %7937 = vmatmul.mubr.msk.bf16.gmra.mrb[124].mxu1 %vm603_vm2, %v1812_v27  ;;  %2296 = vperm.xlu0 %8844, %v524_v23   ;;  %v1976_v23 = vld [vmem:[%s9071_s18 + $0x2c] sm:$0xff] }
 0x114   : > { %v709_v33 = vpop.f32.mrb[20].mxu0  ;;  %7940 = vmatprep.mubr.msk.bf16.mxu1 %vm8950_vm1, %v12701_v1 }
 0x115   : > { %v9489_v34 = vadd.f32 %v844_v21, %v709_v33  ;;  %v7672_v35 = vpop.f32.mrb[21].mxu0  ;;  %v525_v21 = vld [vmem:[%s12673_s1 + $0x10] sm:$0xff] }
 0x116   : > { %v712_v40 = vpop.f32.mrb[22].mxu0  ;;  %v852_v41 = vpop.f32.mrb[20].mxu1  ;;  %2301 = vperm.xlu1 %8845, %v525_v21  }
 0x117   : > { %v9493_v42 = vadd.f32 %v847_v28, %v712_v40  ;;  %v7673_v45 = vpop.f32.mrb[23].mxu0  ;;  %v7714_v46 = vpop.f32.mrb[21].mxu1  ;;  %v1633_v28 = vpack.c.bf16 %v1623_v18, %v1622_v0  ;;  %v526_v40 = vld [vmem:[%s12673_s1 + $0x18] sm:$0xff]  ;;  %v535_v18 = vld [vmem:[%s12673_s1 + $0x60] sm:$0xff] }
 0x118   : > { %v855_v25 = vpop.f32.mrb[22].mxu1  ;;  %v1624_v46 = vld [vmem:[%s9071_s18 + $0x9a] sm:$0xff] }
 0x119   : > { %7895 = vmatmul.mubr.msk.bf16.gmra.mrb[128].mxu0 %vm603_vm2, %v1630_v39  ;;  %v7715_v47 = vpop.f32.mrb[23].mxu1  ;;  %v534_v0 = vld [vmem:[%s12673_s1 + $0x58] sm:$0xff] }
 0x11a   : > { %7898 = vmatprep.mubr.msk.bf16.mxu0 %vm8950_vm1, %v12701_v1  ;;  %2306 = vperm.xlu1 %8845, %v526_v40   ;;  %v528_v47 = vld [vmem:[%s12673_s1 + $0x28] sm:$0xff] }
 0x11b   : > { %7941 = vmatmul.mubr.msk.bf16.gmra.mrb[128].mxu1 %vm603_vm2, %v1813_v20  ;;  %v1625_v20 = vld [vmem:[%s9071_s18 + $0xa2] sm:$0x7f] }
 0x11c   : > { %v717_v51 = vpop.f32.mrb[24].mxu0  ;;  %7944 = vmatprep.mubr.msk.bf16.mxu1 %vm8950_vm1, %v12701_v1 }
 0x11d   : > { %v9503_v52 = vadd.f32 %v852_v41, %v717_v51  ;;  %v7676_v53 = vpop.f32.mrb[25].mxu0  ;;  %v527_v41 = vld [vmem:[%s12673_s1 + $0x20] sm:$0xff]  ;;  %v529_v51 = vld [vmem:[%s12673_s1 + $0x30] sm:$0xff] }
 0x11e   : > { %v720_v58 = vpop.f32.mrb[26].mxu0  ;;  %v860_v59 = vpop.f32.mrb[24].mxu1  ;;  %2311 = vperm.xlu0 %8844, %v527_v41   ;;  %v1634_v53 = vpack.c.bf16 %v1625_v20, %v1624_v46  ;;  %2316 = vperm.xlu1 %8845, %v528_v47  }
 0x11f   : > { %v9507_v60 = vadd.f32 %v855_v25, %v720_v58  ;;  %v7677_v61 = vpop.f32.mrb[27].mxu0  ;;  %v7718_v62 = vpop.f32.mrb[25].mxu1 }
 0x120   : > { %v863_v26 = vpop.f32.mrb[26].mxu1 }
 0x121   : > { %7899 = vmatmul.mubr.msk.bf16.gmra.mrb[132].mxu0 %vm603_vm2, %v1631_v54  ;;  %v7719_v31 = vpop.f32.mrb[27].mxu1 }
 0x122   : > { %7902 = vmatprep.mubr.msk.bf16.mxu0 %vm8950_vm1, %v12701_v1  ;;  %2321 = vperm.xlu0 %8844, %v529_v51   ;;  %v538_v51 = vld [vmem:[%s12673_s1 + $0x78] sm:$0xff] }
 0x123   : > { %7945 = vmatmul.mubr.msk.bf16.gmra.mrb[132].mxu1 %vm603_vm2, %v1814_v63 }
 0x124   : > { %v725_v3 = vpop.f32.mrb[28].mxu0  ;;  %7948 = vmatprep.mubr.msk.bf16.mxu1 %vm8950_vm1, %v12701_v1 }
 0x125   : > { %v9517_v4 = vadd.f32 %v860_v59, %v725_v3  ;;  %v7680_v5 = vpop.f32.mrb[29].mxu0  ;;  %v1974_v3 = vld [vmem:[%s9071_s18 + $0x1c] sm:$0xff] }
 0x126   : > { %v728_v8 = vpop.f32.mrb[30].mxu0  ;;  %v868_v9 = vpop.f32.mrb[28].mxu1  ;;  %v533_v5 = vld [vmem:[%s12673_s1 + $0x50] sm:$0xff] }
 0x127   : > { %v9521_v11 = vadd.f32 %v863_v26, %v728_v8  ;;  %v7681_v12 = vpop.f32.mrb[31].mxu0  ;;  %v7722_v13 = vpop.f32.mrb[29].mxu1  ;;  %v530_v26 = vld [vmem:[%s12673_s1 + $0x38] sm:$0xff] }
 0x128   : > { %v871_v32 = vpop.f32.mrb[30].mxu1  ;;  %2326 = vperm.xlu1 %8845, %v530_v26  }
 0x129   : > { %7903 = vmatmul.mubr.msk.bf16.gmra.mrb[136].mxu0 %vm603_vm2, %v1632_v6  ;;  %v7723_v57 = vpop.f32.mrb[31].mxu1 }
 0x12a   : > { %7906 = vmatprep.mubr.msk.bf16.mxu0 %vm8950_vm1, %v12701_v1 }
 0x12b   : > { %7949 = vmatmul.mubr.msk.bf16.gmra.mrb[136].mxu1 %vm603_vm2, %v1815_v14 }
 0x12c   : > { %v733_v19 = vpop.f32.mrb[32].mxu0  ;;  %7994 = vmatprep.mubr.msk.f32.mxu1 %vm8950_vm1, %v12701_v1  ;;  %2336 = vperm.xlu1 %8845, %v532_v56  }
 0x12d   : > { %v9540_v24 = vadd.f32 %v868_v9, %v733_v19  ;;  %v7684_v27 = vpop.f32.mrb[33].mxu0 }
 0x12e   : > { %v736_v30 = vpop.f32.mrb[34].mxu0  ;;  %v1152_v33 = vpop.f32.mrb[32].mxu1  ;;  %v1977_v27 = vld [vmem:[%s9071_s18 + $0x34] sm:$0xff] }
 0x12f   : > { %v9542_v38 = vadd.f32 %v871_v32, %v736_v30  ;;  %v7685_v43 = vpop.f32.mrb[35].mxu0  ;;  %v7766_v35 = vpop.f32.mrb[33].mxu1  ;;  %v536_v30 = vld [vmem:[%s12673_s1 + $0x68] sm:$0xff] }
 0x130   : > { %v1155_v39 = vpop.f32.mrb[34].mxu1  ;;  %2346 = vperm.xlu1 %8845, %v534_v0  }
 0x131   : > { %7907 = vmatmul.mubr.msk.bf16.gmra.mrb[140].mxu0 %vm603_vm2, %v1633_v28  ;;  %v7767_v45 = vpop.f32.mrb[35].mxu1 }
 0x132   : > { %7910 = vmatprep.mubr.msk.bf16.mxu0 %vm8950_vm1, %v12701_v1 }
 0x134   : > { %v804_v25 = vpop.f32.mrb[36].mxu0  ;;  %2356 = vperm.xlu1 %8845, %v536_v30  }
 0x135   : > { %v805_v44 = vadd.f32 %v804_v25, %v9412_v10  ;;  %v7690_v49 = vpop.f32.mrb[37].mxu0  ;;  %v531_v10 = vld [vmem:[%s12673_s1 + $0x40] sm:$0xff] }
 0x136   : > { %v807_v54 = vpop.f32.mrb[38].mxu0  ;;  %v1160_v58 = vpop.f32.mrb[36].mxu1  ;;  %2331 = vperm.xlu0 %8844, %v531_v10  }
 0x137   : > { %v808_v59 = vadd.f32 %v807_v54, %v9418_v15  ;;  %v7691_v61 = vpop.f32.mrb[39].mxu0  ;;  %v7770_v62 = vpop.f32.mrb[37].mxu1  ;;  %v1975_v15 = vld [vmem:[%s9071_s18 + $0x24] sm:$0xff] }
 0x138   : > { %v1163_v63 = vpop.f32.mrb[38].mxu1  ;;  %v1992_v9 = vpack.c.bf16 %v1975_v15, %v1974_v3  ;;  %2366 = vperm.xlu1 %8845, %v538_v51   ;;  %v1985_v51 = vld [vmem:[%s9071_s18 + $0x74] sm:$0xff] }
 0x139   : > { %7911 = vmatmul.mubr.msk.bf16.gmra.mrb[144].mxu0 %vm603_vm2, %v1634_v53  ;;  %v7771_v31 = vpop.f32.mrb[39].mxu1  ;;  %v1979_v53 = vld [vmem:[%s9071_s18 + $0x44] sm:$0xff] }
 0x13a   : > { %7954 = vmatprep.mubr.msk.bf16.mxu0 %vm8950_vm1, %v12701_v1  ;;  %2341 = vperm.xlu0 %8844, %v533_v5  }
 0x13c   : > { %v967_v50 = vpop.f32.mrb[40].mxu0 }
 0x13d   : > { %v1038_v6 = vadd.f32 %v967_v50, %v805_v44  ;;  %v7728_v8 = vpop.f32.mrb[41].mxu0 }
 0x13e   : > { %v970_v12 = vpop.f32.mrb[42].mxu0  ;;  %v1168_v13 = vpop.f32.mrb[40].mxu1  ;;  %2351 = vperm.xlu0 %8844, %v535_v18  }
 0x13f   : > { %v1039_v14 = vadd.f32 %v970_v12, %v808_v59  ;;  %v9580_v32 = vadd.f32 %v1152_v33, %v1038_v6  ;;  %v7729_v37 = vpop.f32.mrb[43].mxu0  ;;  %v7774_v17 = vpop.f32.mrb[41].mxu1  ;;  %v537_v33 = vld [vmem:[%s12673_s1 + $0x70] sm:$0xff] }
 0x140   : > { %v1171_v57 = vpop.f32.mrb[42].mxu1  ;;  %v1981_v6 = vld [vmem:[%s9071_s18 + $0x54] sm:$0xff] }
 0x141   : > { %v9588_v19 = vadd.f32 %v1155_v39, %v1039_v14  ;;  %7955 = vmatmul.mubr.msk.bf16.vlgmr.msra.gmra.mrb[148].mxu0 %vm603_vm2, %v1992_v9  ;;  %v7775_v21 = vpop.f32.mrb[43].mxu1  ;;  %v1993_v39 = vpack.c.bf16 %v1977_v27, %v1976_v23  ;;  %v1983_v27 = vld [vmem:[%s9071_s18 + $0x64] sm:$0xff] }
 0x142   : > { %7958 = vmatprep.mubr.msk.bf16.mxu0 %vm8950_vm1, %v12701_v1  ;;  %2361 = vperm.xlu0 %8844, %v537_v33  }
 0x144   : > { %v975_v28 = vpop.f32.mrb[44].mxu0 }
 0x145   : > { %v1040_v43 = vadd.f32 %v975_v28, %v9431_v29  ;;  %v7732_v35 = vpop.f32.mrb[45].mxu0  ;;  %v539_v29 = vld [vmem:[%s12673_s1 + $0x80] sm:$0xff] }
 0x146   : > { %v978_v40 = vpop.f32.mrb[46].mxu0  ;;  %v1176_v41 = vpop.f32.mrb[44].mxu1  ;;  %2371 = vperm.xlu0 %8844, %v539_v29  }
 0x147   : > { %v1041_v45 = vadd.f32 %v978_v40, %v9435_v36  ;;  %v9603_v46 = vadd.f32 %v1160_v58, %v1040_v43  ;;  %v7733_v20 = vpop.f32.mrb[47].mxu0  ;;  %v7778_v25 = vpop.f32.mrb[45].mxu1  ;;  %v1978_v36 = vld [vmem:[%s9071_s18 + $0x3c] sm:$0xff]  ;;  %v540_v58 = vld [vmem:[%s12673_s1 + $0x88] sm:$0x7f] }
 0x148   : > { %v1179_v47 = vpop.f32.mrb[46].mxu1  ;;  %v1994_v62 = vpack.c.bf16 %v1979_v53, %v1978_v36  ;;  %2376 = vperm.xlu1 %8845, %v540_v58  }
 0x149   : > { %v9611_v44 = vadd.f32 %v1163_v63, %v1041_v45  ;;  %7959 = vmatmul.mubr.msk.bf16.gmra.mrb[152].mxu0 %vm603_vm2, %v1993_v39  ;;  %v7779_v49 = vpop.f32.mrb[47].mxu1 }
 0x14a   : > { %7962 = vmatprep.mubr.msk.bf16.mxu0 %vm8950_vm1, %v12701_v1 }
 0x14c   : > { %v983_v54 = vpop.f32.mrb[48].mxu0 }
 0x14d   : > { %v1042_v59 = vadd.f32 %v983_v54, %v9447_v48  ;;  %v7736_v61 = vpop.f32.mrb[49].mxu0  ;;  %v1980_v48 = vld [vmem:[%s9071_s18 + $0x4c] sm:$0xff] }
 0x14e   : > { %v986_v63 = vpop.f32.mrb[50].mxu0  ;;  %v1184_v26 = vpop.f32.mrb[48].mxu1  ;;  %v1995_v12 = vpack.c.bf16 %v1981_v6, %v1980_v48 }
 0x14f   : > { %v1043_v10 = vadd.f32 %v986_v63, %v9451_v55  ;;  %v9623_v31 = vadd.f32 %v1168_v13, %v1042_v59  ;;  %v7737_v3 = vpop.f32.mrb[51].mxu0  ;;  %v7782_v15 = vpop.f32.mrb[49].mxu1 }
 0x150   : > { %v1187_v50 = vpop.f32.mrb[50].mxu1  ;;  %v1987_v3 = vld [vmem:[%s9071_s18 + $0x84] sm:$0xff] }
 0x151   : > { %v9625_v56 = vadd.f32 %v1171_v57, %v1043_v10  ;;  %7963 = vmatmul.mubr.msk.bf16.gmra.mrb[156].mxu0 %vm603_vm2, %v1994_v62  ;;  %v7783_v5 = vpop.f32.mrb[51].mxu1 }
 0x152   : > { %7966 = vmatprep.mubr.msk.bf16.mxu0 %vm8950_vm1, %v12701_v1 }
 0x154   : > { %v991_v8 = vpop.f32.mrb[52].mxu0 }
 0x155   : > { %v1044_v55 = vadd.f32 %v991_v8, %v9461_v2  ;;  %v7740_v9 = vpop.f32.mrb[53].mxu0  ;;  %v1982_v2 = vld [vmem:[%s9071_s18 + $0x5c] sm:$0xff] }
 0x156   : > { %v994_v13 = vpop.f32.mrb[54].mxu0  ;;  %v1192_v14 = vpop.f32.mrb[52].mxu1  ;;  %v1996_v33 = vpack.c.bf16 %v1983_v27, %v1982_v2 }
 0x157   : > { %v1045_v37 = vadd.f32 %v994_v13, %v9465_v7  ;;  %v9634_v17 = vadd.f32 %v1176_v41, %v1044_v55  ;;  %v7741_v57 = vpop.f32.mrb[55].mxu0  ;;  %v7786_v0 = vpop.f32.mrb[53].mxu1 }
 0x158   : > { %v1195_v18 = vpop.f32.mrb[54].mxu1  ;;  %v1989_v57 = vld [vmem:[%s9071_s18 + $0x94] sm:$0xff] }
 0x159   : > { %v9636_v21 = vadd.f32 %v1179_v47, %v1045_v37  ;;  %7967 = vmatmul.mubr.msk.bf16.gmra.mrb[160].mxu0 %vm603_vm2, %v1995_v12  ;;  %v7787_v23 = vpop.f32.mrb[55].mxu1 }
 0x15a   : > { %7970 = vmatprep.mubr.msk.bf16.mxu0 %vm8950_vm1, %v12701_v1 }
 0x15c   : > { %v999_v28 = vpop.f32.mrb[56].mxu0 }
 0x15d   : > { %v1046_v7 = vadd.f32 %v999_v28, %v9475_v16  ;;  %v7744_v30 = vpop.f32.mrb[57].mxu0  ;;  %v1984_v16 = vld [vmem:[%s9071_s18 + $0x6c] sm:$0xff] }
 0x15e   : > { %v1002_v43 = vpop.f32.mrb[58].mxu0  ;;  %v1200_v35 = vpop.f32.mrb[56].mxu1  ;;  %v1997_v36 = vpack.c.bf16 %v1985_v51, %v1984_v16 }
 0x15f   : > { %v1047_v39 = vadd.f32 %v1002_v43, %v9479_v22  ;;  %v9645_v40 = vadd.f32 %v1184_v26, %v1046_v7  ;;  %v7745_v41 = vpop.f32.mrb[59].mxu0  ;;  %v7790_v45 = vpop.f32.mrb[57].mxu1 }
 0x160   : > { %v1203_v20 = vpop.f32.mrb[58].mxu1  ;;  %v1991_v41 = vld [vmem:[%s9071_s18 + $0xa4] sm:$0x7f] }
 0x161   : > { %v9647_v25 = vadd.f32 %v1187_v50, %v1047_v39  ;;  %7971 = vmatmul.mubr.msk.bf16.gmra.mrb[164].mxu0 %vm603_vm2, %v1996_v33  ;;  %v7791_v47 = vpop.f32.mrb[59].mxu1 }
 0x162   : > { %7974 = vmatprep.mubr.msk.bf16.mxu0 %vm8950_vm1, %v12701_v1 }
 0x164   : > { %v1007_v29 = vpop.f32.mrb[60].mxu0 }
 0x165   : > { %v1048_v22 = vadd.f32 %v1007_v29, %v9489_v34  ;;  %v7748_v49 = vpop.f32.mrb[61].mxu0  ;;  %v1986_v34 = vld [vmem:[%s9071_s18 + $0x7c] sm:$0xff] }
 0x166   : > { %v1010_v53 = vpop.f32.mrb[62].mxu0  ;;  %v1208_v54 = vpop.f32.mrb[60].mxu1  ;;  %v1998_v5 = vpack.c.bf16 %v1987_v3, %v1986_v34 }
 0x167   : > { %v1049_v58 = vadd.f32 %v1010_v53, %v9493_v42  ;;  %v9656_v59 = vadd.f32 %v1192_v14, %v1048_v22  ;;  %v7749_v61 = vpop.f32.mrb[63].mxu0  ;;  %v7794_v62 = vpop.f32.mrb[61].mxu1 }
 0x168   : > { %v1211_v63 = vpop.f32.mrb[62].mxu1 }
 0x169   : > { %v9658_v26 = vadd.f32 %v1195_v18, %v1049_v58  ;;  %7975 = vmatmul.mubr.msk.bf16.gmra.mrb[168].mxu0 %vm603_vm2, %v1997_v36  ;;  %v7795_v10 = vpop.f32.mrb[63].mxu1 }
 0x16a   : > { %7978 = vmatprep.mubr.msk.bf16.mxu0 %vm8950_vm1, %v12701_v1 }
 0x16c   : > { %v1015_v15 = vpop.f32.mrb[64].mxu0 }
 0x16d   : > { %v1050_v42 = vadd.f32 %v1015_v15, %v9503_v52  ;;  %v7752_v50 = vpop.f32.mrb[65].mxu0  ;;  %v1988_v52 = vld [vmem:[%s9071_s18 + $0x8c] sm:$0xff] }
 0x16e   : > { %v1018_v48 = vpop.f32.mrb[66].mxu0  ;;  %v1216_v6 = vpop.f32.mrb[64].mxu1  ;;  %v1999_v23 = vpack.c.bf16 %v1989_v57, %v1988_v52 }
 0x16f   : > { %v1051_v8 = vadd.f32 %v1018_v48, %v9507_v60  ;;  %v9667_v55 = vadd.f32 %v1200_v35, %v1050_v42  ;;  %v7753_v9 = vpop.f32.mrb[67].mxu0  ;;  %v7798_v12 = vpop.f32.mrb[65].mxu1 }
 0x170   : > { %v1219_v13 = vpop.f32.mrb[66].mxu1 }
 0x171   : > { %v9669_v14 = vadd.f32 %v1203_v20, %v1051_v8  ;;  %7979 = vmatmul.mubr.msk.bf16.gmra.mrb[172].mxu0 %vm603_vm2, %v1998_v5  ;;  %v7799_v37 = vpop.f32.mrb[67].mxu1 }
 0x172   : > { %7982 = vmatprep.mubr.msk.bf16.mxu0 %vm8950_vm1, %v12701_v1 }
 0x174   : > { %v1023_v0 = vpop.f32.mrb[68].mxu0 }
 0x175   : > { %v1052_v60 = vadd.f32 %v1023_v0, %v9517_v4  ;;  %v7756_v18 = vpop.f32.mrb[69].mxu0  ;;  %v1990_v4 = vld [vmem:[%s9071_s18 + $0x9c] sm:$0xff] }
 0x176   : > { %v1026_v2 = vpop.f32.mrb[70].mxu0  ;;  %v1518_v27 = vpop.f32.mrb[68].mxu1 }
 0x177   : > { %v1053_v28 = vadd.f32 %v1026_v2, %v9521_v11  ;;  %v9678_v7 = vadd.f32 %v1208_v54, %v1052_v60  ;;  %v7757_v30 = vpop.f32.mrb[71].mxu0  ;;  %v7842_v33 = vpop.f32.mrb[69].mxu1  ;;  %v2000_v11 = vpack.c.bf16 %v1991_v41, %v1990_v4 }
 0x178   : > { %v1521_v43 = vpop.f32.mrb[70].mxu1 }
 0x179   : > { %v9680_v35 = vadd.f32 %v1211_v63, %v1053_v28  ;;  %7983 = vmatmul.mubr.msk.bf16.gmra.mrb[176].mxu0 %vm603_vm2, %v1999_v23  ;;  %v7843_v39 = vpop.f32.mrb[71].mxu1 }
 0x17a   : > { %7986 = vmatprep.mubr.msk.bf16.mxu0 %vm8950_vm1, %v12701_v1 }
 0x17c   : > { %v1031_v45 = vpop.f32.mrb[72].mxu0 }
 0x17d   : > { %v1054_v20 = vadd.f32 %v1031_v45, %v9540_v24  ;;  %v7760_v47 = vpop.f32.mrb[73].mxu0 }
 0x17e   : > { %v1034_v16 = vpop.f32.mrb[74].mxu0  ;;  %v1526_v51 = vpop.f32.mrb[72].mxu1 }
 0x17f   : > { %v1055_v29 = vadd.f32 %v1034_v16, %v9542_v38  ;;  %v9689_v22 = vadd.f32 %v1216_v6, %v1054_v20  ;;  %v7761_v49 = vpop.f32.mrb[75].mxu0  ;;  %v7846_v36 = vpop.f32.mrb[73].mxu1 }
 0x180   : > { %v1529_v53 = vpop.f32.mrb[74].mxu1 }
 0x181   : > { %v9691_v54 = vadd.f32 %v1219_v13, %v1055_v29  ;;  %7987 = vmatmul.mubr.msk.bf16.gmra.mrb[180].mxu0 %vm603_vm2, %v2000_v11  ;;  %v7847_v58 = vpop.f32.mrb[75].mxu1 }
 0x182   : > { %8044 = vmatprep.mubr.msk.bf16.mxu0 %vm8950_vm1, %v12701_v1 }
 0x184   : > { %v1333_v24 = vpop.f32.mrb[76].mxu0 }
 0x185   : > { %v1404_v61 = vadd.f32 %v1333_v24, %v9580_v32  ;;  %v7804_v62 = vpop.f32.mrb[77].mxu0 }
 0x186   : > { %v1336_v63 = vpop.f32.mrb[78].mxu0  ;;  %v1534_v10 = vpop.f32.mrb[76].mxu1 }
 0x187   : > { %v1405_v38 = vadd.f32 %v1336_v63, %v9588_v19  ;;  %v9698_v34 = vadd.f32 %v1518_v27, %v1404_v61  ;;  %v7805_v3 = vpop.f32.mrb[79].mxu0  ;;  %v7850_v15 = vpop.f32.mrb[77].mxu1 }
 0x188   : > { %v1537_v42 = vpop.f32.mrb[78].mxu1 }
 0x189   : > { %v9700_v50 = vadd.f32 %v1521_v43, %v1405_v38  ;;  %v7851_v5 = vpop.f32.mrb[79].mxu1 }
 0x18c   : > { %v1341_v48 = vpop.f32.mrb[80].mxu0 }
 0x18d   : > { %v1406_v6 = vadd.f32 %v1341_v48, %v9603_v46  ;;  %v7808_v8 = vpop.f32.mrb[81].mxu0 }
 0x18e   : > { %v1344_v9 = vpop.f32.mrb[82].mxu0  ;;  %v1542_v12 = vpop.f32.mrb[80].mxu1 }
 0x18f   : > { %v1407_v32 = vadd.f32 %v1344_v9, %v9611_v44  ;;  %v9704_v13 = vadd.f32 %v1526_v51, %v1406_v6  ;;  %v7809_v37 = vpop.f32.mrb[83].mxu0  ;;  %v7854_v19 = vpop.f32.mrb[81].mxu1 }
 0x190   : > { %v1545_v52 = vpop.f32.mrb[82].mxu1 }
 0x191   : > { %v9706_v57 = vadd.f32 %v1529_v53, %v1407_v32  ;;  %v7855_v0 = vpop.f32.mrb[83].mxu1 }
 0x194   : > { %v1349_v60 = vpop.f32.mrb[84].mxu0 }
 0x195   : > { %v1408_v18 = vadd.f32 %v1349_v60, %v9623_v31  ;;  %v7812_v23 = vpop.f32.mrb[85].mxu0 }
 0x196   : > { %v1352_v2 = vpop.f32.mrb[86].mxu0  ;;  %v1550_v27 = vpop.f32.mrb[84].mxu1 }
 0x197   : > { %v1409_v46 = vadd.f32 %v1352_v2, %v9625_v56  ;;  %v9710_v28 = vadd.f32 %v1534_v10, %v1408_v18  ;;  %v7813_v30 = vpop.f32.mrb[87].mxu0  ;;  %v7858_v44 = vpop.f32.mrb[85].mxu1 }
 0x198   : > { %v1553_v33 = vpop.f32.mrb[86].mxu1 }
 0x199   : > { %v9712_v43 = vadd.f32 %v1537_v42, %v1409_v46  ;;  %v7859_v39 = vpop.f32.mrb[87].mxu1 }
 0x19c   : > { %v1357_v4 = vpop.f32.mrb[88].mxu0 }
 0x19d   : > { %v1410_v41 = vadd.f32 %v1357_v4, %v9634_v17  ;;  %v7816_v45 = vpop.f32.mrb[89].mxu0 }
 0x19e   : > { %v1360_v20 = vpop.f32.mrb[90].mxu0  ;;  %v1558_v47 = vpop.f32.mrb[88].mxu1 }
 0x19f   : > { %v1411_v31 = vadd.f32 %v1360_v20, %v9636_v21  ;;  %v9716_v11 = vadd.f32 %v1542_v12, %v1410_v41  ;;  %v7817_v16 = vpop.f32.mrb[91].mxu0  ;;  %v7862_v56 = vpop.f32.mrb[89].mxu1 }
 0x1a0   : > { %v1561_v51 = vpop.f32.mrb[90].mxu1 }
 0x1a1   : > { %v9718_v29 = vadd.f32 %v1545_v52, %v1411_v31  ;;  %v7863_v49 = vpop.f32.mrb[91].mxu1 }
 0x1a4   : > { %v1365_v36 = vpop.f32.mrb[92].mxu0 }
 0x1a5   : > { %v1412_v53 = vadd.f32 %v1365_v36, %v9645_v40  ;;  %v7820_v58 = vpop.f32.mrb[93].mxu0 }
 0x1a6   : > { %v1368_v24 = vpop.f32.mrb[94].mxu0  ;;  %v1566_v61 = vpop.f32.mrb[92].mxu1 }
 0x1a7   : > { %v1413_v17 = vadd.f32 %v1368_v24, %v9647_v25  ;;  %v9722_v62 = vadd.f32 %v1550_v27, %v1412_v53  ;;  %v7821_v63 = vpop.f32.mrb[95].mxu0  ;;  %v7866_v21 = vpop.f32.mrb[93].mxu1 }
 0x1a8   : > { %v1569_v10 = vpop.f32.mrb[94].mxu1  ;;  %v541_v21 = vld [vmem:[%s12674_s2] sm:$0xff] }
 0x1a9   : > { %v9724_v38 = vadd.f32 %v1553_v33, %v1413_v17  ;;  %v7867_v3 = vpop.f32.mrb[95].mxu1 }
 0x1ac   : > { %v1373_v15 = vpop.f32.mrb[96].mxu0 }
 0x1ad   : > { %v1414_v42 = vadd.f32 %v1373_v15, %v9656_v59  ;;  %v7824_v5 = vpop.f32.mrb[97].mxu0 }
 0x1ae   : > { %v1376_v40 = vpop.f32.mrb[98].mxu0  ;;  %v1574_v25 = vpop.f32.mrb[96].mxu1 }
 0x1af   : > { %v1415_v59 = vadd.f32 %v1376_v40, %v9658_v26  ;;  %v9772_v48 = vadd.f32 %v1558_v47, %v1414_v42  ;;  %v7825_v6 = vpop.f32.mrb[99].mxu0  ;;  %v7870_v8 = vpop.f32.mrb[97].mxu1 }
 0x1b0   : > { %v1577_v9 = vpop.f32.mrb[98].mxu1 }
 0x1b1   : > { %v9774_v12 = vadd.f32 %v1561_v51, %v1415_v59  ;;  %v7871_v32 = vpop.f32.mrb[99].mxu1 }
 0x1b4   : > { %v1381_v37 = vpop.f32.mrb[100].mxu0 }
 0x1b5   : > { %v1416_v19 = vadd.f32 %v1381_v37, %v9667_v55  ;;  %v7828_v52 = vpop.f32.mrb[101].mxu0 }
 0x1b6   : > { %v1384_v0 = vpop.f32.mrb[102].mxu0  ;;  %v1582_v60 = vpop.f32.mrb[100].mxu1 }
 0x1b7   : > { %v1417_v18 = vadd.f32 %v1384_v0, %v9669_v14  ;;  %v9778_v23 = vadd.f32 %v1566_v61, %v1416_v19  ;;  %v7829_v2 = vpop.f32.mrb[103].mxu0  ;;  %v7874_v26 = vpop.f32.mrb[101].mxu1 }
 0x1b8   : > { %v1585_v27 = vpop.f32.mrb[102].mxu1 }
 0x1b9   : > { %v9780_v46 = vadd.f32 %v1569_v10, %v1417_v18  ;;  %v7875_v30 = vpop.f32.mrb[103].mxu1  ;;  %v12689_v10 = vmov 0.0|0.0  }
 0x1ba   : > { %8816 = vmatprep.subr.bf16.mxu1 %v12689_v10 }
 0x1bc   : > { %v1389_v44 = vpop.f32.mrb[104].mxu0 }
 0x1bd   : > { %v1418_v33 = vadd.f32 %v1389_v44, %v9678_v7  ;;  %v7832_v39 = vpop.f32.mrb[105].mxu0 }
 0x1be   : > { %v1392_v4 = vpop.f32.mrb[106].mxu0  ;;  %v1884_v41 = vpop.f32.mrb[104].mxu1 }
 0x1bf   : > { %v1419_v55 = vadd.f32 %v1392_v4, %v9680_v35  ;;  %v9784_v45 = vadd.f32 %v1574_v25, %v1418_v33  ;;  %v7833_v20 = vpop.f32.mrb[107].mxu0  ;;  %v7918_v14 = vpop.f32.mrb[105].mxu1  ;;  %v2759_v33 = vld [vmem:[%s12679_s7] sm:$0x3] }
 0x1c0   : > { %v1887_v47 = vpop.f32.mrb[106].mxu1  ;;  %v2982_v39 = vsel %vm631_vm0, %v2759_v33, 0 }
 0x1c1   : > { %v9786_v31 = vadd.f32 %v1577_v9, %v1419_v55  ;;  %v7919_v16 = vpop.f32.mrb[107].mxu1  ;;  %8043 = vmatpush3.bf16.msra.mxu0 %v2982_v39  ;;  %v2761_v55 = vld [vmem:[%s9071_s18 + $0x8] sm:$0xff]  ;;  %v2767_v39 = vld [vmem:[%s9071_s18 + $0x38] sm:$0xff] }
 0x1c2   : > { %8118 = vmatprep.subr.bf16.mxu0 %v12701_v1 }
 0x1c4   : > { %v1397_v56 = vpop.f32.mrb[108].mxu0 }
 0x1c5   : > { %v1420_v51 = vadd.f32 %v1397_v56, %v9689_v22  ;;  %v7836_v49 = vpop.f32.mrb[109].mxu0  ;;  %v542_v22 = vld [vmem:[%s12674_s2 + $0x8] sm:$0xff] }
 0x1c6   : > { %v1400_v36 = vpop.f32.mrb[110].mxu0  ;;  %v1892_v53 = vpop.f32.mrb[108].mxu1 }
 0x1c7   : > { %v1421_v7 = vadd.f32 %v1400_v36, %v9691_v54  ;;  %v9790_v58 = vadd.f32 %v1582_v60, %v1420_v51  ;;  %v7837_v24 = vpop.f32.mrb[111].mxu0  ;;  %v7922_v35 = vpop.f32.mrb[109].mxu1  ;;  %v9801_v54 = vpack.c.bf16 %v542_v22, %v541_v21 }
 0x1c8   : > { %v1895_v61 = vpop.f32.mrb[110].mxu1 }
 0x1c9   : > { %v9792_v17 = vadd.f32 %v1585_v27, %v1421_v7  ;;  %v7923_v63 = vpop.f32.mrb[111].mxu1  ;;  %12754 = vst [vmem:[#allocation3_spill] sm:$0xff] %v9801_v54  ;;  %8818 = vmatpush3.bf16.msra.mxu1 %v9801_v54 }
 0x1ca   : > { %8819 = vmatprep.subr.bf16.mxu1 %v12689_v10  ;;  %v2763_v63 = vld [vmem:[%s9071_s18 + $0x18] sm:$0xff] }
 0x1cc   : > { %v1699_v3 = vpop.f32.mrb[112].mxu0 }
 0x1cd   : > { %v1770_v15 = vadd.f32 %v1699_v3, %v9698_v34  ;;  %v7880_v42 = vpop.f32.mrb[113].mxu0 }
 0x1ce   : > { %v1702_v5 = vpop.f32.mrb[114].mxu0  ;;  %v1900_v40 = vpop.f32.mrb[112].mxu1 }
 0x1cf   : > { %v1771_v25 = vadd.f32 %v1702_v5, %v9700_v50  ;;  %v9807_v59 = vadd.f32 %v1884_v41, %v1770_v15  ;;  %v7881_v6 = vpop.f32.mrb[115].mxu0  ;;  %v7926_v8 = vpop.f32.mrb[113].mxu1 }
 0x1d0   : > { %v1903_v9 = vpop.f32.mrb[114].mxu1 }
 0x1d1   : > { %v9809_v32 = vadd.f32 %v1887_v47, %v1771_v25  ;;  %v7927_v37 = vpop.f32.mrb[115].mxu1 }
 0x1d2   : > { %v2764_v37 = vld [vmem:[%s9071_s18 + $0x20] sm:$0xff] }
 0x1d4   : > { %v1707_v19 = vpop.f32.mrb[116].mxu0 }
 0x1d5   : > { %v1772_v52 = vadd.f32 %v1707_v19, %v9704_v13  ;;  %v7884_v0 = vpop.f32.mrb[117].mxu0  ;;  %v2765_v19 = vld [vmem:[%s9071_s18 + $0x28] sm:$0xff] }
 0x1d6   : > { %v1710_v34 = vpop.f32.mrb[118].mxu0  ;;  %v1908_v60 = vpop.f32.mrb[116].mxu1  ;;  %v2780_v0 = vpack.c.bf16 %v2765_v19, %v2764_v37 }
 0x1d7   : > { %v1773_v18 = vadd.f32 %v1710_v34, %v9706_v57  ;;  %v9813_v2 = vadd.f32 %v1892_v53, %v1772_v52  ;;  %v7885_v50 = vpop.f32.mrb[119].mxu0  ;;  %v7930_v26 = vpop.f32.mrb[117].mxu1  ;;  %v2760_v57 = vld [vmem:[%s9071_s18] sm:$0xff] }
 0x1d8   : > { %v1911_v27 = vpop.f32.mrb[118].mxu1  ;;  %v2778_v47 = vpack.c.bf16 %v2761_v55, %v2760_v57 }
 0x1d9   : > { %v9815_v30 = vadd.f32 %v1895_v61, %v1773_v18  ;;  %v7931_v44 = vpop.f32.mrb[119].mxu1  ;;  %v2762_v61 = vld [vmem:[%s9071_s18 + $0x10] sm:$0xff] }
 0x1da   : > { %8045 = vmatmul.mubr.msk.bf16.vlgmr.msra.gmra.mrb[184].mxu0 %vm603_vm2, %v2778_v47  ;;  %v2779_v22 = vpack.c.bf16 %v2763_v63, %v2762_v61 }
 0x1db   : > { %8048 = vmatprep.mubr.msk.bf16.mxu0 %vm8950_vm1, %v12701_v1 }
 0x1dc   : > { %v1715_v13 = vpop.f32.mrb[120].mxu0 }
 0x1dd   : > { %v1774_v4 = vadd.f32 %v1715_v13, %v9710_v28  ;;  %v7888_v41 = vpop.f32.mrb[121].mxu0 }
 0x1de   : > { %v1718_v20 = vpop.f32.mrb[122].mxu0  ;;  %v1916_v14 = vpop.f32.mrb[120].mxu1 }
 0x1df   : > { %v1775_v16 = vadd.f32 %v1718_v20, %v9712_v43  ;;  %v9826_v56 = vadd.f32 %v1900_v40, %v1774_v4  ;;  %v7889_v51 = vpop.f32.mrb[123].mxu0  ;;  %v7934_v49 = vpop.f32.mrb[121].mxu1 }
 0x1e0   : > { %v1919_v36 = vpop.f32.mrb[122].mxu1  ;;  %v2768_v49 = vld [vmem:[%s9071_s18 + $0x40] sm:$0xff] }
 0x1e1   : > { %v9829_v28 = vadd.f32 %v1903_v9, %v1775_v16  ;;  %v7935_v53 = vpop.f32.mrb[123].mxu1 }
 0x1e2   : > { %8049 = vmatmul.mubr.msk.bf16.gmra.mrb[188].mxu0 %vm603_vm2, %v2779_v22 }
 0x1e3   : > { %8052 = vmatprep.mubr.msk.bf16.mxu0 %vm8950_vm1, %v12701_v1 }
 0x1e4   : > { %v1723_v7 = vpop.f32.mrb[124].mxu0 }
 0x1e5   : > { %v1776_v24 = vadd.f32 %v1723_v7, %v9716_v11  ;;  %v7892_v35 = vpop.f32.mrb[125].mxu0 }
 0x1e6   : > { %v1726_v43 = vpop.f32.mrb[126].mxu0  ;;  %v1924_v21 = vpop.f32.mrb[124].mxu1 }
 0x1e7   : > { %v1777_v3 = vadd.f32 %v1726_v43, %v9718_v29  ;;  %v9837_v15 = vadd.f32 %v1908_v60, %v1776_v24  ;;  %v7893_v42 = vpop.f32.mrb[127].mxu0  ;;  %v7938_v5 = vpop.f32.mrb[125].mxu1 }
 0x1e8   : > { %v1927_v40 = vpop.f32.mrb[126].mxu1 }
 0x1e9   : > { %v9840_v25 = vadd.f32 %v1911_v27, %v1777_v3  ;;  %v7939_v11 = vpop.f32.mrb[127].mxu1 }
 0x1ea   : > { %8053 = vmatmul.mubr.msk.bf16.gmra.mrb[192].mxu0 %vm603_vm2, %v2780_v0  ;;  %v8851_v0 = vld [vmem:[%s12679_s7 + $0x4] ss:$0 sps:$4 sm:$0xcc]  }
 0x1eb   : > { %8056 = vmatprep.mubr.msk.bf16.mxu0 %vm8950_vm1, %v12701_v1 }
 0x1ec   : > { %v1731_v6 = vpop.f32.mrb[128].mxu0 }
 0x1ed   : > { %v1778_v8 = vadd.f32 %v1731_v6, %v9722_v62  ;;  %v7896_v9 = vpop.f32.mrb[129].mxu0  ;;  %v2771_v6 = vld [vmem:[%s9071_s18 + $0x58] sm:$0xff] }
 0x1ee   : > { %v1734_v29 = vpop.f32.mrb[130].mxu0  ;;  %v1932_v52 = vpop.f32.mrb[128].mxu1 }
 0x1ef   : > { %v1779_v34 = vadd.f32 %v1734_v29, %v9724_v38  ;;  %v9848_v60 = vadd.f32 %v1916_v14, %v1778_v8  ;;  %v7897_v18 = vpop.f32.mrb[131].mxu0  ;;  %v7942_v50 = vpop.f32.mrb[129].mxu1  ;;  %v2766_v38 = vld [vmem:[%s9071_s18 + $0x30] sm:$0xff] }
 0x1f0   : > { %v1935_v26 = vpop.f32.mrb[130].mxu1  ;;  %v2781_v57 = vpack.c.bf16 %v2767_v39, %v2766_v38  ;;  %v3301_v18 = vrot.slane %v8851_v0, 2 }
 0x1f1   : > { %v9851_v27 = vadd.f32 %v1919_v36, %v1779_v34  ;;  %v7943_v62 = vpop.f32.mrb[131].mxu1  ;;  %v2769_v36 = vld [vmem:[%s9071_s18 + $0x48] sm:$0xff] }
 0x1f2   : > { %8057 = vmatmul.mubr.msk.bf16.gmra.mrb[196].mxu0 %vm603_vm2, %v2781_v57  ;;  %v2782_v7 = vpack.c.bf16 %v2769_v36, %v2768_v49  ;;  %v2773_v34 = vld [vmem:[%s9071_s18 + $0x68] sm:$0xff] }
 0x1f3   : > { %8060 = vmatprep.mubr.msk.bf16.mxu0 %vm8950_vm1, %v12701_v1 }
 0x1f4   : > { %v1739_v44 = vpop.f32.mrb[132].mxu0 }
 0x1f5   : > { %v1780_v33 = vadd.f32 %v1739_v44, %v9772_v48  ;;  %v7900_v13 = vpop.f32.mrb[133].mxu0  ;;  %v3330_v44 = vsel %vm631_vm0, %v3301_v18, 0 }
 0x1f6   : > { %v1742_v4 = vpop.f32.mrb[134].mxu0  ;;  %v1940_v41 = vpop.f32.mrb[132].mxu1  ;;  %8119 = vmatpush3.bf16.msra.mxu0 %v3330_v44 }
 0x1f7   : > { %v1781_v55 = vadd.f32 %v1742_v4, %v9774_v12  ;;  %v9859_v20 = vadd.f32 %v1924_v21, %v1780_v33  ;;  %v7901_v14 = vpop.f32.mrb[135].mxu0  ;;  %v7946_v47 = vpop.f32.mrb[133].mxu1  ;;  %8194 = vmatprep.subr.bf16.mxu0 %v12701_v1 }
 0x1f8   : > { %v1943_v16 = vpop.f32.mrb[134].mxu1 }
 0x1f9   : > { %v9862_v51 = vadd.f32 %v1927_v40, %v1781_v55  ;;  %v7947_v48 = vpop.f32.mrb[135].mxu1 }
 0x1fa   : > { %8061 = vmatmul.mubr.msk.bf16.gmra.mrb[200].mxu0 %vm603_vm2, %v2782_v7 }
 0x1fb   : > { %8064 = vmatprep.mubr.msk.bf16.mxu0 %vm8950_vm1, %v12701_v1 }
 0x1fc   : > { %v1747_v53 = vpop.f32.mrb[136].mxu0 }
 0x1fd   : > { %v1782_v24 = vadd.f32 %v1747_v53, %v9778_v23  ;;  %v7904_v12 = vpop.f32.mrb[137].mxu0 }
 0x1fe   : > { %v1750_v35 = vpop.f32.mrb[138].mxu0  ;;  %v1948_v61 = vpop.f32.mrb[136].mxu1 }
 0x1ff   : > { %v1783_v63 = vadd.f32 %v1750_v35, %v9780_v46  ;;  %v9870_v43 = vadd.f32 %v1932_v52, %v1782_v24  ;;  %v7905_v21 = vpop.f32.mrb[139].mxu0  ;;  %v7950_v22 = vpop.f32.mrb[137].mxu1  ;;  %v2770_v46 = vld [vmem:[%s9071_s18 + $0x50] sm:$0xff]  ;;  %v2776_v24 = vld [vmem:[%s9071_s18 + $0x80] sm:$0xff] }
 0x200   : > { %v1951_v3 = vpop.f32.mrb[138].mxu1  ;;  %v2783_v9 = vpack.c.bf16 %v2771_v6, %v2770_v46  ;;  %v3272_v6 = vld [vmem:[%s9071_s18 + $0x15] sm:$0xff] }
 0x201   : > { %v9873_v42 = vadd.f32 %v1935_v26, %v1783_v63  ;;  %v7951_v5 = vpop.f32.mrb[139].mxu1 }
 0x202   : > { %8065 = vmatmul.mubr.msk.bf16.gmra.mrb[204].mxu0 %vm603_vm2, %v2783_v9 }
 0x203   : > { %8068 = vmatprep.mubr.msk.bf16.mxu0 %vm8950_vm1, %v12701_v1 }
 0x204   : > { %v1755_v23 = vpop.f32.mrb[140].mxu0 }
 0x205   : > { %v1784_v40 = vadd.f32 %v1755_v23, %v9784_v45  ;;  %v7908_v11 = vpop.f32.mrb[141].mxu0  ;;  %v2772_v45 = vld [vmem:[%s9071_s18 + $0x60] sm:$0xff] }
 0x206   : > { %v1758_v8 = vpop.f32.mrb[142].mxu0  ;;  %v2784_v50 = vpack.c.bf16 %v2773_v34, %v2772_v45 }
 0x207   : > { %v1785_v37 = vadd.f32 %v1758_v8, %v9786_v31  ;;  %v9881_v19 = vadd.f32 %v1940_v41, %v1784_v40  ;;  %v7909_v29 = vpop.f32.mrb[143].mxu0  ;;  %v2775_v41 = vld [vmem:[%s9071_s18 + $0x78] sm:$0xff] }
 0x209   : > { %v9884_v52 = vadd.f32 %v1943_v16, %v1785_v37 }
 0x20a   : > { %8069 = vmatmul.mubr.msk.bf16.gmra.mrb[208].mxu0 %vm603_vm2, %v2784_v50 }
 0x20b   : > { %8072 = vmatprep.mubr.msk.bf16.mxu0 %vm8950_vm1, %v12701_v1 }
 0x20c   : > { %v1763_v31 = vpop.f32.mrb[144].mxu0 }
 0x20d   : > { %v1786_v26 = vadd.f32 %v1763_v31, %v9790_v58  ;;  %v7912_v62 = vpop.f32.mrb[145].mxu0  ;;  %v2774_v58 = vld [vmem:[%s9071_s18 + $0x70] sm:$0xff] }
 0x20e   : > { %v1766_v33 = vpop.f32.mrb[146].mxu0  ;;  %v2785_v55 = vpack.c.bf16 %v2775_v41, %v2774_v58 }
 0x20f   : > { %v1787_v13 = vadd.f32 %v1766_v33, %v9792_v17  ;;  %v9896_v38 = vadd.f32 %v1948_v61, %v1786_v26  ;;  %v7913_v39 = vpop.f32.mrb[147].mxu0  ;;  %v9909_v17 = vld [vmem:[%s12676_s4] ss:$0 sm:$0xff]  ;;  %v3274_v33 = vld [vmem:[%s9071_s18 + $0x25] sm:$0xff] }
 0x211   : > { %v9900_v4 = vadd.f32 %v1951_v3, %v1787_v13  ;;  %v9955_v13 = vpop.permute.xlu0 %2291 }
 0x212   : > { %8073 = vmatmul.mubr.msk.bf16.gmra.mrb[212].mxu0 %vm603_vm2, %v2785_v55  ;;  %12755 = vst [vmem:[#allocation4_spill] sm:$0xff] %v9955_v13 }
 0x213   : > { %8076 = vmatprep.mubr.msk.bf16.mxu0 %vm8950_vm1, %v12701_v1 }
 0x214   : > { %v2065_v57 = vpop.f32.mrb[148].mxu0 }
 0x215   : > { %v2136_v14 = vadd.f32 %v2065_v57, %v9807_v59  ;;  %v7956_v47 = vpop.f32.mrb[149].mxu0  ;;  %v2777_v59 = vld [vmem:[%s9071_s18 + $0x88] sm:$0x7f] }
 0x216   : > { %v2068_v16 = vpop.f32.mrb[150].mxu0  ;;  %v2786_v61 = vpack.c.bf16 %v2777_v59, %v2776_v24 }
 0x217   : > { %v9913_v48 = vadd.f32 %v9909_v17, %v2136_v14  ;;  %v2137_v49 = vadd.f32 %v2068_v16, %v9809_v32  ;;  %v7957_v36 = vpop.f32.mrb[151].mxu0 }
 0x219   : > { %v2197_v53 = vmin.f32 %v9913_v48, 0.0  ;;  %v9919_v7 = vadd.f32 %v9909_v17, %v2137_v49  ;;  %vm2179_vm5 = vcmp.gt.f32.partialorder %v9913_v48, 0.0 }
 0x21a   : > { %8077 = vmatmul.mubr.msk.bf16.gmra.mrb[216].mxu0 %vm603_vm2, %v2786_v61 }
 0x21b   : > { %v2198_v12 = vmin.f32 %v9919_v7, 0.0  ;;  %v2215_v32 = vmul.f32 1.442695, %v2197_v53  ;;  %8120 = vmatprep.mubr.msk.bf16.mxu0 %vm8950_vm1, %v12701_v1  ;;  %vm2180_vm4 = vcmp.gt.f32.partialorder %v9919_v7, 0.0 }
 0x21c   : > { %v2073_v35 = vpop.f32.mrb[152].mxu0 }
 0x21d   : > { %v2217_v63 = vmul.f32 1.442695, %v2198_v12  ;;  %v2138_v21 = vadd.f32 %v2073_v35, %v9813_v2  ;;  %v7960_v22 = vpop.f32.mrb[153].mxu0  ;;  %v3271_v2 = vld [vmem:[%s9071_s18 + $0xd] sm:$0xff]  ;;  %v9961_v35 = vpop.permute.xlu0 %2296 }
 0x21e   : > { %v2076_v3 = vpop.f32.mrb[154].mxu0  ;;  %12756 = vst [vmem:[#allocation5_spill] sm:$0xff] %v9961_v35 }
 0x21f   : > { %8865 = vpow2.f32 %v2217_v63  ;;  %v9928_v5 = vadd.f32 %v9909_v17, %v2138_v21  ;;  %v2139_v23 = vadd.f32 %v2076_v3, %v9815_v30  ;;  %v7961_v40 = vpop.f32.mrb[155].mxu0  ;;  %v3289_v30 = vpack.c.bf16 %v3272_v6, %v3271_v2  ;;  %v3276_v21 = vld [vmem:[%s9071_s18 + $0x35] sm:$0xff]  ;;  %v9982_v3 = vpop.permute.xlu1 %2301 }
 0x220   : > { %8867 = vpow2.f32 %v2215_v32  ;;  %12757 = vst [vmem:[#allocation6_spill] sm:$0xff] %v9982_v3 }
 0x221   : > { %v2199_v11 = vmin.f32 %v9928_v5, 0.0  ;;  %v9934_v46 = vadd.f32 %v9909_v17, %v2139_v23  ;;  %vm2181_vm6 = vcmp.gt.f32.partialorder %v9928_v5, 0.0 }
 0x222   : > { %8121 = vmatmul.mubr.msk.bf16.vlgmr.msra.gmra.mrb[220].mxu0 %vm603_vm2, %v3289_v30 }
 0x223   : > { %v2219_v8 = vmul.f32 1.442695, %v2199_v11  ;;  %v2200_v9 = vmin.f32 %v9934_v46, 0.0  ;;  %8124 = vmatprep.mubr.msk.bf16.mxu0 %vm8950_vm1, %v12701_v1  ;;  %vm2182_vm7 = vcmp.gt.f32.partialorder %v9934_v46, 0.0 }
 0x224   : > { %v2081_v37 = vpop.f32.mrb[156].mxu0 }
 0x225   : > { %8869 = vpow2.f32 %v2219_v8  ;;  %v2221_v29 = vmul.f32 1.442695, %v2200_v9  ;;  %v2140_v0 = vadd.f32 %v2081_v37, %v9826_v56  ;;  %v7964_v45 = vpop.f32.mrb[157].mxu0  ;;  %v3273_v56 = vld [vmem:[%s9071_s18 + $0x1d] sm:$0xff] }
 0x226   : > { %v2084_v34 = vpop.f32.mrb[158].mxu0  ;;  %v3290_v55 = vpack.c.bf16 %v3274_v33, %v3273_v56  ;;  %v10004_v33 = vpop.permute.xlu1 %2306 }
 0x227   : > { %8871 = vpow2.f32 %v2221_v29  ;;  %v9943_v18 = vadd.f32 %v9909_v17, %v2140_v0  ;;  %v2141_v31 = vadd.f32 %v2084_v34, %v9829_v28  ;;  %v7965_v50 = vpop.f32.mrb[159].mxu0  ;;  %12758 = vst [vmem:[#allocation7_spill] sm:$0xff] %v10004_v33 }
 0x229   : > { %v8866_v26 = vpop.eup %8865  ;;  %v2201_v62 = vmin.f32 %v9943_v18, 0.0  ;;  %v9949_v44 = vadd.f32 %v9909_v17, %v2141_v31  ;;  %vm2183_vm8 = vcmp.gt.f32.partialorder %v9943_v18, 0.0 }
 0x22a   : > { %v8868_v39 = vpop.eup %8867  ;;  %v7089_v41 = vadd.f32 -1.0, %v8866_v26  ;;  %8125 = vmatmul.mubr.msk.bf16.gmra.mrb[224].mxu0 %vm603_vm2, %v3290_v55 }
 0x22b   : > { %v2223_v58 = vmul.f32 1.442695, %v2201_v62  ;;  %v2202_v28 = vmin.f32 %v9949_v44, 0.0  ;;  %v7088_v16 = vadd.f32 -1.0, %v8868_v39  ;;  %8128 = vmatprep.mubr.msk.bf16.mxu0 %vm8950_vm1, %v12701_v1  ;;  %vm2184_vm9 = vcmp.gt.f32.partialorder %v9949_v44, 0.0 }
 0x22c   : > { %v2089_v57 = vpop.f32.mrb[160].mxu0  ;;  %v9964_v61 = vsel %vm2180_vm4, %v9919_v7, %v7089_v41 }
 0x22d   : > { %8873 = vpow2.f32 %v2223_v58  ;;  %v2225_v14 = vmul.f32 1.442695, %v2202_v28  ;;  %v7968_v47 = vpop.f32.mrb[161].mxu0  ;;  %v2142_v49 = vadd.f32 %v2089_v57, %v9837_v15  ;;  %v9979_v22 = vsel %vm2179_vm5, %v9913_v48, %v7088_v16  ;;  %v3278_v58 = vld [vmem:[%s9071_s18 + $0x45] sm:$0xff] }
 0x22e   : > { %v2092_v36 = vpop.f32.mrb[162].mxu0  ;;  %v2380_v23 = vmul.f32 %v9961_v35, %v9964_v61  ;;  %v2379_v48 = vmul.f32 %v9955_v13, %v9979_v22 }
 0x22f   : > { %v8870_v53 = vpop.eup %8869  ;;  %8875 = vpow2.f32 %v2225_v14  ;;  %v2143_v24 = vadd.f32 %v2092_v36, %v9840_v25  ;;  %v7969_v59 = vpop.f32.mrb[163].mxu0  ;;  %v9967_v32 = vadd.f32 %v9909_v17, %v2142_v49  ;;  %v3275_v25 = vld [vmem:[%s9071_s18 + $0x2d] sm:$0xff] }
 0x230   : > { %v7090_v12 = vadd.f32 -1.0, %v8870_v53  ;;  %v3291_v9 = vpack.c.bf16 %v3276_v21, %v3275_v25  ;;  %v2441_v34 = vmul.f32 %v2380_v23, %v2380_v23  ;;  %v2440_v56 = vmul.f32 %v2379_v48, %v2379_v48 }
 0x231   : > { %v8872_v15 = vpop.eup %8871  ;;  %v9972_v63 = vadd.f32 %v9909_v17, %v2143_v24  ;;  %v2203_v7 = vmin.f32 %v9967_v32, 0.0  ;;  %v2399_v28 = vsel %vm2397_vm3, %v2380_v23, 0.0  ;;  %v2398_v55 = vsel %vm2397_vm3, %v2379_v48, 0.0 }
 0x232   : > { %v7091_v11 = vadd.f32 -1.0, %v8872_v15  ;;  %v9989_v2 = vsel %vm2181_vm6, %v9928_v5, %v7090_v12  ;;  %8129 = vmatmul.mubr.msk.bf16.gmra.mrb[228].mxu0 %vm603_vm2, %v3291_v9  ;;  %v2459_v47 = vsel %vm2397_vm3, %v2441_v34, 0.0  ;;  %v2458_v59 = vsel %vm2397_vm3, %v2440_v56, 0.0  ;;  %v10046_v34 = vpop.permute.xlu1 %2316 }
 0x233   : > { %v2204_v40 = vmin.f32 %v9972_v63, 0.0  ;;  %v2227_v6 = vmul.f32 1.442695, %v2203_v7  ;;  %v2381_v5 = vmul.f32 %v9982_v3, %v9989_v2  ;;  %8132 = vmatprep.mubr.msk.bf16.mxu0 %vm8950_vm1, %v12701_v1  ;;  %v2400_v15 = vadd.f32 %v2399_v28, %v2398_v55  ;;  %12760 = vst [vmem:[#allocation9_spill] sm:$0xff] %v10046_v34 }
 0x234   : > { %v2097_v8 = vpop.f32.mrb[164].mxu0  ;;  %v9998_v31 = vsel %vm2182_vm7, %v9934_v46, %v7091_v11  ;;  %v3277_v46 = vld [vmem:[%s9071_s18 + $0x3d] sm:$0xff]  ;;  %v2460_v7 = vadd.f32 %v2459_v47, %v2458_v59  ;;  %vm2185_vm10 = vcmp.gt.f32.partialorder %v9967_v32, 0.0  ;;  %vm2186_vm11 = vcmp.gt.f32.partialorder %v9972_v63, 0.0 }
 0x235   : > { %v2229_v37 = vmul.f32 1.442695, %v2204_v40  ;;  %v7972_v30 = vpop.f32.mrb[165].mxu0  ;;  %8877 = vpow2.f32 %v2227_v6  ;;  %v2144_v29 = vadd.f32 %v2097_v8, %v9848_v60  ;;  %v2382_v41 = vmul.f32 %v10004_v33, %v9998_v31  ;;  %v10028_v40 = vpop.permute.xlu0 %2311 }
 0x236   : > { %v2100_v0 = vpop.f32.mrb[166].mxu0  ;;  %v2442_v14 = vmul.f32 %v2381_v5, %v2381_v5  ;;  %v3292_v24 = vpack.c.bf16 %v3278_v58, %v3277_v46  ;;  %v2401_v12 = vsel %vm2397_vm3, %v2381_v5, 0.0  ;;  %12759 = vst [vmem:[#allocation8_spill] sm:$0xff] %v10028_v40 }
 0x237   : > { %v8874_v45 = vpop.eup %8873  ;;  %8879 = vpow2.f32 %v2229_v37  ;;  %v7973_v50 = vpop.f32.mrb[167].mxu0  ;;  %v10001_v62 = vadd.f32 %v9909_v17, %v2144_v29  ;;  %v2145_v39 = vadd.f32 %v2100_v0, %v9851_v27  ;;  %v2443_v23 = vmul.f32 %v2382_v41, %v2382_v41 }
 0x238   : > { %v7092_v26 = vadd.f32 -1.0, %v8874_v45  ;;  %v2461_v6 = vsel %vm2397_vm3, %v2442_v14, 0.0  ;;  %v2402_v30 = vadd.f32 %v2401_v12, %v2400_v15  ;;  %v2403_v5 = vsel %vm2397_vm3, %v2382_v41, 0.0 }
 0x239   : > { %v8876_v60 = vpop.eup %8875  ;;  %v2205_v57 = vmin.f32 %v10001_v62, 0.0  ;;  %v10020_v27 = vadd.f32 %v9909_v17, %v2145_v39  ;;  %v2463_v56 = vsel %vm2397_vm3, %v2443_v23, 0.0  ;;  %v10066_v14 = vpop.permute.xlu0 %2321  ;;  %vm2187_vm12 = vcmp.gt.f32.partialorder %v10001_v62, 0.0 }
 0x23a   : > { %v10023_v16 = vsel %vm2183_vm8, %v9943_v18, %v7092_v26  ;;  %v7093_v49 = vadd.f32 -1.0, %v8876_v60  ;;  %8133 = vmatmul.mubr.msk.bf16.gmra.mrb[232].mxu0 %vm603_vm2, %v3292_v24  ;;  %v3280_v26 = vld [vmem:[%s9071_s18 + $0x55] sm:$0xff]  ;;  %v2462_v60 = vadd.f32 %v2461_v6, %v2460_v7  ;;  %12761 = vst [vmem:[#allocation10_spill] sm:$0xff] %v10066_v14 }
 0x23b   : > { %v2231_v36 = vmul.f32 1.442695, %v2205_v57  ;;  %v2206_v25 = vmin.f32 %v10020_v27, 0.0  ;;  %v2383_v8 = vmul.f32 %v10028_v40, %v10023_v16  ;;  %8136 = vmatprep.mubr.msk.bf16.mxu0 %vm8950_vm1, %v12701_v1  ;;  %v2404_v57 = vadd.f32 %v2403_v5, %v2402_v30 }
 0x23c   : > { %v2105_v53 = vpop.f32.mrb[168].mxu0  ;;  %v10038_v29 = vsel %vm2184_vm9, %v9949_v44, %v7093_v49  ;;  %v3279_v44 = vld [vmem:[%s9071_s18 + $0x4d] sm:$0xff]  ;;  %v2464_v15 = vadd.f32 %v2463_v56, %v2462_v60  ;;  %vm2188_vm13 = vcmp.gt.f32.partialorder %v10020_v27, 0.0 }
 0x23d   : > { %v7976_v21 = vpop.f32.mrb[169].mxu0  ;;  %8881 = vpow2.f32 %v2231_v36  ;;  %v2146_v18 = vadd.f32 %v2105_v53, %v9859_v20  ;;  %v2233_v9 = vmul.f32 1.442695, %v2206_v25  ;;  %v2444_v46 = vmul.f32 %v2383_v8, %v2383_v8 }
 0x23e   : > { %v2108_v11 = vpop.f32.mrb[170].mxu0  ;;  %v2384_v58 = vmul.f32 %v10046_v34, %v10038_v29  ;;  %v2405_v55 = vsel %vm2397_vm3, %v2383_v8, 0.0  ;;  %v3293_v36 = vpack.c.bf16 %v3280_v26, %v3279_v44 }
 0x23f   : > { %v7977_v48 = vpop.f32.mrb[171].mxu0  ;;  %v8878_v37 = vpop.eup %8877  ;;  %v10041_v20 = vadd.f32 %v9909_v17, %v2146_v18  ;;  %v2147_v0 = vadd.f32 %v2108_v11, %v9862_v51  ;;  %8883 = vpow2.f32 %v2233_v9  ;;  %v2406_v21 = vadd.f32 %v2405_v55, %v2404_v57 }
 0x240   : > { %v7094_v50 = vadd.f32 -1.0, %v8878_v37  ;;  %v2465_v7 = vsel %vm2397_vm3, %v2444_v46, 0.0  ;;  %v2445_v23 = vmul.f32 %v2384_v58, %v2384_v58  ;;  %v10078_v18 = vpop.permute.xlu1 %2326  ;;  %v2407_v8 = vsel %vm2397_vm3, %v2384_v58, 0.0  ;;  %v10102_v46 = vpop.permute.xlu0 %2331 }
 0x241   : > { %v8880_v45 = vpop.eup %8879  ;;  %v2207_v39 = vmin.f32 %v10041_v20, 0.0  ;;  %v10063_v41 = vadd.f32 %v9909_v17, %v2147_v0  ;;  %12762 = vst [vmem:[#allocation11_spill] sm:$0xff] %v10078_v18  ;;  %v3281_v0 = vld [vmem:[%s9071_s18 + $0x5d] sm:$0xff]  ;;  %v2466_v5 = vadd.f32 %v2465_v7, %v2464_v15  ;;  %12763 = vst [vmem:[#allocation12_spill] sm:$0xff] %v10102_v46  ;;  %vm2189_vm14 = vcmp.gt.f32.partialorder %v10041_v20, 0.0 }
 0x242   : > { %v7095_v51 = vadd.f32 -1.0, %v8880_v45  ;;  %v10060_v28 = vsel %vm2185_vm10, %v9967_v32, %v7094_v50  ;;  %8137 = vmatmul.mubr.msk.bf16.gmra.mrb[236].mxu0 %vm603_vm2, %v3293_v36  ;;  %v3282_v45 = vld [vmem:[%s9071_s18 + $0x65] sm:$0xff]  ;;  %v2467_v60 = vsel %vm2397_vm3, %v2445_v23, 0.0  ;;  %vm2431_vm10 = vcmask 129024  }
 0x243   : > { %v2235_v47 = vmul.f32 1.442695, %v2207_v39  ;;  %v2385_v53 = vmul.f32 %v10066_v14, %v10060_v28  ;;  %v2208_v32 = vmin.f32 %v10063_v41, 0.0  ;;  %8140 = vmatprep.mubr.msk.bf16.mxu0 %vm8950_vm1, %v12701_v1  ;;  %vm2190_vm15 = vcmp.gt.f32.partialorder %v10063_v41, 0.0 }
 0x244   : > { %v2113_v49 = vpop.f32.mrb[172].mxu0  ;;  %v10073_v24 = vsel %vm2186_vm11, %v9972_v63, %v7095_v51 }
 0x245   : > { %v2148_v59 = vadd.f32 %v2113_v49, %v9870_v43  ;;  %v7980_v12 = vpop.f32.mrb[173].mxu0  ;;  %8885 = vpow2.f32 %v2235_v47  ;;  %v2237_v11 = vmul.f32 1.442695, %v2208_v32  ;;  %v2386_v43 = vmul.f32 %v10078_v18, %v10073_v24 }
 0x246   : > { %v2116_v25 = vpop.f32.mrb[174].mxu0  ;;  %v2446_v37 = vmul.f32 %v2385_v53, %v2385_v53  ;;  %v2409_v56 = vsel %vm2397_vm3, %v2385_v53, 0.0  ;;  %v3294_v47 = vpack.c.bf16 %v3282_v45, %v3281_v0  ;;  %v2468_v12 = vadd.f32 %v2467_v60, %v2466_v5  ;;  %v10132_v5 = vpop.permute.xlu0 %2341 }
 0x247   : > { %v7981_v6 = vpop.f32.mrb[175].mxu0  ;;  %v8882_v63 = vpop.eup %8881  ;;  %v10084_v9 = vadd.f32 %v9909_v17, %v2148_v59  ;;  %v2149_v48 = vadd.f32 %v2116_v25, %v9873_v42  ;;  %8887 = vpow2.f32 %v2237_v11  ;;  %v2408_v42 = vadd.f32 %v2407_v8, %v2406_v21  ;;  %12765 = vst [vmem:[#allocation14_spill] sm:$0xff] %v10132_v5 }
 0x248   : > { %v7096_v30 = vadd.f32 -1.0, %v8882_v63  ;;  %v2447_v39 = vmul.f32 %v2386_v43, %v2386_v43  ;;  %v2469_v49 = vsel %vm2397_vm3, %v2446_v37, 0.0  ;;  %v2411_v63 = vsel %vm2397_vm3, %v2386_v43, 0.0 }
 0x249   : > { %v2209_v50 = vmin.f32 %v10084_v9, 0.0  ;;  %v10095_v44 = vadd.f32 %v9909_v17, %v2149_v48  ;;  %v8884_v26 = vpop.eup %8883  ;;  %v2410_v15 = vadd.f32 %v2409_v56, %v2408_v42  ;;  %v2470_v6 = vadd.f32 %v2469_v49, %v2468_v12  ;;  %v10122_v48 = vpop.permute.xlu1 %2336 }
 0x24a   : > { %v10100_v51 = vsel %vm2187_vm12, %v10001_v62, %v7096_v30  ;;  %v7097_v58 = vadd.f32 -1.0, %v8884_v26  ;;  %8141 = vmatmul.mubr.msk.bf16.gmra.mrb[240].mxu0 %vm603_vm2, %v3294_v47  ;;  %v2471_v8 = vsel %vm2397_vm3, %v2447_v39, 0.0  ;;  %12764 = vst [vmem:[#allocation13_spill] sm:$0xff] %v10122_v48  ;;  %v8852_v30 = vld [vmem:[%s12679_s7 + $0x8] ss:$0 sps:$4 sm:$0xcc]  }
 0x24b   : > { %v2239_v57 = vmul.f32 1.442695, %v2209_v50  ;;  %v2387_v36 = vmul.f32 %v10102_v46, %v10100_v51  ;;  %v2210_v32 = vmin.f32 %v10095_v44, 0.0  ;;  %8144 = vmatprep.mubr.msk.bf16.mxu0 %vm8950_vm1, %v12701_v1  ;;  %v2412_v45 = vadd.f32 %v2411_v63, %v2410_v15 }
 0x24c   : > { %v2121_v55 = vpop.f32.mrb[176].mxu0  ;;  %v10111_v25 = vsel %vm2188_vm13, %v10020_v27, %v7097_v58  ;;  %v2472_v60 = vadd.f32 %v2471_v8, %v2470_v6  ;;  %vm2191_vm4 = vcmp.gt.f32.partialorder %v10084_v9, 0.0  ;;  %vm2192_vm5 = vcmp.gt.f32.partialorder %v10095_v44, 0.0 }
 0x24d   : > { %v2150_v59 = vadd.f32 %v2121_v55, %v9881_v19  ;;  %v7984_v53 = vpop.f32.mrb[177].mxu0  ;;  %8889 = vpow2.f32 %v2239_v57  ;;  %v2241_v21 = vmul.f32 1.442695, %v2210_v32  ;;  %v2413_v27 = vsel %vm2397_vm3, %v2387_v36, 0.0  ;;  %v3283_v32 = vld [vmem:[%s9071_s18 + $0x6d] sm:$0xff] }
 0x24e   : > { %v2124_v62 = vpop.f32.mrb[178].mxu0  ;;  %v2448_v43 = vmul.f32 %v2387_v36, %v2387_v36  ;;  %v3667_v57 = vrot.slane %v8852_v30, 2  ;;  %v2414_v55 = vadd.f32 %v2413_v27, %v2412_v45 }
 0x24f   : > { %v10114_v7 = vadd.f32 %v9909_v17, %v2150_v59  ;;  %v7985_v23 = vpop.f32.mrb[179].mxu0  ;;  %v8886_v11 = vpop.eup %8885  ;;  %v2151_v19 = vadd.f32 %v2124_v62, %v9884_v52  ;;  %v2388_v52 = vmul.f32 %v10122_v48, %v10111_v25  ;;  %8891 = vpow2.f32 %v2241_v21  ;;  %v3284_v59 = vld [vmem:[%s9071_s18 + $0x75] sm:$0xff] }
 0x250   : > { %v7098_v37 = vadd.f32 -1.0, %v8886_v11  ;;  %v2473_v53 = vsel %vm2397_vm3, %v2448_v43, 0.0  ;;  %v3696_v15 = vsel %vm631_vm0, %v3667_v57, 0  ;;  %v10150_v23 = vpop.permute.xlu1 %2346  ;;  %v3295_v30 = vpack.c.bf16 %v3284_v59, %v3283_v32 }
 0x251   : > { %v2211_v0 = vmin.f32 %v10114_v7, 0.0  ;;  %v10139_v26 = vadd.f32 %v9909_v17, %v2151_v19  ;;  %v8888_v42 = vpop.eup %8887  ;;  %v2449_v12 = vmul.f32 %v2388_v52, %v2388_v52  ;;  %v2415_v21 = vsel %vm2397_vm3, %v2388_v52, 0.0  ;;  %12766 = vst [vmem:[#allocation15_spill] sm:$0xff] %v10150_v23  ;;  %8195 = vmatpush3.bf16.msra.mxu0 %v3696_v15 }
 0x252   : > { %v10135_v50 = vsel %vm2189_vm14, %v10041_v20, %v7098_v37  ;;  %v7099_v47 = vadd.f32 -1.0, %v8888_v42  ;;  %8270 = vmatprep.subr.bf16.mxu0 %v12701_v1  ;;  %8145 = vmatmul.mubr.msk.bf16.gmra.mrb[244].mxu0 %vm603_vm2, %v3295_v30  ;;  %vm2193_vm6 = vcmp.gt.f32.partialorder %v10114_v7, 0.0 }
 0x253   : > { %v2389_v56 = vmul.f32 %v10132_v5, %v10135_v50  ;;  %v2243_v39 = vmul.f32 1.442695, %v2211_v0  ;;  %v2212_v49 = vmin.f32 %v10139_v26, 0.0  ;;  %v2475_v52 = vsel %vm2397_vm3, %v2449_v12, 0.0  ;;  %8148 = vmatprep.mubr.msk.bf16.mxu0 %vm8950_vm1, %v12701_v1 }
 0x254   : > { %v2129_v58 = vpop.f32.mrb[180].mxu0  ;;  %v10155_v11 = vsel %vm2190_vm15, %v10063_v41, %v7099_v47  ;;  %v2474_v41 = vadd.f32 %v2473_v53, %v2472_v60  ;;  %v10187_v15 = vpop.permute.xlu1 %2356  ;;  %vm2194_vm7 = vcmp.gt.f32.partialorder %v10139_v26, 0.0 }
 0x255   : > { %v2152_v20 = vadd.f32 %v2129_v58, %v9896_v38  ;;  %v7988_v36 = vpop.f32.mrb[181].mxu0  ;;  %8893 = vpow2.f32 %v2243_v39  ;;  %v2245_v38 = vmul.f32 1.442695, %v2212_v49  ;;  %v2450_v8 = vmul.f32 %v2389_v56, %v2389_v56  ;;  %v10172_v39 = vpop.permute.xlu0 %2351  ;;  %v3285_v58 = vld [vmem:[%s9071_s18 + $0x7d] sm:$0xff]  ;;  %12768 = vst [vmem:[#allocation17_spill] sm:$0xff] %v10187_v15 }
 0x256   : > { %v2132_v62 = vpop.f32.mrb[182].mxu0  ;;  %v2390_v27 = vmul.f32 %v10150_v23, %v10155_v11  ;;  %v2417_v0 = vsel %vm2397_vm3, %v2389_v56, 0.0  ;;  %12767 = vst [vmem:[#allocation16_spill] sm:$0xff] %v10172_v39  ;;  %v3286_v56 = vld [vmem:[%s9071_s18 + $0x85] sm:$0xff] }
 0x257   : > { %v10158_v6 = vadd.f32 %v9909_v17, %v2152_v20  ;;  %v7989_v63 = vpop.f32.mrb[183].mxu0  ;;  %v8890_v19 = vpop.eup %8889  ;;  %v2153_v37 = vadd.f32 %v2132_v62, %v9900_v4  ;;  %8895 = vpow2.f32 %v2245_v38  ;;  %v2416_v4 = vadd.f32 %v2415_v21, %v2414_v55 }
 0x258   : > { %v7100_v43 = vadd.f32 -1.0, %v8890_v19  ;;  %v2451_v47 = vmul.f32 %v2390_v27, %v2390_v27  ;;  %v2476_v20 = vadd.f32 %v2475_v52, %v2474_v41  ;;  %v2419_v59 = vsel %vm2397_vm3, %v2390_v27, 0.0  ;;  %v3288_v52 = vld [vmem:[%s9071_s18 + $0x95] sm:$0x7f] }
 0x259   : > { %v2213_v45 = vmin.f32 %v10158_v6, 0.0  ;;  %v10169_v42 = vadd.f32 %v9909_v17, %v2153_v37  ;;  %v8892_v57 = vpop.eup %8891  ;;  %v2477_v17 = vsel %vm2397_vm3, %v2450_v8, 0.0  ;;  %v2418_v36 = vadd.f32 %v2417_v0, %v2416_v4  ;;  %v10203_v4 = vpop.permute.xlu0 %2361 }
 0x25a   : > { %v10175_v60 = vsel %vm2191_vm4, %v10084_v9, %v7100_v43  ;;  %v7101_v32 = vadd.f32 -1.0, %v8892_v57  ;;  %v3296_v12 = vpack.c.bf16 %v3286_v56, %v3285_v58  ;;  %v2478_v62 = vadd.f32 %v2477_v17, %v2476_v20  ;;  %12769 = vst [vmem:[#allocation18_spill] sm:$0xff] %v10203_v4 }
 0x25b   : > { %v2391_v49 = vmul.f32 %v10172_v39, %v10175_v60  ;;  %v2247_v55 = vmul.f32 1.442695, %v2213_v45  ;;  %v2214_v9 = vmin.f32 %v10169_v42, 0.0  ;;  %v2479_v19 = vsel %vm2397_vm3, %v2451_v47, 0.0 }
 0x25c   : > { %v10192_v21 = vsel %vm2192_vm5, %v10095_v44, %v7101_v32  ;;  %v2420_v37 = vadd.f32 %v2419_v59, %v2418_v36  ;;  %8149 = vmatmul.mubr.msk.bf16.gmra.mrb[248].mxu0 %vm603_vm2, %v3296_v12  ;;  %v3287_v44 = vld [vmem:[%s9071_s18 + $0x8d] sm:$0xff]  ;;  %v2480_v45 = vadd.f32 %v2479_v19, %v2478_v62  ;;  %v10215_v36 = vpop.permute.xlu1 %2366  ;;  %vm2195_vm8 = vcmp.gt.f32.partialorder %v10158_v6, 0.0 }
 0x25d   : > { %v2452_v53 = vmul.f32 %v2391_v49, %v2391_v49  ;;  %8897 = vpow2.f32 %v2247_v55  ;;  %v2249_v38 = vmul.f32 1.442695, %v2214_v9  ;;  %v2421_v8 = vsel %vm2397_vm3, %v2391_v49, 0.0  ;;  %8152 = vmatprep.mubr.msk.bf16.mxu0 %vm8950_vm1, %v12701_v1  ;;  %12770 = vst [vmem:[#allocation19_spill] sm:$0xff] %v10215_v36 }
 0x25e   : > { %v2392_v27 = vmul.f32 %v10187_v15, %v10192_v21  ;;  %v2422_v58 = vadd.f32 %v2421_v8, %v2420_v37  ;;  %v3297_v55 = vpack.c.bf16 %v3288_v52, %v3287_v44  ;;  %v10227_v37 = vpop.permute.xlu0 %2371  ;;  %v3638_v44 = vld [vmem:[%s9071_s18 + $0x17] sm:$0xff]  ;;  %vm2196_vm9 = vcmp.gt.f32.partialorder %v10169_v42, 0.0 }
 0x25f   : > { %v8894_v63 = vpop.eup %8893  ;;  %8899 = vpow2.f32 %v2249_v38  ;;  %v2481_v41 = vsel %vm2397_vm3, %v2452_v53, 0.0  ;;  %12771 = vst [vmem:[#allocation20_spill] sm:$0xff] %v10227_v37 }
 0x260   : > { %v7102_v30 = vadd.f32 -1.0, %v8894_v63  ;;  %v2453_v43 = vmul.f32 %v2392_v27, %v2392_v27  ;;  %v2423_v57 = vsel %vm2397_vm3, %v2392_v27, 0.0  ;;  %v2482_v49 = vadd.f32 %v2481_v41, %v2480_v45 }
 0x261   : > { %v8896_v0 = vpop.eup %8895  ;;  %v2424_v59 = vadd.f32 %v2423_v57, %v2422_v58  ;;  %v10240_v57 = vpop.permute.xlu1 %2376 }
 0x262   : > { %v10206_v56 = vsel %vm2193_vm6, %v10114_v7, %v7102_v30  ;;  %v7103_v17 = vadd.f32 -1.0, %v8896_v0  ;;  %v2483_v20 = vsel %vm2397_vm3, %v2453_v43, 0.0  ;;  %v3637_v43 = vld [vmem:[%s9071_s18 + $0xf] sm:$0xff]  ;;  %12772 = vst [vmem:[#allocation21_spill] sm:$0xff] %v10240_v57 }
 0x263   : > { %v2393_v47 = vmul.f32 %v10203_v4, %v10206_v56  ;;  %v2484_v38 = vadd.f32 %v2483_v20, %v2482_v49  ;;  %v3655_v49 = vpack.c.bf16 %v3638_v44, %v3637_v43 }
 0x264   : > { %v10219_v9 = vsel %vm2194_vm7, %v10139_v26, %v7103_v17  ;;  %8153 = vmatmul.mubr.msk.bf16.gmra.mrb[252].mxu0 %vm603_vm2, %v3297_v55 }
 0x265   : > { %v2425_v7 = vsel %vm2397_vm3, %v2393_v47, 0.0  ;;  %v2454_v32 = vmul.f32 %v2393_v47, %v2393_v47  ;;  %v2394_v53 = vmul.f32 %v10215_v36, %v10219_v9  ;;  %8196 = vmatprep.mubr.msk.bf16.mxu0 %vm8950_vm1, %v12701_v1 }
 0x266   : > { %v2426_v63 = vadd.f32 %v2425_v7, %v2424_v59 }
 0x267   : > { %v8898_v12 = vpop.eup %8897  ;;  %v2485_v62 = vsel %vm2397_vm3, %v2454_v32, 0.0  ;;  %v2455_v19 = vmul.f32 %v2394_v53, %v2394_v53  ;;  %v2427_v27 = vsel %vm2397_vm3, %v2394_v53, 0.0 }
 0x268   : > { %v7104_v8 = vadd.f32 -1.0, %v8898_v12  ;;  %v2486_v30 = vadd.f32 %v2485_v62, %v2484_v38  ;;  %v2428_v58 = vadd.f32 %v2427_v27, %v2426_v63  ;;  %v3640_v63 = vld [vmem:[%s9071_s18 + $0x27] sm:$0xff] }
 0x269   : > { %v8900_v26 = vpop.eup %8899  ;;  %v2487_v52 = vsel %vm2397_vm3, %v2455_v19, 0.0 }
 0x26a   : > { %v10230_v41 = vsel %vm2195_vm8, %v10158_v6, %v7104_v8  ;;  %v7105_v45 = vadd.f32 -1.0, %v8900_v26  ;;  %v2488_v55 = vadd.f32 %v2487_v52, %v2486_v30 }
 0x26b   : > { %v2395_v0 = vmul.f32 %v10227_v37, %v10230_v41 }
 0x26c   : > { %v10244_v17 = vsel %vm2196_vm9, %v10169_v42, %v7105_v45  ;;  %8197 = vmatmul.mubr.msk.bf16.vlgmr.msra.gmra.mrb[0].mxu0 %vm603_vm2, %v3655_v49  ;;  %v3639_v42 = vld [vmem:[%s9071_s18 + $0x1f] sm:$0xff] }
 0x26d   : > { %v2429_v6 = vsel %vm2397_vm3, %v2395_v0, 0.0  ;;  %v2456_v47 = vmul.f32 %v2395_v0, %v2395_v0  ;;  %12773 = vst [vmem:[#allocation22_spill] sm:$0xff] %v10244_v17  ;;  %v2396_v7 = vmul.f32 %v10240_v57, %v10244_v17  ;;  %8200 = vmatprep.mubr.msk.bf16.mxu0 %vm8950_vm1, %v12701_v1  ;;  %v3656_v30 = vpack.c.bf16 %v3640_v63, %v3639_v42  ;;  %v8850_v45 = vld [vmem:[%s12679_s7] ss:$0 sps:$4 sm:$0xcc]   ;;  %v3644_v63 = vld [vmem:[%s9071_s18 + $0x47] sm:$0xff] }
 0x26e   : > { %v2430_v20 = vadd.f32 %v2429_v6, %v2428_v58  ;;  %v3641_v58 = vld [vmem:[%s9071_s18 + $0x2f] sm:$0xff]  ;;  %v3642_v6 = vld [vmem:[%s9071_s18 + $0x37] sm:$0xff]  ;;  %v3643_v42 = vld [vmem:[%s9071_s18 + $0x3f] sm:$0xff]  ;;  %v2654_v17 = vlaneseq }
 0x26f   : > { %v2489_v32 = vsel %vm2397_vm3, %v2456_v47, 0.0  ;;  %v2432_v53 = vsel %vm2431_vm10, %v2396_v7, 0.0  ;;  %v2457_v12 = vmul.f32 %v2396_v7, %v2396_v7  ;;  %v2818_v7 = vrot.slane %v8850_v45, 2  ;;  %v2792_v45 = vld [vmem:[%s9071_s18 + $0x21] sm:$0xff] }
 0x270   : > { %v2490_v59 = vadd.f32 %v2489_v32, %v2488_v55  ;;  %v2433_v62 = vadd.f32 %v2432_v53, %v2430_v20  ;;  %v3657_v32 = vpack.c.bf16 %v3642_v6, %v3641_v58  ;;  %v2789_v53 = vld [vmem:[%s9071_s18 + $0x9] sm:$0xff]  ;;  %v3647_v6 = vld [vmem:[%s9071_s18 + $0x5f] sm:$0xff] }
 0x271   : > { %v2491_v38 = vsel %vm2431_vm10, %v2457_v12, 0.0  ;;  %v2793_v58 = vld [vmem:[%s9071_s18 + $0x29] sm:$0xff] }
 0x272   : > { %v2434_v19 = vrot.slane %v2433_v62, 4  ;;  %v2492_v8 = vadd.f32 %v2491_v38, %v2490_v59  ;;  %v2788_v59 = vld [vmem:[%s9071_s18 + $0x1] sm:$0xff] }
 0x273   : > { %v3089_v38 = vld [vmem:[%s12679_s7 + $0x4] sm:$0x3] }
 0x274   : > { %v2435_v27 = vadd.f32 %v2434_v19, %v2433_v62  ;;  %v2493_v26 = vrot.slane %v2492_v8, 4  ;;  %8201 = vmatmul.mubr.msk.bf16.gmra.mrb[4].mxu0 %vm603_vm2, %v3656_v30  ;;  %v2847_v62 = vsel %vm631_vm0, %v2818_v7, 0  ;;  %v2806_v19 = vpack.c.bf16 %v2789_v53, %v2788_v59  ;;  %v2791_v30 = vld [vmem:[%s9071_s18 + $0x19] sm:$0xff]  ;;  %v3649_v53 = vld [vmem:[%s9071_s18 + $0x6f] sm:$0xff] }
 0x275   : > { %8204 = vmatprep.mubr.msk.bf16.mxu0 %vm8950_vm1, %v12701_v1  ;;  %v2795_v7 = vld [vmem:[%s9071_s18 + $0x39] sm:$0xff] }
 0x276   : > { %v2436_v43 = vrot.slane %v2435_v27, 2  ;;  %v2494_v44 = vadd.f32 %v2493_v26, %v2492_v8  ;;  %v3145_v8 = vsel %vm631_vm0, %v3089_v38, 0  ;;  %v2790_v26 = vld [vmem:[%s9071_s18 + $0x11] sm:$0xff] }
 0x278   : > { %v2437_v52 = vadd.f32 %v2436_v43, %v2435_v27  ;;  %v2495_v0 = vrot.slane %v2494_v44, 2  ;;  %v3658_v27 = vpack.c.bf16 %v3644_v63, %v3643_v42  ;;  %v3645_v43 = vld [vmem:[%s9071_s18 + $0x4f] sm:$0xff]  ;;  %v2796_v63 = vld [vmem:[%s9071_s18 + $0x41] sm:$0xff] }
 0x27a   : > { %v2438_v47 = vrot.slane %v2437_v52, 1  ;;  %v2496_v49 = vadd.f32 %v2495_v0, %v2494_v44  ;;  %v3646_v44 = vld [vmem:[%s9071_s18 + $0x57] sm:$0xff] }
 0x27b   : > { %v3659_v0 = vpack.c.bf16 %v3646_v44, %v3645_v43  ;;  %v2798_v43 = vld [vmem:[%s9071_s18 + $0x51] sm:$0xff]  ;;  %v2799_v44 = vld [vmem:[%s9071_s18 + $0x59] sm:$0xff] }
 0x27c   : > { %v2439_v55 = vadd.f32 %v2438_v47, %v2437_v52  ;;  %v2497_v20 = vrot.slane %v2496_v49, 1  ;;  %8205 = vmatmul.mubr.msk.bf16.gmra.mrb[8].mxu0 %vm603_vm2, %v3657_v32  ;;  %v2807_v52 = vpack.c.bf16 %v2791_v30, %v2790_v26  ;;  %v3648_v47 = vld [vmem:[%s9071_s18 + $0x67] sm:$0xff] }
 0x27d   : > { %8208 = vmatprep.mubr.msk.bf16.mxu0 %vm8950_vm1, %v12701_v1  ;;  %v8853_v32 = vld [vmem:[%s12679_s7 + $0xc] ss:$0 sps:$4 sm:$0xcc]  }
 0x27e   : > { %7995 = vmatmul.mubr.msk.f32.vlgmr.msra.gmra.mrb[140].mxu1 %vm2397_vm3, %v2439_v55  ;;  %v2498_v12 = vadd.f32 %v2497_v20, %v2496_v49  ;;  %v2808_v49 = vpack.c.bf16 %v2793_v58, %v2792_v45  ;;  %v3660_v55 = vpack.c.bf16 %v3648_v47, %v3647_v6  ;;  %v2794_v20 = vld [vmem:[%s9071_s18 + $0x31] sm:$0xff]  ;;  %v4033_v59 = vrot.slane %v8853_v32, 2  ;;  %v2800_v6 = vld [vmem:[%s9071_s18 + $0x61] sm:$0xff]  ;;  %v2801_v47 = vld [vmem:[%s9071_s18 + $0x69] sm:$0xff] }
 0x27f   : > { %8821 = vmatpush3.bf16.msra.mxu1 %v9801_v54  ;;  %8001 = vmatprep.mubr.msk.f32.mxu1 %vm8950_vm1, %v12701_v1  ;;  %v2811_v45 = vpack.c.bf16 %v2799_v44, %v2798_v43  ;;  %v2802_v32 = vld [vmem:[%s9071_s18 + $0x71] sm:$0xff]  ;;  %v3455_v44 = vld [vmem:[%s12679_s7 + $0x8] sm:$0x3] }
 0x280   : > { %8004 = vmatprep.subr.bf16.mxu1 %v12701_v1  ;;  %v4062_v38 = vsel %vm631_vm0, %v4033_v59, 0  ;;  %v2803_v59 = vld [vmem:[%s9071_s18 + $0x79] sm:$0xff]  ;;  %v3091_v43 = vld [vmem:[%s9071_s18 + $0xa] sm:$0xff] }
 0x281   : > { %8271 = vmatpush3.bf16.msra.mxu0 %v4062_v38 }
 0x282   : > { %8002 = vmatmul.mubr.msk.f32.vlgmr.msra.gmra.mrb[142].mxu1 %vm2397_vm3, %v2498_v12  ;;  %v3650_v12 = vld [vmem:[%s9071_s18 + $0x77] sm:$0xff]  ;;  %8346 = vmatprep.subr.bf16.mxu0 %v12701_v1 }
 0x283   : > { %8005 = vmatpush3.bf16.msra.mxu1 %v2847_v62  ;;  %8006 = vmatprep.mubr.msk.bf16.mxu1 %vm8950_vm1, %v12701_v1  ;;  %v2809_v62 = vpack.c.bf16 %v2795_v7, %v2794_v20  ;;  %v3661_v42 = vpack.c.bf16 %v3650_v12, %v3649_v53  ;;  %v2812_v20 = vpack.c.bf16 %v2801_v47, %v2800_v6  ;;  %v4005_v53 = vld [vmem:[%s9071_s18 + $0x2b] sm:$0xff]  ;;  %v4006_v12 = vld [vmem:[%s9071_s18 + $0x33] sm:$0xff] }
 0x284   : > { %8080 = vmatprep.subr.bf16.mxu1 %v12701_v1  ;;  %8209 = vmatmul.mubr.msk.bf16.gmra.mrb[12].mxu0 %vm603_vm2, %v3658_v27  ;;  %v3652_v27 = vld [vmem:[%s9071_s18 + $0x87] sm:$0xff]  ;;  %v4022_v38 = vpack.c.bf16 %v4006_v12, %v4005_v53  ;;  %v3092_v47 = vld [vmem:[%s9071_s18 + $0x12] sm:$0xff] }
 0x285   : > { %8212 = vmatprep.mubr.msk.bf16.mxu0 %vm8950_vm1, %v12701_v1  ;;  %v10406_v53 = vld [vmem:[%s9071_s18 + $0x2a] sm:$0xff] }
 0x286   : > { %8007 = vmatmul.mubr.msk.bf16.vlgmr.msra.gmra.mrb[144].mxu1 %vm603_vm2, %v2806_v19  ;;  %v2797_v19 = vld [vmem:[%s9071_s18 + $0x49] sm:$0xff] }
 0x287   : > { %8081 = vmatpush3.bf16.msra.mxu1 %v3145_v8  ;;  %8010 = vmatprep.mubr.msk.bf16.mxu1 %vm8950_vm1, %v12701_v1  ;;  %v3651_v8 = vld [vmem:[%s9071_s18 + $0x7f] sm:$0xff]  ;;  %v2810_v26 = vpack.c.bf16 %v2797_v19, %v2796_v63  ;;  %v2805_v63 = vld [vmem:[%s9071_s18 + $0x89] sm:$0x7f] }
 0x288   : > { %8156 = vmatprep.subr.bf16.mxu1 %v12701_v1  ;;  %v3662_v30 = vpack.c.bf16 %v3652_v27, %v3651_v8  ;;  %v4007_v19 = vld [vmem:[%s9071_s18 + $0x3b] sm:$0xff]  ;;  %v4008_v8 = vld [vmem:[%s9071_s18 + $0x43] sm:$0xff] }
 0x28c   : > { %8213 = vmatmul.mubr.msk.bf16.gmra.mrb[16].mxu0 %vm603_vm2, %v3659_v0  ;;  %v3654_v0 = vld [vmem:[%s9071_s18 + $0x97] sm:$0x7f] }
 0x28d   : > { %8216 = vmatprep.mubr.msk.bf16.mxu0 %vm8950_vm1, %v12701_v1 }
 0x28e   : > { %8011 = vmatmul.mubr.msk.bf16.gmra.mrb[148].mxu1 %vm603_vm2, %v2807_v52  ;;  %v3653_v52 = vld [vmem:[%s9071_s18 + $0x8f] sm:$0xff] }
 0x28f   : > { %8014 = vmatprep.mubr.msk.bf16.mxu1 %vm8950_vm1, %v12701_v1  ;;  %v3663_v58 = vpack.c.bf16 %v3654_v0, %v3653_v52  ;;  %v4009_v52 = vld [vmem:[%s9071_s18 + $0x4b] sm:$0xff]  ;;  %v4010_v0 = vld [vmem:[%s9071_s18 + $0x53] sm:$0xff] }
 0x290   : > { %v4024_v6 = vpack.c.bf16 %v4010_v0, %v4009_v52 }
 0x294   : > { %8217 = vmatmul.mubr.msk.bf16.gmra.mrb[20].mxu0 %vm603_vm2, %v3660_v55  ;;  %v4004_v55 = vld [vmem:[%s9071_s18 + $0x23] sm:$0xff] }
 0x295   : > { %8220 = vmatprep.mubr.msk.bf16.mxu0 %vm8950_vm1, %v12701_v1 }
 0x296   : > { %8015 = vmatmul.mubr.msk.bf16.gmra.mrb[152].mxu1 %vm603_vm2, %v2808_v49  ;;  %v4003_v49 = vld [vmem:[%s9071_s18 + $0x1b] sm:$0xff] }
 0x297   : > { %8018 = vmatprep.mubr.msk.bf16.mxu1 %vm8950_vm1, %v12701_v1  ;;  %v4021_v7 = vpack.c.bf16 %v4004_v55, %v4003_v49  ;;  %v10390_v49 = vld [vmem:[%s9071_s18 + $0x1a] sm:$0xff] }
 0x298   : > { %v3109_v55 = vpack.c.bf16 %v10390_v49, %v3092_v47 }
 0x29c   : > { %8221 = vmatmul.mubr.msk.bf16.gmra.mrb[24].mxu0 %vm603_vm2, %v3661_v42  ;;  %v2804_v42 = vld [vmem:[%s9071_s18 + $0x81] sm:$0xff] }
 0x29d   : > { %8224 = vmatprep.mubr.msk.bf16.mxu0 %vm8950_vm1, %v12701_v1  ;;  %v2814_v27 = vpack.c.bf16 %v2805_v63, %v2804_v42  ;;  %v4013_v63 = vld [vmem:[%s9071_s18 + $0x6b] sm:$0xff] }
 0x29e   : > { %8019 = vmatmul.mubr.msk.bf16.gmra.mrb[156].mxu1 %vm603_vm2, %v2809_v62  ;;  %v2813_v62 = vpack.c.bf16 %v2803_v59, %v2802_v32  ;;  %v10403_v59 = vld [vmem:[%s9071_s18 + $0x22] sm:$0xff] }
 0x29f   : > { %8022 = vmatprep.mubr.msk.bf16.mxu1 %vm8950_vm1, %v12701_v1 }
 0x2a4   : > { %8225 = vmatmul.mubr.msk.bf16.gmra.mrb[28].mxu0 %vm603_vm2, %v3662_v30  ;;  %v3090_v30 = vld [vmem:[%s9071_s18 + $0x2] sm:$0xff] }
 0x2a5   : > { %8228 = vmatprep.mubr.msk.bf16.mxu0 %vm8950_vm1, %v12701_v1 }
 0x2a6   : > { %8023 = vmatmul.mubr.msk.bf16.gmra.mrb[160].mxu1 %vm603_vm2, %v2810_v26  ;;  %v4023_v26 = vpack.c.bf16 %v4008_v8, %v4007_v19  ;;  %v4014_v19 = vld [vmem:[%s9071_s18 + $0x73] sm:$0xff] }
 0x2a7   : > { %8026 = vmatprep.mubr.msk.bf16.mxu1 %vm8950_vm1, %v12701_v1 }
 0x2ac   : > { %8229 = vmatmul.mubr.msk.bf16.gmra.mrb[32].mxu0 %vm603_vm2, %v3663_v58  ;;  %v3511_v58 = vsel %vm631_vm0, %v3455_v44, 0 }
 0x2ad   : > { %8272 = vmatprep.mubr.msk.bf16.mxu0 %vm8950_vm1, %v12701_v1  ;;  %v10409_v12 = vpop.f32.mrb[184].mxu0 }
 0x2ae   : > { %8027 = vmatmul.mubr.msk.bf16.gmra.mrb[164].mxu1 %vm603_vm2, %v2811_v45  ;;  %v3108_v45 = vpack.c.bf16 %v3091_v43, %v3090_v30  ;;  %v10426_v30 = vld [vmem:[%s9071_s18 + $0x3a] sm:$0xff] }
 0x2af   : > { %8030 = vmatprep.mubr.msk.bf16.mxu1 %vm8950_vm1, %v12701_v1 }
 0x2b4   : > { %8273 = vmatmul.mubr.msk.bf16.vlgmr.msra.gmra.mrb[36].mxu0 %vm603_vm2, %v4021_v7  ;;  %v4012_v7 = vld [vmem:[%s9071_s18 + $0x63] sm:$0xff] }
 0x2b5   : > { %8276 = vmatprep.mubr.msk.bf16.mxu0 %vm8950_vm1, %v12701_v1 }
 0x2b6   : > { %8031 = vmatmul.mubr.msk.bf16.gmra.mrb[168].mxu1 %vm603_vm2, %v2812_v20  ;;  %v4011_v20 = vld [vmem:[%s9071_s18 + $0x5b] sm:$0xff] }
 0x2b7   : > { %8034 = vmatprep.mubr.msk.bf16.mxu1 %vm8950_vm1, %v12701_v1  ;;  %v4025_v32 = vpack.c.bf16 %v4012_v7, %v4011_v20  ;;  %v10446_v20 = vld [vmem:[%s9071_s18 + $0x4a] sm:$0xff] }
 0x2bc   : > { %8277 = vmatmul.mubr.msk.bf16.gmra.mrb[40].mxu0 %vm603_vm2, %v4022_v38  ;;  %v8046_v38 = vpop.f32.mrb[185].mxu0 }
 0x2bd   : > { %8280 = vmatprep.mubr.msk.bf16.mxu0 %vm8950_vm1, %v12701_v1  ;;  %v10415_v42 = vpop.f32.mrb[186].mxu0 }
 0x2be   : > { %8035 = vmatmul.mubr.msk.bf16.gmra.mrb[172].mxu1 %vm603_vm2, %v2813_v62  ;;  %v3110_v62 = vpack.c.bf16 %v10406_v53, %v10403_v59  ;;  %v8047_v8 = vpop.f32.mrb[187].mxu0 }
 0x2bf   : > { %8038 = vmatprep.mubr.msk.bf16.mxu1 %vm8950_vm1, %v12701_v1  ;;  %v10429_v43 = vpop.f32.mrb[188].mxu0 }
 0x2c0   : > { %v8050_v52 = vpop.f32.mrb[189].mxu0 }
 0x2c1   : > { %v10435_v0 = vpop.f32.mrb[190].mxu0 }
 0x2c4   : > { %8281 = vmatmul.mubr.msk.bf16.gmra.mrb[44].mxu0 %vm603_vm2, %v4023_v26  ;;  %v10423_v26 = vld [vmem:[%s9071_s18 + $0x32] sm:$0xff] }
 0x2c5   : > { %8284 = vmatprep.mubr.msk.bf16.mxu0 %vm8950_vm1, %v12701_v1  ;;  %v3111_v44 = vpack.c.bf16 %v10426_v30, %v10423_v26 }
 0x2c6   : > { %8039 = vmatmul.mubr.msk.bf16.gmra.mrb[176].mxu1 %vm603_vm2, %v2814_v27  ;;  %v4026_v27 = vpack.c.bf16 %v4014_v19, %v4013_v63  ;;  %v4017_v63 = vld [vmem:[%s9071_s18 + $0x8b] sm:$0xff]  ;;  %v4018_v19 = vld [vmem:[%s9071_s18 + $0x93] sm:$0xff] }
 0x2c7   : > { %8082 = vmatprep.mubr.msk.bf16.mxu1 %vm8950_vm1, %v12701_v1 }
 0x2cc   : > { %8285 = vmatmul.mubr.msk.bf16.gmra.mrb[48].mxu0 %vm603_vm2, %v4024_v6  ;;  %v8051_v6 = vpop.f32.mrb[191].mxu0 }
 0x2cd   : > { %8288 = vmatprep.mubr.msk.bf16.mxu0 %vm8950_vm1, %v12701_v1  ;;  %v10449_v7 = vpop.f32.mrb[192].mxu0 }
 0x2ce   : > { %8083 = vmatmul.mubr.msk.bf16.vlgmr.msra.gmra.mrb[180].mxu1 %vm603_vm2, %v3108_v45  ;;  %v4015_v45 = vld [vmem:[%s9071_s18 + $0x7b] sm:$0xff] }
 0x2cf   : > { %8157 = vmatpush3.bf16.msra.mxu1 %v3511_v58  ;;  %8086 = vmatprep.mubr.msk.bf16.mxu1 %vm8950_vm1, %v12701_v1  ;;  %v4016_v58 = vld [vmem:[%s9071_s18 + $0x83] sm:$0xff] }
 0x2d0   : > { %8232 = vmatprep.subr.bf16.mxu1 %v12701_v1  ;;  %v4027_v47 = vpack.c.bf16 %v4016_v58, %v4015_v45  ;;  %v10468_v45 = vld [vmem:[%s9071_s18 + $0x52] sm:$0xff]  ;;  %v10471_v58 = vld [vmem:[%s9071_s18 + $0x5a] sm:$0xff] }
 0x2d4   : > { %8289 = vmatmul.mubr.msk.bf16.gmra.mrb[52].mxu0 %vm603_vm2, %v4025_v32 }
 0x2d5   : > { %8292 = vmatprep.mubr.msk.bf16.mxu0 %vm8950_vm1, %v12701_v1 }
 0x2d6   : > { %8087 = vmatmul.mubr.msk.bf16.gmra.mrb[184].mxu1 %vm603_vm2, %v3109_v55  ;;  %v10443_v55 = vld [vmem:[%s9071_s18 + $0x42] sm:$0xff] }
 0x2d7   : > { %8090 = vmatprep.mubr.msk.bf16.mxu1 %vm8950_vm1, %v12701_v1  ;;  %v3112_v32 = vpack.c.bf16 %v10446_v20, %v10443_v55 }
 0x2dc   : > { %8293 = vmatmul.mubr.msk.bf16.gmra.mrb[56].mxu0 %vm603_vm2, %v4026_v27  ;;  %v4028_v27 = vpack.c.bf16 %v4018_v19, %v4017_v63  ;;  %v4019_v63 = vld [vmem:[%s9071_s18 + $0x9b] sm:$0xff]  ;;  %v4020_v19 = vld [vmem:[%s9071_s18 + $0xa3] sm:$0x7f] }
 0x2dd   : > { %8296 = vmatprep.mubr.msk.bf16.mxu0 %vm8950_vm1, %v12701_v1 }
 0x2de   : > { %8091 = vmatmul.mubr.msk.bf16.gmra.mrb[188].mxu1 %vm603_vm2, %v3110_v62  ;;  %v8054_v62 = vpop.f32.mrb[193].mxu0 }
 0x2df   : > { %8094 = vmatprep.mubr.msk.bf16.mxu1 %vm8950_vm1, %v12701_v1  ;;  %v10455_v38 = vpop.f32.mrb[194].mxu0 }
 0x2e0   : > { %v8055_v8 = vpop.f32.mrb[195].mxu0 }
 0x2e1   : > { %v10463_v52 = vpop.f32.mrb[196].mxu0  ;;  %v4029_v8 = vpack.c.bf16 %v4020_v19, %v4019_v63 }
 0x2e2   : > { %v8058_v6 = vpop.f32.mrb[197].mxu0 }
 0x2e3   : > { %v10492_v6 = vld [vmem:[%s9071_s18 + $0x6a] sm:$0xff] }
 0x2e4   : > { %8297 = vmatmul.mubr.msk.bf16.gmra.mrb[60].mxu0 %vm603_vm2, %v4027_v47  ;;  %v3113_v47 = vpack.c.bf16 %v10471_v58, %v10468_v45  ;;  %12775 = vst [vmem:[#allocation24_spill] sm:$0xff] %v10492_v6 }
 0x2e5   : > { %8300 = vmatprep.mubr.msk.bf16.mxu0 %vm8950_vm1, %v12701_v1 }
 0x2e6   : > { %8095 = vmatmul.mubr.msk.bf16.gmra.mrb[192].mxu1 %vm603_vm2, %v3111_v44  ;;  %v8854_v44 = vld [vmem:[%s12680_s8 + $0x8] sm:$0xff]  }
 0x2e7   : > { %8098 = vmatprep.mubr.msk.bf16.mxu1 %vm8950_vm1, %v12701_v1  ;;  %8347 = vmatpush3.bf16.msra.mxu0 %v8854_v44 }
 0x2e8   : > { %8422 = vmatprep.subr.bf16.mxu0 %v12701_v1 }
 0x2ec   : > { %8301 = vmatmul.mubr.msk.bf16.gmra.mrb[64].mxu0 %vm603_vm2, %v4028_v27  ;;  %v10489_v27 = vld [vmem:[%s9071_s18 + $0x62] sm:$0xff] }
 0x2ed   : > { %8304 = vmatprep.mubr.msk.bf16.mxu0 %vm8950_vm1, %v12701_v1 }
 0x2ee   : > { %8099 = vmatmul.mubr.msk.bf16.gmra.mrb[196].mxu1 %vm603_vm2, %v3112_v32  ;;  %v10479_v32 = vpop.f32.mrb[198].mxu0 }
 0x2ef   : > { %8102 = vmatprep.mubr.msk.bf16.mxu1 %vm8950_vm1, %v12701_v1  ;;  %v8059_v62 = vpop.f32.mrb[199].mxu0 }
 0x2f0   : > { %v10484_v44 = vpop.f32.mrb[200].mxu0  ;;  %v3114_v62 = vpack.c.bf16 %v10492_v6, %v10489_v27 }
 0x2f1   : > { %12774 = vst [vmem:[#allocation23_spill] sm:$0xff] %v10484_v44  ;;  %v8062_v10 = vpop.f32.mrb[201].mxu0 }
 0x2f2   : > { %v10507_v10 = vld [vmem:[%s9071_s18 + $0x72] sm:$0xff] }
 0x2f3   : > { %12778 = vst [vmem:[#allocation27_spill] sm:$0xff] %v10507_v10 }
 0x2f4   : > { %8305 = vmatmul.mubr.msk.bf16.gmra.mrb[68].mxu0 %vm603_vm2, %v4029_v8  ;;  %v10510_v8 = vld [vmem:[%s9071_s18 + $0x7a] sm:$0xff] }
 0x2f5   : > { %8348 = vmatprep.mubr.msk.bf16.mxu0 %vm8950_vm1, %v12701_v1  ;;  %12779 = vst [vmem:[#allocation28_spill] sm:$0xff] %v10510_v8  ;;  %v3115_v6 = vpack.c.bf16 %v10510_v8, %v10507_v10 }
 0x2f6   : > { %8103 = vmatmul.mubr.msk.bf16.gmra.mrb[200].mxu1 %vm603_vm2, %v3113_v47  ;;  %v10499_v47 = vpop.f32.mrb[202].mxu0 }
 0x2f7   : > { %8106 = vmatprep.mubr.msk.bf16.mxu1 %vm8950_vm1, %v12701_v1  ;;  %12776 = vst [vmem:[#allocation25_spill] sm:$0xff] %v10499_v47  ;;  %v8063_v63 = vpop.f32.mrb[203].mxu0  ;;  %v3107_v47 = vld [vmem:[%s9071_s18 + $0x8a] sm:$0x7f] }
 0x2f8   : > { %v10502_v19 = vpop.f32.mrb[204].mxu0 }
 0x2f9   : > { %12777 = vst [vmem:[#allocation26_spill] sm:$0xff] %v10502_v19  ;;  %v8066_v54 = vpop.f32.mrb[205].mxu0  ;;  %v10522_v19 = vld [vmem:[%s9071_s18 + $0x82] sm:$0xff] }
 0x2fa   : > { %v10514_v57 = vpop.f32.mrb[206].mxu0  ;;  %12782 = vst [vmem:[#allocation31_spill] sm:$0xff] %v10522_v19  ;;  %v3116_v54 = vpack.c.bf16 %v3107_v47, %v10522_v19  ;;  %v3459_v19 = vld [vmem:[%s9071_s18 + $0x26] sm:$0xff] }
 0x2fb   : > { %12780 = vst [vmem:[#allocation29_spill] sm:$0xff] %v10514_v57  ;;  %v8067_v63 = vpop.f32.mrb[207].mxu0 }
 0x2fe   : > { %8107 = vmatmul.mubr.msk.bf16.gmra.mrb[204].mxu1 %vm603_vm2, %v3114_v62  ;;  %v10517_v62 = vpop.f32.mrb[208].mxu0 }
 0x2ff   : > { %8110 = vmatprep.mubr.msk.bf16.mxu1 %vm8950_vm1, %v12701_v1  ;;  %12781 = vst [vmem:[#allocation30_spill] sm:$0xff] %v10517_v62  ;;  %v8070_v37 = vpop.f32.mrb[209].mxu0  ;;  %v3457_v62 = vld [vmem:[%s9071_s18 + $0x16] sm:$0xff] }
 0x300   : > { %v10526_v36 = vpop.f32.mrb[210].mxu0  ;;  %v3821_v37 = vld [vmem:[%s12679_s7 + $0xc] sm:$0x3] }
 0x301   : > { %12783 = vst [vmem:[#allocation32_spill] sm:$0xff] %v10526_v36  ;;  %v8071_v8 = vpop.f32.mrb[211].mxu0 }
 0x302   : > { %v10529_v63 = vpop.f32.mrb[212].mxu0 }
 0x303   : > { %12784 = vst [vmem:[#allocation33_spill] sm:$0xff] %v10529_v63  ;;  %v8074_v57 = vpop.f32.mrb[213].mxu0  ;;  %v3458_v63 = vld [vmem:[%s9071_s18 + $0x1e] sm:$0xff] }
 0x304   : > { %v10540_v36 = vpop.f32.mrb[214].mxu0  ;;  %v12788_v57 = vmov 0.0  }
 0x305   : > { %12786 = vst [vmem:[#allocation35_spill] sm:$0xff] %v10540_v36  ;;  %v8075_v8 = vpop.f32.mrb[215].mxu0 }
 0x306   : > { %8111 = vmatmul.mubr.msk.bf16.gmra.mrb[208].mxu1 %vm603_vm2, %v3115_v6  ;;  %v3456_v6 = vld [vmem:[%s9071_s18 + $0xe] sm:$0xff] }
 0x307   : > { %8114 = vmatprep.mubr.msk.bf16.mxu1 %vm8950_vm1, %v12701_v1  ;;  %v10538_v47 = vpack.c.bf16 %v3457_v62, %v3456_v6  ;;  %v10552_v6 = vpack.c.bf16 %v3459_v19, %v3458_v63 }
 0x309   : > { %12785 = vst [vmem:[#allocation34_spill] sm:$0xff] %v10538_v47  ;;  %12789 = vst [vmem:[#allocation37_spill] sm:$0xff] %v10552_v6 }
 0x30e   : > { %8115 = vmatmul.mubr.msk.bf16.gmra.mrb[212].mxu1 %vm603_vm2, %v3116_v54  ;;  %v3877_v54 = vsel %vm631_vm0, %v3821_v37, 0 }
 0x30f   : > { %8158 = vmatprep.mubr.msk.bf16.mxu1 %vm8950_vm1, %v12701_v1  ;;  %v10545_v1 = vpop.f32.mrb[216].mxu0 }
 0x310   : > { %12787 = vst [vmem:[#allocation36_spill] sm:$0xff] %v10545_v1  ;;  %v8078_v62 = vpop.f32.mrb[217].mxu0  ;;  %v3461_v1 = vld [vmem:[%s9071_s18 + $0x36] sm:$0xff] }
 0x311   : > { %v10554_v37 = vpop.f32.mrb[218].mxu0 }
 0x312   : > { %12790 = vst [vmem:[#allocation38_spill] sm:$0xff] %v10554_v37  ;;  %v8079_v8 = vpop.f32.mrb[219].mxu0 }
 0x313   : > { %v3462_v8 = vld [vmem:[%s9071_s18 + $0x3e] sm:$0xff] }
 0x316   : > { %8159 = vmatmul.mubr.msk.bf16.vlgmr.msra.gmra.mrb[216].mxu1 %vm603_vm2, %v10538_v47  ;;  %v10558_v47 = vpop.f32.mrb[220].mxu0 }
 0x317   : > { %8233 = vmatpush3.bf16.msra.mxu1 %v3877_v54  ;;  %8162 = vmatprep.mubr.msk.bf16.mxu1 %vm8950_vm1, %v12788_v57  ;;  %12791 = vst [vmem:[#allocation39_spill] sm:$0xff] %v10558_v47  ;;  %v3460_v54 = vld [vmem:[%s9071_s18 + $0x2e] sm:$0xff]  ;;  %v8122_v62 = vpop.f32.mrb[221].mxu0 }
 0x318   : > { %8308 = vmatprep.subr.bf16.mxu1 %v12788_v57  ;;  %v10564_v36 = vpack.c.bf16 %v3461_v1, %v3460_v54  ;;  %v10566_v19 = vpop.f32.mrb[222].mxu0 }
 0x319   : > { %12793 = vst [vmem:[#allocation41_spill] sm:$0xff] %v10566_v19  ;;  %v8123_v63 = vpop.f32.mrb[223].mxu0  ;;  %v3465_v19 = vld [vmem:[%s9071_s18 + $0x56] sm:$0xff] }
 0x31a   : > { %12792 = vst [vmem:[#allocation40_spill] sm:$0xff] %v10564_v36  ;;  %v10574_v47 = vpop.f32.mrb[224].mxu0 }
 0x31b   : > { %12794 = vst [vmem:[#allocation42_spill] sm:$0xff] %v10574_v47  ;;  %v8126_v37 = vpop.f32.mrb[225].mxu0 }
 0x31c   : > { %v10578_v1 = vpop.f32.mrb[226].mxu0 }
 0x31d   : > { %12796 = vst [vmem:[#allocation44_spill] sm:$0xff] %v10578_v1  ;;  %v8127_v54 = vpop.f32.mrb[227].mxu0 }
 0x31e   : > { %8163 = vmatmul.mubr.msk.bf16.gmra.mrb[220].mxu1 %vm603_vm2, %v10552_v6  ;;  %v3463_v6 = vld [vmem:[%s9071_s18 + $0x46] sm:$0xff]  ;;  %v10582_v63 = vpop.f32.mrb[228].mxu0 }
 0x31f   : > { %8166 = vmatprep.mubr.msk.bf16.mxu1 %vm8950_vm1, %v12788_v57  ;;  %v10576_v62 = vpack.c.bf16 %v3463_v6, %v3462_v8  ;;  %12797 = vst [vmem:[#allocation45_spill] sm:$0xff] %v10582_v63  ;;  %v8130_v10 = vpop.f32.mrb[229].mxu0  ;;  %v3467_v63 = vld [vmem:[%s9071_s18 + $0x66] sm:$0xff] }
 0x320   : > { %v10590_v6 = vpop.f32.mrb[230].mxu0 }
 0x321   : > { %12795 = vst [vmem:[#allocation43_spill] sm:$0xff] %v10576_v62  ;;  %12799 = vst [vmem:[#allocation47_spill] sm:$0xff] %v10590_v6  ;;  %v8131_v8 = vpop.f32.mrb[231].mxu0 }
 0x322   : > { %v10594_v54 = vpop.f32.mrb[232].mxu0 }
 0x323   : > { %12800 = vst [vmem:[#allocation48_spill] sm:$0xff] %v10594_v54  ;;  %v8134_v1 = vpop.f32.mrb[233].mxu0  ;;  %v3469_v54 = vld [vmem:[%s9071_s18 + $0x76] sm:$0xff] }
 0x326   : > { %8167 = vmatmul.mubr.msk.bf16.gmra.mrb[224].mxu1 %vm603_vm2, %v10564_v36  ;;  %v3464_v36 = vld [vmem:[%s9071_s18 + $0x4e] sm:$0xff] }
 0x327   : > { %8170 = vmatprep.mubr.msk.bf16.mxu1 %vm8950_vm1, %v12788_v57  ;;  %v10588_v37 = vpack.c.bf16 %v3465_v19, %v3464_v36  ;;  %v10602_v36 = vpop.f32.mrb[234].mxu0 }
 0x328   : > { %12802 = vst [vmem:[#allocation50_spill] sm:$0xff] %v10602_v36  ;;  %v8135_v19 = vpop.f32.mrb[235].mxu0 }
 0x329   : > { %12798 = vst [vmem:[#allocation46_spill] sm:$0xff] %v10588_v37  ;;  %v10606_v8 = vpop.f32.mrb[236].mxu0 }
 0x32a   : > { %12803 = vst [vmem:[#allocation51_spill] sm:$0xff] %v10606_v8  ;;  %v8138_v6 = vpop.f32.mrb[237].mxu0  ;;  %v3471_v8 = vld [vmem:[%s9071_s18 + $0x86] sm:$0xff] }
 0x32e   : > { %8171 = vmatmul.mubr.msk.bf16.gmra.mrb[228].mxu1 %vm603_vm2, %v10576_v62  ;;  %v3466_v62 = vld [vmem:[%s9071_s18 + $0x5e] sm:$0xff] }
 0x32f   : > { %8174 = vmatprep.mubr.msk.bf16.mxu1 %vm8950_vm1, %v12788_v57  ;;  %v10600_v10 = vpack.c.bf16 %v3467_v63, %v3466_v62  ;;  %v10614_v62 = vpop.f32.mrb[238].mxu0 }
 0x330   : > { %12805 = vst [vmem:[#allocation53_spill] sm:$0xff] %v10614_v62  ;;  %v8139_v63 = vpop.f32.mrb[239].mxu0 }
 0x331   : > { %12801 = vst [vmem:[#allocation49_spill] sm:$0xff] %v10600_v10  ;;  %v10618_v19 = vpop.f32.mrb[240].mxu0  ;;  %v3472_v63 = vld [vmem:[%s9071_s18 + $0x8e] sm:$0xff] }
 0x332   : > { %12806 = vst [vmem:[#allocation54_spill] sm:$0xff] %v10618_v19  ;;  %v8142_v36 = vpop.f32.mrb[241].mxu0 }
 0x333   : > { %v10626_v6 = vpop.f32.mrb[242].mxu0 }
 0x334   : > { %12808 = vst [vmem:[#allocation56_spill] sm:$0xff] %v10626_v6 }
 0x336   : > { %8175 = vmatmul.mubr.msk.bf16.gmra.mrb[232].mxu1 %vm603_vm2, %v10588_v37  ;;  %v3468_v37 = vld [vmem:[%s9071_s18 + $0x6e] sm:$0xff] }
 0x337   : > { %8178 = vmatprep.mubr.msk.bf16.mxu1 %vm8950_vm1, %v12788_v57  ;;  %v10612_v1 = vpack.c.bf16 %v3469_v54, %v3468_v37  ;;  %v8143_v37 = vpop.f32.mrb[243].mxu0 }
 0x338   : > { %v10630_v54 = vpop.f32.mrb[244].mxu0 }
 0x339   : > { %12804 = vst [vmem:[#allocation52_spill] sm:$0xff] %v10612_v1  ;;  %12809 = vst [vmem:[#allocation57_spill] sm:$0xff] %v10630_v54  ;;  %v8146_v19 = vpop.f32.mrb[245].mxu0 }
 0x33e   : > { %8179 = vmatmul.mubr.msk.bf16.gmra.mrb[236].mxu1 %vm603_vm2, %v10600_v10  ;;  %v3470_v10 = vld [vmem:[%s9071_s18 + $0x7e] sm:$0xff] }
 0x33f   : > { %8182 = vmatprep.mubr.msk.bf16.mxu1 %vm8950_vm1, %v12788_v57  ;;  %v10624_v47 = vpack.c.bf16 %v3471_v8, %v3470_v10  ;;  %v10638_v10 = vpop.f32.mrb[246].mxu0 }
 0x340   : > { %12811 = vst [vmem:[#allocation59_spill] sm:$0xff] %v10638_v10  ;;  %v8147_v36 = vpop.f32.mrb[247].mxu0 }
 0x341   : > { %12807 = vst [vmem:[#allocation55_spill] sm:$0xff] %v10624_v47 }
 0x346   : > { %8183 = vmatmul.mubr.msk.bf16.gmra.mrb[240].mxu1 %vm603_vm2, %v10612_v1  ;;  %v3473_v1 = vld [vmem:[%s9071_s18 + $0x96] sm:$0x7f] }
 0x347   : > { %8186 = vmatprep.mubr.msk.bf16.mxu1 %vm8950_vm1, %v12788_v57  ;;  %v10636_v4 = vpack.c.bf16 %v3473_v1, %v3472_v63  ;;  %v4187_v1 = vld [vmem:[%s12679_s7 + $0x10] sm:$0x3] }
 0x348   : > { %v4243_v10 = vsel %vm631_vm0, %v4187_v1, 0 }
 0x349   : > { %12810 = vst [vmem:[#allocation58_spill] sm:$0xff] %v10636_v4 }
 0x34e   : > { %8187 = vmatmul.mubr.msk.bf16.gmra.mrb[244].mxu1 %vm603_vm2, %v10624_v47  ;;  %v10642_v47 = vpop.f32.mrb[248].mxu0 }
 0x34f   : > { %8190 = vmatprep.mubr.msk.bf16.mxu1 %vm8950_vm1, %v12788_v57  ;;  %12812 = vst [vmem:[#allocation60_spill] sm:$0xff] %v10642_v47  ;;  %v8150_v19 = vpop.f32.mrb[249].mxu0 }
 0x351   : > { %v2568_v62 = vpop.f32.mrb[140].mxu1 }
 0x352   : > { %v7996_v44 = vpop.f32.mrb[141].mxu1  ;;  %v2645_v8 = vmul.f32 %v2568_v62, %v2568_v62 }
 0x355   : > { %v2641_v37 = vpop.f32.mrb[142].mxu1 }
 0x356   : > { %v2646_v6 = vsub.f32 %v2641_v37, %v2645_v8  ;;  %v8003_v15 = vpop.f32.mrb[143].mxu1  ;;  %8191 = vmatmul.mubr.msk.bf16.gmra.mrb[248].mxu1 %vm603_vm2, %v10636_v4  ;;  %v3840_v8 = vpack.c.bf16 %v10403_v59, %v10390_v49  ;;  %v10654_v37 = vpop.f32.mrb[250].mxu0  ;;  %v2655_v59 = vshrl.u32 %v2654_v17, 7 }
 0x357   : > { %8234 = vmatprep.mubr.msk.bf16.mxu1 %vm8950_vm1, %v12788_v57  ;;  %v8151_v47 = vpop.f32.mrb[251].mxu0 }
 0x358   : > { %v2647_v54 = vmax.f32 %v2646_v6, 0.0 }
 0x359   : > { %v2883_v44 = vpop.f32.mrb[144].mxu1 }
 0x35a   : > { %v2648_v63 = vadd.f32 1e-05, %v2647_v54  ;;  %v10650_v36 = vadd.f32 %v10409_v12, %v2883_v44  ;;  %v8008_v15 = vpop.f32.mrb[145].mxu1  ;;  %v10661_v12 = vpop.f32.mrb[252].mxu0  ;;  %v3841_v54 = vpack.c.bf16 %v10423_v26, %v10406_v53 }
 0x35b   : > { %v2886_v4 = vpop.f32.mrb[146].mxu1  ;;  %v8154_v49 = vpop.f32.mrb[253].mxu0 }
 0x35c   : > { %8901 = vrsqrt.f32 %v2648_v63  ;;  %v10657_v6 = vadd.f32 %v10415_v42, %v2886_v4  ;;  %v8009_v19 = vpop.f32.mrb[147].mxu1  ;;  %v10671_v44 = vpop.f32.mrb[254].mxu0  ;;  %v2288_v49 = vld [vmem:[%s12678_s6] sm:$0x1] }
 0x35d   : > { %v8155_v63 = vpop.f32.mrb[255].mxu0 }
 0x35e   : > { %8235 = vmatmul.mubr.msk.bf16.vlgmr.msra.gmra.mrb[252].mxu1 %vm603_vm2, %v3840_v8  ;;  %v10679_v8 = vsub.s32 0, %v2655_v59  ;;  %v10682_v19 = vpop.f32.mrb[0].mxu0  ;;  %v3843_v63 = vpack.c.bf16 %v10468_v45, %v10446_v20  ;;  %v12827_v45 = vld [vmem:[#allocation22_spill] sm:$0xff] }
 0x35f   : > { %8309 = vmatpush3.bf16.msra.mxu1 %v4243_v10  ;;  %8238 = vmatprep.mubr.msk.bf16.mxu1 %vm8950_vm1, %v12788_v57  ;;  %v2287_v10 = vld [vmem:[%s12677_s5] sm:$0x1]  ;;  %v8198_v26 = vpop.f32.mrb[1].mxu0 }
 0x360   : > { %8384 = vmatprep.subr.bf16.mxu1 %v12788_v57  ;;  %12813 = vst [vmem:[#allocation61_spill] sm:$0xff] %v10679_v8 }
 0x361   : > { %v2891_v47 = vpop.f32.mrb[148].mxu1 }
 0x362   : > { %v10667_v4 = vadd.f32 %v10429_v43, %v2891_v47  ;;  %v8012_v42 = vpop.f32.mrb[149].mxu1 }
 0x363   : > { %v2894_v1 = vpop.f32.mrb[150].mxu1 }
 0x364   : > { %v10677_v15 = vadd.f32 %v10435_v0, %v2894_v1  ;;  %v8013_v17 = vpop.f32.mrb[151].mxu1  ;;  %v3842_v1 = vpack.c.bf16 %v10443_v55, %v10426_v30 }
 0x365   : > { %v10701_v17 = vpop.f32.mrb[2].mxu0 }
 0x366   : > { %v8902_v43 = vpop.eup %8901  ;;  %8239 = vmatmul.mubr.msk.bf16.gmra.mrb[0].mxu1 %vm603_vm2, %v3841_v54  ;;  %v8199_v30 = vpop.f32.mrb[3].mxu0 }
 0x367   : > { %v2650_v53 = vmul.f32 %v8902_v43, %v2287_v10  ;;  %8242 = vmatprep.mubr.msk.bf16.mxu1 %vm8950_vm1, %v12788_v57  ;;  %v12832_v10 = vld [vmem:[#allocation23_spill] sm:$0xff] }
 0x369   : > { %v2651_v47 = vmul.f32 %v2650_v53, %v2568_v62  ;;  %v10690_v0 = vrot.slane %v2650_v53, %v10679_v8  ;;  %v2899_v59 = vpop.f32.mrb[152].mxu1 }
 0x36a   : > { %v10693_v42 = vadd.f32 %v10449_v7, %v2899_v59  ;;  %v8016_v54 = vpop.f32.mrb[153].mxu1 }
 0x36b   : > { %v2652_v62 = vsub.f32 %v2288_v49, %v2651_v47  ;;  %v2902_v43 = vpop.f32.mrb[154].mxu1  ;;  %v2659_v53 = vmul.f32 %v10690_v0, %v9979_v22  ;;  %v2660_v7 = vmul.f32 %v10690_v0, %v9964_v61  ;;  %v2661_v26 = vmul.f32 %v10690_v0, %v9989_v2 }
 0x36c   : > { %v10710_v55 = vadd.f32 %v10455_v38, %v2902_v43  ;;  %v8017_v59 = vpop.f32.mrb[155].mxu1  ;;  %v2662_v54 = vmul.f32 %v10690_v0, %v9998_v31  ;;  %v2663_v49 = vmul.f32 %v10690_v0, %v10023_v16  ;;  %v2664_v22 = vmul.f32 %v10690_v0, %v10038_v29 }
 0x36d   : > { %v10719_v47 = vrot.slane %v2652_v62, %v10679_v8  ;;  %v2665_v61 = vmul.f32 %v10690_v0, %v10060_v28  ;;  %v2666_v2 = vmul.f32 %v10690_v0, %v10073_v24  ;;  %v2667_v38 = vmul.f32 %v10690_v0, %v10100_v51  ;;  %v10742_v62 = vpop.f32.mrb[4].mxu0 }
 0x36e   : > { %8243 = vmatmul.mubr.msk.bf16.gmra.mrb[4].mxu1 %vm603_vm2, %v3842_v1  ;;  %v2668_v31 = vmul.f32 %v10690_v0, %v10111_v25  ;;  %v2669_v16 = vmul.f32 %v10690_v0, %v10135_v50  ;;  %v2670_v29 = vmul.f32 %v10690_v0, %v10155_v11  ;;  %v2671_v28 = vmul.f32 %v10690_v0, %v10175_v60  ;;  %v8202_v30 = vpop.f32.mrb[5].mxu0 }
 0x36f   : > { %8246 = vmatprep.mubr.msk.bf16.mxu1 %vm8950_vm1, %v12788_v57  ;;  %v2683_v24 = vadd.f32 %v10719_v47, %v2659_v53  ;;  %v2684_v51 = vadd.f32 %v10719_v47, %v2660_v7  ;;  %v2685_v1 = vadd.f32 %v10719_v47, %v2661_v26  ;;  %v2686_v25 = vadd.f32 %v10719_v47, %v2662_v54 }
 0x370   : > { %v2687_v50 = vadd.f32 %v10719_v47, %v2663_v49  ;;  %v2688_v11 = vadd.f32 %v10719_v47, %v2664_v22  ;;  %v2689_v43 = vadd.f32 %v10719_v47, %v2665_v61  ;;  %v2690_v60 = vadd.f32 %v10719_v47, %v2666_v2 }
 0x371   : > { %v2907_v59 = vpop.f32.mrb[156].mxu1  ;;  %v10749_v53 = vmul.f32 %v2683_v24, %v9955_v13  ;;  %v10752_v7 = vmul.f32 %v2684_v51, %v9961_v35  ;;  %v10755_v26 = vmul.f32 %v2685_v1, %v9982_v3  ;;  %v10758_v54 = vmul.f32 %v2686_v25, %v10004_v33  ;;  %v10772_v51 = vpop.f32.mrb[6].mxu0  ;;  %v12856_v3 = vld [vmem:[#allocation38_spill] sm:$0xff] }
 0x372   : > { %v10761_v49 = vadd.f32 %v10463_v52, %v2907_v59  ;;  %v8020_v22 = vpop.f32.mrb[157].mxu1  ;;  %v10764_v61 = vmul.f32 %v2687_v50, %v10028_v40  ;;  %v10767_v2 = vmul.f32 %v2688_v11, %v10046_v34  ;;  %v10770_v24 = vmul.f32 %v2689_v43, %v10066_v14  ;;  %v8203_v43 = vpop.f32.mrb[7].mxu0  ;;  %v12852_v14 = vld [vmem:[#allocation35_spill] sm:$0xff] }
 0x373   : > { %12814 = vst [vmem:[#allocation62_spill] sm:$0xff] %v10749_v53  ;;  %12815 = vst [vmem:[#allocation63_spill] sm:$0xff] %v10752_v7  ;;  %v2910_v1 = vpop.f32.mrb[158].mxu1  ;;  %v2691_v52 = vadd.f32 %v10719_v47, %v2667_v38  ;;  %v10784_v25 = vmul.f32 %v2690_v60, %v10078_v18  ;;  %v2692_v50 = vadd.f32 %v10719_v47, %v2668_v31  ;;  %v4399_v43 = vld [vmem:[#allocation2 + $0x1] sm:$0xff] }
 0x374   : > { %12816 = vst [vmem:[#allocation64_spill] sm:$0xff] %v10755_v26  ;;  %12817 = vst [vmem:[#allocation65_spill] sm:$0xff] %v10758_v54  ;;  %v2693_v11 = vadd.f32 %v10719_v47, %v2669_v16  ;;  %v10789_v30 = vadd.f32 %v10479_v32, %v2910_v1  ;;  %v8021_v59 = vpop.f32.mrb[159].mxu1  ;;  %v2694_v38 = vadd.f32 %v10719_v47, %v2670_v29 }
 0x375   : > { %12818 = vst [vmem:[#allocation66_spill] sm:$0xff] %v10764_v61  ;;  %12819 = vst [vmem:[#allocation67_spill] sm:$0xff] %v10767_v2  ;;  %v2695_v31 = vadd.f32 %v10719_v47, %v2671_v28  ;;  %v2672_v16 = vmul.f32 %v10690_v0, %v10192_v21  ;;  %v10802_v32 = vmul.f32 %v2691_v52, %v10102_v46  ;;  %v12828_v59 = vld [vmem:[#allocation17_spill] sm:$0xff] }
 0x376   : > { %12820 = vst [vmem:[#allocation68_spill] sm:$0xff] %v10770_v24  ;;  %2741 = vst.msk [vmem:[#allocation2 + $0xe] sm:$0xff] %vm2397_vm3, %v10749_v53  ;;  %v10807_v60 = vmul.f32 %v2692_v50, %v10122_v48  ;;  %v10810_v22 = vmul.f32 %v2693_v11, %v10132_v5  ;;  %v2673_v29 = vmul.f32 %v10690_v0, %v10206_v56  ;;  %8247 = vmatmul.mubr.msk.bf16.gmra.mrb[8].mxu1 %vm603_vm2, %v3843_v63  ;;  %v10827_v50 = vpop.f32.mrb[8].mxu0  ;;  %v12848_v5 = vld [vmem:[#allocation32_spill] sm:$0xff] }
 0x377   : > { %2742 = vst.msk [vmem:[#allocation2 + $0x16] sm:$0xff] %vm2397_vm3, %v10752_v7  ;;  %2743 = vst.msk [vmem:[#allocation2 + $0x1e] sm:$0xff] %vm2397_vm3, %v10755_v26  ;;  %v10819_v21 = vmul.f32 %v2694_v38, %v10150_v23  ;;  %v10822_v28 = vmul.f32 %v2695_v31, %v10172_v39  ;;  %v2696_v1 = vadd.f32 %v10719_v47, %v2672_v16  ;;  %8250 = vmatprep.mubr.msk.bf16.mxu1 %vm8950_vm1, %v12788_v57 }
 0x378   : > { %2744 = vst.msk [vmem:[#allocation2 + $0x26] sm:$0xff] %vm2397_vm3, %v10758_v54  ;;  %12821 = vst [vmem:[#allocation69_spill] sm:$0xff] %v10784_v25  ;;  %v2674_v52 = vmul.f32 %v10690_v0, %v10219_v9  ;;  %v2697_v56 = vadd.f32 %v10719_v47, %v2673_v29  ;;  %v2675_v20 = vmul.f32 %v10690_v0, %v10230_v41  ;;  %v8206_v9 = vpop.f32.mrb[9].mxu0  ;;  %v12830_v29 = vld [vmem:[#allocation18_spill] sm:$0xff] }
 0x379   : > { %2745 = vst.msk [vmem:[#allocation2 + $0x2e] sm:$0xff] %vm2397_vm3, %v10764_v61  ;;  %2746 = vst.msk [vmem:[#allocation2 + $0x36] sm:$0xff] %vm2397_vm3, %v10767_v2  ;;  %v2676_v63 = vmul.f32 %v10690_v0, %v12827_v45  ;;  %v10849_v38 = vmul.f32 %v2696_v1, %v12828_v59  ;;  %v2915_v16 = vpop.f32.mrb[160].mxu1  ;;  %v12833_v0 = vld [vmem:[#allocation19_spill] sm:$0xff] }
 0x37a   : > { %2747 = vst.msk [vmem:[#allocation2 + $0x3e] sm:$0xff] %vm2397_vm3, %v10770_v24  ;;  %12822 = vst [vmem:[#allocation70_spill] sm:$0xff] %v10802_v32  ;;  %v2698_v31 = vadd.f32 %v10719_v47, %v2674_v52  ;;  %v10857_v9 = vmul.f32 %v2697_v56, %v12830_v29  ;;  %v2699_v45 = vadd.f32 %v10719_v47, %v2675_v20  ;;  %v8024_v52 = vpop.f32.mrb[161].mxu1  ;;  %v10871_v56 = vpop.f32.mrb[10].mxu0  ;;  %v12837_v24 = vld [vmem:[#allocation21_spill] sm:$0xff]  ;;  %v12847_v29 = vld [vmem:[#allocation31_spill] sm:$0xff] }
 0x37b   : > { %2748 = vst.msk [vmem:[#allocation2 + $0x46] sm:$0xff] %vm2397_vm3, %v10784_v25  ;;  %12823 = vst [vmem:[#allocation71_spill] sm:$0xff] %v10807_v60  ;;  %v2700_v11 = vadd.f32 %v10719_v47, %v2676_v63  ;;  %v10864_v8 = vadd.f32 %v12832_v10, %v2915_v16  ;;  %v2918_v63 = vpop.f32.mrb[162].mxu1  ;;  %v8856_v10 = vld [vmem:[%s12680_s8 + $0x10] sm:$0xff]   ;;  %v12835_v16 = vld [vmem:[#allocation20_spill] sm:$0xff]  ;;  %v8207_v52 = vpop.f32.mrb[11].mxu0 }
 0x37c   : > { %12824 = vst [vmem:[#allocation72_spill] sm:$0xff] %v10810_v22  ;;  %12825 = vst [vmem:[#allocation73_spill] sm:$0xff] %v10819_v21  ;;  %v10869_v41 = vmul.f32 %v2698_v31, %v12833_v0  ;;  %v10883_v31 = vmul.f32 %v2699_v45, %v12835_v16  ;;  %v12839_v20 = vld [vmem:[#allocation25_spill] sm:$0xff]  ;;  %v8025_v47 = vpop.f32.mrb[163].mxu1  ;;  %v12846_v0 = vld [vmem:[#allocation28_spill] sm:$0xff] }
 0x37d   : > { %12826 = vst [vmem:[#allocation74_spill] sm:$0xff] %v10822_v28  ;;  %2749 = vst.msk [vmem:[#allocation2 + $0x4e] sm:$0xff] %vm2397_vm3, %v10802_v32  ;;  %v4400_v53 = vld [vmem:[#allocation2 + $0x9] sm:$0xff]  ;;  %v10886_v25 = vmul.f32 %v2700_v11, %v12837_v24  ;;  %v10889_v32 = vadd.f32 %v12839_v20, %v2918_v63  ;;  %v12840_v47 = vpack.c.bf16 %v10489_v27, %v10471_v58 }
 0x37e   : > { %2750 = vst.msk [vmem:[#allocation2 + $0x56] sm:$0xff] %vm2397_vm3, %v10807_v60  ;;  %2751 = vst.msk [vmem:[#allocation2 + $0x5e] sm:$0xff] %vm2397_vm3, %v10810_v22  ;;  %v4417_v1 = vpack.c.bf16 %v4400_v53, %v4399_v43  ;;  %v10900_v11 = vld [vmem:[#allocation2 + $0x1a] sm:$0xff]  ;;  %v4401_v52 = vld [vmem:[#allocation2 + $0x11] sm:$0xff]  ;;  %v3846_v59 = vpack.c.bf16 %v12847_v29, %v12846_v0 }
 0x37f   : > { %2752 = vst.msk [vmem:[#allocation2 + $0x66] sm:$0xff] %vm2397_vm3, %v10819_v21  ;;  %2753 = vst.msk [vmem:[#allocation2 + $0x6e] sm:$0xff] %vm2397_vm3, %v10822_v28  ;;  %v10902_v45 = vld [vmem:[#allocation2 + $0x22] sm:$0xff]  ;;  %8251 = vmatmul.mubr.msk.bf16.gmra.mrb[12].mxu1 %vm603_vm2, %v12840_v47  ;;  %v4402_v43 = vld [vmem:[#allocation2 + $0x19] sm:$0xff] }
 0x380   : > { %12829 = vst [vmem:[#allocation22_spill] sm:$0xff] %v10849_v38  ;;  %12831 = vst [vmem:[#allocation75_spill] sm:$0xff] %v10857_v9  ;;  %8349 = vmatmul.mubr.msk.bf16.vlgmr.msra.gmra.mrb[72].mxu0 %vm2397_vm3, %v4417_v1  ;;  %v10914_v1 = vpop.f32.mrb[12].mxu0  ;;  %8254 = vmatprep.mubr.msk.bf16.mxu1 %vm8950_vm1, %v12788_v57  ;;  %v10920_v20 = vld [vmem:[#allocation2 + $0x2a] sm:$0xff]  ;;  %v10922_v58 = vld [vmem:[#allocation2 + $0x32] sm:$0xff]  ;;  %v4418_v54 = vpack.c.bf16 %v4402_v43, %v4401_v52 }
 0x381   : > { %2754 = vst.msk [vmem:[#allocation2 + $0x76] sm:$0xff] %vm2397_vm3, %v10849_v38  ;;  %12834 = vst [vmem:[#allocation23_spill] sm:$0xff] %v10869_v41  ;;  %8352 = vmatprep.mubr.msk.bf16.mxu0 %vm8950_vm1, %v12788_v57  ;;  %8423 = vmatpush3.bf16.msra.mxu0 %v8856_v10  ;;  %v8210_v53 = vpop.f32.mrb[13].mxu0  ;;  %v10924_v27 = vld [vmem:[#allocation2 + $0x3a] sm:$0xff]  ;;  %v12843_v22 = vld [vmem:[#allocation27_spill] sm:$0xff] }
 0x382   : > { %2755 = vst.msk [vmem:[#allocation2 + $0x7e] sm:$0xff] %vm2397_vm3, %v10857_v9  ;;  %12836 = vst [vmem:[#allocation76_spill] sm:$0xff] %v10883_v31  ;;  %v10926_v47 = vld [vmem:[#allocation2 + $0x42] sm:$0xff]  ;;  %8498 = vmatprep.subr.bf16.mxu0 %v12788_v57  ;;  %v12842_v38 = vld [vmem:[#allocation24_spill] sm:$0xff]  ;;  %v10944_v61 = vpop.f32.mrb[14].mxu0 }
 0x383   : > { %12838 = vst [vmem:[#allocation77_spill] sm:$0xff] %v10886_v25  ;;  %2756 = vst.msk [vmem:[#allocation2 + $0x86] sm:$0xff] %vm2397_vm3, %v10869_v41  ;;  %v12841_v53 = vld [vmem:[#allocation26_spill] sm:$0xff]  ;;  %v3845_v21 = vpack.c.bf16 %v12843_v22, %v12842_v38  ;;  %v8211_v10 = vpop.f32.mrb[15].mxu0  ;;  %v3837_v29 = vld [vmem:[%s9071_s18 + $0x92] sm:$0xff] }
 0x384   : > { %2757 = vst.msk [vmem:[#allocation2 + $0x8e] sm:$0xff] %vm2397_vm3, %v10883_v31  ;;  %v2923_v31 = vpop.f32.mrb[164].mxu1  ;;  %v10967_v52 = vpop.f32.mrb[16].mxu0  ;;  %v12845_v22 = vld [vmem:[#allocation30_spill] sm:$0xff] }
 0x385   : > { %2758 = vst.msk [vmem:[#allocation2 + $0x96] sm:$0x7f] %vm2431_vm10, %v10886_v25  ;;  %v10929_v25 = vld [vmem:[#allocation2 + $0x4a] sm:$0xff]  ;;  %v10931_v63 = vld [vmem:[#allocation2 + $0x52] sm:$0xff]  ;;  %v10938_v41 = vadd.f32 %v12841_v53, %v2923_v31  ;;  %v8028_v28 = vpop.f32.mrb[165].mxu1  ;;  %v10942_v60 = vld [vmem:[#allocation2 + $0x5a] sm:$0xff] }
 0x386   : > { %v2926_v26 = vpop.f32.mrb[166].mxu1  ;;  %v10948_v9 = vld [vmem:[#allocation2 + $0x62] sm:$0xff]  ;;  %v10950_v7 = vld [vmem:[#allocation2 + $0x6a] sm:$0xff] }
 0x387   : > { %v12844_v31 = vld [vmem:[#allocation29_spill] sm:$0xff]  ;;  %v8029_v28 = vpop.f32.mrb[167].mxu1  ;;  %8255 = vmatmul.mubr.msk.bf16.gmra.mrb[16].mxu1 %vm603_vm2, %v3845_v21  ;;  %v3836_v0 = vld [vmem:[%s9071_s18 + $0x8a] sm:$0xff] }
 0x388   : > { %v10953_v53 = vadd.f32 %v12844_v31, %v2926_v26  ;;  %8353 = vmatmul.mubr.msk.bf16.gmra.mrb[76].mxu0 %vm2397_vm3, %v4418_v54  ;;  %v10958_v38 = vld [vmem:[#allocation2 + $0x72] sm:$0xff]  ;;  %8258 = vmatprep.mubr.msk.bf16.mxu1 %vm8950_vm1, %v12788_v57  ;;  %v8214_v54 = vpop.f32.mrb[17].mxu0  ;;  %v4403_v31 = vld [vmem:[#allocation2 + $0x21] sm:$0xff]  ;;  %v4404_v28 = vld [vmem:[#allocation2 + $0x29] sm:$0xff] }
 0x389   : > { %v10960_v24 = vld [vmem:[#allocation2 + $0x7a] sm:$0xff]  ;;  %8356 = vmatprep.mubr.msk.bf16.mxu0 %vm8950_vm1, %v12788_v57  ;;  %v2931_v21 = vpop.f32.mrb[168].mxu1  ;;  %v10980_v26 = vpop.f32.mrb[18].mxu0  ;;  %v4419_v23 = vpack.c.bf16 %v4404_v28, %v4403_v31  ;;  %v4405_v31 = vld [vmem:[#allocation2 + $0x31] sm:$0xff] }
 0x38a   : > { %v10965_v43 = vld [vmem:[#allocation2 + $0x82] sm:$0xff]  ;;  %v10976_v2 = vadd.f32 %v12845_v22, %v2931_v21  ;;  %v8032_v16 = vpop.f32.mrb[169].mxu1  ;;  %v8215_v54 = vpop.f32.mrb[19].mxu0  ;;  %v4406_v28 = vld [vmem:[#allocation2 + $0x39] sm:$0xff] }
 0x38b   : > { %v2934_v39 = vpop.f32.mrb[170].mxu1  ;;  %v10989_v16 = vpop.f32.mrb[20].mxu0  ;;  %v4420_v46 = vpack.c.bf16 %v4406_v28, %v4405_v31  ;;  %v4408_v28 = vld [vmem:[#allocation2 + $0x49] sm:$0xff] }
 0x38c   : > { %v10983_v48 = vadd.f32 %v12848_v5, %v2934_v39  ;;  %v8033_v10 = vpop.f32.mrb[171].mxu1  ;;  %12849 = vst [vmem:[#allocation25_spill] sm:$0xff] %v10989_v16  ;;  %v8218_v22 = vpop.f32.mrb[21].mxu0  ;;  %v12850_v39 = vld [vmem:[#allocation33_spill] sm:$0xff] }
 0x38d   : > { %v3847_v10 = vpack.c.bf16 %v3837_v29, %v3836_v0  ;;  %v10998_v21 = vpop.f32.mrb[22].mxu0  ;;  %v3838_v0 = vld [vmem:[%s9071_s18 + $0x9a] sm:$0xff]  ;;  %v3839_v29 = vld [vmem:[%s9071_s18 + $0xa2] sm:$0x7f] }
 0x38e   : > { %12851 = vst [vmem:[#allocation26_spill] sm:$0xff] %v10998_v21  ;;  %v8219_v18 = vpop.f32.mrb[23].mxu0 }
 0x38f   : > { %8259 = vmatmul.mubr.msk.bf16.gmra.mrb[20].mxu1 %vm603_vm2, %v3846_v59  ;;  %v11007_v22 = vpop.f32.mrb[24].mxu0  ;;  %v4407_v18 = vld [vmem:[#allocation2 + $0x41] sm:$0xff] }
 0x390   : > { %8357 = vmatmul.mubr.msk.bf16.gmra.mrb[80].mxu0 %vm2397_vm3, %v4419_v23  ;;  %8262 = vmatprep.mubr.msk.bf16.mxu1 %vm8950_vm1, %v12788_v57  ;;  %12853 = vst [vmem:[#allocation24_spill] sm:$0xff] %v11007_v22  ;;  %v8222_v31 = vpop.f32.mrb[25].mxu0  ;;  %v12859_v22 = vld [vmem:[#allocation39_spill] sm:$0xff] }
 0x391   : > { %8360 = vmatprep.mubr.msk.bf16.mxu0 %vm8950_vm1, %v12788_v57  ;;  %v2939_v5 = vpop.f32.mrb[172].mxu1 }
 0x392   : > { %v10996_v23 = vadd.f32 %v12850_v39, %v2939_v5  ;;  %v8036_v59 = vpop.f32.mrb[173].mxu1  ;;  %v3848_v39 = vpack.c.bf16 %v3839_v29, %v3838_v0  ;;  %v4188_v0 = vld [vmem:[%s9071_s18 + $0x1c] sm:$0xff]  ;;  %v4189_v29 = vld [vmem:[%s9071_s18 + $0x24] sm:$0xff] }
 0x393   : > { %v2942_v54 = vpop.f32.mrb[174].mxu1  ;;  %v11016_v59 = vpop.f32.mrb[26].mxu0 }
 0x394   : > { %v11001_v34 = vadd.f32 %v12852_v14, %v2942_v54  ;;  %v8037_v40 = vpop.f32.mrb[175].mxu1  ;;  %12855 = vst [vmem:[#allocation27_spill] sm:$0xff] %v11016_v59  ;;  %v4421_v54 = vpack.c.bf16 %v4408_v28, %v4407_v18  ;;  %v8223_v33 = vpop.f32.mrb[27].mxu0  ;;  %v4410_v28 = vld [vmem:[#allocation2 + $0x59] sm:$0xff] }
 0x395   : > { %v12854_v40 = vld [vmem:[#allocation36_spill] sm:$0xff]  ;;  %v11025_v31 = vpop.f32.mrb[28].mxu0 }
 0x396   : > { %12857 = vst [vmem:[#allocation29_spill] sm:$0xff] %v11025_v31  ;;  %v8226_v18 = vpop.f32.mrb[29].mxu0  ;;  %v4409_v33 = vld [vmem:[#allocation2 + $0x51] sm:$0xff] }
 0x397   : > { %8263 = vmatmul.mubr.msk.bf16.gmra.mrb[24].mxu1 %vm603_vm2, %v3847_v10 }
 0x398   : > { %8361 = vmatmul.mubr.msk.bf16.gmra.mrb[84].mxu0 %vm2397_vm3, %v4420_v46  ;;  %8266 = vmatprep.mubr.msk.bf16.mxu1 %vm8950_vm1, %v12788_v57 }
 0x399   : > { %8364 = vmatprep.mubr.msk.bf16.mxu0 %vm8950_vm1, %v12788_v57  ;;  %v2947_v14 = vpop.f32.mrb[176].mxu1 }
 0x39a   : > { %v11014_v46 = vadd.f32 %v12854_v40, %v2947_v14  ;;  %v8040_v5 = vpop.f32.mrb[177].mxu1  ;;  %v4206_v40 = vpack.c.bf16 %v4189_v29, %v4188_v0 }
 0x39b   : > { %v2950_v10 = vpop.f32.mrb[178].mxu1  ;;  %v11032_v5 = vpop.f32.mrb[30].mxu0 }
 0x39c   : > { %v11019_v13 = vadd.f32 %v12856_v3, %v2950_v10  ;;  %v8041_v35 = vpop.f32.mrb[179].mxu1  ;;  %12858 = vst [vmem:[#allocation30_spill] sm:$0xff] %v11032_v5  ;;  %v4422_v10 = vpack.c.bf16 %v4410_v28, %v4409_v33  ;;  %v8227_v31 = vpop.f32.mrb[31].mxu0  ;;  %v4412_v33 = vld [vmem:[#allocation2 + $0x69] sm:$0xff] }
 0x39d   : > { %v11048_v29 = vpop.f32.mrb[32].mxu0  ;;  %v4411_v31 = vld [vmem:[#allocation2 + $0x61] sm:$0xff] }
 0x39e   : > { %12861 = vst [vmem:[#allocation28_spill] sm:$0xff] %v11048_v29 }
 0x39f   : > { %8267 = vmatmul.mubr.msk.bf16.gmra.mrb[28].mxu1 %vm603_vm2, %v3848_v39 }
 0x3a0   : > { %8365 = vmatmul.mubr.msk.bf16.gmra.mrb[88].mxu0 %vm2397_vm3, %v4421_v54  ;;  %8310 = vmatprep.mubr.msk.bf16.mxu1 %vm8950_vm1, %v12788_v57  ;;  %v8855_v54 = vld [vmem:[%s12680_s8] sm:$0xff]  }
 0x3a1   : > { %8368 = vmatprep.mubr.msk.bf16.mxu0 %vm8950_vm1, %v12788_v57  ;;  %v3181_v3 = vpop.f32.mrb[180].mxu1 }
 0x3a2   : > { %v3252_v35 = vadd.f32 %v3181_v3, %v10650_v36  ;;  %v8084_v14 = vpop.f32.mrb[181].mxu1  ;;  %v12860_v36 = vld [vmem:[#allocation41_spill] sm:$0xff] }
 0x3a3   : > { %v3184_v39 = vpop.f32.mrb[182].mxu1 }
 0x3a4   : > { %v3253_v18 = vadd.f32 %v3184_v39, %v10657_v6  ;;  %v8085_v59 = vpop.f32.mrb[183].mxu1  ;;  %v11039_v21 = vadd.f32 %v12859_v22, %v3252_v35  ;;  %v4190_v6 = vld [vmem:[%s9071_s18 + $0x2c] sm:$0xff]  ;;  %v8230_v22 = vpop.f32.mrb[33].mxu0 }
 0x3a5   : > { %v4191_v59 = vld [vmem:[%s9071_s18 + $0x34] sm:$0xff]  ;;  %v12863_v22 = vld [vmem:[#allocation42_spill] sm:$0xff] }
 0x3a6   : > { %v11046_v0 = vadd.f32 %v12860_v36, %v3253_v18  ;;  %v4207_v14 = vpack.c.bf16 %v4191_v59, %v4190_v6  ;;  %v12865_v6 = vld [vmem:[#allocation44_spill] sm:$0xff] }
 0x3a7   : > { %8311 = vmatmul.mubr.msk.bf16.vlgmr.msra.gmra.mrb[32].mxu1 %vm603_vm2, %v4206_v40  ;;  %v11056_v40 = vpop.f32.mrb[34].mxu0 }
 0x3a8   : > { %8369 = vmatmul.mubr.msk.bf16.gmra.mrb[92].mxu0 %vm2397_vm3, %v4422_v10  ;;  %8385 = vmatpush3.bf16.msra.mxu1 %v8855_v54  ;;  %12862 = vst [vmem:[#allocation31_spill] sm:$0xff] %v11056_v40  ;;  %v4423_v10 = vpack.c.bf16 %v4412_v33, %v4411_v31  ;;  %v8231_v54 = vpop.f32.mrb[35].mxu0  ;;  %v4193_v33 = vld [vmem:[%s9071_s18 + $0x44] sm:$0xff] }
 0x3a9   : > { %8372 = vmatprep.mubr.msk.bf16.mxu0 %vm8950_vm1, %v12788_v57  ;;  %8314 = vmatprep.mubr.msk.bf16.mxu1 %vm8950_vm1, %v12788_v57  ;;  %v3189_v28 = vpop.f32.mrb[184].mxu1  ;;  %v11062_v5 = vpop.f32.mrb[36].mxu0  ;;  %v12869_v40 = vld [vmem:[#allocation45_spill] sm:$0xff] }
 0x3aa   : > { %8460 = vmatprep.subr.bf16.mxu1 %v12788_v57  ;;  %v3254_v3 = vadd.f32 %v3189_v28, %v10667_v4  ;;  %v8088_v35 = vpop.f32.mrb[185].mxu1  ;;  %12864 = vst [vmem:[#allocation32_spill] sm:$0xff] %v11062_v5  ;;  %v8274_v4 = vpop.f32.mrb[37].mxu0 }
 0x3ab   : > { %v3192_v39 = vpop.f32.mrb[186].mxu1  ;;  %v11071_v31 = vpop.f32.mrb[38].mxu0  ;;  %v4414_v35 = vld [vmem:[#allocation2 + $0x79] sm:$0xff] }
 0x3ac   : > { %v3255_v18 = vadd.f32 %v3192_v39, %v10677_v15  ;;  %v8089_v36 = vpop.f32.mrb[187].mxu1  ;;  %v11060_v29 = vadd.f32 %v12863_v22, %v3254_v3  ;;  %12866 = vst [vmem:[#allocation33_spill] sm:$0xff] %v11071_v31  ;;  %v4192_v15 = vld [vmem:[%s9071_s18 + $0x3c] sm:$0xff]  ;;  %v8275_v28 = vpop.f32.mrb[39].mxu0  ;;  %v4413_v3 = vld [vmem:[#allocation2 + $0x71] sm:$0xff] }
 0x3ad   : > { %v11077_v39 = vpop.f32.mrb[40].mxu0  ;;  %v4208_v22 = vpack.c.bf16 %v4193_v33, %v4192_v15  ;;  %v12871_v15 = vld [vmem:[#allocation47_spill] sm:$0xff] }
 0x3ae   : > { %v11069_v59 = vadd.f32 %v12865_v6, %v3255_v18  ;;  %12867 = vst [vmem:[#allocation35_spill] sm:$0xff] %v11077_v39  ;;  %v4424_v6 = vpack.c.bf16 %v4414_v35, %v4413_v3  ;;  %v4415_v35 = vld [vmem:[#allocation2 + $0x81] sm:$0xff] }
 0x3af   : > { %8315 = vmatmul.mubr.msk.bf16.gmra.mrb[36].mxu1 %vm603_vm2, %v4207_v14  ;;  %v8278_v14 = vpop.f32.mrb[41].mxu0 }
 0x3b0   : > { %8373 = vmatmul.mubr.msk.bf16.gmra.mrb[96].mxu0 %vm2397_vm3, %v4423_v10  ;;  %8318 = vmatprep.mubr.msk.bf16.mxu1 %vm8950_vm1, %v12788_v57  ;;  %v11080_v18 = vpop.f32.mrb[42].mxu0 }
 0x3b1   : > { %8376 = vmatprep.mubr.msk.bf16.mxu0 %vm8950_vm1, %v12788_v57  ;;  %v3197_v10 = vpop.f32.mrb[188].mxu1  ;;  %12868 = vst [vmem:[#allocation36_spill] sm:$0xff] %v11080_v18  ;;  %v8279_v31 = vpop.f32.mrb[43].mxu0 }
 0x3b2   : > { %v3256_v54 = vadd.f32 %v3197_v10, %v10693_v42  ;;  %v8092_v36 = vpop.f32.mrb[189].mxu1  ;;  %v11086_v39 = vpop.f32.mrb[44].mxu0  ;;  %v4416_v10 = vld [vmem:[#allocation2 + $0x89] sm:$0x7f] }
 0x3b3   : > { %v3200_v4 = vpop.f32.mrb[190].mxu1  ;;  %12870 = vst [vmem:[#allocation38_spill] sm:$0xff] %v11086_v39  ;;  %v8282_v42 = vpop.f32.mrb[45].mxu0  ;;  %v12874_v39 = vld [vmem:[#allocation48_spill] sm:$0xff] }
 0x3b4   : > { %v3257_v5 = vadd.f32 %v3200_v4, %v10710_v55  ;;  %v8093_v28 = vpop.f32.mrb[191].mxu1  ;;  %v11084_v16 = vadd.f32 %v12869_v40, %v3256_v54  ;;  %v11095_v31 = vpop.f32.mrb[46].mxu0  ;;  %v4194_v55 = vld [vmem:[%s9071_s18 + $0x4c] sm:$0xff]  ;;  %v4195_v40 = vld [vmem:[%s9071_s18 + $0x54] sm:$0xff]  ;;  %v4425_v42 = vpack.c.bf16 %v4416_v10, %v4415_v35 }
 0x3b5   : > { %12872 = vst [vmem:[#allocation39_spill] sm:$0xff] %v11095_v31  ;;  %v8283_v3 = vpop.f32.mrb[47].mxu0 }
 0x3b6   : > { %v11093_v33 = vadd.f32 %v12871_v15, %v3257_v5  ;;  %v11101_v14 = vpop.f32.mrb[48].mxu0 }
 0x3b7   : > { %8319 = vmatmul.mubr.msk.bf16.gmra.mrb[40].mxu1 %vm603_vm2, %v4208_v22  ;;  %12873 = vst [vmem:[#allocation41_spill] sm:$0xff] %v11101_v14  ;;  %v8286_v36 = vpop.f32.mrb[49].mxu0 }
 0x3b8   : > { %8377 = vmatmul.mubr.msk.bf16.gmra.mrb[100].mxu0 %vm2397_vm3, %v4424_v6  ;;  %8322 = vmatprep.mubr.msk.bf16.mxu1 %vm8950_vm1, %v12788_v57  ;;  %v4209_v6 = vpack.c.bf16 %v4195_v40, %v4194_v55  ;;  %v11104_v5 = vpop.f32.mrb[50].mxu0  ;;  %v12876_v55 = vld [vmem:[#allocation50_spill] sm:$0xff] }
 0x3b9   : > { %8380 = vmatprep.mubr.msk.bf16.mxu0 %vm8950_vm1, %v12788_v57  ;;  %v3205_v54 = vpop.f32.mrb[192].mxu1  ;;  %v8287_v15 = vpop.f32.mrb[51].mxu0  ;;  %v4705_v36 = vld [vmem:[#allocation2 + $0xa] sm:$0xff] }
 0x3ba   : > { %v3258_v22 = vadd.f32 %v3205_v54, %v10761_v49  ;;  %v8096_v4 = vpop.f32.mrb[193].mxu1  ;;  %v11110_v14 = vpop.f32.mrb[52].mxu0  ;;  %v4704_v54 = vld [vmem:[#allocation2 + $0x2] sm:$0xff] }
 0x3bb   : > { %v3208_v28 = vpop.f32.mrb[194].mxu1  ;;  %12875 = vst [vmem:[#allocation42_spill] sm:$0xff] %v11110_v14  ;;  %v8290_v49 = vpop.f32.mrb[53].mxu0  ;;  %v12880_v14 = vld [vmem:[#allocation51_spill] sm:$0xff] }
 0x3bc   : > { %v3259_v31 = vadd.f32 %v3208_v28, %v10789_v30  ;;  %v8097_v3 = vpop.f32.mrb[195].mxu1  ;;  %v11108_v18 = vadd.f32 %v12874_v39, %v3258_v22  ;;  %v11119_v35 = vpop.f32.mrb[54].mxu0  ;;  %v4196_v30 = vld [vmem:[%s9071_s18 + $0x5c] sm:$0xff]  ;;  %v4197_v39 = vld [vmem:[%s9071_s18 + $0x64] sm:$0xff]  ;;  %v4722_v49 = vpack.c.bf16 %v4705_v36, %v4704_v54 }
 0x3bd   : > { %12877 = vst [vmem:[#allocation44_spill] sm:$0xff] %v11119_v35  ;;  %v8291_v10 = vpop.f32.mrb[55].mxu0  ;;  %v4210_v15 = vpack.c.bf16 %v4197_v39, %v4196_v30  ;;  %v12882_v39 = vld [vmem:[#allocation53_spill] sm:$0xff] }
 0x3be   : > { %v11117_v40 = vadd.f32 %v12876_v55, %v3259_v31  ;;  %v11125_v22 = vpop.f32.mrb[56].mxu0  ;;  %v8858_v55 = vld [vmem:[%s12680_s8 + $0x20] sm:$0xff]  }
 0x3bf   : > { %8323 = vmatmul.mubr.msk.bf16.gmra.mrb[44].mxu1 %vm603_vm2, %v4209_v6  ;;  %12878 = vst [vmem:[#allocation45_spill] sm:$0xff] %v11125_v22  ;;  %v8294_v6 = vpop.f32.mrb[57].mxu0 }
 0x3c0   : > { %8381 = vmatmul.mubr.msk.bf16.gmra.mrb[104].mxu0 %vm2397_vm3, %v4425_v42  ;;  %8326 = vmatprep.mubr.msk.bf16.mxu1 %vm8950_vm1, %v12788_v57  ;;  %v11128_v31 = vpop.f32.mrb[58].mxu0 }
 0x3c1   : > { %8424 = vmatprep.mubr.msk.bf16.mxu0 %vm8950_vm1, %v12788_v57  ;;  %v3213_v4 = vpop.f32.mrb[196].mxu1  ;;  %12879 = vst [vmem:[#allocation47_spill] sm:$0xff] %v11128_v31  ;;  %v8295_v10 = vpop.f32.mrb[59].mxu0 }
 0x3c2   : > { %v3260_v28 = vadd.f32 %v3213_v4, %v10864_v8  ;;  %v8100_v42 = vpop.f32.mrb[197].mxu1  ;;  %v11137_v8 = vpop.f32.mrb[60].mxu0  ;;  %v4706_v4 = vld [vmem:[#allocation2 + $0x12] sm:$0xff] }
 0x3c3   : > { %v3216_v3 = vpop.f32.mrb[198].mxu1  ;;  %12881 = vst [vmem:[#allocation48_spill] sm:$0xff] %v11137_v8  ;;  %v8298_v30 = vpop.f32.mrb[61].mxu0  ;;  %v12885_v8 = vld [vmem:[#allocation54_spill] sm:$0xff] }
 0x3c4   : > { %v3261_v35 = vadd.f32 %v3216_v3, %v10889_v32  ;;  %v8101_v22 = vpop.f32.mrb[199].mxu1  ;;  %v11135_v6 = vadd.f32 %v12880_v14, %v3260_v28  ;;  %v11146_v36 = vpop.f32.mrb[62].mxu0  ;;  %v4198_v32 = vld [vmem:[%s9071_s18 + $0x6c] sm:$0xff]  ;;  %v4199_v14 = vld [vmem:[%s9071_s18 + $0x74] sm:$0xff] }
 0x3c5   : > { %12883 = vst [vmem:[#allocation50_spill] sm:$0xff] %v11146_v36  ;;  %v8299_v22 = vpop.f32.mrb[63].mxu0 }
 0x3c6   : > { %v11144_v54 = vadd.f32 %v12882_v39, %v3261_v35  ;;  %v11153_v28 = vpop.f32.mrb[64].mxu0  ;;  %v4723_v39 = vpack.c.bf16 %v10900_v11, %v4706_v4 }
 0x3c7   : > { %8327 = vmatmul.mubr.msk.bf16.gmra.mrb[48].mxu1 %vm603_vm2, %v4210_v15  ;;  %12884 = vst [vmem:[#allocation51_spill] sm:$0xff] %v11153_v28  ;;  %v8302_v15 = vpop.f32.mrb[65].mxu0 }
 0x3c8   : > { %8425 = vmatmul.mubr.msk.bf16.vlgmr.msra.gmra.mrb[108].mxu0 %vm2397_vm3, %v4722_v49  ;;  %8330 = vmatprep.mubr.msk.bf16.mxu1 %vm8950_vm1, %v12788_v57  ;;  %v4211_v49 = vpack.c.bf16 %v4199_v14, %v4198_v32  ;;  %v11156_v10 = vpop.f32.mrb[66].mxu0  ;;  %v12886_v32 = vld [vmem:[#allocation56_spill] sm:$0xff] }
 0x3c9   : > { %8428 = vmatprep.mubr.msk.bf16.mxu0 %vm8950_vm1, %v12788_v57  ;;  %8499 = vmatpush3.bf16.msra.mxu0 %v8858_v55  ;;  %v3221_v42 = vpop.f32.mrb[200].mxu1  ;;  %v8303_v55 = vpop.f32.mrb[67].mxu0 }
 0x3ca   : > { %8574 = vmatprep.subr.bf16.mxu0 %v12788_v57  ;;  %v3262_v3 = vadd.f32 %v3221_v42, %v10938_v41  ;;  %v8104_v35 = vpop.f32.mrb[201].mxu1  ;;  %v11163_v28 = vpop.f32.mrb[68].mxu0 }
 0x3cb   : > { %v3224_v30 = vpop.f32.mrb[202].mxu1  ;;  %v8306_v41 = vpop.f32.mrb[69].mxu0 }
 0x3cc   : > { %v3263_v22 = vadd.f32 %v3224_v30, %v10953_v53  ;;  %v8105_v36 = vpop.f32.mrb[203].mxu1  ;;  %v11161_v31 = vadd.f32 %v12885_v8, %v3262_v3  ;;  %v11172_v4 = vpop.f32.mrb[70].mxu0  ;;  %v4200_v53 = vld [vmem:[%s9071_s18 + $0x7c] sm:$0xff]  ;;  %v4201_v8 = vld [vmem:[%s9071_s18 + $0x84] sm:$0xff]  ;;  %v4724_v30 = vpack.c.bf16 %v10920_v20, %v10902_v45 }
 0x3cd   : > { %v8307_v36 = vpop.f32.mrb[71].mxu0  ;;  %v4212_v35 = vpack.c.bf16 %v4201_v8, %v4200_v53  ;;  %v4202_v53 = vld [vmem:[%s9071_s18 + $0x8c] sm:$0xff] }
 0x3ce   : > { %v11170_v14 = vadd.f32 %v12886_v32, %v3263_v22  ;;  %v12887_v22 = vld [vmem:[#allocation57_spill] sm:$0xff] }
 0x3cf   : > { %8331 = vmatmul.mubr.msk.bf16.gmra.mrb[52].mxu1 %vm603_vm2, %v4211_v49 }
 0x3d0   : > { %8429 = vmatmul.mubr.msk.bf16.gmra.mrb[112].mxu0 %vm2397_vm3, %v4723_v39  ;;  %8334 = vmatprep.mubr.msk.bf16.mxu1 %vm8950_vm1, %v12788_v57 }
 0x3d1   : > { %8432 = vmatprep.mubr.msk.bf16.mxu0 %vm8950_vm1, %v12788_v57  ;;  %v3229_v42 = vpop.f32.mrb[204].mxu1 }
 0x3d2   : > { %v3264_v15 = vadd.f32 %v3229_v42, %v10976_v2  ;;  %v8108_v3 = vpop.f32.mrb[205].mxu1  ;;  %v12888_v2 = vld [vmem:[#allocation59_spill] sm:$0xff] }
 0x3d3   : > { %v3232_v49 = vpop.f32.mrb[206].mxu1 }
 0x3d4   : > { %v3265_v39 = vadd.f32 %v3232_v49, %v10983_v48  ;;  %v8109_v55 = vpop.f32.mrb[207].mxu1  ;;  %v11183_v41 = vadd.f32 %v12887_v22, %v3264_v15  ;;  %v4203_v48 = vld [vmem:[%s9071_s18 + $0x94] sm:$0xff]  ;;  %v4204_v22 = vld [vmem:[%s9071_s18 + $0x9c] sm:$0xff] }
 0x3d5   : > { %v4213_v15 = vpack.c.bf16 %v4203_v48, %v4202_v53 }
 0x3d6   : > { %v11190_v32 = vadd.f32 %v12888_v2, %v3265_v39  ;;  %v12889_v39 = vld [vmem:[#allocation60_spill] sm:$0xff]  ;;  %v4205_v2 = vld [vmem:[%s9071_s18 + $0xa4] sm:$0x7f] }
 0x3d7   : > { %8335 = vmatmul.mubr.msk.bf16.gmra.mrb[56].mxu1 %vm603_vm2, %v4212_v35  ;;  %v4725_v35 = vpack.c.bf16 %v10924_v27, %v10922_v58 }
 0x3d8   : > { %8433 = vmatmul.mubr.msk.bf16.gmra.mrb[116].mxu0 %vm2397_vm3, %v4724_v30  ;;  %8338 = vmatprep.mubr.msk.bf16.mxu1 %vm8950_vm1, %v12788_v57 }
 0x3d9   : > { %8436 = vmatprep.mubr.msk.bf16.mxu0 %vm8950_vm1, %v12788_v57  ;;  %v3237_v8 = vpop.f32.mrb[208].mxu1 }
 0x3da   : > { %v3266_v36 = vadd.f32 %v3237_v8, %v10996_v23  ;;  %v8112_v42 = vpop.f32.mrb[209].mxu1  ;;  %v4214_v8 = vpack.c.bf16 %v4205_v2, %v4204_v22  ;;  %v4727_v22 = vpack.c.bf16 %v10942_v60, %v10931_v63  ;;  %v8857_v2 = vld [vmem:[%s12680_s8 + $0x18] sm:$0xff]  }
 0x3db   : > { %v3240_v3 = vpop.f32.mrb[210].mxu1  ;;  %v4726_v42 = vpack.c.bf16 %v10929_v25, %v10926_v47 }
 0x3dc   : > { %v3267_v49 = vadd.f32 %v3240_v3, %v11001_v34  ;;  %v8113_v30 = vpop.f32.mrb[211].mxu1  ;;  %v11201_v55 = vadd.f32 %v12889_v39, %v3266_v36 }
 0x3de   : > { %v11208_v23 = vadd.f32 %v10654_v37, %v3267_v49  ;;  %v4370_v49 = vld [vmem:[#allocation2] sm:$0xff] }
 0x3df   : > { %8339 = vmatmul.mubr.msk.bf16.gmra.mrb[60].mxu1 %vm603_vm2, %v4213_v15 }
 0x3e0   : > { %8437 = vmatmul.mubr.msk.bf16.gmra.mrb[120].mxu0 %vm2397_vm3, %v4725_v35  ;;  %8342 = vmatprep.mubr.msk.bf16.mxu1 %vm8950_vm1, %v12788_v57 }
 0x3e1   : > { %8440 = vmatprep.mubr.msk.bf16.mxu0 %vm8950_vm1, %v12788_v57  ;;  %v3245_v34 = vpop.f32.mrb[212].mxu1 }
 0x3e2   : > { %v3268_v53 = vadd.f32 %v3245_v34, %v11014_v46  ;;  %v8116_v48 = vpop.f32.mrb[213].mxu1 }
 0x3e3   : > { %v3248_v36 = vpop.f32.mrb[214].mxu1 }
 0x3e4   : > { %v3269_v15 = vadd.f32 %v3248_v36, %v11019_v13  ;;  %v8117_v3 = vpop.f32.mrb[215].mxu1  ;;  %v11219_v37 = vadd.f32 %v10661_v12, %v3268_v53  ;;  %v4371_v13 = vld [vmem:[#allocation2 + $0x8] sm:$0xff] }
 0x3e5   : > { %v4388_v53 = vpack.c.bf16 %v4371_v13, %v4370_v49  ;;  %v4728_v3 = vpack.c.bf16 %v10950_v7, %v10948_v9 }
 0x3e6   : > { %v11226_v46 = vadd.f32 %v10671_v44, %v3269_v15 }
 0x3e7   : > { %8343 = vmatmul.mubr.msk.bf16.gmra.mrb[64].mxu1 %vm603_vm2, %v4214_v8  ;;  %v4372_v8 = vld [vmem:[#allocation2 + $0x10] sm:$0xff] }
 0x3e8   : > { %8441 = vmatmul.mubr.msk.bf16.gmra.mrb[124].mxu0 %vm2397_vm3, %v4726_v42  ;;  %8386 = vmatprep.mubr.msk.bf16.mxu1 %vm8950_vm1, %v12788_v57 }
 0x3e9   : > { %8444 = vmatprep.mubr.msk.bf16.mxu0 %vm8950_vm1, %v12788_v57  ;;  %v3547_v35 = vpop.f32.mrb[216].mxu1 }
 0x3ea   : > { %v3618_v30 = vadd.f32 %v3547_v35, %v11039_v21  ;;  %v8160_v12 = vpop.f32.mrb[217].mxu1 }
 0x3eb   : > { %v3550_v39 = vpop.f32.mrb[218].mxu1  ;;  %v4375_v12 = vld [vmem:[#allocation2 + $0x28] sm:$0xff] }
 0x3ec   : > { %v3619_v44 = vadd.f32 %v3550_v39, %v11046_v0  ;;  %v8161_v34 = vpop.f32.mrb[219].mxu1  ;;  %v11238_v48 = vadd.f32 %v10682_v19, %v3618_v30  ;;  %v4373_v19 = vld [vmem:[#allocation2 + $0x18] sm:$0xff] }
 0x3ed   : > { %v4389_v49 = vpack.c.bf16 %v4373_v19, %v4372_v8  ;;  %v4376_v8 = vld [vmem:[#allocation2 + $0x30] sm:$0xff]  ;;  %v4377_v19 = vld [vmem:[#allocation2 + $0x38] sm:$0xff] }
 0x3ee   : > { %v11245_v21 = vadd.f32 %v10701_v17, %v3619_v44 }
 0x3ef   : > { %8387 = vmatmul.mubr.msk.bf16.vlgmr.msra.gmra.mrb[68].mxu1 %vm2397_vm3, %v4388_v53 }
 0x3f0   : > { %8445 = vmatmul.mubr.msk.bf16.gmra.mrb[128].mxu0 %vm2397_vm3, %v4727_v22  ;;  %8461 = vmatpush3.bf16.msra.mxu1 %v8857_v2  ;;  %v4729_v2 = vpack.c.bf16 %v10960_v24, %v10958_v38 }
 0x3f1   : > { %8448 = vmatprep.mubr.msk.bf16.mxu0 %vm8950_vm1, %v12788_v57  ;;  %8390 = vmatprep.mubr.msk.bf16.mxu1 %vm8950_vm1, %v12788_v57  ;;  %v3555_v0 = vpop.f32.mrb[220].mxu1 }
 0x3f2   : > { %8536 = vmatprep.subr.bf16.mxu1 %v12788_v57  ;;  %v3620_v36 = vadd.f32 %v3555_v0, %v11060_v29  ;;  %v8164_v42 = vpop.f32.mrb[221].mxu1  ;;  %v4721_v0 = vld [vmem:[#allocation2 + $0x8a] sm:$0x7f] }
 0x3f3   : > { %v3558_v15 = vpop.f32.mrb[222].mxu1 }
 0x3f4   : > { %v3621_v35 = vadd.f32 %v3558_v15, %v11069_v59  ;;  %v8165_v17 = vpop.f32.mrb[223].mxu1  ;;  %v11255_v13 = vadd.f32 %v10742_v62, %v3620_v36  ;;  %v4374_v59 = vld [vmem:[#allocation2 + $0x20] sm:$0xff]  ;;  %v4730_v15 = vpack.c.bf16 %v4721_v0, %v10965_v43 }
 0x3f5   : > { %v4390_v53 = vpack.c.bf16 %v4375_v12, %v4374_v59  ;;  %v4391_v17 = vpack.c.bf16 %v4377_v19, %v4376_v8  ;;  %v4378_v59 = vld [vmem:[#allocation2 + $0x40] sm:$0xff]  ;;  %v4379_v12 = vld [vmem:[#allocation2 + $0x48] sm:$0xff]  ;;  %v4381_v8 = vld [vmem:[#allocation2 + $0x58] sm:$0xff] }
 0x3f6   : > { %v11262_v29 = vadd.f32 %v10772_v51, %v3621_v35  ;;  %v5077_v0 = vld [vmem:[#allocation2 + $0x26] sm:$0xff] }
 0x3f7   : > { %8391 = vmatmul.mubr.msk.bf16.gmra.mrb[72].mxu1 %vm2397_vm3, %v4389_v49  ;;  %v5074_v49 = vld [vmem:[#allocation2 + $0xe] sm:$0xff] }
 0x3f8   : > { %8449 = vmatmul.mubr.msk.bf16.gmra.mrb[132].mxu0 %vm2397_vm3, %v4728_v3  ;;  %8394 = vmatprep.mubr.msk.bf16.mxu1 %vm8950_vm1, %v12788_v57 }
 0x3f9   : > { %8452 = vmatprep.mubr.msk.bf16.mxu0 %vm8950_vm1, %v12788_v57  ;;  %v3563_v30 = vpop.f32.mrb[224].mxu1 }
 0x3fa   : > { %v3622_v39 = vadd.f32 %v3563_v30, %v11084_v16  ;;  %v8168_v62 = vpop.f32.mrb[225].mxu1 }
 0x3fb   : > { %v3566_v22 = vpop.f32.mrb[226].mxu1 }
 0x3fc   : > { %v3623_v44 = vadd.f32 %v3566_v22, %v11093_v33  ;;  %v8169_v34 = vpop.f32.mrb[227].mxu1  ;;  %v11271_v51 = vadd.f32 %v10827_v50, %v3622_v39 }
 0x3fd   : > { %v4392_v34 = vpack.c.bf16 %v4379_v12, %v4378_v59  ;;  %v4382_v59 = vld [vmem:[#allocation2 + $0x60] sm:$0xff]  ;;  %v4383_v12 = vld [vmem:[#allocation2 + $0x68] sm:$0xff] }
 0x3fe   : > { %v11278_v16 = vadd.f32 %v10871_v56, %v3623_v44 }
 0x3ff   : > { %8395 = vmatmul.mubr.msk.bf16.gmra.mrb[76].mxu1 %vm2397_vm3, %v4390_v53 }
 0x400   : > { %8453 = vmatmul.mubr.msk.bf16.gmra.mrb[136].mxu0 %vm2397_vm3, %v4729_v2  ;;  %8398 = vmatprep.mubr.msk.bf16.mxu1 %vm8950_vm1, %v12788_v57  ;;  %v8860_v2 = vld [vmem:[%s12680_s8 + $0x30] sm:$0xff]  }
 0x401   : > { %8456 = vmatprep.mubr.msk.bf16.mxu0 %vm8950_vm1, %v12788_v57  ;;  %v3571_v33 = vpop.f32.mrb[228].mxu1 }
 0x402   : > { %v3624_v50 = vadd.f32 %v3571_v33, %v11108_v18  ;;  %v8172_v36 = vpop.f32.mrb[229].mxu1  ;;  %v4380_v33 = vld [vmem:[#allocation2 + $0x50] sm:$0xff] }
 0x403   : > { %v3574_v42 = vpop.f32.mrb[230].mxu1 }
 0x404   : > { %v3625_v3 = vadd.f32 %v3574_v42, %v11117_v40  ;;  %v8173_v35 = vpop.f32.mrb[231].mxu1  ;;  %v11286_v56 = vadd.f32 %v10914_v1, %v3624_v50  ;;  %v5075_v40 = vld [vmem:[#allocation2 + $0x16] sm:$0xff] }
 0x405   : > { %v5092_v22 = vpack.c.bf16 %v5075_v40, %v5074_v49  ;;  %v12890_v35 = vld [vmem:[#allocation25_spill] sm:$0xff]  ;;  %v12891_v49 = vld [vmem:[#allocation26_spill] sm:$0xff] }
 0x406   : > { %v11293_v18 = vadd.f32 %v10944_v61, %v3625_v3  ;;  %v4393_v3 = vpack.c.bf16 %v4381_v8, %v4380_v33  ;;  %v4384_v8 = vld [vmem:[#allocation2 + $0x70] sm:$0xff] }
 0x407   : > { %8399 = vmatmul.mubr.msk.bf16.gmra.mrb[80].mxu1 %vm2397_vm3, %v4391_v17 }
 0x408   : > { %8457 = vmatmul.mubr.msk.bf16.gmra.mrb[140].mxu0 %vm2397_vm3, %v4730_v15  ;;  %8402 = vmatprep.mubr.msk.bf16.mxu1 %vm8950_vm1, %v12788_v57 }
 0x409   : > { %8500 = vmatprep.mubr.msk.bf16.mxu0 %vm8950_vm1, %v12788_v57  ;;  %v3579_v30 = vpop.f32.mrb[232].mxu1 }
 0x40a   : > { %v3626_v1 = vadd.f32 %v3579_v30, %v11135_v6  ;;  %v8176_v39 = vpop.f32.mrb[233].mxu1 }
 0x40b   : > { %v3582_v62 = vpop.f32.mrb[234].mxu1 }
 0x40c   : > { %v3627_v61 = vadd.f32 %v3582_v62, %v11144_v54  ;;  %v8177_v44 = vpop.f32.mrb[235].mxu1  ;;  %v11303_v53 = vadd.f32 %v10967_v52, %v3626_v1  ;;  %v5076_v54 = vld [vmem:[#allocation2 + $0x1e] sm:$0xff] }
 0x40d   : > { %v5093_v42 = vpack.c.bf16 %v5077_v0, %v5076_v54  ;;  %v4394_v44 = vpack.c.bf16 %v4383_v12, %v4382_v59  ;;  %v12893_v0 = vld [vmem:[#allocation27_spill] sm:$0xff]  ;;  %v4386_v12 = vld [vmem:[#allocation2 + $0x80] sm:$0xff] }
 0x40e   : > { %v11310_v6 = vadd.f32 %v10980_v26, %v3627_v61 }
 0x40f   : > { %8403 = vmatmul.mubr.msk.bf16.gmra.mrb[84].mxu1 %vm2397_vm3, %v4392_v34  ;;  %v12892_v34 = vld [vmem:[#allocation24_spill] sm:$0xff] }
 0x410   : > { %8501 = vmatmul.mubr.msk.bf16.vlgmr.msra.gmra.mrb[144].mxu0 %vm2397_vm3, %v5092_v22  ;;  %8406 = vmatprep.mubr.msk.bf16.mxu1 %vm8950_vm1, %v12788_v57 }
 0x411   : > { %8504 = vmatprep.mubr.msk.bf16.mxu0 %vm8950_vm1, %v12788_v57  ;;  %8575 = vmatpush3.bf16.msra.mxu0 %v8860_v2  ;;  %v3587_v52 = vpop.f32.mrb[236].mxu1 }
 0x412   : > { %8650 = vmatprep.subr.bf16.mxu0 %v12788_v57  ;;  %v3628_v19 = vadd.f32 %v3587_v52, %v11161_v31  ;;  %v8180_v50 = vpop.f32.mrb[237].mxu1  ;;  %v5078_v31 = vld [vmem:[#allocation2 + $0x2e] sm:$0xff] }
 0x413   : > { %v3590_v36 = vpop.f32.mrb[238].mxu1 }
 0x414   : > { %v3629_v15 = vadd.f32 %v3590_v36, %v11170_v14  ;;  %v8181_v26 = vpop.f32.mrb[239].mxu1  ;;  %v11318_v17 = vadd.f32 %v12890_v35, %v3628_v19  ;;  %v5079_v14 = vld [vmem:[#allocation2 + $0x36] sm:$0xff] }
 0x415   : > { %v5094_v22 = vpack.c.bf16 %v5079_v14, %v5078_v31  ;;  %v4385_v19 = vld [vmem:[#allocation2 + $0x78] sm:$0xff]  ;;  %v12895_v14 = vld [vmem:[#allocation30_spill] sm:$0xff] }
 0x416   : > { %v11325_v40 = vadd.f32 %v12891_v49, %v3629_v15  ;;  %v4395_v35 = vpack.c.bf16 %v4385_v19, %v4384_v8  ;;  %v12894_v49 = vld [vmem:[#allocation29_spill] sm:$0xff]  ;;  %v4889_v19 = vld [vmem:[#allocation2 + $0xd] sm:$0xff] }
 0x417   : > { %8407 = vmatmul.mubr.msk.bf16.gmra.mrb[88].mxu1 %vm2397_vm3, %v4393_v3 }
 0x418   : > { %8505 = vmatmul.mubr.msk.bf16.gmra.mrb[148].mxu0 %vm2397_vm3, %v5093_v42  ;;  %8410 = vmatprep.mubr.msk.bf16.mxu1 %vm8950_vm1, %v12788_v57 }
 0x419   : > { %8508 = vmatprep.mubr.msk.bf16.mxu0 %vm8950_vm1, %v12788_v57  ;;  %v3595_v30 = vpop.f32.mrb[240].mxu1 }
 0x41a   : > { %v3630_v1 = vadd.f32 %v3595_v30, %v11183_v41  ;;  %v8184_v39 = vpop.f32.mrb[241].mxu1  ;;  %v5080_v41 = vld [vmem:[#allocation2 + $0x3e] sm:$0xff] }
 0x41b   : > { %v3598_v62 = vpop.f32.mrb[242].mxu1 }
 0x41c   : > { %v3631_v2 = vadd.f32 %v3598_v62, %v11190_v32  ;;  %v8185_v61 = vpop.f32.mrb[243].mxu1  ;;  %v11332_v54 = vadd.f32 %v12892_v34, %v3630_v1  ;;  %v5081_v32 = vld [vmem:[#allocation2 + $0x46] sm:$0xff] }
 0x41d   : > { %v5095_v15 = vpack.c.bf16 %v5081_v32, %v5080_v41  ;;  %v4387_v1 = vld [vmem:[#allocation2 + $0x88] sm:$0x7f]  ;;  %v12897_v32 = vld [vmem:[#allocation31_spill] sm:$0xff] }
 0x41e   : > { %v11339_v52 = vadd.f32 %v12893_v0, %v3631_v2  ;;  %v4396_v34 = vpack.c.bf16 %v4387_v1, %v4386_v12  ;;  %v12896_v0 = vld [vmem:[#allocation28_spill] sm:$0xff] }
 0x41f   : > { %8411 = vmatmul.mubr.msk.bf16.gmra.mrb[92].mxu1 %vm2397_vm3, %v4394_v44  ;;  %v5087_v12 = vld [vmem:[#allocation2 + $0x76] sm:$0xff] }
 0x420   : > { %8509 = vmatmul.mubr.msk.bf16.gmra.mrb[152].mxu0 %vm2397_vm3, %v5094_v22  ;;  %8414 = vmatprep.mubr.msk.bf16.mxu1 %vm8950_vm1, %v12788_v57 }
 0x421   : > { %8512 = vmatprep.mubr.msk.bf16.mxu0 %vm8950_vm1, %v12788_v57  ;;  %v3603_v33 = vpop.f32.mrb[244].mxu1 }
 0x422   : > { %v3632_v50 = vadd.f32 %v3603_v33, %v11201_v55  ;;  %v8188_v36 = vpop.f32.mrb[245].mxu1  ;;  %v5082_v55 = vld [vmem:[#allocation2 + $0x4e] sm:$0xff] }
 0x423   : > { %v3606_v42 = vpop.f32.mrb[246].mxu1 }
 0x424   : > { %v3633_v26 = vadd.f32 %v3606_v42, %v11208_v23  ;;  %v8189_v3 = vpop.f32.mrb[247].mxu1  ;;  %v11346_v31 = vadd.f32 %v12894_v49, %v3632_v50  ;;  %v5083_v23 = vld [vmem:[#allocation2 + $0x56] sm:$0xff] }
 0x425   : > { %v5096_v2 = vpack.c.bf16 %v5083_v23, %v5082_v55  ;;  %v4890_v50 = vld [vmem:[#allocation2 + $0x15] sm:$0xff]  ;;  %v8859_v3 = vld [vmem:[%s12680_s8 + $0x28] sm:$0xff]  }
 0x426   : > { %v11353_v30 = vadd.f32 %v12895_v14, %v3633_v26  ;;  %v4907_v14 = vpack.c.bf16 %v4890_v50, %v4889_v19  ;;  %v12898_v55 = vld [vmem:[#allocation32_spill] sm:$0xff] }
 0x427   : > { %8415 = vmatmul.mubr.msk.bf16.gmra.mrb[96].mxu1 %vm2397_vm3, %v4395_v35 }
 0x428   : > { %8513 = vmatmul.mubr.msk.bf16.gmra.mrb[156].mxu0 %vm2397_vm3, %v5095_v15  ;;  %8418 = vmatprep.mubr.msk.bf16.mxu1 %vm8950_vm1, %v12788_v57 }
 0x429   : > { %8516 = vmatprep.mubr.msk.bf16.mxu0 %vm8950_vm1, %v12788_v57  ;;  %v3611_v59 = vpop.f32.mrb[248].mxu1 }
 0x42a   : > { %v3634_v39 = vadd.f32 %v3611_v59, %v11219_v37  ;;  %v8192_v62 = vpop.f32.mrb[249].mxu1  ;;  %v5084_v37 = vld [vmem:[#allocation2 + $0x5e] sm:$0xff] }
 0x42b   : > { %v3614_v22 = vpop.f32.mrb[250].mxu1  ;;  %v4892_v62 = vld [vmem:[#allocation2 + $0x25] sm:$0xff] }
 0x42c   : > { %v3635_v61 = vadd.f32 %v3614_v22, %v11226_v46  ;;  %v8193_v44 = vpop.f32.mrb[251].mxu1  ;;  %v11360_v41 = vadd.f32 %v12896_v0, %v3634_v39  ;;  %v5085_v46 = vld [vmem:[#allocation2 + $0x66] sm:$0xff]  ;;  %v4891_v39 = vld [vmem:[#allocation2 + $0x1d] sm:$0xff] }
 0x42d   : > { %v5097_v26 = vpack.c.bf16 %v5085_v46, %v5084_v37  ;;  %v12900_v37 = vld [vmem:[#allocation35_spill] sm:$0xff] }
 0x42e   : > { %v11367_v33 = vadd.f32 %v12897_v32, %v3635_v61  ;;  %v4908_v32 = vpack.c.bf16 %v4892_v62, %v4891_v39  ;;  %v4895_v62 = vld [vmem:[#allocation2 + $0x3d] sm:$0xff] }
 0x42f   : > { %8419 = vmatmul.mubr.msk.bf16.gmra.mrb[100].mxu1 %vm2397_vm3, %v4396_v34 }
 0x430   : > { %8517 = vmatmul.mubr.msk.bf16.gmra.mrb[160].mxu0 %vm2397_vm3, %v5096_v2  ;;  %8462 = vmatprep.mubr.msk.bf16.mxu1 %vm8950_vm1, %v12788_v57 }
 0x431   : > { %8520 = vmatprep.mubr.msk.bf16.mxu0 %vm8950_vm1, %v12788_v57  ;;  %v3913_v8 = vpop.f32.mrb[252].mxu1 }
 0x432   : > { %v3984_v36 = vadd.f32 %v3913_v8, %v11238_v48  ;;  %v8236_v42 = vpop.f32.mrb[253].mxu1  ;;  %v12899_v48 = vld [vmem:[#allocation33_spill] sm:$0xff]  ;;  %v12901_v8 = vld [vmem:[#allocation36_spill] sm:$0xff] }
 0x433   : > { %v3916_v15 = vpop.f32.mrb[254].mxu1  ;;  %v4894_v42 = vld [vmem:[#allocation2 + $0x35] sm:$0xff] }
 0x434   : > { %v3985_v35 = vadd.f32 %v3916_v15, %v11245_v21  ;;  %v8237_v49 = vpop.f32.mrb[255].mxu1  ;;  %v11377_v23 = vadd.f32 %v12898_v55, %v3984_v36  ;;  %v5086_v21 = vld [vmem:[#allocation2 + $0x6e] sm:$0xff] }
 0x435   : > { %v5098_v44 = vpack.c.bf16 %v5087_v12, %v5086_v21  ;;  %v4893_v36 = vld [vmem:[#allocation2 + $0x2d] sm:$0xff] }
 0x436   : > { %v11384_v59 = vadd.f32 %v12899_v48, %v3985_v35  ;;  %v4909_v55 = vpack.c.bf16 %v4894_v42, %v4893_v36  ;;  %v12902_v48 = vld [vmem:[#allocation38_spill] sm:$0xff]  ;;  %v12903_v12 = vld [vmem:[#allocation39_spill] sm:$0xff] }
 0x437   : > { %8463 = vmatmul.mubr.msk.bf16.vlgmr.msra.gmra.mrb[104].mxu1 %vm2397_vm3, %v4907_v14  ;;  %v4897_v36 = vld [vmem:[#allocation2 + $0x4d] sm:$0xff]  ;;  %v4898_v42 = vld [vmem:[#allocation2 + $0x55] sm:$0xff] }
 0x438   : > { %8521 = vmatmul.mubr.msk.bf16.gmra.mrb[164].mxu0 %vm2397_vm3, %v5097_v26  ;;  %8537 = vmatpush3.bf16.msra.mxu1 %v8859_v3 }
 0x439   : > { %8524 = vmatprep.mubr.msk.bf16.mxu0 %vm8950_vm1, %v12788_v57  ;;  %8466 = vmatprep.mubr.msk.bf16.mxu1 %vm8950_vm1, %v12788_v57  ;;  %v3921_v1 = vpop.f32.mrb[0].mxu1 }
 0x43a   : > { %8612 = vmatprep.subr.bf16.mxu1 %v12788_v57  ;;  %v3986_v22 = vadd.f32 %v3921_v1, %v11255_v13  ;;  %v8240_v2 = vpop.f32.mrb[1].mxu1  ;;  %v5088_v13 = vld [vmem:[#allocation2 + $0x7e] sm:$0xff] }
 0x43b   : > { %v3924_v61 = vpop.f32.mrb[2].mxu1 }
 0x43c   : > { %v3987_v34 = vadd.f32 %v3924_v61, %v11262_v29  ;;  %v8241_v0 = vpop.f32.mrb[3].mxu1  ;;  %v11392_v46 = vadd.f32 %v12900_v37, %v3986_v22  ;;  %v5089_v29 = vld [vmem:[#allocation2 + $0x86] sm:$0xff] }
 0x43d   : > { %v5099_v35 = vpack.c.bf16 %v5089_v29, %v5088_v13  ;;  %v4896_v22 = vld [vmem:[#allocation2 + $0x45] sm:$0xff] }
 0x43e   : > { %v11399_v19 = vadd.f32 %v12901_v8, %v3987_v34  ;;  %v4910_v37 = vpack.c.bf16 %v4896_v22, %v4895_v62  ;;  %v12904_v8 = vld [vmem:[#allocation41_spill] sm:$0xff] }
 0x43f   : > { %8467 = vmatmul.mubr.msk.bf16.gmra.mrb[108].mxu1 %vm2397_vm3, %v4908_v32  ;;  %v4900_v22 = vld [vmem:[#allocation2 + $0x65] sm:$0xff] }
 0x440   : > { %8525 = vmatmul.mubr.msk.bf16.gmra.mrb[168].mxu0 %vm2397_vm3, %v5098_v44  ;;  %8470 = vmatprep.mubr.msk.bf16.mxu1 %vm8950_vm1, %v12788_v57 }
 0x441   : > { %8528 = vmatprep.mubr.msk.bf16.mxu0 %vm8950_vm1, %v12788_v57  ;;  %v3929_v50 = vpop.f32.mrb[4].mxu1 }
 0x442   : > { %v3988_v15 = vadd.f32 %v3929_v50, %v11271_v51  ;;  %v8244_v26 = vpop.f32.mrb[5].mxu1  ;;  %v5090_v51 = vld [vmem:[#allocation2 + $0x8e] sm:$0xff] }
 0x443   : > { %v3932_v3 = vpop.f32.mrb[6].mxu1 }
 0x444   : > { %v3989_v49 = vadd.f32 %v3932_v3, %v11278_v16  ;;  %v8245_v14 = vpop.f32.mrb[7].mxu1  ;;  %v11406_v21 = vadd.f32 %v12902_v48, %v3988_v15  ;;  %v5091_v16 = vld [vmem:[#allocation2 + $0x96] sm:$0x7f]  ;;  %v4911_v48 = vpack.c.bf16 %v4898_v42, %v4897_v36  ;;  %v12909_v36 = vpack.c.bf16 %v10922_v58, %v10920_v20 }
 0x445   : > { %v5100_v34 = vpack.c.bf16 %v5091_v16, %v5090_v51  ;;  %v12906_v16 = vpack.c.bf16 %v10902_v45, %v10900_v11  ;;  %v4899_v45 = vld [vmem:[#allocation2 + $0x5d] sm:$0xff] }
 0x446   : > { %v11413_v1 = vadd.f32 %v12903_v12, %v3989_v49  ;;  %v12905_v12 = vld [vmem:[#allocation42_spill] sm:$0xff] }
 0x447   : > { %8471 = vmatmul.mubr.msk.bf16.gmra.mrb[112].mxu1 %vm2397_vm3, %v4909_v55 }
 0x448   : > { %8529 = vmatmul.mubr.msk.bf16.gmra.mrb[172].mxu0 %vm2397_vm3, %v5099_v35  ;;  %8474 = vmatprep.mubr.msk.bf16.mxu1 %vm8950_vm1, %v12788_v57 }
 0x449   : > { %8532 = vmatprep.mubr.msk.bf16.mxu0 %vm8950_vm1, %v12788_v57  ;;  %v3937_v39 = vpop.f32.mrb[8].mxu1 }
 0x44a   : > { %v3990_v2 = vadd.f32 %v3937_v39, %v11286_v56  ;;  %v8248_v61 = vpop.f32.mrb[9].mxu1 }
 0x44b   : > { %v3940_v44 = vpop.f32.mrb[10].mxu1 }
 0x44c   : > { %v3991_v0 = vadd.f32 %v3940_v44, %v11293_v18  ;;  %v8249_v32 = vpop.f32.mrb[11].mxu1  ;;  %v11420_v13 = vadd.f32 %v12904_v8, %v3990_v2  ;;  %v4912_v8 = vpack.c.bf16 %v4900_v22, %v4899_v45 }
 0x44e   : > { %v11427_v29 = vadd.f32 %v11104_v5, %v3991_v0  ;;  %v8862_v5 = vld [vmem:[%s12680_s8 + $0x40] sm:$0xff]  }
 0x44f   : > { %8475 = vmatmul.mubr.msk.bf16.gmra.mrb[116].mxu1 %vm2397_vm3, %v4910_v37 }
 0x450   : > { %8533 = vmatmul.mubr.msk.bf16.gmra.mrb[176].mxu0 %vm2397_vm3, %v5100_v34  ;;  %8478 = vmatprep.mubr.msk.bf16.mxu1 %vm8950_vm1, %v12788_v57 }
 0x451   : > { %8576 = vmatprep.mubr.msk.bf16.mxu0 %vm8950_vm1, %v12788_v57 }
 0x452   : > { %v3945_v18 = vpop.f32.mrb[12].mxu1 }
 0x453   : > { %v11431_v56 = vpop.f32.mrb[72].mxu0  ;;  %v3992_v15 = vadd.f32 %v3945_v18, %v11303_v53  ;;  %v8252_v26 = vpop.f32.mrb[13].mxu1  ;;  %v12907_v53 = vld [vmem:[#allocation44_spill] sm:$0xff]  ;;  %v12908_v18 = vld [vmem:[#allocation45_spill] sm:$0xff] }
 0x454   : > { %v8350_v50 = vpop.f32.mrb[73].mxu0  ;;  %v3948_v35 = vpop.f32.mrb[14].mxu1 }
 0x455   : > { %v11434_v3 = vpop.f32.mrb[74].mxu0  ;;  %v3993_v14 = vadd.f32 %v3948_v35, %v11310_v6  ;;  %v8253_v55 = vpop.f32.mrb[15].mxu1  ;;  %v11441_v51 = vadd.f32 %v12905_v12, %v3992_v15  ;;  %v4901_v35 = vld [vmem:[#allocation2 + $0x6d] sm:$0xff] }
 0x456   : > { %v8351_v49 = vpop.f32.mrb[75].mxu0 }
 0x457   : > { %8479 = vmatmul.mubr.msk.bf16.gmra.mrb[120].mxu1 %vm2397_vm3, %v4911_v48  ;;  %v11451_v39 = vadd.f32 %v12907_v53, %v3993_v14  ;;  %v4902_v49 = vld [vmem:[#allocation2 + $0x75] sm:$0xff] }
 0x458   : > { %8577 = vmatmul.mubr.msk.bf16.vlgmr.msra.gmra.mrb[180].mxu0 %vm2397_vm3, %v12906_v16  ;;  %8482 = vmatprep.mubr.msk.bf16.mxu1 %vm8950_vm1, %v12788_v57  ;;  %v4913_v16 = vpack.c.bf16 %v4902_v49, %v4901_v35  ;;  %v12911_v53 = vld [vmem:[#allocation48_spill] sm:$0xff] }
 0x459   : > { %8580 = vmatprep.mubr.msk.bf16.mxu0 %vm8950_vm1, %v12788_v57  ;;  %8651 = vmatpush3.bf16.msra.mxu0 %v8862_v5 }
 0x45a   : > { %8740 = vmatprep.subr.bf16.mxu0 %v12788_v57  ;;  %v3953_v62 = vpop.f32.mrb[16].mxu1 }
 0x45b   : > { %v11455_v6 = vpop.f32.mrb[76].mxu0  ;;  %v3994_v2 = vadd.f32 %v3953_v62, %v11318_v17  ;;  %v8256_v61 = vpop.f32.mrb[17].mxu1  ;;  %v12910_v17 = vld [vmem:[#allocation47_spill] sm:$0xff] }
 0x45c   : > { %v8354_v11 = vpop.f32.mrb[77].mxu0  ;;  %v3956_v34 = vpop.f32.mrb[18].mxu1  ;;  %v4903_v61 = vld [vmem:[#allocation2 + $0x7d] sm:$0xff] }
 0x45d   : > { %v11459_v44 = vpop.f32.mrb[78].mxu0  ;;  %v3995_v32 = vadd.f32 %v3956_v34, %v11325_v40  ;;  %v8257_v37 = vpop.f32.mrb[19].mxu1  ;;  %v11463_v50 = vadd.f32 %v12908_v18, %v3994_v2  ;;  %v12912_v11 = vpack.c.bf16 %v10926_v47, %v10924_v27  ;;  %v4904_v34 = vld [vmem:[#allocation2 + $0x85] sm:$0xff] }
 0x45e   : > { %v8355_v0 = vpop.f32.mrb[79].mxu0 }
 0x45f   : > { %8483 = vmatmul.mubr.msk.bf16.gmra.mrb[124].mxu1 %vm2397_vm3, %v4912_v8  ;;  %v11473_v42 = vadd.f32 %v12910_v17, %v3995_v32  ;;  %v12914_v17 = vld [vmem:[#allocation51_spill] sm:$0xff] }
 0x460   : > { %8581 = vmatmul.mubr.msk.bf16.gmra.mrb[184].mxu0 %vm2397_vm3, %v12909_v36  ;;  %8486 = vmatprep.mubr.msk.bf16.mxu1 %vm8950_vm1, %v12788_v57  ;;  %v4914_v36 = vpack.c.bf16 %v4904_v34, %v4903_v61 }
 0x461   : > { %8584 = vmatprep.mubr.msk.bf16.mxu0 %vm8950_vm1, %v12788_v57 }
 0x462   : > { %v3961_v15 = vpop.f32.mrb[20].mxu1 }
 0x463   : > { %v11477_v40 = vpop.f32.mrb[80].mxu0  ;;  %v3996_v20 = vadd.f32 %v3961_v15, %v11332_v54  ;;  %v8260_v58 = vpop.f32.mrb[21].mxu1  ;;  %v12913_v54 = vld [vmem:[#allocation50_spill] sm:$0xff] }
 0x464   : > { %v8358_v26 = vpop.f32.mrb[81].mxu0  ;;  %v3964_v14 = vpop.f32.mrb[22].mxu1  ;;  %v4906_v58 = vld [vmem:[#allocation2 + $0x95] sm:$0x7f] }
 0x465   : > { %v11480_v5 = vpop.f32.mrb[82].mxu0  ;;  %v3997_v48 = vadd.f32 %v3964_v14, %v11339_v52  ;;  %v8261_v12 = vpop.f32.mrb[23].mxu1  ;;  %v11484_v62 = vadd.f32 %v12911_v53, %v3996_v20  ;;  %v12915_v26 = vpack.c.bf16 %v10931_v63, %v10929_v25  ;;  %v4905_v20 = vld [vmem:[#allocation2 + $0x8d] sm:$0xff] }
 0x466   : > { %v8359_v55 = vpop.f32.mrb[83].mxu0 }
 0x467   : > { %8487 = vmatmul.mubr.msk.bf16.gmra.mrb[128].mxu1 %vm2397_vm3, %v4913_v16  ;;  %v11494_v45 = vadd.f32 %v12913_v54, %v3997_v48  ;;  %v4915_v16 = vpack.c.bf16 %v4906_v58, %v4905_v20 }
 0x468   : > { %8585 = vmatmul.mubr.msk.bf16.gmra.mrb[188].mxu0 %vm2397_vm3, %v12912_v11  ;;  %8490 = vmatprep.mubr.msk.bf16.mxu1 %vm8950_vm1, %v12788_v57  ;;  %v12916_v11 = vpack.c.bf16 %v10948_v9, %v10942_v60 }
 0x469   : > { %8588 = vmatprep.mubr.msk.bf16.mxu0 %vm8950_vm1, %v12788_v57 }
 0x46a   : > { %v3969_v22 = vpop.f32.mrb[24].mxu1 }
 0x46b   : > { %v11498_v52 = vpop.f32.mrb[84].mxu0  ;;  %v3998_v27 = vadd.f32 %v3969_v22, %v11346_v31  ;;  %v8264_v47 = vpop.f32.mrb[25].mxu1  ;;  %v5259_v22 = vld [vmem:[#allocation2 + $0xf] sm:$0xff] }
 0x46c   : > { %v8362_v2 = vpop.f32.mrb[85].mxu0  ;;  %v3972_v32 = vpop.f32.mrb[26].mxu1 }
 0x46d   : > { %v11501_v0 = vpop.f32.mrb[86].mxu0  ;;  %v3999_v8 = vadd.f32 %v3972_v32, %v11353_v30  ;;  %v8265_v18 = vpop.f32.mrb[27].mxu1  ;;  %v11505_v15 = vadd.f32 %v12914_v17, %v3998_v27  ;;  %v5260_v2 = vld [vmem:[#allocation2 + $0x17] sm:$0xff]  ;;  %v5261_v17 = vld [vmem:[#allocation2 + $0x1f] sm:$0xff] }
 0x46e   : > { %v8363_v37 = vpop.f32.mrb[87].mxu0 }
 0x46f   : > { %8491 = vmatmul.mubr.msk.bf16.gmra.mrb[132].mxu1 %vm2397_vm3, %v4914_v36  ;;  %v11515_v31 = vadd.f32 %v11156_v10, %v3999_v8  ;;  %v5277_v37 = vpack.c.bf16 %v5260_v2, %v5259_v22  ;;  %v12917_v8 = vpack.c.bf16 %v10958_v38, %v10950_v7 }
 0x470   : > { %8589 = vmatmul.mubr.msk.bf16.gmra.mrb[192].mxu0 %vm2397_vm3, %v12915_v26  ;;  %8494 = vmatprep.mubr.msk.bf16.mxu1 %vm8950_vm1, %v12788_v57  ;;  %v5262_v26 = vld [vmem:[#allocation2 + $0x27] sm:$0xff] }
 0x471   : > { %8592 = vmatprep.mubr.msk.bf16.mxu0 %vm8950_vm1, %v12788_v57 }
 0x472   : > { %v3977_v35 = vpop.f32.mrb[28].mxu1 }
 0x473   : > { %v11519_v30 = vpop.f32.mrb[88].mxu0  ;;  %v4000_v25 = vadd.f32 %v3977_v35, %v11360_v41  ;;  %v8268_v63 = vpop.f32.mrb[29].mxu1 }
 0x474   : > { %v8366_v49 = vpop.f32.mrb[89].mxu0  ;;  %v3980_v55 = vpop.f32.mrb[30].mxu1  ;;  %v5278_v63 = vpack.c.bf16 %v5262_v26, %v5261_v17 }
 0x475   : > { %v11522_v14 = vpop.f32.mrb[90].mxu0  ;;  %v4001_v12 = vadd.f32 %v3980_v55, %v11367_v33  ;;  %v8269_v10 = vpop.f32.mrb[31].mxu1  ;;  %v11526_v53 = vadd.f32 %v11163_v28, %v4000_v25  ;;  %v12919_v55 = vpack.c.bf16 %v10965_v43, %v10960_v24 }
 0x476   : > { %v8367_v48 = vpop.f32.mrb[91].mxu0 }
 0x477   : > { %8495 = vmatmul.mubr.msk.bf16.gmra.mrb[136].mxu1 %vm2397_vm3, %v4915_v16  ;;  %v11536_v41 = vadd.f32 %v11172_v4, %v4001_v12  ;;  %v8861_v4 = vld [vmem:[%s12680_s8 + $0x38] sm:$0xff]   ;;  %v5458_v48 = vld [vmem:[#allocation2 + $0x8a] sm:$0xff] }
 0x478   : > { %8593 = vmatmul.mubr.msk.bf16.gmra.mrb[196].mxu0 %vm2397_vm3, %v12916_v11  ;;  %8538 = vmatprep.mubr.msk.bf16.mxu1 %vm8950_vm1, %v12788_v57  ;;  %v5263_v16 = vld [vmem:[#allocation2 + $0x2f] sm:$0xff]  ;;  %v5264_v11 = vld [vmem:[#allocation2 + $0x37] sm:$0xff] }
 0x479   : > { %8596 = vmatprep.mubr.msk.bf16.mxu0 %vm8950_vm1, %v12788_v57 }
 0x47a   : > { %v4279_v28 = vpop.f32.mrb[32].mxu1 }
 0x47b   : > { %v11540_v33 = vpop.f32.mrb[92].mxu0  ;;  %v11543_v60 = vadd.f32 %v4279_v28, %v11377_v23  ;;  %v8312_v9 = vpop.f32.mrb[33].mxu1 }
 0x47c   : > { %v8370_v54 = vpop.f32.mrb[93].mxu0  ;;  %v4282_v34 = vpop.f32.mrb[34].mxu1 }
 0x47d   : > { %v11545_v61 = vpop.f32.mrb[94].mxu0  ;;  %v11551_v47 = vadd.f32 %v4282_v34, %v11384_v59  ;;  %v8313_v32 = vpop.f32.mrb[35].mxu1  ;;  %v12918_v59 = vmov 0.0|0.0  }
 0x47e   : > { %v8371_v27 = vpop.f32.mrb[95].mxu0  ;;  %v5461_v32 = vld [vmem:[#allocation2 + $0xa2] sm:$0x7f] }
 0x47f   : > { %8539 = vmatmul.mubr.msk.bf16.vlgmr.msra.gmra.mrb[140].mxu1 %vm2397_vm3, %v5277_v37  ;;  %v5279_v27 = vpack.c.bf16 %v5264_v11, %v5263_v16  ;;  %v5268_v16 = vld [vmem:[#allocation2 + $0x57] sm:$0xff] }
 0x480   : > { %8597 = vmatmul.mubr.msk.bf16.gmra.mrb[200].mxu0 %vm2397_vm3, %v12917_v8  ;;  %8613 = vmatpush3.bf16.msra.mxu1 %v8861_v4  ;;  %v5460_v4 = vld [vmem:[#allocation2 + $0x9a] sm:$0xff] }
 0x481   : > { %8600 = vmatprep.mubr.msk.bf16.mxu0 %vm8950_vm1, %v12788_v57  ;;  %8542 = vmatprep.mubr.msk.bf16.mxu1 %vm8950_vm1, %v12788_v57 }
 0x482   : > { %8822 = vmatprep.subr.bf16.mxu1 %v12918_v59  ;;  %v4287_v18 = vpop.f32.mrb[36].mxu1 }
 0x483   : > { %v11562_v23 = vpop.f32.mrb[96].mxu0  ;;  %v11566_v7 = vadd.f32 %v4287_v18, %v11392_v46  ;;  %v8316_v38 = vpop.f32.mrb[37].mxu1  ;;  %v5266_v18 = vld [vmem:[#allocation2 + $0x47] sm:$0xff] }
 0x484   : > { %v8374_v36 = vpop.f32.mrb[97].mxu0  ;;  %v4290_v49 = vpop.f32.mrb[38].mxu1 }
 0x485   : > { %v11568_v35 = vpop.f32.mrb[98].mxu0  ;;  %v11571_v58 = vadd.f32 %v4290_v49, %v11399_v19  ;;  %v8317_v25 = vpop.f32.mrb[39].mxu1  ;;  %v5459_v19 = vld [vmem:[#allocation2 + $0x92] sm:$0xff] }
 0x486   : > { %v8375_v20 = vpop.f32.mrb[99].mxu0  ;;  %v5469_v2 = vpack.c.bf16 %v5459_v19, %v5458_v48  ;;  %v5814_v48 = vld [vmem:[#allocation2 + $0x1c] sm:$0xff]  ;;  %v5815_v19 = vld [vmem:[#allocation2 + $0x24] sm:$0xff] }
 0x487   : > { %8543 = vmatmul.mubr.msk.bf16.gmra.mrb[144].mxu1 %vm2397_vm3, %v5278_v63  ;;  %v5470_v20 = vpack.c.bf16 %v5461_v32, %v5460_v4 }
 0x488   : > { %8601 = vmatmul.mubr.msk.bf16.gmra.mrb[204].mxu0 %vm2397_vm3, %v12919_v55  ;;  %8546 = vmatprep.mubr.msk.bf16.mxu1 %vm8950_vm1, %v12788_v57 }
 0x489   : > { %8604 = vmatprep.mubr.msk.bf16.mxu0 %vm8950_vm1, %v12788_v57 }
 0x48a   : > { %v4295_v12 = vpop.f32.mrb[40].mxu1 }
 0x48b   : > { %v11582_v46 = vpop.f32.mrb[100].mxu0  ;;  %v11585_v24 = vadd.f32 %v4295_v12, %v11406_v21  ;;  %v8320_v43 = vpop.f32.mrb[41].mxu1 }
 0x48c   : > { %v8378_v10 = vpop.f32.mrb[101].mxu0  ;;  %v4298_v54 = vpop.f32.mrb[42].mxu1 }
 0x48d   : > { %v11587_v28 = vpop.f32.mrb[102].mxu0  ;;  %v11590_v9 = vadd.f32 %v4298_v54, %v11413_v1  ;;  %v8321_v34 = vpop.f32.mrb[43].mxu1  ;;  %v5265_v1 = vld [vmem:[#allocation2 + $0x3f] sm:$0xff] }
 0x48e   : > { %v8379_v22 = vpop.f32.mrb[103].mxu0  ;;  %v5280_v55 = vpack.c.bf16 %v5266_v18, %v5265_v1  ;;  %v5832_v34 = vpack.c.bf16 %v5815_v19, %v5814_v48 }
 0x48f   : > { %8547 = vmatmul.mubr.msk.bf16.gmra.mrb[148].mxu1 %vm2397_vm3, %v5279_v27 }
 0x490   : > { %8605 = vmatmul.mubr.msk.bf16.gmra.mrb[208].mxu0 %vm2397_vm3, %v5469_v2  ;;  %8550 = vmatprep.mubr.msk.bf16.mxu1 %vm8950_vm1, %v12788_v57 }
 0x491   : > { %8608 = vmatprep.mubr.msk.bf16.mxu0 %vm8950_vm1, %v12788_v57 }
 0x492   : > { %v4303_v37 = vpop.f32.mrb[44].mxu1 }
 0x493   : > { %v11598_v21 = vpop.f32.mrb[104].mxu0  ;;  %v11601_v36 = vadd.f32 %v4303_v37, %v11420_v13  ;;  %v8324_v17 = vpop.f32.mrb[45].mxu1  ;;  %v5816_v37 = vld [vmem:[#allocation2 + $0x2c] sm:$0xff] }
 0x494   : > { %v8382_v8 = vpop.f32.mrb[105].mxu0  ;;  %v4306_v38 = vpop.f32.mrb[46].mxu1  ;;  %v5270_v17 = vld [vmem:[#allocation2 + $0x67] sm:$0xff] }
 0x495   : > { %v11603_v26 = vpop.f32.mrb[106].mxu0  ;;  %v11606_v25 = vadd.f32 %v4306_v38, %v11427_v29  ;;  %v8325_v63 = vpop.f32.mrb[47].mxu1  ;;  %v5267_v29 = vld [vmem:[#allocation2 + $0x4f] sm:$0xff] }
 0x496   : > { %v8383_v49 = vpop.f32.mrb[107].mxu0  ;;  %v5281_v32 = vpack.c.bf16 %v5268_v16, %v5267_v29  ;;  %v5817_v8 = vld [vmem:[#allocation2 + $0x34] sm:$0xff]  ;;  %v5818_v29 = vld [vmem:[#allocation2 + $0x3c] sm:$0xff]  ;;  %v5819_v16 = vld [vmem:[#allocation2 + $0x44] sm:$0xff] }
 0x497   : > { %8551 = vmatmul.mubr.msk.bf16.gmra.mrb[152].mxu1 %vm2397_vm3, %v5280_v55  ;;  %v5833_v48 = vpack.c.bf16 %v5817_v8, %v5816_v37 }
 0x498   : > { %8609 = vmatmul.mubr.msk.bf16.gmra.mrb[212].mxu0 %vm2397_vm3, %v5470_v20  ;;  %8554 = vmatprep.mubr.msk.bf16.mxu1 %vm8950_vm1, %v12788_v57 }
 0x499   : > { %8652 = vmatprep.mubr.msk.bf16.mxu0 %vm8950_vm1, %v12788_v57 }
 0x49a   : > { %v4311_v12 = vpop.f32.mrb[48].mxu1 }
 0x49b   : > { %v11614_v13 = vpop.f32.mrb[108].mxu0  ;;  %v11617_v11 = vadd.f32 %v4311_v12, %v11441_v51  ;;  %v8328_v43 = vpop.f32.mrb[49].mxu1 }
 0x49c   : > { %v8426_v10 = vpop.f32.mrb[109].mxu0  ;;  %v4314_v22 = vpop.f32.mrb[50].mxu1 }
 0x49d   : > { %v11619_v54 = vpop.f32.mrb[110].mxu0  ;;  %v11622_v27 = vadd.f32 %v4314_v22, %v11451_v39  ;;  %v8329_v4 = vpop.f32.mrb[51].mxu1  ;;  %v5269_v39 = vld [vmem:[#allocation2 + $0x5f] sm:$0xff] }
 0x49e   : > { %v8427_v2 = vpop.f32.mrb[111].mxu0  ;;  %v5282_v10 = vpack.c.bf16 %v5270_v17, %v5269_v39 }
 0x49f   : > { %8555 = vmatmul.mubr.msk.bf16.gmra.mrb[156].mxu1 %vm2397_vm3, %v5281_v32  ;;  %v5272_v2 = vld [vmem:[#allocation2 + $0x77] sm:$0xff] }
 0x4a0   : > { %8653 = vmatmul.mubr.msk.bf16.vlgmr.msra.gmra.mrb[216].mxu0 %vm2397_vm3, %v5832_v34  ;;  %8558 = vmatprep.mubr.msk.bf16.mxu1 %vm8950_vm1, %v12788_v57 }
 0x4a1   : > { %8656 = vmatprep.mubr.msk.bf16.mxu0 %vm8950_vm1, %v12788_v57 }
 0x4a2   : > { %v4319_v1 = vpop.f32.mrb[52].mxu1 }
 0x4a3   : > { %v11630_v51 = vpop.f32.mrb[112].mxu0  ;;  %v11633_v38 = vadd.f32 %v4319_v1, %v11463_v50  ;;  %v8332_v49 = vpop.f32.mrb[53].mxu1  ;;  %v5834_v1 = vpack.c.bf16 %v5819_v16, %v5818_v29 }
 0x4a4   : > { %v8430_v18 = vpop.f32.mrb[113].mxu0  ;;  %v4322_v63 = vpop.f32.mrb[54].mxu1  ;;  %v5820_v49 = vld [vmem:[#allocation2 + $0x4c] sm:$0xff] }
 0x4a5   : > { %v11635_v20 = vpop.f32.mrb[114].mxu0  ;;  %v11638_v19 = vadd.f32 %v4322_v63, %v11473_v42  ;;  %v8333_v12 = vpop.f32.mrb[55].mxu1  ;;  %v5271_v42 = vld [vmem:[#allocation2 + $0x6f] sm:$0xff] }
 0x4a6   : > { %v8431_v55 = vpop.f32.mrb[115].mxu0  ;;  %v5283_v17 = vpack.c.bf16 %v5272_v2, %v5271_v42  ;;  %v5821_v63 = vld [vmem:[#allocation2 + $0x54] sm:$0xff]  ;;  %v5274_v12 = vld [vmem:[#allocation2 + $0x87] sm:$0xff] }
 0x4a7   : > { %8559 = vmatmul.mubr.msk.bf16.gmra.mrb[160].mxu1 %vm2397_vm3, %v5282_v10  ;;  %v5835_v42 = vpack.c.bf16 %v5821_v63, %v5820_v49  ;;  %v5276_v49 = vld [vmem:[#allocation2 + $0x97] sm:$0x7f] }
 0x4a8   : > { %8657 = vmatmul.mubr.msk.bf16.gmra.mrb[220].mxu0 %vm2397_vm3, %v5833_v48  ;;  %8562 = vmatprep.mubr.msk.bf16.mxu1 %vm8950_vm1, %v12788_v57 }
 0x4a9   : > { %8660 = vmatprep.mubr.msk.bf16.mxu0 %vm8950_vm1, %v12788_v57 }
 0x4aa   : > { %v4327_v43 = vpop.f32.mrb[56].mxu1 }
 0x4ab   : > { %v11646_v50 = vpop.f32.mrb[116].mxu0  ;;  %v11649_v34 = vadd.f32 %v4327_v43, %v11484_v62  ;;  %v8336_v4 = vpop.f32.mrb[57].mxu1 }
 0x4ac   : > { %v8434_v22 = vpop.f32.mrb[117].mxu0  ;;  %v4330_v37 = vpop.f32.mrb[58].mxu1 }
 0x4ad   : > { %v11651_v32 = vpop.f32.mrb[118].mxu0  ;;  %v11654_v18 = vadd.f32 %v4330_v37, %v11494_v45  ;;  %v8337_v39 = vpop.f32.mrb[59].mxu1  ;;  %v5273_v45 = vld [vmem:[#allocation2 + $0x7f] sm:$0xff] }
 0x4ae   : > { %v8435_v8 = vpop.f32.mrb[119].mxu0  ;;  %v5284_v37 = vpack.c.bf16 %v5274_v12, %v5273_v45 }
 0x4af   : > { %8563 = vmatmul.mubr.msk.bf16.gmra.mrb[164].mxu1 %vm2397_vm3, %v5283_v17  ;;  %v5822_v8 = vld [vmem:[#allocation2 + $0x5c] sm:$0xff] }
 0x4b0   : > { %8661 = vmatmul.mubr.msk.bf16.gmra.mrb[224].mxu0 %vm2397_vm3, %v5834_v1  ;;  %8566 = vmatprep.mubr.msk.bf16.mxu1 %vm8950_vm1, %v12788_v57  ;;  %v5823_v1 = vld [vmem:[#allocation2 + $0x64] sm:$0xff] }
 0x4b1   : > { %8664 = vmatprep.mubr.msk.bf16.mxu0 %vm8950_vm1, %v12788_v57 }
 0x4b2   : > { %v4335_v55 = vpop.f32.mrb[60].mxu1 }
 0x4b3   : > { %v11662_v62 = vpop.f32.mrb[120].mxu0  ;;  %v11665_v10 = vadd.f32 %v4335_v55, %v11505_v15  ;;  %v8340_v29 = vpop.f32.mrb[61].mxu1 }
 0x4b4   : > { %v8438_v48 = vpop.f32.mrb[121].mxu0  ;;  %v4338_v43 = vpop.f32.mrb[62].mxu1  ;;  %v5836_v29 = vpack.c.bf16 %v5823_v1, %v5822_v8 }
 0x4b5   : > { %v11667_v16 = vpop.f32.mrb[122].mxu0  ;;  %v11670_v2 = vadd.f32 %v4338_v43, %v11515_v31  ;;  %v8341_v4 = vpop.f32.mrb[63].mxu1  ;;  %v5275_v31 = vld [vmem:[#allocation2 + $0x8f] sm:$0xff] }
 0x4b6   : > { %v8439_v22 = vpop.f32.mrb[123].mxu0  ;;  %v5824_v4 = vld [vmem:[#allocation2 + $0x6c] sm:$0xff] }
 0x4b7   : > { %8567 = vmatmul.mubr.msk.bf16.gmra.mrb[168].mxu1 %vm2397_vm3, %v5284_v37  ;;  %v5825_v37 = vld [vmem:[#allocation2 + $0x74] sm:$0xff] }
 0x4b8   : > { %8665 = vmatmul.mubr.msk.bf16.gmra.mrb[228].mxu0 %vm2397_vm3, %v5835_v42  ;;  %8570 = vmatprep.mubr.msk.bf16.mxu1 %vm8950_vm1, %v12788_v57  ;;  %v5285_v42 = vpack.c.bf16 %v5276_v49, %v5275_v31 }
 0x4b9   : > { %8668 = vmatprep.mubr.msk.bf16.mxu0 %vm8950_vm1, %v12788_v57 }
 0x4ba   : > { %v4343_v39 = vpop.f32.mrb[64].mxu1 }
 0x4bb   : > { %v11678_v15 = vpop.f32.mrb[124].mxu0  ;;  %v11681_v63 = vadd.f32 %v4343_v39, %v11526_v53  ;;  %v8344_v55 = vpop.f32.mrb[65].mxu1  ;;  %v5630_v39 = vld [vmem:[#allocation2 + $0x23] sm:$0xff] }
 0x4bc   : > { %v8442_v17 = vpop.f32.mrb[125].mxu0  ;;  %v4346_v45 = vpop.f32.mrb[66].mxu1 }
 0x4bd   : > { %v11683_v48 = vpop.f32.mrb[126].mxu0  ;;  %v11686_v43 = vadd.f32 %v4346_v45, %v11536_v41  ;;  %v8345_v22 = vpop.f32.mrb[67].mxu1  ;;  %v5629_v41 = vld [vmem:[#allocation2 + $0x1b] sm:$0xff] }
 0x4be   : > { %v8443_v12 = vpop.f32.mrb[127].mxu0 }
 0x4bf   : > { %12920 = vst [vmem:[#allocation53_spill] sm:$0xff] %v11686_v43  ;;  %8571 = vmatmul.mubr.msk.bf16.gmra.mrb[172].mxu1 %vm2397_vm3, %v5285_v42  ;;  %v5837_v12 = vpack.c.bf16 %v5825_v37, %v5824_v4  ;;  %v5647_v42 = vpack.c.bf16 %v5630_v39, %v5629_v41  ;;  %v12921_v4 = vld [vmem:[#allocation3_spill] sm:$0xff]  ;;  %v5826_v37 = vld [vmem:[#allocation2 + $0x7c] sm:$0xff] }
 0x4c0   : > { %8669 = vmatmul.mubr.msk.bf16.gmra.mrb[232].mxu0 %vm2397_vm3, %v5836_v29  ;;  %8614 = vmatprep.mubr.msk.bf16.mxu1 %vm8950_vm1, %v12788_v57  ;;  %v5631_v41 = vld [vmem:[#allocation2 + $0x2b] sm:$0xff]  ;;  %v5632_v39 = vld [vmem:[#allocation2 + $0x33] sm:$0xff] }
 0x4c1   : > { %8672 = vmatprep.mubr.msk.bf16.mxu0 %vm8950_vm1, %v12788_v57 }
 0x4c2   : > { %v4631_v8 = vpop.f32.mrb[68].mxu1 }
 0x4c3   : > { %v11694_v53 = vpop.f32.mrb[128].mxu0  ;;  %v4632_v17 = vadd.f32 %v4631_v8, %v11431_v56  ;;  %v8388_v31 = vpop.f32.mrb[69].mxu1 }
 0x4c4   : > { %v8446_v1 = vpop.f32.mrb[129].mxu0  ;;  %v4634_v55 = vpop.f32.mrb[70].mxu1 }
 0x4c5   : > { %v11697_v49 = vpop.f32.mrb[130].mxu0  ;;  %v4635_v29 = vadd.f32 %v4634_v55, %v11434_v3  ;;  %v8389_v22 = vpop.f32.mrb[71].mxu1  ;;  %v11701_v43 = vadd.f32 %v11614_v13, %v4632_v17  ;;  %v5827_v13 = vld [vmem:[#allocation2 + $0x84] sm:$0xff] }
 0x4c6   : > { %v8447_v45 = vpop.f32.mrb[131].mxu0 }
 0x4c7   : > { %8615 = vmatmul.mubr.msk.bf16.vlgmr.msra.gmra.mrb[176].mxu1 %vm2397_vm3, %v5647_v42  ;;  %v11708_v56 = vadd.f32 %v11619_v54, %v4635_v29  ;;  %v5648_v42 = vpack.c.bf16 %v5632_v39, %v5631_v41 }
 0x4c8   : > { %8673 = vmatmul.mubr.msk.bf16.gmra.mrb[236].mxu0 %vm2397_vm3, %v5837_v12  ;;  %8618 = vmatprep.mubr.msk.bf16.mxu1 %vm8950_vm1, %v12788_v57  ;;  %v5838_v12 = vpack.c.bf16 %v5827_v13, %v5826_v37  ;;  %v5829_v37 = vld [vmem:[#allocation2 + $0x94] sm:$0xff] }
 0x4c9   : > { %8676 = vmatprep.mubr.msk.bf16.mxu0 %vm8950_vm1, %v12788_v57  ;;  %8824 = vmatpush3.bf16.msra.mxu1 %v12921_v4 }
 0x4ca   : > { %8825 = vmatprep.subr.bf16.mxu1 %v12918_v59  ;;  %v4639_v8 = vpop.f32.mrb[72].mxu1 }
 0x4cb   : > { %v11713_v3 = vpop.f32.mrb[132].mxu0  ;;  %v4640_v17 = vadd.f32 %v4639_v8, %v11455_v6  ;;  %v8392_v31 = vpop.f32.mrb[73].mxu1  ;;  %v5633_v8 = vld [vmem:[#allocation2 + $0x3b] sm:$0xff] }
 0x4cc   : > { %v8450_v1 = vpop.f32.mrb[133].mxu0  ;;  %v4642_v55 = vpop.f32.mrb[74].mxu1 }
 0x4cd   : > { %v11717_v54 = vpop.f32.mrb[134].mxu0  ;;  %v4643_v29 = vadd.f32 %v4642_v55, %v11459_v44  ;;  %v8393_v22 = vpop.f32.mrb[75].mxu1  ;;  %v11721_v4 = vadd.f32 %v11630_v51, %v4640_v17  ;;  %v5828_v44 = vld [vmem:[#allocation2 + $0x8c] sm:$0xff]  ;;  %v5634_v1 = vld [vmem:[#allocation2 + $0x43] sm:$0xff] }
 0x4ce   : > { %v8451_v45 = vpop.f32.mrb[135].mxu0 }
 0x4cf   : > { %8619 = vmatmul.mubr.msk.bf16.gmra.mrb[180].mxu1 %vm2397_vm3, %v5648_v42  ;;  %v11728_v6 = vadd.f32 %v11635_v20, %v4643_v29  ;;  %v5839_v20 = vpack.c.bf16 %v5829_v37, %v5828_v44  ;;  %v5649_v29 = vpack.c.bf16 %v5634_v1, %v5633_v8  ;;  %v5831_v44 = vld [vmem:[#allocation2 + $0xa4] sm:$0x7f] }
 0x4d0   : > { %8677 = vmatmul.mubr.msk.bf16.gmra.mrb[240].mxu0 %vm2397_vm3, %v5838_v12  ;;  %8622 = vmatprep.mubr.msk.bf16.mxu1 %vm8950_vm1, %v12788_v57 }
 0x4d1   : > { %8680 = vmatprep.mubr.msk.bf16.mxu0 %vm8950_vm1, %v12788_v57 }
 0x4d2   : > { %v4647_v13 = vpop.f32.mrb[76].mxu1 }
 0x4d3   : > { %v11732_v59 = vpop.f32.mrb[136].mxu0  ;;  %v4648_v41 = vadd.f32 %v4647_v13, %v11477_v40  ;;  %v8396_v39 = vpop.f32.mrb[77].mxu1  ;;  %v5635_v13 = vld [vmem:[#allocation2 + $0x4b] sm:$0xff] }
 0x4d4   : > { %v8454_v51 = vpop.f32.mrb[137].mxu0  ;;  %v4650_v31 = vpop.f32.mrb[78].mxu1 }
 0x4d5   : > { %v11735_v17 = vpop.f32.mrb[138].mxu0  ;;  %v4651_v45 = vadd.f32 %v4650_v31, %v11480_v5  ;;  %v8397_v12 = vpop.f32.mrb[79].mxu1  ;;  %v11739_v22 = vadd.f32 %v11646_v50, %v4648_v41  ;;  %v5830_v5 = vld [vmem:[#allocation2 + $0x9c] sm:$0xff]  ;;  %v5636_v51 = vld [vmem:[#allocation2 + $0x53] sm:$0xff] }
 0x4d6   : > { %v8455_v55 = vpop.f32.mrb[139].mxu0 }
 0x4d7   : > { %8623 = vmatmul.mubr.msk.bf16.gmra.mrb[184].mxu1 %vm2397_vm3, %v5649_v29  ;;  %v11746_v40 = vadd.f32 %v11651_v32, %v4651_v45  ;;  %v5840_v32 = vpack.c.bf16 %v5831_v44, %v5830_v5  ;;  %v5650_v45 = vpack.c.bf16 %v5636_v51, %v5635_v13  ;;  %v5637_v44 = vld [vmem:[#allocation2 + $0x5b] sm:$0xff] }
 0x4d8   : > { %8681 = vmatmul.mubr.msk.bf16.gmra.mrb[244].mxu0 %vm2397_vm3, %v5839_v20  ;;  %8626 = vmatprep.mubr.msk.bf16.mxu1 %vm8950_vm1, %v12788_v57 }
 0x4d9   : > { %8684 = vmatprep.mubr.msk.bf16.mxu0 %vm8950_vm1, %v12788_v57 }
 0x4da   : > { %v4655_v37 = vpop.f32.mrb[80].mxu1 }
 0x4db   : > { %v11750_v42 = vpop.f32.mrb[140].mxu0  ;;  %v4656_v8 = vadd.f32 %v4655_v37, %v11498_v52  ;;  %v8400_v1 = vpop.f32.mrb[81].mxu1 }
 0x4dc   : > { %v8458_v50 = vpop.f32.mrb[141].mxu0  ;;  %v4658_v39 = vpop.f32.mrb[82].mxu1 }
 0x4dd   : > { %v11753_v41 = vpop.f32.mrb[142].mxu0  ;;  %v4659_v55 = vadd.f32 %v4658_v39, %v11501_v0  ;;  %v8401_v20 = vpop.f32.mrb[83].mxu1  ;;  %v11757_v12 = vadd.f32 %v11662_v62, %v4656_v8  ;;  %v5638_v62 = vld [vmem:[#allocation2 + $0x63] sm:$0xff] }
 0x4de   : > { %v8459_v31 = vpop.f32.mrb[143].mxu0  ;;  %v5651_v39 = vpack.c.bf16 %v5638_v62, %v5637_v44 }
 0x4df   : > { %8627 = vmatmul.mubr.msk.bf16.gmra.mrb[188].mxu1 %vm2397_vm3, %v5650_v45  ;;  %v11762_v29 = vadd.f32 %v11667_v16, %v4659_v55  ;;  %v5639_v45 = vld [vmem:[#allocation2 + $0x6b] sm:$0xff] }
 0x4e0   : > { %8685 = vmatmul.mubr.msk.bf16.gmra.mrb[248].mxu0 %vm2397_vm3, %v5840_v32  ;;  %8630 = vmatprep.mubr.msk.bf16.mxu1 %vm8950_vm1, %v12788_v57 }
 0x4e1   : > { %8742 = vmatprep.mubr.msk.bf16.mxu0 %vm8950_vm1, %v12788_v57 }
 0x4e2   : > { %v4663_v0 = vpop.f32.mrb[84].mxu1 }
 0x4e3   : > { %v11768_v52 = vpop.f32.mrb[144].mxu0  ;;  %v4664_v37 = vadd.f32 %v4663_v0, %v11519_v30  ;;  %v8404_v50 = vpop.f32.mrb[85].mxu1  ;;  %v5640_v0 = vld [vmem:[#allocation2 + $0x73] sm:$0xff] }
 0x4e4   : > { %v8502_v5 = vpop.f32.mrb[145].mxu0  ;;  %v4666_v51 = vpop.f32.mrb[86].mxu1  ;;  %v5652_v50 = vpack.c.bf16 %v5640_v0, %v5639_v45 }
 0x4e5   : > { %v11771_v13 = vpop.f32.mrb[146].mxu0  ;;  %v4667_v8 = vadd.f32 %v4666_v51, %v11522_v14  ;;  %v8405_v1 = vpop.f32.mrb[87].mxu1  ;;  %v11775_v31 = vadd.f32 %v11678_v15, %v4664_v37 }
 0x4e6   : > { %v8503_v16 = vpop.f32.mrb[147].mxu0 }
 0x4e7   : > { %8631 = vmatmul.mubr.msk.bf16.gmra.mrb[192].mxu1 %vm2397_vm3, %v5651_v39  ;;  %v11779_v32 = vadd.f32 %v11683_v48, %v4667_v8  ;;  %v5641_v39 = vld [vmem:[#allocation2 + $0x7b] sm:$0xff] }
 0x4e8   : > { %8634 = vmatprep.mubr.msk.bf16.mxu1 %vm8950_vm1, %v12788_v57 }
 0x4ea   : > { %v4671_v55 = vpop.f32.mrb[88].mxu1 }
 0x4eb   : > { %v11783_v30 = vpop.f32.mrb[148].mxu0  ;;  %v4672_v14 = vadd.f32 %v4671_v55, %v11540_v33  ;;  %v8408_v5 = vpop.f32.mrb[89].mxu1  ;;  %v5642_v55 = vld [vmem:[#allocation2 + $0x83] sm:$0xff] }
 0x4ec   : > { %v8506_v20 = vpop.f32.mrb[149].mxu0  ;;  %v4674_v15 = vpop.f32.mrb[90].mxu1  ;;  %v5653_v5 = vpack.c.bf16 %v5642_v55, %v5641_v39 }
 0x4ed   : > { %v11786_v44 = vpop.f32.mrb[150].mxu0  ;;  %v4675_v37 = vadd.f32 %v4674_v15, %v11545_v61  ;;  %v8409_v48 = vpop.f32.mrb[91].mxu1  ;;  %v11790_v51 = vadd.f32 %v11694_v53, %v4672_v14 }
 0x4ee   : > { %v8507_v62 = vpop.f32.mrb[151].mxu0 }
 0x4ef   : > { %8635 = vmatmul.mubr.msk.bf16.gmra.mrb[196].mxu1 %vm2397_vm3, %v5652_v50  ;;  %v11794_v16 = vadd.f32 %v11697_v49, %v4675_v37  ;;  %v5643_v50 = vld [vmem:[#allocation2 + $0x8b] sm:$0xff] }
 0x4f0   : > { %8638 = vmatprep.mubr.msk.bf16.mxu1 %vm8950_vm1, %v12788_v57 }
 0x4f2   : > { %v4679_v8 = vpop.f32.mrb[92].mxu1 }
 0x4f3   : > { %v11798_v33 = vpop.f32.mrb[152].mxu0  ;;  %v4680_v61 = vadd.f32 %v4679_v8, %v11562_v23  ;;  %v8412_v20 = vpop.f32.mrb[93].mxu1  ;;  %v5644_v8 = vld [vmem:[#allocation2 + $0x93] sm:$0xff] }
 0x4f4   : > { %v8510_v1 = vpop.f32.mrb[153].mxu0  ;;  %v4682_v53 = vpop.f32.mrb[94].mxu1  ;;  %v5654_v20 = vpack.c.bf16 %v5644_v8, %v5643_v50 }
 0x4f5   : > { %v11801_v45 = vpop.f32.mrb[154].mxu0  ;;  %v4683_v14 = vadd.f32 %v4682_v53, %v11568_v35  ;;  %v8413_v49 = vpop.f32.mrb[95].mxu1  ;;  %v11805_v15 = vadd.f32 %v11713_v3, %v4680_v61 }
 0x4f6   : > { %v8511_v0 = vpop.f32.mrb[155].mxu0 }
 0x4f7   : > { %8639 = vmatmul.mubr.msk.bf16.gmra.mrb[200].mxu1 %vm2397_vm3, %v5653_v5  ;;  %v11809_v62 = vadd.f32 %v11717_v54, %v4683_v14  ;;  %v5645_v5 = vld [vmem:[#allocation2 + $0x9b] sm:$0xff] }
 0x4f8   : > { %8642 = vmatprep.mubr.msk.bf16.mxu1 %vm8950_vm1, %v12788_v57 }
 0x4fa   : > { %v4687_v37 = vpop.f32.mrb[96].mxu1 }
 0x4fb   : > { %v11813_v23 = vpop.f32.mrb[156].mxu0  ;;  %v4688_v35 = vadd.f32 %v4687_v37, %v11582_v46  ;;  %v8416_v1 = vpop.f32.mrb[97].mxu1  ;;  %v5646_v37 = vld [vmem:[#allocation2 + $0xa3] sm:$0x7f] }
 0x4fc   : > { %v8514_v48 = vpop.f32.mrb[157].mxu0  ;;  %v4690_v3 = vpop.f32.mrb[98].mxu1  ;;  %v5655_v1 = vpack.c.bf16 %v5646_v37, %v5645_v5 }
 0x4fd   : > { %v11816_v39 = vpop.f32.mrb[158].mxu0  ;;  %v4691_v61 = vadd.f32 %v4690_v3, %v11587_v28  ;;  %v8417_v54 = vpop.f32.mrb[99].mxu1  ;;  %v11820_v53 = vadd.f32 %v11732_v59, %v4688_v35 }
 0x4fe   : > { %v8515_v55 = vpop.f32.mrb[159].mxu0 }
 0x4ff   : > { %8643 = vmatmul.mubr.msk.bf16.gmra.mrb[204].mxu1 %vm2397_vm3, %v5654_v20  ;;  %v11824_v0 = vadd.f32 %v11735_v17, %v4691_v61 }
 0x500   : > { %8646 = vmatprep.mubr.msk.bf16.mxu1 %vm8950_vm1, %v12788_v57 }
 0x502   : > { %v4695_v14 = vpop.f32.mrb[100].mxu1 }
 0x503   : > { %v11828_v46 = vpop.f32.mrb[160].mxu0  ;;  %v4696_v28 = vadd.f32 %v4695_v14, %v11598_v21  ;;  %v8420_v48 = vpop.f32.mrb[101].mxu1 }
 0x504   : > { %v8518_v49 = vpop.f32.mrb[161].mxu0  ;;  %v4698_v59 = vpop.f32.mrb[102].mxu1 }
 0x505   : > { %v11831_v50 = vpop.f32.mrb[162].mxu0  ;;  %v4699_v35 = vadd.f32 %v4698_v59, %v11603_v26  ;;  %v8421_v17 = vpop.f32.mrb[103].mxu1  ;;  %v11835_v3 = vadd.f32 %v11750_v42, %v4696_v28 }
 0x506   : > { %v8519_v8 = vpop.f32.mrb[163].mxu0 }
 0x507   : > { %8647 = vmatmul.mubr.msk.bf16.gmra.mrb[208].mxu1 %vm2397_vm3, %v5655_v1  ;;  %v11839_v55 = vadd.f32 %v11753_v41, %v4699_v35 }
 0x508   : > { %8692 = vmatprep.mubr.msk.f32.mxu1 %vm8950_vm1, %v12788_v57 }
 0x50a   : > { %v4983_v61 = vpop.f32.mrb[104].mxu1 }
 0x50b   : > { %v11843_v21 = vpop.f32.mrb[164].mxu0  ;;  %v5054_v20 = vadd.f32 %v4983_v61, %v11701_v43  ;;  %v8464_v26 = vpop.f32.mrb[105].mxu1 }
 0x50c   : > { %v8522_v54 = vpop.f32.mrb[165].mxu0  ;;  %v4986_v49 = vpop.f32.mrb[106].mxu1 }
 0x50d   : > { %v11846_v14 = vpop.f32.mrb[166].mxu0  ;;  %v5055_v5 = vadd.f32 %v4986_v49, %v11708_v56  ;;  %v8465_v37 = vpop.f32.mrb[107].mxu1  ;;  %v11850_v41 = vadd.f32 %v11768_v52, %v5054_v20 }
 0x50e   : > { %v8523_v42 = vpop.f32.mrb[167].mxu0 }
 0x50f   : > { %v11853_v28 = vadd.f32 %v11771_v13, %v5055_v5 }
 0x512   : > { %v4991_v59 = vpop.f32.mrb[108].mxu1 }
 0x513   : > { %v11855_v48 = vpop.f32.mrb[168].mxu0  ;;  %v5056_v43 = vadd.f32 %v4991_v59, %v11721_v4  ;;  %v8468_v35 = vpop.f32.mrb[109].mxu1 }
 0x514   : > { %v8526_v8 = vpop.f32.mrb[169].mxu0  ;;  %v4994_v1 = vpop.f32.mrb[110].mxu1 }
 0x515   : > { %v11858_v17 = vpop.f32.mrb[170].mxu0  ;;  %v5057_v56 = vadd.f32 %v4994_v1, %v11728_v6  ;;  %v8469_v54 = vpop.f32.mrb[111].mxu1  ;;  %v11862_v52 = vadd.f32 %v11783_v30, %v5056_v43 }
 0x516   : > { %v8527_v61 = vpop.f32.mrb[171].mxu0 }
 0x517   : > { %v11865_v13 = vadd.f32 %v11786_v44, %v5057_v56 }
 0x51a   : > { %v4999_v26 = vpop.f32.mrb[112].mxu1 }
 0x51b   : > { %v11867_v20 = vpop.f32.mrb[172].mxu0  ;;  %v5058_v4 = vadd.f32 %v4999_v26, %v11739_v22  ;;  %v8472_v42 = vpop.f32.mrb[113].mxu1 }
 0x51c   : > { %v8530_v49 = vpop.f32.mrb[173].mxu0  ;;  %v5002_v37 = vpop.f32.mrb[114].mxu1 }
 0x51d   : > { %v11870_v5 = vpop.f32.mrb[174].mxu0  ;;  %v5059_v6 = vadd.f32 %v5002_v37, %v11746_v40  ;;  %v8473_v8 = vpop.f32.mrb[115].mxu1  ;;  %v11874_v30 = vadd.f32 %v11798_v33, %v5058_v4 }
 0x51e   : > { %v8531_v59 = vpop.f32.mrb[175].mxu0 }
 0x51f   : > { %v11877_v44 = vadd.f32 %v11801_v45, %v5059_v6 }
 0x522   : > { %v5007_v35 = vpop.f32.mrb[116].mxu1 }
 0x523   : > { %v11879_v43 = vpop.f32.mrb[176].mxu0  ;;  %v5060_v22 = vadd.f32 %v5007_v35, %v11757_v12  ;;  %v8476_v61 = vpop.f32.mrb[117].mxu1 }
 0x524   : > { %v8534_v1 = vpop.f32.mrb[177].mxu0  ;;  %v5010_v54 = vpop.f32.mrb[118].mxu1 }
 0x525   : > { %v11882_v56 = vpop.f32.mrb[178].mxu0  ;;  %v5061_v40 = vadd.f32 %v5010_v54, %v11762_v29  ;;  %v8477_v49 = vpop.f32.mrb[119].mxu1  ;;  %v11886_v33 = vadd.f32 %v11813_v23, %v5060_v22 }
 0x526   : > { %v8535_v26 = vpop.f32.mrb[179].mxu0 }
 0x527   : > { %v11889_v45 = vadd.f32 %v11816_v39, %v5061_v40 }
 0x52a   : > { %v5015_v42 = vpop.f32.mrb[120].mxu1 }
 0x52b   : > { %v11891_v4 = vpop.f32.mrb[180].mxu0  ;;  %v5062_v12 = vadd.f32 %v5015_v42, %v11775_v31  ;;  %v8480_v59 = vpop.f32.mrb[121].mxu1 }
 0x52c   : > { %v8578_v37 = vpop.f32.mrb[181].mxu0  ;;  %v5018_v8 = vpop.f32.mrb[122].mxu1 }
 0x52d   : > { %v11894_v6 = vpop.f32.mrb[182].mxu0  ;;  %v5063_v29 = vadd.f32 %v5018_v8, %v11779_v32  ;;  %v8481_v1 = vpop.f32.mrb[123].mxu1  ;;  %v11898_v23 = vadd.f32 %v11828_v46, %v5062_v12 }
 0x52e   : > { %v8579_v35 = vpop.f32.mrb[183].mxu0 }
 0x52f   : > { %v11901_v39 = vadd.f32 %v11831_v50, %v5063_v29 }
 0x532   : > { %v5023_v61 = vpop.f32.mrb[124].mxu1 }
 0x533   : > { %v11903_v22 = vpop.f32.mrb[184].mxu0  ;;  %v5064_v31 = vadd.f32 %v5023_v61, %v11790_v51  ;;  %v8484_v26 = vpop.f32.mrb[125].mxu1 }
 0x534   : > { %v8582_v54 = vpop.f32.mrb[185].mxu0  ;;  %v5026_v49 = vpop.f32.mrb[126].mxu1 }
 0x535   : > { %v11906_v40 = vpop.f32.mrb[186].mxu0  ;;  %v5065_v32 = vadd.f32 %v5026_v49, %v11794_v16  ;;  %v8485_v37 = vpop.f32.mrb[127].mxu1  ;;  %v11910_v46 = vadd.f32 %v11843_v21, %v5064_v31 }
 0x536   : > { %v8583_v42 = vpop.f32.mrb[187].mxu0 }
 0x537   : > { %v11913_v50 = vadd.f32 %v11846_v14, %v5065_v32 }
 0x53a   : > { %v5031_v59 = vpop.f32.mrb[128].mxu1 }
 0x53b   : > { %v11915_v12 = vpop.f32.mrb[188].mxu0  ;;  %v5066_v51 = vadd.f32 %v5031_v59, %v11805_v15  ;;  %v8488_v35 = vpop.f32.mrb[129].mxu1 }
 0x53c   : > { %v8586_v8 = vpop.f32.mrb[189].mxu0  ;;  %v5034_v1 = vpop.f32.mrb[130].mxu1 }
 0x53d   : > { %v11918_v29 = vpop.f32.mrb[190].mxu0  ;;  %v5067_v16 = vadd.f32 %v5034_v1, %v11809_v62  ;;  %v8489_v54 = vpop.f32.mrb[131].mxu1  ;;  %v11922_v21 = vadd.f32 %v11855_v48, %v5066_v51 }
 0x53e   : > { %v8587_v61 = vpop.f32.mrb[191].mxu0 }
 0x53f   : > { %v11925_v14 = vadd.f32 %v11858_v17, %v5067_v16 }
 0x542   : > { %v5039_v26 = vpop.f32.mrb[132].mxu1 }
 0x543   : > { %v11927_v31 = vpop.f32.mrb[192].mxu0  ;;  %v5068_v15 = vadd.f32 %v5039_v26, %v11820_v53  ;;  %v8492_v42 = vpop.f32.mrb[133].mxu1 }
 0x544   : > { %v8590_v49 = vpop.f32.mrb[193].mxu0  ;;  %v5042_v37 = vpop.f32.mrb[134].mxu1 }
 0x545   : > { %v11930_v32 = vpop.f32.mrb[194].mxu0  ;;  %v5069_v62 = vadd.f32 %v5042_v37, %v11824_v0  ;;  %v8493_v8 = vpop.f32.mrb[135].mxu1  ;;  %v11934_v48 = vadd.f32 %v11867_v20, %v5068_v15 }
 0x546   : > { %v8591_v59 = vpop.f32.mrb[195].mxu0 }
 0x547   : > { %v11937_v17 = vadd.f32 %v11870_v5, %v5069_v62 }
 0x54a   : > { %v5047_v35 = vpop.f32.mrb[136].mxu1 }
 0x54b   : > { %v11939_v51 = vpop.f32.mrb[196].mxu0  ;;  %v5070_v53 = vadd.f32 %v5047_v35, %v11835_v3  ;;  %v8496_v61 = vpop.f32.mrb[137].mxu1 }
 0x54c   : > { %v8594_v1 = vpop.f32.mrb[197].mxu0  ;;  %v5050_v54 = vpop.f32.mrb[138].mxu1 }
 0x54d   : > { %v11942_v16 = vpop.f32.mrb[198].mxu0  ;;  %v5071_v0 = vadd.f32 %v5050_v54, %v11839_v55  ;;  %v8497_v49 = vpop.f32.mrb[139].mxu1  ;;  %v11946_v20 = vadd.f32 %v11879_v43, %v5070_v53 }
 0x54e   : > { %v8595_v26 = vpop.f32.mrb[199].mxu0 }
 0x54f   : > { %v11949_v5 = vadd.f32 %v11882_v56, %v5071_v0 }
 0x552   : > { %v5353_v42 = vpop.f32.mrb[140].mxu1 }
 0x553   : > { %v11951_v15 = vpop.f32.mrb[200].mxu0  ;;  %v5424_v3 = vadd.f32 %v5353_v42, %v11850_v41  ;;  %v8540_v59 = vpop.f32.mrb[141].mxu1 }
 0x554   : > { %v8598_v37 = vpop.f32.mrb[201].mxu0  ;;  %v5356_v8 = vpop.f32.mrb[142].mxu1 }
 0x555   : > { %v11954_v62 = vpop.f32.mrb[202].mxu0  ;;  %v5425_v55 = vadd.f32 %v5356_v8, %v11853_v28  ;;  %v8541_v1 = vpop.f32.mrb[143].mxu1  ;;  %v11958_v43 = vadd.f32 %v11891_v4, %v5424_v3 }
 0x556   : > { %v8599_v35 = vpop.f32.mrb[203].mxu0 }
 0x557   : > { %v11961_v56 = vadd.f32 %v11894_v6, %v5425_v55 }
 0x55a   : > { %v5361_v61 = vpop.f32.mrb[144].mxu1 }
 0x55b   : > { %v11963_v53 = vpop.f32.mrb[204].mxu0  ;;  %v5426_v41 = vadd.f32 %v5361_v61, %v11862_v52  ;;  %v8544_v26 = vpop.f32.mrb[145].mxu1 }
 0x55c   : > { %v8602_v54 = vpop.f32.mrb[205].mxu0  ;;  %v5364_v49 = vpop.f32.mrb[146].mxu1 }
 0x55d   : > { %v11966_v0 = vpop.f32.mrb[206].mxu0  ;;  %v5427_v28 = vadd.f32 %v5364_v49, %v11865_v13  ;;  %v8545_v37 = vpop.f32.mrb[147].mxu1  ;;  %v11970_v4 = vadd.f32 %v11903_v22, %v5426_v41 }
 0x55e   : > { %v8603_v42 = vpop.f32.mrb[207].mxu0 }
 0x55f   : > { %v11973_v6 = vadd.f32 %v11906_v40, %v5427_v28 }
 0x562   : > { %v5369_v59 = vpop.f32.mrb[148].mxu1 }
 0x563   : > { %v11975_v3 = vpop.f32.mrb[208].mxu0  ;;  %v5428_v52 = vadd.f32 %v5369_v59, %v11874_v30  ;;  %v8548_v35 = vpop.f32.mrb[149].mxu1 }
 0x564   : > { %v8606_v8 = vpop.f32.mrb[209].mxu0  ;;  %v5372_v1 = vpop.f32.mrb[150].mxu1 }
 0x565   : > { %v11978_v55 = vpop.f32.mrb[210].mxu0  ;;  %v5429_v13 = vadd.f32 %v5372_v1, %v11877_v44  ;;  %v8549_v54 = vpop.f32.mrb[151].mxu1  ;;  %v11982_v22 = vadd.f32 %v11915_v12, %v5428_v52 }
 0x566   : > { %v8607_v61 = vpop.f32.mrb[211].mxu0 }
 0x567   : > { %v11985_v40 = vadd.f32 %v11918_v29, %v5429_v13 }
 0x56a   : > { %v5377_v26 = vpop.f32.mrb[152].mxu1 }
 0x56b   : > { %v11987_v41 = vpop.f32.mrb[212].mxu0  ;;  %v5430_v30 = vadd.f32 %v5377_v26, %v11886_v33  ;;  %v8552_v42 = vpop.f32.mrb[153].mxu1 }
 0x56c   : > { %v8610_v49 = vpop.f32.mrb[213].mxu0  ;;  %v5380_v37 = vpop.f32.mrb[154].mxu1 }
 0x56d   : > { %v11990_v28 = vpop.f32.mrb[214].mxu0  ;;  %v5431_v44 = vadd.f32 %v5380_v37, %v11889_v45  ;;  %v8553_v8 = vpop.f32.mrb[155].mxu1  ;;  %v11994_v12 = vadd.f32 %v11927_v31, %v5430_v30 }
 0x56e   : > { %v8611_v59 = vpop.f32.mrb[215].mxu0 }
 0x56f   : > { %v11997_v29 = vadd.f32 %v11930_v32, %v5431_v44 }
 0x572   : > { %v5385_v35 = vpop.f32.mrb[156].mxu1 }
 0x573   : > { %v11999_v52 = vpop.f32.mrb[216].mxu0  ;;  %v5432_v33 = vadd.f32 %v5385_v35, %v11898_v23  ;;  %v8556_v61 = vpop.f32.mrb[157].mxu1 }
 0x574   : > { %v8654_v1 = vpop.f32.mrb[217].mxu0  ;;  %v5388_v54 = vpop.f32.mrb[158].mxu1 }
 0x575   : > { %v12002_v13 = vpop.f32.mrb[218].mxu0  ;;  %v5433_v45 = vadd.f32 %v5388_v54, %v11901_v39  ;;  %v8557_v49 = vpop.f32.mrb[159].mxu1  ;;  %v12006_v31 = vadd.f32 %v11939_v51, %v5432_v33 }
 0x576   : > { %v8655_v26 = vpop.f32.mrb[219].mxu0 }
 0x577   : > { %v12009_v32 = vadd.f32 %v11942_v16, %v5433_v45 }
 0x57a   : > { %v5393_v42 = vpop.f32.mrb[160].mxu1 }
 0x57b   : > { %v12011_v30 = vpop.f32.mrb[220].mxu0  ;;  %v5434_v23 = vadd.f32 %v5393_v42, %v11910_v46  ;;  %v8560_v59 = vpop.f32.mrb[161].mxu1 }
 0x57c   : > { %v8658_v37 = vpop.f32.mrb[221].mxu0  ;;  %v5396_v8 = vpop.f32.mrb[162].mxu1 }
 0x57d   : > { %v12014_v44 = vpop.f32.mrb[222].mxu0  ;;  %v5435_v39 = vadd.f32 %v5396_v8, %v11913_v50  ;;  %v8561_v1 = vpop.f32.mrb[163].mxu1  ;;  %v12018_v51 = vadd.f32 %v11951_v15, %v5434_v23 }
 0x57e   : > { %v8659_v35 = vpop.f32.mrb[223].mxu0 }
 0x57f   : > { %v12021_v16 = vadd.f32 %v11954_v62, %v5435_v39 }
 0x582   : > { %v5401_v61 = vpop.f32.mrb[164].mxu1 }
 0x583   : > { %v12023_v33 = vpop.f32.mrb[224].mxu0  ;;  %v5436_v46 = vadd.f32 %v5401_v61, %v11922_v21  ;;  %v8564_v26 = vpop.f32.mrb[165].mxu1 }
 0x584   : > { %v8662_v54 = vpop.f32.mrb[225].mxu0  ;;  %v5404_v49 = vpop.f32.mrb[166].mxu1 }
 0x585   : > { %v12026_v45 = vpop.f32.mrb[226].mxu0  ;;  %v5437_v50 = vadd.f32 %v5404_v49, %v11925_v14  ;;  %v8565_v37 = vpop.f32.mrb[167].mxu1  ;;  %v12030_v15 = vadd.f32 %v11963_v53, %v5436_v46 }
 0x586   : > { %v8663_v42 = vpop.f32.mrb[227].mxu0 }
 0x587   : > { %v12033_v62 = vadd.f32 %v11966_v0, %v5437_v50 }
 0x58a   : > { %v5409_v59 = vpop.f32.mrb[168].mxu1 }
 0x58b   : > { %v12035_v23 = vpop.f32.mrb[228].mxu0  ;;  %v5438_v21 = vadd.f32 %v5409_v59, %v11934_v48  ;;  %v8568_v35 = vpop.f32.mrb[169].mxu1 }
 0x58c   : > { %v8666_v8 = vpop.f32.mrb[229].mxu0  ;;  %v5412_v1 = vpop.f32.mrb[170].mxu1  ;;  %v12922_v35 = vld [vmem:[#allocation34_spill] sm:$0xff] }
 0x58d   : > { %v12038_v39 = vpop.f32.mrb[230].mxu0  ;;  %v5439_v14 = vadd.f32 %v5412_v1, %v11937_v17  ;;  %v8569_v54 = vpop.f32.mrb[171].mxu1  ;;  %v12042_v53 = vadd.f32 %v11975_v3, %v5438_v21  ;;  %v6470_v17 = vld [vmem:[%s12684_s12] sm:$0x3] }
 0x58e   : > { %v8667_v61 = vpop.f32.mrb[231].mxu0  ;;  %v6621_v3 = vsel %vm631_vm0, %v6470_v17, 0  ;;  %v12077_v17 = vld [vmem:[%s12681_s9] ss:$0 sm:$0xff] }
 0x58f   : > { %v12045_v0 = vadd.f32 %v11978_v55, %v5439_v14  ;;  %8741 = vmatpush3.bf16.msra.mxu0 %v6621_v3 }
 0x592   : > { %v5417_v26 = vpop.f32.mrb[172].mxu1  ;;  %8743 = vmatmul.mubr.msk.bf16.vlgmr.msra.gmra.mrb[252].mxu0 %vm603_vm2, %v12922_v35 }
 0x593   : > { %v12047_v46 = vpop.f32.mrb[232].mxu0  ;;  %v5440_v48 = vadd.f32 %v5417_v26, %v11946_v20  ;;  %v8572_v42 = vpop.f32.mrb[173].mxu1  ;;  %8746 = vmatprep.mubr.msk.bf16.mxu0 %vm8950_vm1, %v12788_v57 }
 0x594   : > { %v8670_v49 = vpop.f32.mrb[233].mxu0  ;;  %v5420_v37 = vpop.f32.mrb[174].mxu1 }
 0x595   : > { %v12050_v50 = vpop.f32.mrb[234].mxu0  ;;  %v5441_v55 = vadd.f32 %v5420_v37, %v11949_v5  ;;  %v8573_v8 = vpop.f32.mrb[175].mxu1  ;;  %v12058_v21 = vadd.f32 %v11987_v41, %v5440_v48 }
 0x596   : > { %v8671_v59 = vpop.f32.mrb[235].mxu0 }
 0x597   : > { %v12061_v20 = vadd.f32 %v11990_v28, %v5441_v55 }
 0x59a   : > { %v5723_v61 = vpop.f32.mrb[176].mxu1 }
 0x59b   : > { %v12065_v1 = vpop.f32.mrb[236].mxu0  ;;  %v5794_v5 = vadd.f32 %v5723_v61, %v11958_v43  ;;  %v8616_v54 = vpop.f32.mrb[177].mxu1  ;;  %v12923_v43 = vld [vmem:[#allocation37_spill] sm:$0xff] }
 0x59c   : > { %v8674_v14 = vpop.f32.mrb[237].mxu0  ;;  %v5726_v41 = vpop.f32.mrb[178].mxu1  ;;  %8747 = vmatmul.mubr.msk.bf16.gmra.mrb[0].mxu0 %vm603_vm2, %v12923_v43 }
 0x59d   : > { %v12070_v26 = vpop.f32.mrb[238].mxu0  ;;  %v5979_v28 = vadd.f32 %v11999_v52, %v5794_v5  ;;  %v5795_v48 = vadd.f32 %v5726_v41, %v11961_v56  ;;  %v8617_v42 = vpop.f32.mrb[179].mxu1  ;;  %8750 = vmatprep.mubr.msk.bf16.mxu0 %vm8950_vm1, %v12788_v57 }
 0x59e   : > { %v8675_v49 = vpop.f32.mrb[239].mxu0 }
 0x59f   : > { %v5997_v37 = vadd.f32 %v5979_v28, %v11543_v60  ;;  %v5980_v59 = vadd.f32 %v12002_v13, %v5795_v48 }
 0x5a1   : > { %v12084_v3 = vadd.f32 %v12077_v17, %v5997_v37  ;;  %v5998_v52 = vadd.f32 %v5980_v59, %v11551_v47  ;;  %v12924_v59 = vld [vmem:[#allocation40_spill] sm:$0xff] }
 0x5a2   : > { %v5731_v56 = vpop.f32.mrb[180].mxu1 }
 0x5a3   : > { %v12087_v55 = vpop.f32.mrb[240].mxu0  ;;  %v12092_v35 = vadd.f32 %v12077_v17, %v5998_v52  ;;  %v5796_v60 = vadd.f32 %v5731_v56, %v11970_v4  ;;  %v8620_v13 = vpop.f32.mrb[181].mxu1  ;;  %v6058_v14 = vmin.f32 %v12084_v3, 0.0  ;;  %vm6040_vm11 = vcmp.gt.f32.partialorder %v12084_v3, 0.0 }
 0x5a4   : > { %v8678_v8 = vpop.f32.mrb[241].mxu0  ;;  %v5734_v5 = vpop.f32.mrb[182].mxu1  ;;  %8751 = vmatmul.mubr.msk.bf16.gmra.mrb[4].mxu0 %vm603_vm2, %v12924_v59 }
 0x5a5   : > { %v12095_v61 = vpop.f32.mrb[242].mxu0  ;;  %v6059_v47 = vmin.f32 %v12092_v35, 0.0  ;;  %v5981_v41 = vadd.f32 %v12011_v30, %v5796_v60  ;;  %v8621_v49 = vpop.f32.mrb[183].mxu1  ;;  %v5797_v28 = vadd.f32 %v5734_v5, %v11973_v6  ;;  %v6076_v37 = vmul.f32 1.442695, %v6058_v14  ;;  %8754 = vmatprep.mubr.msk.bf16.mxu0 %vm8950_vm1, %v12788_v57 }
 0x5a6   : > { %v8679_v54 = vpop.f32.mrb[243].mxu0  ;;  %vm6041_vm0 = vcmp.gt.f32.partialorder %v12092_v35, 0.0 }
 0x5a7   : > { %v6078_v48 = vmul.f32 1.442695, %v6059_v47  ;;  %v5999_v42 = vadd.f32 %v5981_v41, %v11566_v7  ;;  %v5982_v4 = vadd.f32 %v12014_v44, %v5797_v28 }
 0x5a9   : > { %v12106_v43 = vadd.f32 %v12077_v17, %v5999_v42  ;;  %v6000_v30 = vadd.f32 %v5982_v4, %v11571_v58  ;;  %8903 = vpow2.f32 %v6078_v48  ;;  %v12925_v42 = vld [vmem:[#allocation43_spill] sm:$0xff] }
 0x5aa   : > { %v5739_v6 = vpop.f32.mrb[184].mxu1  ;;  %8905 = vpow2.f32 %v6076_v37 }
 0x5ab   : > { %v12108_v52 = vpop.f32.mrb[244].mxu0  ;;  %v6060_v7 = vmin.f32 %v12106_v43, 0.0  ;;  %v5798_v44 = vadd.f32 %v5739_v6, %v11982_v22  ;;  %v8624_v8 = vpop.f32.mrb[185].mxu1  ;;  %v12118_v13 = vadd.f32 %v12077_v17, %v6000_v30  ;;  %vm6042_vm12 = vcmp.gt.f32.partialorder %v12106_v43, 0.0 }
 0x5ac   : > { %v8682_v56 = vpop.f32.mrb[245].mxu0  ;;  %v5742_v14 = vpop.f32.mrb[186].mxu1  ;;  %8755 = vmatmul.mubr.msk.bf16.gmra.mrb[8].mxu0 %vm603_vm2, %v12925_v42 }
 0x5ad   : > { %v12115_v60 = vpop.f32.mrb[246].mxu0  ;;  %v6080_v54 = vmul.f32 1.442695, %v6060_v7  ;;  %v5983_v47 = vadd.f32 %v12023_v33, %v5798_v44  ;;  %v5799_v58 = vadd.f32 %v5742_v14, %v11985_v40  ;;  %v8625_v41 = vpop.f32.mrb[187].mxu1  ;;  %v6061_v49 = vmin.f32 %v12118_v13, 0.0  ;;  %8758 = vmatprep.mubr.msk.bf16.mxu0 %vm8950_vm1, %v12788_v57 }
 0x5ae   : > { %v8683_v5 = vpop.f32.mrb[247].mxu0  ;;  %vm6043_vm13 = vcmp.gt.f32.partialorder %v12118_v13, 0.0 }
 0x5af   : > { %8907 = vpow2.f32 %v6080_v54  ;;  %v6001_v22 = vadd.f32 %v5983_v47, %v11585_v24  ;;  %v5984_v28 = vadd.f32 %v12026_v45, %v5799_v58  ;;  %v6082_v48 = vmul.f32 1.442695, %v6061_v49 }
 0x5b1   : > { %v12128_v37 = vadd.f32 %v12077_v17, %v6001_v22  ;;  %v6002_v4 = vadd.f32 %v5984_v28, %v11590_v9  ;;  %8909 = vpow2.f32 %v6082_v48  ;;  %v12926_v28 = vld [vmem:[#allocation46_spill] sm:$0xff] }
 0x5b2   : > { %v5747_v40 = vpop.f32.mrb[188].mxu1 }
 0x5b3   : > { %v12131_v33 = vpop.f32.mrb[248].mxu0  ;;  %v6062_v24 = vmin.f32 %v12128_v37, 0.0  ;;  %v12137_v45 = vadd.f32 %v12077_v17, %v6002_v4  ;;  %v5800_v30 = vadd.f32 %v5747_v40, %v11994_v12  ;;  %v8628_v6 = vpop.f32.mrb[189].mxu1  ;;  %vm6044_vm14 = vcmp.gt.f32.partialorder %v12128_v37, 0.0 }
 0x5b4   : > { %v8686_v59 = vpop.f32.mrb[249].mxu0  ;;  %v5750_v7 = vpop.f32.mrb[190].mxu1  ;;  %8759 = vmatmul.mubr.msk.bf16.gmra.mrb[12].mxu0 %vm603_vm2, %v12926_v28 }
 0x5b5   : > { %v12140_v56 = vpop.f32.mrb[250].mxu0  ;;  %v8904_v44 = vpop.eup %8903  ;;  %v6084_v8 = vmul.f32 1.442695, %v6062_v24  ;;  %v6063_v14 = vmin.f32 %v12137_v45, 0.0  ;;  %v5985_v47 = vadd.f32 %v12035_v23, %v5800_v30  ;;  %v5801_v58 = vadd.f32 %v5750_v7, %v11997_v29  ;;  %8762 = vmatprep.mubr.msk.bf16.mxu0 %vm8950_vm1, %v12788_v57 }
 0x5b6   : > { %v8687_v9 = vpop.f32.mrb[251].mxu0  ;;  %v8629_v5 = vpop.f32.mrb[191].mxu1  ;;  %v7285_v41 = vadd.f32 -1.0, %v8904_v44  ;;  %vm6045_vm15 = vcmp.gt.f32.partialorder %v12137_v45, 0.0 }
 0x5b7   : > { %v8906_v54 = vpop.eup %8905  ;;  %8911 = vpow2.f32 %v6084_v8  ;;  %v6086_v49 = vmul.f32 1.442695, %v6063_v14  ;;  %v6003_v12 = vadd.f32 %v5985_v47, %v11601_v36  ;;  %v5986_v22 = vadd.f32 %v12038_v39, %v5801_v58  ;;  %v12927_v8 = vld [vmem:[#allocation5_spill] sm:$0xff] }
 0x5b8   : > { %v7284_v42 = vadd.f32 -1.0, %v8906_v54  ;;  %v12159_v59 = vsel %vm6041_vm0, %v12092_v35, %v7285_v41  ;;  %v12928_v54 = vld [vmem:[#allocation4_spill] sm:$0xff] }
 0x5b9   : > { %v8908_v48 = vpop.eup %8907  ;;  %v12152_v4 = vadd.f32 %v12077_v17, %v6003_v12  ;;  %v6004_v40 = vadd.f32 %v5986_v22, %v11606_v25  ;;  %8913 = vpow2.f32 %v6086_v49  ;;  %v6151_v14 = vmul.f32 %v12159_v59, %v12927_v8 }
 0x5ba   : > { %v5755_v23 = vpop.f32.mrb[192].mxu1  ;;  %v7286_v29 = vadd.f32 -1.0, %v8908_v48  ;;  %v12163_v7 = vsel %vm6040_vm11, %v12084_v3, %v7284_v42 }
 0x5bb   : > { %v5802_v36 = vadd.f32 %v5755_v23, %v12006_v31  ;;  %v8632_v39 = vpop.f32.mrb[193].mxu1  ;;  %v6064_v24 = vmin.f32 %v12152_v4, 0.0  ;;  %v8910_v6 = vpop.eup %8909  ;;  %v12166_v9 = vadd.f32 %v12077_v17, %v6004_v40  ;;  %v6150_v3 = vmul.f32 %v12163_v7, %v12928_v54 }
 0x5bc   : > { %v5758_v30 = vpop.f32.mrb[194].mxu1  ;;  %v12174_v5 = vsel %vm6042_vm12, %v12106_v43, %v7286_v29  ;;  %v7287_v47 = vadd.f32 -1.0, %v8910_v6  ;;  %v12930_v43 = vld [vmem:[#allocation6_spill] sm:$0xff]  ;;  %v6210_v28 = vmul.f32 %v6151_v14, %v6151_v14  ;;  %vm6046_vm4 = vcmp.gt.f32.partialorder %v12152_v4, 0.0 }
 0x5bd   : > { %v5987_v25 = vadd.f32 %v12047_v46, %v5802_v36  ;;  %v8633_v31 = vpop.f32.mrb[195].mxu1  ;;  %v6088_v44 = vmul.f32 1.442695, %v6064_v24  ;;  %v5803_v35 = vadd.f32 %v5758_v30, %v12009_v32  ;;  %v6065_v58 = vmin.f32 %v12166_v9, 0.0  ;;  %v12929_v46 = vld [vmem:[#allocation49_spill] sm:$0xff] }
 0x5be   : > { %8763 = vmatmul.mubr.msk.bf16.gmra.mrb[16].mxu0 %vm603_vm2, %v12929_v46  ;;  %v6152_v12 = vmul.f32 %v12174_v5, %v12930_v43  ;;  %v6169_v24 = vsel %vm2397_vm3, %v6151_v14, 0.0  ;;  %vm6047_vm5 = vcmp.gt.f32.partialorder %v12166_v9, 0.0 }
 0x5bf   : > { %8915 = vpow2.f32 %v6088_v44  ;;  %v6005_v49 = vadd.f32 %v5987_v25, %v11617_v11  ;;  %v5988_v32 = vadd.f32 %v12050_v50, %v5803_v35  ;;  %8766 = vmatprep.mubr.msk.bf16.mxu0 %vm8950_vm1, %v12788_v57  ;;  %v6090_v48 = vmul.f32 1.442695, %v6065_v58  ;;  %v12931_v35 = vld [vmem:[#allocation7_spill] sm:$0xff] }
 0x5c0   : > { %v6209_v11 = vmul.f32 %v6150_v3, %v6150_v3  ;;  %v12193_v50 = vsel %vm6043_vm13, %v12118_v13, %v7287_v47  ;;  %v6211_v25 = vmul.f32 %v6152_v12, %v6152_v12  ;;  %v6228_v44 = vsel %vm2397_vm3, %v6210_v28, 0.0 }
 0x5c1   : > { %v8912_v41 = vpop.eup %8911  ;;  %v12189_v42 = vadd.f32 %v12077_v17, %v6005_v49  ;;  %v6006_v23 = vadd.f32 %v5988_v32, %v11622_v27  ;;  %8917 = vpow2.f32 %v6090_v48  ;;  %v6153_v8 = vmul.f32 %v12193_v50, %v12931_v35 }
 0x5c2   : > { %v5763_v22 = vpop.f32.mrb[196].mxu1  ;;  %v7288_v40 = vadd.f32 -1.0, %v8912_v41  ;;  %v6227_v54 = vsel %vm2397_vm3, %v6209_v11, 0.0  ;;  %v12932_v41 = vld [vmem:[#allocation52_spill] sm:$0xff] }
 0x5c3   : > { %v8636_v29 = vpop.f32.mrb[197].mxu1  ;;  %v5804_v36 = vadd.f32 %v5763_v22, %v12018_v51  ;;  %v8914_v6 = vpop.eup %8913  ;;  %v6066_v27 = vmin.f32 %v12189_v42, 0.0  ;;  %v12201_v31 = vadd.f32 %v12077_v17, %v6006_v23  ;;  %v6168_v51 = vsel %vm2397_vm3, %v6150_v3, 0.0 }
 0x5c4   : > { %v5766_v39 = vpop.f32.mrb[198].mxu1  ;;  %v6170_v47 = vadd.f32 %v6169_v24, %v6168_v51  ;;  %v12211_v58 = vsel %vm6044_vm14, %v12128_v37, %v7288_v40  ;;  %v6229_v43 = vadd.f32 %v6228_v44, %v6227_v54  ;;  %v6171_v22 = vsel %vm2397_vm3, %v6152_v12, 0.0  ;;  %v12933_v40 = vld [vmem:[#allocation8_spill] sm:$0xff]  ;;  %v12934_v54 = vld [vmem:[#allocation9_spill] sm:$0xff] }
 0x5c5   : > { %v8637_v30 = vpop.f32.mrb[199].mxu1  ;;  %v5989_v13 = vadd.f32 %v12065_v1, %v5804_v36  ;;  %v5805_v14 = vadd.f32 %v5766_v39, %v12021_v16  ;;  %v6092_v46 = vmul.f32 1.442695, %v6066_v27  ;;  %v7289_v1 = vadd.f32 -1.0, %v8914_v6 }
 0x5c6   : > { %8767 = vmatmul.mubr.msk.bf16.gmra.mrb[20].mxu0 %vm603_vm2, %v12932_v41  ;;  %v6067_v3 = vmin.f32 %v12201_v31, 0.0  ;;  %v6230_v37 = vsel %vm2397_vm3, %v6211_v25, 0.0  ;;  %v6212_v48 = vmul.f32 %v6153_v8, %v6153_v8  ;;  %v6172_v24 = vadd.f32 %v6171_v22, %v6170_v47  ;;  %v12935_v41 = vld [vmem:[#allocation55_spill] sm:$0xff] }
 0x5c7   : > { %v6007_v49 = vadd.f32 %v5989_v13, %v11633_v38  ;;  %v5990_v32 = vadd.f32 %v12070_v26, %v5805_v14  ;;  %8770 = vmatprep.mubr.msk.bf16.mxu0 %vm8950_vm1, %v12788_v57  ;;  %8919 = vpow2.f32 %v6092_v46  ;;  %v6154_v26 = vmul.f32 %v12211_v58, %v12933_v40 }
 0x5c8   : > { %v6094_v29 = vmul.f32 1.442695, %v6067_v3  ;;  %v6231_v30 = vadd.f32 %v6230_v37, %v6229_v43  ;;  %v12233_v6 = vsel %vm6045_vm15, %v12137_v45, %v7289_v1  ;;  %v6173_v27 = vsel %vm2397_vm3, %v6153_v8, 0.0 }
 0x5c9   : > { %v8916_v16 = vpop.eup %8915  ;;  %v12223_v11 = vadd.f32 %v12077_v17, %v6007_v49  ;;  %v6008_v36 = vadd.f32 %v5990_v32, %v11638_v19  ;;  %v6232_v44 = vsel %vm2397_vm3, %v6212_v48, 0.0  ;;  %v6175_v14 = vsel %vm2397_vm3, %v6154_v26, 0.0  ;;  %v12936_v49 = vld [vmem:[#allocation10_spill] sm:$0xff] }
 0x5ca   : > { %v5771_v28 = vpop.f32.mrb[200].mxu1  ;;  %v7290_v23 = vadd.f32 -1.0, %v8916_v16  ;;  %8921 = vpow2.f32 %v6094_v29  ;;  %v6213_v8 = vmul.f32 %v6154_v26, %v6154_v26  ;;  %v6155_v47 = vmul.f32 %v12233_v6, %v12934_v54 }
 0x5cb   : > { %v8640_v38 = vpop.f32.mrb[201].mxu1  ;;  %v5806_v12 = vadd.f32 %v5771_v28, %v12030_v15  ;;  %v6068_v13 = vmin.f32 %v12223_v11, 0.0  ;;  %v12238_v51 = vadd.f32 %v12077_v17, %v6008_v36  ;;  %v8918_v15 = vpop.eup %8917  ;;  %vm6048_vm6 = vcmp.gt.f32.partialorder %v12189_v42, 0.0 }
 0x5cc   : > { %v5774_v39 = vpop.f32.mrb[202].mxu1  ;;  %v12243_v35 = vsel %vm6046_vm4, %v12152_v4, %v7290_v23  ;;  %v7291_v1 = vadd.f32 -1.0, %v8918_v15  ;;  %v6234_v23 = vsel %vm2397_vm3, %v6213_v8, 0.0  ;;  %v6214_v29 = vmul.f32 %v6155_v47, %v6155_v47  ;;  %v12937_v15 = vld [vmem:[#allocation11_spill] sm:$0xff]  ;;  %v12938_v8 = vld [vmem:[#allocation58_spill] sm:$0xff] }
 0x5cd   : > { %v8641_v25 = vpop.f32.mrb[203].mxu1  ;;  %v5991_v19 = vadd.f32 %v12087_v55, %v5806_v12  ;;  %v5807_v45 = vadd.f32 %v5774_v39, %v12033_v62  ;;  %v6096_v46 = vmul.f32 1.442695, %v6068_v13  ;;  %v6174_v55 = vadd.f32 %v6173_v27, %v6172_v24 }
 0x5ce   : > { %8771 = vmatmul.mubr.msk.bf16.gmra.mrb[24].mxu0 %vm603_vm2, %v12935_v41  ;;  %v6069_v3 = vmin.f32 %v12238_v51, 0.0  ;;  %v6233_v62 = vadd.f32 %v6232_v44, %v6231_v30  ;;  %v6156_v32 = vmul.f32 %v12243_v35, %v12936_v49  ;;  %vm6049_vm7 = vcmp.gt.f32.partialorder %v12201_v31, 0.0  ;;  %v12939_v41 = vld [vmem:[#allocation12_spill] sm:$0xff] }
 0x5cf   : > { %v6009_v4 = vadd.f32 %v5991_v19, %v11649_v34  ;;  %8774 = vmatprep.mubr.msk.bf16.mxu0 %vm8950_vm1, %v12788_v57  ;;  %8923 = vpow2.f32 %v6096_v46  ;;  %v5992_v16 = vadd.f32 %v12095_v61, %v5807_v45  ;;  %v6176_v22 = vadd.f32 %v6175_v14, %v6174_v55 }
 0x5d0   : > { %v6098_v37 = vmul.f32 1.442695, %v6069_v3  ;;  %v12269_v61 = vsel %vm6047_vm5, %v12166_v9, %v7291_v1  ;;  %v6177_v39 = vsel %vm2397_vm3, %v6155_v47, 0.0  ;;  %v6215_v24 = vmul.f32 %v6156_v32, %v6156_v32 }
 0x5d1   : > { %v12261_v28 = vadd.f32 %v12077_v17, %v6009_v4  ;;  %v8920_v34 = vpop.eup %8919  ;;  %v6010_v38 = vadd.f32 %v5992_v16, %v11654_v18  ;;  %v6235_v25 = vadd.f32 %v6234_v23, %v6233_v62  ;;  %v6236_v19 = vsel %vm2397_vm3, %v6214_v29, 0.0 }
 0x5d2   : > { %v5779_v43 = vpop.f32.mrb[204].mxu1  ;;  %v7292_v36 = vadd.f32 -1.0, %v8920_v34  ;;  %8925 = vpow2.f32 %v6098_v37  ;;  %v6157_v44 = vmul.f32 %v12269_v61, %v12937_v15  ;;  %v6178_v54 = vadd.f32 %v6177_v39, %v6176_v22 }
 0x5d3   : > { %v8644_v48 = vpop.f32.mrb[205].mxu1  ;;  %v5808_v40 = vadd.f32 %v5779_v43, %v12042_v53  ;;  %v6070_v30 = vmin.f32 %v12261_v28, 0.0  ;;  %v12275_v18 = vadd.f32 %v12077_v17, %v6010_v38  ;;  %v6237_v3 = vadd.f32 %v6236_v19, %v6235_v25  ;;  %v12941_v25 = vld [vmem:[#allocation14_spill] sm:$0xff] }
 0x5d4   : > { %v5782_v26 = vpop.f32.mrb[206].mxu1  ;;  %v8922_v53 = vpop.eup %8921  ;;  %v12280_v9 = vsel %vm6048_vm6, %v12189_v42, %v7292_v36  ;;  %vm6050_vm8 = vcmp.gt.f32.partialorder %v12223_v11, 0.0  ;;  %v6216_v16 = vmul.f32 %v6157_v44, %v6157_v44  ;;  %v6181_v29 = vsel %vm2397_vm3, %v6157_v44, 0.0 }
 0x5d5   : > { %v8645_v12 = vpop.f32.mrb[207].mxu1  ;;  %v5993_v27 = vadd.f32 %v12108_v52, %v5808_v40  ;;  %v5809_v13 = vadd.f32 %v5782_v26, %v12045_v0  ;;  %v7293_v45 = vadd.f32 -1.0, %v8922_v53  ;;  %v6100_v14 = vmul.f32 1.442695, %v6070_v30 }
 0x5d6   : > { %8775 = vmatmul.mubr.msk.bf16.gmra.mrb[28].mxu0 %vm603_vm2, %v12938_v8  ;;  %v6071_v47 = vmin.f32 %v12275_v18, 0.0  ;;  %v6179_v52 = vsel %vm2397_vm3, %v6156_v32, 0.0  ;;  %v6238_v0 = vsel %vm2397_vm3, %v6215_v24, 0.0  ;;  %v6158_v55 = vmul.f32 %v12280_v9, %v12939_v41 }
 0x5d7   : > { %v6011_v42 = vadd.f32 %v5993_v27, %v11665_v10  ;;  %v5994_v46 = vadd.f32 %v12115_v60, %v5809_v13  ;;  %8927 = vpow2.f32 %v6100_v14  ;;  %v12303_v60 = vsel %vm6049_vm7, %v12201_v31, %v7293_v45  ;;  %v12940_v31 = vld [vmem:[#allocation13_spill] sm:$0xff] }
 0x5d8   : > { %v6102_v4 = vmul.f32 1.442695, %v6071_v47  ;;  %v6180_v37 = vadd.f32 %v6179_v52, %v6178_v54  ;;  %v6239_v48 = vadd.f32 %v6238_v0, %v6237_v3  ;;  %vm6051_vm2 = vcmp.gt.f32.partialorder %v12238_v51, 0.0  ;;  %v12942_v52 = vld [vmem:[#allocation15_spill] sm:$0xff] }
 0x5d9   : > { %v12298_v62 = vadd.f32 %v12077_v17, %v6011_v42  ;;  %v8924_v10 = vpop.eup %8923  ;;  %v6012_v32 = vadd.f32 %v5994_v46, %v11670_v2  ;;  %v6217_v38 = vmul.f32 %v6158_v55, %v6158_v55  ;;  %v6159_v36 = vmul.f32 %v12303_v60, %v12940_v31 }
 0x5da   : > { %v5787_v1 = vpop.f32.mrb[208].mxu1  ;;  %v7294_v34 = vadd.f32 -1.0, %v8924_v10  ;;  %8929 = vpow2.f32 %v6102_v4  ;;  %v6240_v39 = vsel %vm2397_vm3, %v6216_v16, 0.0  ;;  %v6183_v24 = vsel %vm2397_vm3, %v6158_v55, 0.0 }
 0x5db   : > { %v8648_v49 = vpop.f32.mrb[209].mxu1  ;;  %v5810_v43 = vadd.f32 %v5787_v1, %v12058_v21  ;;  %v6072_v40 = vmin.f32 %v12298_v62, 0.0  ;;  %v12318_v21 = vadd.f32 %v12077_v17, %v6012_v32  ;;  %v6182_v15 = vadd.f32 %v6181_v29, %v6180_v37  ;;  %v12944_v32 = vld [vmem:[#allocation16_spill] sm:$0xff] }
 0x5dc   : > { %v5790_v22 = vpop.f32.mrb[210].mxu1  ;;  %v8926_v26 = vpop.eup %8925  ;;  %v12315_v2 = vsel %vm6050_vm8, %v12223_v11, %v7294_v34  ;;  %v6242_v44 = vsel %vm2397_vm3, %v6217_v38, 0.0  ;;  %v6218_v45 = vmul.f32 %v6159_v36, %v6159_v36  ;;  %v6241_v47 = vadd.f32 %v6240_v39, %v6239_v48  ;;  %v12945_v39 = vld [vmem:[#allocation17_spill] sm:$0xff] }
 0x5dd   : > { %v8649_v23 = vpop.f32.mrb[211].mxu1  ;;  %v5995_v12 = vadd.f32 %v12131_v33, %v5810_v43  ;;  %v7295_v30 = vadd.f32 -1.0, %v8926_v26  ;;  %v6104_v53 = vmul.f32 1.442695, %v6072_v40  ;;  %v6160_v27 = vmul.f32 %v12315_v2, %v12941_v25 }
 0x5de   : > { %v6073_v13 = vmin.f32 %v12318_v21, 0.0  ;;  %v5811_v11 = vadd.f32 %v5790_v22, %v12061_v20  ;;  %v6184_v42 = vadd.f32 %v6183_v24, %v6182_v15  ;;  %v6185_v20 = vsel %vm2397_vm3, %v6159_v36, 0.0 }
 0x5df   : > { %v6013_v19 = vadd.f32 %v5995_v12, %v11681_v63  ;;  %v12331_v33 = vsel %vm6051_vm2, %v12238_v51, %v7295_v30  ;;  %8931 = vpow2.f32 %v6104_v53  ;;  %v6219_v46 = vmul.f32 %v6160_v27, %v6160_v27 }
 0x5e0   : > { %v6106_v14 = vmul.f32 1.442695, %v6073_v13  ;;  %v5996_v63 = vadd.f32 %v12140_v56, %v5811_v11  ;;  %v6161_v51 = vmul.f32 %v12331_v33, %v12942_v52  ;;  %v6243_v41 = vadd.f32 %v6242_v44, %v6241_v47  ;;  %v12943_v56 = vld [vmem:[#allocation53_spill] sm:$0xff] }
 0x5e1   : > { %v12335_v8 = vadd.f32 %v12077_v17, %v6013_v19  ;;  %v8928_v54 = vpop.eup %8927  ;;  %vm6052_vm9 = vcmp.gt.f32.partialorder %v12261_v28, 0.0  ;;  %v6244_v1 = vsel %vm2397_vm3, %v6218_v45, 0.0  ;;  %v6187_v3 = vsel %vm2397_vm3, %v6160_v27, 0.0  ;;  %v12946_v45 = vld [vmem:[#allocation18_spill] sm:$0xff] }
 0x5e2   : > { %v7296_v0 = vadd.f32 -1.0, %v8928_v54  ;;  %8933 = vpow2.f32 %v6106_v14  ;;  %v6014_v49 = vadd.f32 %v5996_v63, %v12943_v56  ;;  %v6186_v16 = vadd.f32 %v6185_v20, %v6184_v42 }
 0x5e3   : > { %v6074_v55 = vmin.f32 %v12335_v8, 0.0  ;;  %v6246_v37 = vsel %vm2397_vm3, %v6219_v46, 0.0  ;;  %v6220_v48 = vmul.f32 %v6161_v51, %v6161_v51  ;;  %v6245_v29 = vadd.f32 %v6244_v1, %v6243_v41 }
 0x5e4   : > { %v12346_v4 = vsel %vm6052_vm9, %v12261_v28, %v7296_v0  ;;  %v8930_v10 = vpop.eup %8929  ;;  %v6039_v23 = vadd.f32 %v12077_v17, %v6014_v49  ;;  %v6188_v38 = vadd.f32 %v6187_v3, %v6186_v16  ;;  %vm6053_vm0 = vcmp.gt.f32.partialorder %v12275_v18, 0.0  ;;  %v12947_v0 = vld [vmem:[#allocation19_spill] sm:$0xff] }
 0x5e5   : > { %v6162_v43 = vmul.f32 %v12346_v4, %v12944_v32  ;;  %v6108_v22 = vmul.f32 1.442695, %v6074_v55  ;;  %v7297_v34 = vadd.f32 -1.0, %v8930_v10  ;;  %v6189_v28 = vsel %vm2397_vm3, %v6161_v51, 0.0  ;;  %v12948_v32 = vld [vmem:[#allocation20_spill] sm:$0xff] }
 0x5e6   : > { %v6075_v31 = vmin.f32 %v6039_v23, 0.0  ;;  %v6247_v12 = vadd.f32 %v6246_v37, %v6245_v29  ;;  %v6248_v30 = vsel %vm2397_vm3, %v6220_v48, 0.0  ;;  %v6190_v27 = vadd.f32 %v6189_v28, %v6188_v38 }
 0x5e7   : > { %8935 = vpow2.f32 %v6108_v22  ;;  %v6221_v40 = vmul.f32 %v6162_v43, %v6162_v43  ;;  %v12356_v26 = vsel %vm6053_vm0, %v12275_v18, %v7297_v34  ;;  %v6191_v17 = vsel %vm2397_vm3, %v6162_v43, 0.0 }
 0x5e8   : > { %v6163_v24 = vmul.f32 %v12356_v26, %v12945_v39  ;;  %v6110_v25 = vmul.f32 1.442695, %v6075_v31  ;;  %vm6054_vm11 = vcmp.gt.f32.partialorder %v12298_v62, 0.0  ;;  %v6249_v15 = vadd.f32 %v6248_v30, %v6247_v12 }
 0x5e9   : > { %v8932_v36 = vpop.eup %8931  ;;  %v6250_v13 = vsel %vm2397_vm3, %v6221_v40, 0.0  ;;  %v6192_v44 = vadd.f32 %v6191_v17, %v6190_v27  ;;  %vm6055_vm12 = vcmp.gt.f32.partialorder %v12318_v21, 0.0  ;;  %vm6056_vm13 = vcmp.gt.f32.partialorder %v12335_v8, 0.0 }
 0x5ea   : > { %v7298_v53 = vadd.f32 -1.0, %v8932_v36  ;;  %v6222_v19 = vmul.f32 %v6163_v24, %v6163_v24  ;;  %8937 = vpow2.f32 %v6110_v25  ;;  %v6193_v54 = vsel %vm2397_vm3, %v6163_v24, 0.0 }
 0x5eb   : > { %v6251_v42 = vadd.f32 %v6250_v13, %v6249_v15  ;;  %v6194_v51 = vadd.f32 %v6193_v54, %v6192_v44  ;;  %vm6057_vm14 = vcmp.gt.f32.partialorder %v6039_v23, 0.0 }
 0x5ec   : > { %v12365_v18 = vsel %vm6054_vm11, %v12298_v62, %v7298_v53  ;;  %v8934_v11 = vpop.eup %8933  ;;  %v6252_v20 = vsel %vm2397_vm3, %v6222_v19, 0.0 }
 0x5ed   : > { %v6164_v14 = vmul.f32 %v12365_v18, %v12946_v45  ;;  %v7299_v47 = vadd.f32 -1.0, %v8934_v11  ;;  %v6253_v3 = vadd.f32 %v6252_v20, %v6251_v42  ;;  %v12950_v42 = vld [vmem:[#allocation3_spill] sm:$0xff] }
 0x5ef   : > { %v6223_v63 = vmul.f32 %v6164_v14, %v6164_v14  ;;  %v6195_v46 = vsel %vm2397_vm3, %v6164_v14, 0.0  ;;  %v12374_v62 = vsel %vm6055_vm12, %v12318_v21, %v7299_v47 }
 0x5f0   : > { %v6165_v41 = vmul.f32 %v12374_v62, %v12947_v0  ;;  %v6196_v56 = vadd.f32 %v6195_v46, %v6194_v51  ;;  %v8864_v46 = vld [vmem:[%s12686_s14] sm:$0xff]   ;;  %v12952_v51 = vld [vmem:[#allocation62_spill] sm:$0xff] }
 0x5f1   : > { %v8936_v52 = vpop.eup %8935  ;;  %v6254_v55 = vsel %vm2397_vm3, %v6223_v63, 0.0  ;;  %v8863_v63 = vld [vmem:[%s12685_s13] sm:$0xff]  }
 0x5f2   : > { %v7300_v1 = vadd.f32 -1.0, %v8936_v52  ;;  %v6224_v49 = vmul.f32 %v6165_v41, %v6165_v41  ;;  %v6197_v10 = vsel %vm2397_vm3, %v6165_v41, 0.0  ;;  %v6255_v21 = vadd.f32 %v6254_v55, %v6253_v3  ;;  %v12951_v52 = vld [vmem:[#allocation63_spill] sm:$0xff]  ;;  %v12954_v41 = vld [vmem:[#allocation65_spill] sm:$0xff]  ;;  %v12955_v55 = vld [vmem:[#allocation64_spill] sm:$0xff] }
 0x5f3   : > { %v6198_v48 = vadd.f32 %v6197_v10, %v6196_v56  ;;  %v12953_v0 = vpack.c.bf16 %v12951_v52, %v12952_v51  ;;  %v12957_v3 = vld [vmem:[#allocation67_spill] sm:$0xff]  ;;  %v12958_v56 = vld [vmem:[#allocation66_spill] sm:$0xff]  ;;  %v12960_v10 = vld [vmem:[#allocation69_spill] sm:$0xff] }
 0x5f4   : > { %v12382_v16 = vsel %vm6056_vm13, %v12335_v8, %v7300_v1  ;;  %v8938_v22 = vpop.eup %8937  ;;  %v6256_v37 = vsel %vm2397_vm3, %v6224_v49, 0.0  ;;  %v12949_v8 = vld [vmem:[#allocation21_spill] sm:$0xff]  ;;  %v12956_v1 = vpack.c.bf16 %v12954_v41, %v12955_v55  ;;  %v12959_v49 = vpack.c.bf16 %v12957_v3, %v12958_v56 }
 0x5f5   : > { %v6166_v43 = vmul.f32 %v12382_v16, %v12948_v32  ;;  %v7301_v38 = vadd.f32 -1.0, %v8938_v22  ;;  %v6257_v28 = vadd.f32 %v6256_v37, %v6255_v21  ;;  %v12961_v21 = vld [vmem:[#allocation68_spill] sm:$0xff]  ;;  %v12964_v22 = vld [vmem:[#allocation70_spill] sm:$0xff] }
 0x5f6   : > { %v12962_v32 = vpack.c.bf16 %v12960_v10, %v12961_v21 }
 0x5f7   : > { %v6199_v34 = vsel %vm2397_vm3, %v6166_v43, 0.0  ;;  %v6225_v29 = vmul.f32 %v6166_v43, %v6166_v43  ;;  %v12389_v36 = vsel %vm6057_vm14, %v6039_v23, %v7301_v38  ;;  %v12963_v43 = vld [vmem:[#allocation71_spill] sm:$0xff]  ;;  %v12969_v38 = vld [vmem:[#allocation22_spill] sm:$0xff] }
 0x5f8   : > { %v6200_v40 = vadd.f32 %v6199_v34, %v6198_v48  ;;  %v6167_v12 = vmul.f32 %v12389_v36, %v12949_v8  ;;  %v12965_v37 = vpack.c.bf16 %v12963_v43, %v12964_v22  ;;  %v12966_v48 = vld [vmem:[#allocation73_spill] sm:$0xff]  ;;  %v12967_v34 = vld [vmem:[#allocation72_spill] sm:$0xff]  ;;  %v12973_v8 = vld [vmem:[#allocation75_spill] sm:$0xff] }
 0x5f9   : > { %v6258_v31 = vsel %vm2397_vm3, %v6225_v29, 0.0  ;;  %v12968_v29 = vpack.c.bf16 %v12966_v48, %v12967_v34 }
 0x5fa   : > { %v6259_v39 = vadd.f32 %v6258_v31, %v6257_v28  ;;  %v6201_v24 = vsel %vm2431_vm10, %v6167_v12, 0.0  ;;  %v6226_v30 = vmul.f32 %v6167_v12, %v6167_v12  ;;  %v12970_v28 = vld [vmem:[#allocation74_spill] sm:$0xff]  ;;  %v12972_v31 = vld [vmem:[#allocation23_spill] sm:$0xff] }
 0x5fb   : > { %v6202_v17 = vadd.f32 %v6201_v24, %v6200_v40  ;;  %v12971_v40 = vpack.c.bf16 %v12969_v38, %v12970_v28  ;;  %v12974_v12 = vpack.c.bf16 %v12972_v31, %v12973_v8  ;;  %v12976_v24 = vld [vmem:[#allocation76_spill] sm:$0xff] }
 0x5fc   : > { %v6260_v53 = vsel %vm2431_vm10, %v6226_v30, 0.0 }
 0x5fd   : > { %v6203_v25 = vrot.slane %v6202_v17, 4  ;;  %v6261_v27 = vadd.f32 %v6260_v53, %v6259_v39  ;;  %v12975_v39 = vld [vmem:[#allocation77_spill] sm:$0xff] }
 0x5fe   : > { %v12977_v30 = vpack.c.bf16 %v12975_v39, %v12976_v24 }
 0x5ff   : > { %v6204_v13 = vadd.f32 %v6203_v25, %v6202_v17  ;;  %v6262_v19 = vrot.slane %v6261_v27, 4 }
 0x601   : > { %v6205_v11 = vrot.slane %v6204_v13, 2  ;;  %v6263_v15 = vadd.f32 %v6262_v19, %v6261_v27 }
 0x603   : > { %v6206_v44 = vadd.f32 %v6205_v11, %v6204_v13  ;;  %v6264_v45 = vrot.slane %v6263_v15, 2 }
 0x605   : > { %v6207_v23 = vrot.slane %v6206_v44, 1  ;;  %v6265_v14 = vadd.f32 %v6264_v45, %v6263_v15 }
 0x607   : > { %v6208_v54 = vadd.f32 %v6207_v23, %v6206_v44  ;;  %v6266_v47 = vrot.slane %v6265_v14, 1 }
 0x609   : > { %8693 = vmatmul.mubr.msk.f32.vlgmr.msra.gmra.mrb[212].mxu1 %vm2397_vm3, %v6208_v54  ;;  %v6267_v20 = vadd.f32 %v6266_v47, %v6265_v14 }
 0x60a   : > { %8827 = vmatpush3.bf16.msra.mxu1 %v12950_v42  ;;  %8699 = vmatprep.mubr.msk.f32.mxu1 %vm8950_vm1, %v12788_v57 }
 0x60b   : > { %8702 = vmatprep.subr.bf16.mxu1 %v12788_v57 }
 0x60d   : > { %8700 = vmatmul.mubr.msk.f32.vlgmr.msra.gmra.mrb[214].mxu1 %vm2397_vm3, %v6267_v20 }
 0x60e   : > { %8703 = vmatpush3.bf16.msra.mxu1 %v8863_v63  ;;  %8704 = vmatprep.mubr.msk.bf16.mxu1 %vm8950_vm1, %v12788_v57 }
 0x60f   : > { %8778 = vmatprep.subr.bf16.mxu1 %v12788_v57 }
 0x611   : > { %8705 = vmatmul.mubr.msk.bf16.vlgmr.msra.gmra.mrb[216].mxu1 %vm2397_vm3, %v12953_v0 }
 0x612   : > { %8708 = vmatprep.mubr.msk.bf16.mxu1 %vm8950_vm1, %v12788_v57  ;;  %8779 = vmatpush3.bf16.msra.mxu1 %v8864_v46 }
 0x619   : > { %8709 = vmatmul.mubr.msk.bf16.gmra.mrb[220].mxu1 %vm2397_vm3, %v12956_v1 }
 0x61a   : > { %8712 = vmatprep.mubr.msk.bf16.mxu1 %vm8950_vm1, %v12788_v57 }
 0x621   : > { %8713 = vmatmul.mubr.msk.bf16.gmra.mrb[224].mxu1 %vm2397_vm3, %v12959_v49 }
 0x622   : > { %8716 = vmatprep.mubr.msk.bf16.mxu1 %vm8950_vm1, %v12788_v57 }
 0x629   : > { %8717 = vmatmul.mubr.msk.bf16.gmra.mrb[228].mxu1 %vm2397_vm3, %v12962_v32 }
 0x62a   : > { %8720 = vmatprep.mubr.msk.bf16.mxu1 %vm8950_vm1, %v12788_v57 }
 0x631   : > { %8721 = vmatmul.mubr.msk.bf16.gmra.mrb[232].mxu1 %vm2397_vm3, %v12965_v37 }
 0x632   : > { %8724 = vmatprep.mubr.msk.bf16.mxu1 %vm8950_vm1, %v12788_v57 }
 0x639   : > { %8725 = vmatmul.mubr.msk.bf16.gmra.mrb[236].mxu1 %vm2397_vm3, %v12968_v29 }
 0x63a   : > { %8728 = vmatprep.mubr.msk.bf16.mxu1 %vm8950_vm1, %v12788_v57 }
 0x641   : > { %8729 = vmatmul.mubr.msk.bf16.gmra.mrb[240].mxu1 %vm2397_vm3, %v12971_v40 }
 0x642   : > { %8732 = vmatprep.mubr.msk.bf16.mxu1 %vm8950_vm1, %v12788_v57 }
 0x649   : > { %8733 = vmatmul.mubr.msk.bf16.gmra.mrb[244].mxu1 %vm2397_vm3, %v12974_v12 }
 0x64a   : > { %8736 = vmatprep.mubr.msk.bf16.mxu1 %vm8950_vm1, %v12788_v57 }
 0x651   : > { %8737 = vmatmul.mubr.msk.bf16.gmra.mrb[248].mxu1 %vm2397_vm3, %v12977_v30 }
 0x652   : > { %8780 = vmatprep.mubr.msk.bf16.mxu1 %vm8950_vm1, %v12788_v57 }
 0x665   : > { %v6657_v17 = vpop.f32.mrb[252].mxu0 }
 0x666   : > { %v8744_v53 = vpop.f32.mrb[253].mxu0 }
 0x667   : > { %v6660_v25 = vpop.f32.mrb[254].mxu0 }
 0x668   : > { %v8745_v27 = vpop.f32.mrb[255].mxu0 }
 0x66f   : > { %v6665_v13 = vpop.f32.mrb[0].mxu0 }
 0x670   : > { %v8748_v19 = vpop.f32.mrb[1].mxu0 }
 0x671   : > { %v6668_v11 = vpop.f32.mrb[2].mxu0 }
 0x672   : > { %v8749_v15 = vpop.f32.mrb[3].mxu0 }
 0x677   : > { %v6673_v44 = vpop.f32.mrb[4].mxu0 }
 0x678   : > { %v8752_v45 = vpop.f32.mrb[5].mxu0 }
 0x679   : > { %v6676_v23 = vpop.f32.mrb[6].mxu0 }
 0x67a   : > { %v8753_v14 = vpop.f32.mrb[7].mxu0 }
 0x67f   : > { %v12464_v54 = vpop.f32.mrb[8].mxu0 }
 0x680   : > { %v8756_v47 = vpop.f32.mrb[9].mxu0 }
 0x681   : > { %v12466_v42 = vpop.f32.mrb[10].mxu0 }
 0x682   : > { %v8757_v63 = vpop.f32.mrb[11].mxu0 }
 0x687   : > { %v12468_v20 = vpop.f32.mrb[12].mxu0 }
 0x688   : > { %v8760_v46 = vpop.f32.mrb[13].mxu0 }
 0x689   : > { %v12470_v52 = vpop.f32.mrb[14].mxu0 }
 0x68a   : > { %v8761_v51 = vpop.f32.mrb[15].mxu0 }
 0x68b   : > { %v6148_v51 = vld [vmem:[%s12682_s10] sm:$0x1] }
 0x691   : > { %v12472_v0 = vpop.f32.mrb[16].mxu0 }
 0x692   : > { %v8764_v41 = vpop.f32.mrb[17].mxu0 }
 0x693   : > { %v12474_v55 = vpop.f32.mrb[18].mxu0 }
 0x694   : > { %v8765_v1 = vpop.f32.mrb[19].mxu0 }
 0x699   : > { %v12476_v3 = vpop.f32.mrb[20].mxu0 }
 0x69a   : > { %v8768_v56 = vpop.f32.mrb[21].mxu0 }
 0x69b   : > { %v12478_v49 = vpop.f32.mrb[22].mxu0 }
 0x69c   : > { %v8769_v10 = vpop.f32.mrb[23].mxu0 }
 0x6a1   : > { %v12480_v21 = vpop.f32.mrb[24].mxu0 }
 0x6a2   : > { %v8772_v32 = vpop.f32.mrb[25].mxu0 }
 0x6a3   : > { %v12482_v43 = vpop.f32.mrb[26].mxu0  ;;  %v12978_v32 = vld [vmem:[#allocation61_spill] sm:$0xff] }
 0x6a4   : > { %v8773_v22 = vpop.f32.mrb[27].mxu0 }
 0x6a9   : > { %v12484_v37 = vpop.f32.mrb[28].mxu0 }
 0x6aa   : > { %v8776_v48 = vpop.f32.mrb[29].mxu0 }
 0x6ab   : > { %v12486_v34 = vpop.f32.mrb[30].mxu0 }
 0x6ac   : > { %v8777_v29 = vpop.f32.mrb[31].mxu0 }
 0x6dc   : > { %v6337_v38 = vpop.f32.mrb[212].mxu1 }
 0x6dd   : > { %v8694_v28 = vpop.f32.mrb[213].mxu1  ;;  %v6414_v40 = vmul.f32 %v6337_v38, %v6337_v38 }
 0x6e0   : > { %v6410_v31 = vpop.f32.mrb[214].mxu1 }
 0x6e1   : > { %v6415_v8 = vsub.f32 %v6410_v31, %v6414_v40  ;;  %v8701_v12 = vpop.f32.mrb[215].mxu1 }
 0x6e3   : > { %v6416_v39 = vmax.f32 %v6415_v8, 0.0 }
 0x6e4   : > { %v6549_v24 = vpop.f32.mrb[216].mxu1 }
 0x6e5   : > { %v6417_v30 = vadd.f32 1e-05, %v6416_v39  ;;  %v12488_v53 = vadd.f32 %v6657_v17, %v6549_v24  ;;  %v8706_v27 = vpop.f32.mrb[217].mxu1 }
 0x6e6   : > { %v6552_v19 = vpop.f32.mrb[218].mxu1 }
 0x6e7   : > { %8939 = vrsqrt.f32 %v6417_v30  ;;  %v12490_v15 = vadd.f32 %v6660_v25, %v6552_v19  ;;  %v8707_v45 = vpop.f32.mrb[219].mxu1  ;;  %v6149_v25 = vld [vmem:[%s12683_s11] sm:$0x1] }
 0x6ec   : > { %v6557_v14 = vpop.f32.mrb[220].mxu1 }
 0x6ed   : > { %v12492_v47 = vadd.f32 %v6665_v13, %v6557_v14  ;;  %v8710_v63 = vpop.f32.mrb[221].mxu1 }
 0x6ee   : > { %v6560_v46 = vpop.f32.mrb[222].mxu1 }
 0x6ef   : > { %v12497_v41 = vadd.f32 %v6668_v11, %v6560_v46  ;;  %v8711_v1 = vpop.f32.mrb[223].mxu1 }
 0x6f1   : > { %v8940_v17 = vpop.eup %8939 }
 0x6f2   : > { %v6419_v56 = vmul.f32 %v8940_v17, %v6148_v51 }
 0x6f4   : > { %v6420_v10 = vmul.f32 %v6419_v56, %v6337_v38  ;;  %v6426_v22 = vrot.slane %v6419_v56, %v12978_v32  ;;  %v6565_v13 = vpop.f32.mrb[224].mxu1 }
 0x6f5   : > { %v12503_v48 = vadd.f32 %v6673_v44, %v6565_v13  ;;  %v8714_v29 = vpop.f32.mrb[225].mxu1 }
 0x6f6   : > { %v6421_v28 = vsub.f32 %v6149_v25, %v6420_v10  ;;  %v6568_v40 = vpop.f32.mrb[226].mxu1  ;;  %v6428_v31 = vmul.f32 %v6426_v22, %v12163_v7  ;;  %v6429_v11 = vmul.f32 %v6426_v22, %v12159_v59  ;;  %v6430_v8 = vmul.f32 %v6426_v22, %v12174_v5 }
 0x6f7   : > { %v12508_v12 = vadd.f32 %v6676_v23, %v6568_v40  ;;  %v8715_v39 = vpop.f32.mrb[227].mxu1  ;;  %v6431_v24 = vmul.f32 %v6426_v22, %v12193_v50  ;;  %v6432_v38 = vmul.f32 %v6426_v22, %v12211_v58  ;;  %v6433_v30 = vmul.f32 %v6426_v22, %v12233_v6 }
 0x6f8   : > { %v6450_v44 = vrot.slane %v6421_v28, %v12978_v32  ;;  %v6434_v27 = vmul.f32 %v6426_v22, %v12243_v35  ;;  %v6435_v19 = vmul.f32 %v6426_v22, %v12269_v61  ;;  %v6436_v7 = vmul.f32 %v6426_v22, %v12280_v9 }
 0x6f9   : > { %v6437_v59 = vmul.f32 %v6426_v22, %v12303_v60  ;;  %v6438_v5 = vmul.f32 %v6426_v22, %v12315_v2  ;;  %v6439_v23 = vmul.f32 %v6426_v22, %v12331_v33  ;;  %v6440_v50 = vmul.f32 %v6426_v22, %v12346_v4 }
 0x6fa   : > { %v6452_v45 = vadd.f32 %v6450_v44, %v6428_v31  ;;  %v6453_v58 = vadd.f32 %v6450_v44, %v6429_v11  ;;  %v6454_v14 = vadd.f32 %v6450_v44, %v6430_v8  ;;  %v6455_v6 = vadd.f32 %v6450_v44, %v6431_v24 }
 0x6fb   : > { %v6456_v63 = vadd.f32 %v6450_v44, %v6432_v38  ;;  %v6457_v46 = vadd.f32 %v6450_v44, %v6433_v30  ;;  %v6458_v51 = vadd.f32 %v6450_v44, %v6434_v27  ;;  %v6459_v35 = vadd.f32 %v6450_v44, %v6435_v19 }
 0x6fc   : > { %v6573_v1 = vpop.f32.mrb[228].mxu1  ;;  %v6728_v61 = vpack.c.bf16 %v6453_v58, %v6452_v45  ;;  %v6729_v17 = vpack.c.bf16 %v6455_v6, %v6454_v14  ;;  %v6460_v9 = vadd.f32 %v6450_v44, %v6436_v7  ;;  %v6461_v56 = vadd.f32 %v6450_v44, %v6437_v59 }
 0x6fd   : > { %v12522_v60 = vadd.f32 %v12464_v54, %v6573_v1  ;;  %v8718_v2 = vpop.f32.mrb[229].mxu1  ;;  %v6730_v33 = vpack.c.bf16 %v6457_v46, %v6456_v63  ;;  %v6731_v25 = vpack.c.bf16 %v6459_v35, %v6458_v51  ;;  %v6462_v4 = vadd.f32 %v6450_v44, %v6438_v5 }
 0x6fe   : > { %v6576_v10 = vpop.f32.mrb[230].mxu1  ;;  %8781 = vmatmul.mubr.msk.bf16.vlgmr.msra.gmra.mrb[252].mxu1 %vm2397_vm3, %v6728_v61  ;;  %v6732_v32 = vpack.c.bf16 %v6461_v56, %v6460_v9  ;;  %v6463_v13 = vadd.f32 %v6450_v44, %v6439_v23  ;;  %v6441_v29 = vmul.f32 %v6426_v22, %v12356_v26  ;;  %v6464_v28 = vadd.f32 %v6450_v44, %v6440_v50 }
 0x6ff   : > { %v12527_v40 = vadd.f32 %v12466_v42, %v6576_v10  ;;  %v8719_v31 = vpop.f32.mrb[231].mxu1  ;;  %8784 = vmatprep.mubr.msk.bf16.mxu1 %vm8950_vm1, %v12788_v57  ;;  %v6442_v54 = vmul.f32 %v6426_v22, %v12365_v18  ;;  %v6443_v11 = vmul.f32 %v6426_v22, %v12374_v62  ;;  %v6444_v8 = vmul.f32 %v6426_v22, %v12382_v16 }
 0x700   : > { %v6733_v39 = vpack.c.bf16 %v6463_v13, %v6462_v4  ;;  %v6465_v24 = vadd.f32 %v6450_v44, %v6441_v29  ;;  %v6445_v38 = vmul.f32 %v6426_v22, %v12389_v36 }
 0x701   : > { %v6466_v30 = vadd.f32 %v6450_v44, %v6442_v54  ;;  %v6467_v26 = vadd.f32 %v6450_v44, %v6443_v11  ;;  %v6468_v27 = vadd.f32 %v6450_v44, %v6444_v8 }
 0x702   : > { %v6734_v19 = vpack.c.bf16 %v6465_v24, %v6464_v28  ;;  %v6469_v42 = vadd.f32 %v6450_v44, %v6445_v38 }
 0x703   : > { %v6735_v7 = vpack.c.bf16 %v6467_v26, %v6466_v30 }
 0x704   : > { %v6581_v59 = vpop.f32.mrb[232].mxu1  ;;  %v6736_v5 = vpack.c.bf16 %v6469_v42, %v6468_v27 }
 0x705   : > { %v12536_v23 = vadd.f32 %v12468_v20, %v6581_v59  ;;  %v8722_v18 = vpop.f32.mrb[233].mxu1 }
 0x706   : > { %v6584_v50 = vpop.f32.mrb[234].mxu1  ;;  %8785 = vmatmul.mubr.msk.bf16.gmra.mrb[0].mxu1 %vm2397_vm3, %v6729_v17 }
 0x707   : > { %v12540_v62 = vadd.f32 %v12470_v52, %v6584_v50  ;;  %v8723_v16 = vpop.f32.mrb[235].mxu1  ;;  %8788 = vmatprep.mubr.msk.bf16.mxu1 %vm8950_vm1, %v12788_v57 }
 0x70c   : > { %v6589_v36 = vpop.f32.mrb[236].mxu1 }
 0x70d   : > { %v12545_v22 = vadd.f32 %v12472_v0, %v6589_v36  ;;  %v8726_v44 = vpop.f32.mrb[237].mxu1 }
 0x70e   : > { %v6592_v45 = vpop.f32.mrb[238].mxu1  ;;  %8789 = vmatmul.mubr.msk.bf16.gmra.mrb[4].mxu1 %vm2397_vm3, %v6730_v33 }
 0x70f   : > { %v12549_v20 = vadd.f32 %v12474_v55, %v6592_v45  ;;  %v8727_v58 = vpop.f32.mrb[239].mxu1  ;;  %8792 = vmatprep.mubr.msk.bf16.mxu1 %vm8950_vm1, %v12788_v57 }
 0x714   : > { %v6597_v52 = vpop.f32.mrb[240].mxu1 }
 0x715   : > { %v12554_v14 = vadd.f32 %v12476_v3, %v6597_v52  ;;  %v8730_v6 = vpop.f32.mrb[241].mxu1 }
 0x716   : > { %v6600_v63 = vpop.f32.mrb[242].mxu1  ;;  %8793 = vmatmul.mubr.msk.bf16.gmra.mrb[8].mxu1 %vm2397_vm3, %v6731_v25 }
 0x717   : > { %v12558_v0 = vadd.f32 %v12478_v49, %v6600_v63  ;;  %v8731_v46 = vpop.f32.mrb[243].mxu1  ;;  %8796 = vmatprep.mubr.msk.bf16.mxu1 %vm8950_vm1, %v12788_v57 }
 0x71c   : > { %v6605_v55 = vpop.f32.mrb[244].mxu1 }
 0x71d   : > { %v12563_v51 = vadd.f32 %v12480_v21, %v6605_v55  ;;  %v8734_v35 = vpop.f32.mrb[245].mxu1 }
 0x71e   : > { %v6608_v1 = vpop.f32.mrb[246].mxu1  ;;  %8797 = vmatmul.mubr.msk.bf16.gmra.mrb[12].mxu1 %vm2397_vm3, %v6732_v32 }
 0x71f   : > { %v12567_v3 = vadd.f32 %v12482_v43, %v6608_v1  ;;  %v8735_v61 = vpop.f32.mrb[247].mxu1  ;;  %8800 = vmatprep.mubr.msk.bf16.mxu1 %vm8950_vm1, %v12788_v57 }
 0x724   : > { %v6613_v49 = vpop.f32.mrb[248].mxu1 }
 0x725   : > { %v12572_v17 = vadd.f32 %v12484_v37, %v6613_v49  ;;  %v8738_v9 = vpop.f32.mrb[249].mxu1  ;;  %v12591_v37 = vld [vmem:[%s12687_s15] ss:$0 sm:$0xff] }
 0x726   : > { %v6616_v56 = vpop.f32.mrb[250].mxu1  ;;  %8801 = vmatmul.mubr.msk.bf16.gmra.mrb[16].mxu1 %vm2397_vm3, %v6733_v39 }
 0x727   : > { %v12576_v21 = vadd.f32 %v12486_v34, %v6616_v56  ;;  %v8739_v2 = vpop.f32.mrb[251].mxu1  ;;  %8804 = vmatprep.mubr.msk.bf16.mxu1 %vm8950_vm1, %v12788_v57 }
 0x72e   : > { %8805 = vmatmul.mubr.msk.bf16.gmra.mrb[20].mxu1 %vm2397_vm3, %v6734_v19 }
 0x72f   : > { %8808 = vmatprep.mubr.msk.bf16.mxu1 %vm8950_vm1, %v12788_v57 }
 0x736   : > { %8809 = vmatmul.mubr.msk.bf16.gmra.mrb[24].mxu1 %vm2397_vm3, %v6735_v7 }
 0x737   : > { %8812 = vmatprep.mubr.msk.bf16.mxu1 %vm8950_vm1, %v12788_v57  ;;  %vm6920_vm1 = vcmask 64512  }
 0x73e   : > { %8813 = vmatmul.mubr.msk.bf16.gmra.mrb[28].mxu1 %vm2397_vm3, %v6736_v5  ;;  %vm6938_vm3 = vcmask 63488  }
 0x7d1   : > { %v6806_v43 = vpop.f32.mrb[252].mxu1 }
 0x7d2   : > { %v6877_v34 = vadd.f32 %v6806_v43, %v12488_v53  ;;  %v8782_v33 = vpop.f32.mrb[253].mxu1 }
 0x7d3   : > { %v6809_v57 = vpop.f32.mrb[254].mxu1 }
 0x7d4   : > { %v6902_v25 = vadd.f32 %v12591_v37, %v6877_v34  ;;  %v6878_v4 = vadd.f32 %v6809_v57, %v12490_v15  ;;  %v8783_v10 = vpop.f32.mrb[255].mxu1 }
 0x7d6   : > { %6921 = vst.msk [vmem:[%s12597_s19] sm:$0xff] %vm6920_vm1, %v6902_v25  ;;  %v6903_v53 = vadd.f32 %v12591_v37, %v6878_v4 }
 0x7d8   : > { %6922 = vst.msk [vmem:[%s12597_s19 + $0x8] sm:$0xff] %vm6920_vm1, %v6903_v53 }
 0x7d9   : > { %v6814_v32 = vpop.f32.mrb[0].mxu1 }
 0x7da   : > { %v6879_v13 = vadd.f32 %v6814_v32, %v12492_v47  ;;  %v8786_v29 = vpop.f32.mrb[1].mxu1 }
 0x7db   : > { %v6817_v28 = vpop.f32.mrb[2].mxu1 }
 0x7dc   : > { %v6904_v31 = vadd.f32 %v12591_v37, %v6879_v13  ;;  %v6880_v54 = vadd.f32 %v6817_v28, %v12497_v41  ;;  %v8787_v11 = vpop.f32.mrb[3].mxu1 }
 0x7de   : > { %6923 = vst.msk [vmem:[%s12597_s19 + $0x10] sm:$0xff] %vm6920_vm1, %v6904_v31  ;;  %v6905_v15 = vadd.f32 %v12591_v37, %v6880_v54 }
 0x7e0   : > { %6924 = vst.msk [vmem:[%s12597_s19 + $0x18] sm:$0xff] %vm6920_vm1, %v6905_v15 }
 0x7e1   : > { %v6822_v8 = vpop.f32.mrb[4].mxu1 }
 0x7e2   : > { %v6881_v39 = vadd.f32 %v6822_v8, %v12503_v48  ;;  %v8790_v47 = vpop.f32.mrb[5].mxu1 }
 0x7e3   : > { %v6825_v24 = vpop.f32.mrb[6].mxu1 }
 0x7e4   : > { %v6906_v38 = vadd.f32 %v12591_v37, %v6881_v39  ;;  %v6882_v30 = vadd.f32 %v6825_v24, %v12508_v12  ;;  %v8791_v26 = vpop.f32.mrb[7].mxu1 }
 0x7e6   : > { %6925 = vst.msk [vmem:[%s12597_s19 + $0x20] sm:$0xff] %vm6920_vm1, %v6906_v38  ;;  %v6907_v41 = vadd.f32 %v12591_v37, %v6882_v30 }
 0x7e8   : > { %6926 = vst.msk [vmem:[%s12597_s19 + $0x28] sm:$0xff] %vm6920_vm1, %v6907_v41 }
 0x7e9   : > { %v6830_v27 = vpop.f32.mrb[8].mxu1 }
 0x7ea   : > { %v6883_v19 = vadd.f32 %v6830_v27, %v12522_v60  ;;  %v8794_v48 = vpop.f32.mrb[9].mxu1 }
 0x7eb   : > { %v6833_v42 = vpop.f32.mrb[10].mxu1 }
 0x7ec   : > { %v6908_v7 = vadd.f32 %v12591_v37, %v6883_v19  ;;  %v6884_v59 = vadd.f32 %v6833_v42, %v12527_v40  ;;  %v8795_v5 = vpop.f32.mrb[11].mxu1 }
 0x7ee   : > { %6927 = vst.msk [vmem:[%s12597_s19 + $0x30] sm:$0xff] %vm6920_vm1, %v6908_v7  ;;  %v6909_v12 = vadd.f32 %v12591_v37, %v6884_v59 }
 0x7f0   : > { %6928 = vst.msk [vmem:[%s12597_s19 + $0x38] sm:$0xff] %vm6920_vm1, %v6909_v12 }
 0x7f1   : > { %v6838_v18 = vpop.f32.mrb[12].mxu1 }
 0x7f2   : > { %v6885_v50 = vadd.f32 %v6838_v18, %v12536_v23  ;;  %v8798_v60 = vpop.f32.mrb[13].mxu1 }
 0x7f3   : > { %v6841_v16 = vpop.f32.mrb[14].mxu1 }
 0x7f4   : > { %v6910_v36 = vadd.f32 %v12591_v37, %v6885_v50  ;;  %v6886_v44 = vadd.f32 %v6841_v16, %v12540_v62  ;;  %v8799_v45 = vpop.f32.mrb[15].mxu1 }
 0x7f6   : > { %6929 = vst.msk [vmem:[%s12597_s19 + $0x40] sm:$0xff] %vm6920_vm1, %v6910_v36  ;;  %v6911_v40 = vadd.f32 %v12591_v37, %v6886_v44 }
 0x7f8   : > { %6930 = vst.msk [vmem:[%s12597_s19 + $0x48] sm:$0xff] %vm6920_vm1, %v6911_v40 }
 0x7f9   : > { %v6846_v58 = vpop.f32.mrb[16].mxu1 }
 0x7fa   : > { %v6887_v52 = vadd.f32 %v6846_v58, %v12545_v22  ;;  %v8802_v23 = vpop.f32.mrb[17].mxu1 }
 0x7fb   : > { %v6849_v6 = vpop.f32.mrb[18].mxu1 }
 0x7fc   : > { %v6912_v63 = vadd.f32 %v12591_v37, %v6887_v52  ;;  %v6888_v46 = vadd.f32 %v6849_v6, %v12549_v20  ;;  %v8803_v55 = vpop.f32.mrb[19].mxu1 }
 0x7fe   : > { %6931 = vst.msk [vmem:[%s12597_s19 + $0x50] sm:$0xff] %vm6920_vm1, %v6912_v63  ;;  %v6913_v62 = vadd.f32 %v12591_v37, %v6888_v46 }
 0x800   : > { %6932 = vst.msk [vmem:[%s12597_s19 + $0x58] sm:$0xff] %vm6920_vm1, %v6913_v62 }
 0x801   : > { %v6854_v35 = vpop.f32.mrb[20].mxu1 }
 0x802   : > { %v6889_v1 = vadd.f32 %v6854_v35, %v12554_v14  ;;  %v8806_v22 = vpop.f32.mrb[21].mxu1 }
 0x803   : > { %v6857_v61 = vpop.f32.mrb[22].mxu1 }
 0x804   : > { %v6914_v49 = vadd.f32 %v12591_v37, %v6889_v1  ;;  %v6890_v9 = vadd.f32 %v6857_v61, %v12558_v0  ;;  %v8807_v56 = vpop.f32.mrb[23].mxu1 }
 0x806   : > { %6933 = vst.msk [vmem:[%s12597_s19 + $0x60] sm:$0xff] %vm6920_vm1, %v6914_v49  ;;  %v6915_v20 = vadd.f32 %v12591_v37, %v6890_v9 }
 0x808   : > { %6934 = vst.msk [vmem:[%s12597_s19 + $0x68] sm:$0xff] %vm6920_vm1, %v6915_v20 }
 0x809   : > { %v6862_v2 = vpop.f32.mrb[24].mxu1 }
 0x80a   : > { %v6891_v43 = vadd.f32 %v6862_v2, %v12563_v51  ;;  %v8810_v34 = vpop.f32.mrb[25].mxu1 }
 0x80b   : > { %v6865_v14 = vpop.f32.mrb[26].mxu1 }
 0x80c   : > { %v6916_v33 = vadd.f32 %v12591_v37, %v6891_v43  ;;  %v6892_v57 = vadd.f32 %v6865_v14, %v12567_v3  ;;  %v8811_v25 = vpop.f32.mrb[27].mxu1 }
 0x80e   : > { %6935 = vst.msk [vmem:[%s12597_s19 + $0x70] sm:$0xff] %vm6920_vm1, %v6916_v33  ;;  %v6917_v0 = vadd.f32 %v12591_v37, %v6892_v57 }
 0x810   : > { %6936 = vst.msk [vmem:[%s12597_s19 + $0x78] sm:$0xff] %vm6920_vm1, %v6917_v0 }
 0x811   : > { %v6870_v4 = vpop.f32.mrb[28].mxu1 }
 0x812   : > { %v6893_v10 = vadd.f32 %v6870_v4, %v12572_v17  ;;  %v8814_v53 = vpop.f32.mrb[29].mxu1 }
 0x813   : > { %v6873_v51 = vpop.f32.mrb[30].mxu1 }
 0x814   : > { %v6918_v32 = vadd.f32 %v12591_v37, %v6893_v10  ;;  %v6894_v13 = vadd.f32 %v6873_v51, %v12576_v21  ;;  %v8815_v29 = vpop.f32.mrb[31].mxu1 }
 0x816   : > { %6937 = vst.msk [vmem:[%s12597_s19 + $0x80] sm:$0xff] %vm6920_vm1, %v6918_v32  ;;  %v6919_v3 = vadd.f32 %v12591_v37, %v6894_v13 }
 0x818   : > { %6939 = vst.msk [vmem:[%s12597_s19 + $0x88] sm:$0x7f] %vm6938_vm3, %v6919_v3 }
 0x819 PF: > { %s26_s21 = sadd.s32 1, %s8947_s21  }
 0x81a   : > { %p23_p4 = scmp.ge.s32.totalorder %s26_s21, 4  }
 0x81c   :  { %25 = sbr.rel (!%p23_p4) target bundleno = 2 (0x2), region = 114 }

</bundles_post_ra>
